<compile_context>
chip_gen: v6e
topology: v6e:2x2x1
jax: 0.10.0
libtpu: 0.0.40
codegen_flags: <defaults>
</compile_context>

<pallas_src>
import functools

import jax
import jax.numpy as jnp
from jax import lax
from jax.experimental import pallas as pl
from jax.experimental.pallas import tpu as pltpu

_EPS = 1e-5             # PyTorch BatchNorm2d default eps
_LANE = 128
_MAX_TILE_ROWS = 1024   # measured: 512-1024-row tiles reach ~85% of HBM roofline
_VMEM_BUDGET = 24 << 20  # conservative per-step working-set target (v7x-safe)


def _rup(x, m):
    return (x + m - 1) // m * m


# ----------------------------------------------------------------------------
# Kernels.  Each grid step processes TR = images_per_tile * H * W rows with
# channels on the lane axis and emits per-tile [sum; sumsq] BN partials.
# ----------------------------------------------------------------------------
def _stats(t):
    """Per-lane [sum ; sum of squares] over rows -> (2, C); single-pass BN stats."""
    return jnp.concatenate([jnp.sum(t, axis=0, keepdims=True),
                            jnp.sum(t * t, axis=0, keepdims=True)], axis=0)


def _conv1_kernel(x_ref, w1_ref, b1_ref, x0_ref, st_ref):
    # 1x1 conv as an MXU matmul (bf16 inputs, f32 accumulation) + BN1 partials.
    acc = jnp.dot(x_ref[...], w1_ref[...],
                  preferred_element_type=jnp.float32) + b1_ref[...]
    st_ref[0] = _stats(acc)                    # stats from the f32 accumulator
    x0_ref[...] = acc.astype(x0_ref.dtype)     # lane-dense bf16 store


def _deconv_kernel(W, R, x0_ref, sc1_ref, sh1_ref, w4_ref, b2_ref,
                   d4_ref, st_ref):
    TR, CMs = x0_ref.shape
    # BN1 (pre-folded per-channel scale/shift) + ReLU in f32.
    a32 = jnp.maximum(x0_ref[...].astype(jnp.float32) * sc1_ref[...]
                      + sh1_ref[...], 0.0)

    # (TR, 1) row-position masks.  Tiles are image-aligned, so iota % R is the
    # position of each row inside its image: O(TR) integer work, broadcast by
    # the jnp.where below (replaces the old O(TR*C) full-tile iota).
    rows = lax.broadcasted_iota(jnp.int32, (TR, 1), 0) % R
    keep_w = (rows % W) < (W - 1)          # column j != W-1
    keep_h = rows < (R - W)                # row    i != H-1

    # Tile-local shifted copies (rows r -> r+1 / r+W / r+W+1), zeroed at image
    # boundaries.  Cross-image reads inside a multi-image tile are always
    # masked (the only crossing rows have i==H-1 or j==W-1).
    zero = jnp.zeros((_rup(W + 1, 8), CMs), jnp.float32)
    ext = jnp.concatenate([a32, zero], axis=0)
    xw = jnp.where(keep_w, ext[1:1 + TR, :], 0.0)                    # X[i,   j+1]
    xh = jnp.where(keep_h, ext[W:W + TR, :], 0.0)                    # X[i+1, j  ]
    xhw = jnp.where(keep_w & keep_h, ext[W + 1:W + 1 + TR, :], 0.0)  # X[i+1, j+1]

    # ConvTranspose2d(k=3, s=2, p=1, op=1) as 4 accumulating MXU matmuls (one
    # per neighbour tap).  The 4 sub-pixel output phases [y00|y01|y10|y11] are
    # packed along the lane axis of the result (lane-dense, 128-multiple).
    acc = jnp.dot(a32.astype(jnp.bfloat16), w4_ref[0],
                  preferred_element_type=jnp.float32)
    acc = acc + jnp.dot(xw.astype(jnp.bfloat16), w4_ref[1],
                        preferred_element_type=jnp.float32)
    acc = acc + jnp.dot(xh.astype(jnp.bfloat16), w4_ref[2],
                        preferred_element_type=jnp.float32)
    acc = acc + jnp.dot(xhw.astype(jnp.bfloat16), w4_ref[3],
                        preferred_element_type=jnp.float32)
    acc = acc + b2_ref[...]
    st_ref[0] = _stats(acc)
    d4_ref[...] = acc.astype(d4_ref.dtype)


def _conv3_kernel(d4_ref, sc2_ref, sh2_ref, w3_ref, b3_ref, y3_ref, st_ref):
    # BN2 + ReLU (f32), then 1x1 conv per phase via a block-diagonal bf16 matmul.
    a = jnp.maximum(d4_ref[...].astype(jnp.float32) * sc2_ref[...]
                    + sh2_ref[...], 0.0)
    acc = jnp.dot(a.astype(jnp.bfloat16), w3_ref[...],
                  preferred_element_type=jnp.float32) + b3_ref[...]
    st_ref[0] = _stats(acc)
    y3_ref[...] = acc.astype(y3_ref.dtype)


# ----------------------------------------------------------------------------
# Wrapper glue: parameter packing, BN statistics folding, layout plumbing.
# ----------------------------------------------------------------------------
def _fold_bn(st_partials, gamma, beta, count, phases):
    """Fold per-tile [sum; sumsq] partials into per-lane BN scale/shift.

    O(C) bookkeeping between the gridded kernels; per-element normalisation
    runs inside the kernels.  (Single-pass variance in f32 is adequate at the
    O(1) activation scale here; switch to Welford merging for huge counts.)
    """
    s = jnp.sum(st_partials, axis=0)                  # (2, width)
    cp = s.shape[1] // phases
    if phases > 1:                                    # combine the 4 sub-pixel phases
        s = s.reshape(2, phases, cp).sum(axis=1)
    mu = s[0] / count
    var = jnp.maximum(s[1] / count - mu * mu, 0.0)
    g = jnp.pad(gamma.reshape(-1), (0, cp - gamma.size))
    b = jnp.pad(beta.reshape(-1), (0, cp - beta.size))
    scale = g * lax.rsqrt(var + _EPS)
    shift = b - mu * scale
    if phases > 1:
        scale = jnp.tile(scale, phases)
        shift = jnp.tile(shift, phases)
    return (scale[None, :].astype(jnp.float32),
            shift[None, :].astype(jnp.float32))


def _pack_params(p, Cin, Cmid, Cout):
    """Pad / pack weights so every matmul operand and HBM store is 128-lane dense."""
    CMs = _rup(Cmid, _LANE)            # conv1-out / deconv-in stored channel width
    CMp = _rup(Cmid, _LANE // 4)       # per-phase width inside the packed deconv out
    COp = _rup(Cout, _LANE // 4)       # per-phase width inside the packed conv3 out
    CM4, CO4 = 4 * CMp, 4 * COp        # both multiples of 128

    w1p = jnp.pad(p['w1'], ((0, 0), (0, CMs - Cmid))).astype(jnp.bfloat16)
    b1p = jnp.pad(p['b1'], ((0, 0), (0, CMs - Cmid))).astype(jnp.float32)

    # ConvTranspose2d(3, s=2, p=1, op=1): for output phase (a,b) of pixel (i,j)
    #   y00 = x(i,j)W11
    #   y01 = x(i,j)W12 + x(i,j+1)W10
    #   y10 = x(i,j)W21 + x(i+1,j)W01
    #   y11 = x(i,j)W22 + x(i,j+1)W20 + x(i+1,j)W02 + x(i+1,j+1)W00
    # One (CMs, CM4) weight per tap; phases [y00|y01|y10|y11] along the lanes.
    w2 = p['w2']                       # (3, 3, Cmid, Cmid) indexed [kh, kw, ci, co]
    taps = {(0, 0): (1, 1), (0, 1): (1, 2), (0, 2): (2, 1), (0, 3): (2, 2),
            (1, 1): (1, 0), (1, 3): (2, 0),
            (2, 2): (0, 1), (2, 3): (0, 2),
            (3, 3): (0, 0)}
    w4 = jnp.zeros((4, CMs, CM4), jnp.float32)
    for (tap, cb), (kh, kw) in taps.items():
        w4 = w4.at[tap, :Cmid, cb * CMp:cb * CMp + Cmid].set(w2[kh, kw])
    w4 = w4.astype(jnp.bfloat16)
    b2p = jnp.tile(jnp.pad(p['b2'], ((0, 0), (0, CMp - Cmid))),
                   (1, 4)).astype(jnp.float32)

    # conv3 (1x1) applied per phase: block-diagonal weight -> lane-packed output.
    w3p = jnp.zeros((CM4, CO4), jnp.float32)
    for ph in range(4):
        w3p = w3p.at[ph * CMp:ph * CMp + Cmid,
                     ph * COp:ph * COp + Cout].set(p['w3'])
    w3p = w3p.astype(jnp.bfloat16)
    b3p = jnp.tile(jnp.pad(p['b3'], ((0, 0), (0, COp - Cout))),
                   (1, 4)).astype(jnp.float32)

    return dict(CMs=CMs, CMp=CMp, COp=COp, CM4=CM4, CO4=CO4,
                w1p=w1p, b1p=b1p, w4=w4, b2p=b2p, w3p=w3p, b3p=b3p)


def _images_per_tile(N, R, CMs, CM4, CO4):
    """How many whole images per grid step: biggest row tile (<=1024 rows) that
    fits a conservative per-step VMEM working-set budget (v7x/v5e safe)."""
    per_row = max(
        # deconv pass: bf16 in/out (double-buffered) + f32 temps + bf16 taps + f32 acc
        2 * 2 * CMs + 2 * 2 * CM4 + 5 * 4 * CMs + 4 * 2 * CMs + 4 * CM4,
        # conv3 pass: bf16 in/out (double-buffered) + f32 BN temp + bf16 in + f32 acc
        2 * 2 * CM4 + 2 * 2 * CO4 + 4 * CM4 + 2 * CM4 + 4 * CO4,
    )
    max_rows = min(_MAX_TILE_ROWS, max(1, _VMEM_BUDGET // per_row))
    ipt = 1
    for d in range(1, N + 1):
        if N % d == 0 and d * R <= max_rows:
            ipt = d
    # TODO(synk): when R = H*W alone exceeds the row budget (e.g. 112x112
    # decoder stages on v7x), split rows *within* an image with a (W+1)-row halo.
    return ipt


def decoder_block(x_nchw, params):
    """Forward of LinkNet DecoderBlock (training-mode BatchNorm). NCHW in/out."""
    N, Cin, H, W = x_nchw.shape
    Cmid = params['w1'].shape[1]
    Cout = params['w3'].shape[1]
    R = H * W
    M = N * R
    assert R % 8 == 0, "wrapper assumes H*W is a multiple of 8"

    pk = _pack_params(params, Cin, Cmid, Cout)
    CMs, COp, CM4, CO4 = pk['CMs'], pk['COp'], pk['CM4'], pk['CO4']

    ipt = _images_per_tile(N, R, CMs, CM4, CO4)
    TR = ipt * R                         # rows per grid step (whole images only)
    grid = (M // TR,)

    cparams = pltpu.CompilerParams(
        dimension_semantics=("parallel",),
        vmem_limit_bytes=48 * 1024 * 1024)   # above the 16/32 MiB scoped defaults

    # Layout glue: NCHW -> (N*H*W, Cin) rows, channels on lanes, bf16 MXU input.
    # TODO(synk): if this block feeds another lane-packed decoder stage, keep
    # activations NHWC / lane-packed end-to-end and drop this transpose and the
    # final NHWC->NCHW transpose.
    x = jnp.transpose(x_nchw, (0, 2, 3, 1)).reshape(M, Cin).astype(jnp.bfloat16)

    def tiled(width):                    # per-step activation block, (TR, width)
        return pl.BlockSpec((TR, width), lambda t: (t, 0))

    def whole(shape):                    # constant weights / folded BN vectors
        # (pl.Buffered(1) would drop their second pipeline buffer; they are
        # small here, so left at the default for portability.)
        return pl.BlockSpec(shape, lambda t: tuple(0 for _ in shape))

    def stat_spec(width):
        return pl.BlockSpec((1, 2, width), lambda t: (t, 0, 0))

    def stat_shape(width):
        return jax.ShapeDtypeStruct((grid[0], 2, width), jnp.float32)

    # ---- pass 1: conv1 (1x1) + BN1 batch statistics -------------------------
    x0, st1 = pl.pallas_call(
        _conv1_kernel,
        grid=grid,
        in_specs=[tiled(Cin), whole((Cin, CMs)), whole((1, CMs))],
        out_specs=[tiled(CMs), stat_spec(CMs)],
        out_shape=[jax.ShapeDtypeStruct((M, CMs), jnp.bfloat16), stat_shape(CMs)],
        compiler_params=cparams,
        cost_estimate=pl.CostEstimate(
            flops=2 * M * Cin * CMs, transcendentals=0,
            bytes_accessed=M * Cin * 2 + Cin * CMs * 2 + M * CMs * 2),
    )(x, pk['w1p'], pk['b1p'])
    sc1, sh1 = _fold_bn(st1, params['g1'], params['be1'], M, phases=1)

    # ---- pass 2: BN1+ReLU, deconv2 as 4 accumulating tap matmuls, BN2 stats --
    d4, st2 = pl.pallas_call(
        functools.partial(_deconv_kernel, W, R),
        grid=grid,
        in_specs=[tiled(CMs), whole((1, CMs)), whole((1, CMs)),
                  whole((4, CMs, CM4)), whole((1, CM4))],
        out_specs=[tiled(CM4), stat_spec(CM4)],
        out_shape=[jax.ShapeDtypeStruct((M, CM4), jnp.bfloat16), stat_shape(CM4)],
        compiler_params=cparams,
        cost_estimate=pl.CostEstimate(
            flops=8 * M * CMs * CM4, transcendentals=0,
            bytes_accessed=M * CMs * 2 + 4 * CMs * CM4 * 2 + M * CM4 * 2),
    )(x0, sc1, sh1, pk['w4'], pk['b2p'])
    sc2, sh2 = _fold_bn(st2, params['g2'], params['be2'], 4 * M, phases=4)

    # ---- pass 3: BN2+ReLU, conv3 (1x1 per phase, block-diagonal), BN3 stats --
    y3, st3 = pl.pallas_call(
        _conv3_kernel,
        grid=grid,
        in_specs=[tiled(CM4), whole((1, CM4)), whole((1, CM4)),
                  whole((CM4, CO4)), whole((1, CO4))],
        out_specs=[tiled(CO4), stat_spec(CO4)],
        out_shape=[jax.ShapeDtypeStruct((M, CO4), jnp.bfloat16), stat_shape(CO4)],
        compiler_params=cparams,
        cost_estimate=pl.CostEstimate(
            flops=2 * M * CM4 * CO4, transcendentals=0,
            bytes_accessed=M * CM4 * 2 + CM4 * CO4 * 2 + M * CO4 * 2),
    )(d4, sc2, sh2, pk['w3p'], pk['b3p'])
    sc3, sh3 = _fold_bn(st3, params['g3'], params['be3'], 4 * M, phases=4)

    # ---- epilogue: BN3 + ReLU, fused by XLA into the sub-pixel unpack --------
    # (Saves one full read+write of the M x CO4 tensor vs a 4th pallas_call.)
    o4 = jnp.maximum(y3.astype(jnp.float32) * sc3 + sh3, 0.0)      # (M, CO4)
    o = o4.reshape(N, H, W, 4, COp)[..., :Cout]                    # (n, i, j, ab, c)
    o = o.reshape(N, H, W, 2, 2, Cout)                             # (n, i, j, a, b, c)
    o = jnp.transpose(o, (0, 1, 3, 2, 4, 5)).reshape(N, 2 * H, 2 * W, Cout)
    return jnp.transpose(o, (0, 3, 1, 2))                          # NCHW out


# ----------------------------------------------------------------------------
# Deterministic parameter init (synthetic; shapes from DecoderBlock.__init__).
# ----------------------------------------------------------------------------
def init_params(key, in_channels, n_filters):
    cmid = in_channels // 4
    ks = jax.random.split(key, 12)

    def nrm(k, shape, scale):
        return (scale * jax.random.normal(k, shape)).astype(jnp.float32)

    return dict(
        w1=nrm(ks[0], (in_channels, cmid), 0.3),      # conv1 1x1: (Cin, Cmid)
        b1=nrm(ks[1], (1, cmid), 0.1),
        g1=1.0 + nrm(ks[2], (1, cmid), 0.1),
        be1=nrm(ks[3], (1, cmid), 0.1),
        w2=nrm(ks[4], (3, 3, cmid, cmid), 0.3),       # deconv: [kh, kw, c_in, c_out]
        b2=nrm(ks[5], (1, cmid), 0.1),
        g2=1.0 + nrm(ks[6], (1, cmid), 0.1),
        be2=nrm(ks[7], (1, cmid), 0.1),
        w3=nrm(ks[8], (cmid, n_filters), 0.3),        # conv3 1x1: (Cmid, Cout)
        b3=nrm(ks[9], (1, n_filters), 0.1),
        g3=1.0 + nrm(ks[10], (1, n_filters), 0.1),
        be3=nrm(ks[11], (1, n_filters), 0.1),
    )


# ----------------------------------------------------------------------------
# Pure-JAX reference (matches PyTorch training-mode forward semantics).
# ----------------------------------------------------------------------------
def reference_forward(x_nchw, p):
    x = jnp.transpose(x_nchw, (0, 2, 3, 1)).astype(jnp.float32)

    def bn_relu(t, g, b):
        mu = t.mean(axis=(0, 1, 2), keepdims=True)
        var = ((t - mu) ** 2).mean(axis=(0, 1, 2), keepdims=True)
        return jnp.maximum((t - mu) * lax.rsqrt(var + _EPS) * g + b, 0.0)

    hp = lax.Precision.HIGHEST
    h = jnp.einsum('nhwc,cd->nhwd', x, p['w1'], precision=hp) + p['b1'][0]
    h = bn_relu(h, p['g1'][0], p['be1'][0])

    # ConvTranspose2d(3, stride=2, pad=1, output_pad=1) == dilated conv with
    # lhs_dilation=2, padding=(1,2), spatially-flipped kernel.
    k2 = p['w2'][::-1, ::-1, :, :]
    d = lax.conv_general_dilated(
        h, k2, window_strides=(1, 1), padding=((1, 2), (1, 2)),
        lhs_dilation=(2, 2), rhs_dilation=(1, 1),
        dimension_numbers=('NHWC', 'HWIO', 'NHWC'), precision=hp) + p['b2'][0]
    d = bn_relu(d, p['g2'][0], p['be2'][0])

    o = jnp.einsum('nhwc,cd->nhwd', d, p['w3'], precision=hp) + p['b3'][0]
    o = bn_relu(o, p['g3'][0], p['be3'][0])
    return jnp.transpose(o, (0, 3, 1, 2))


if __name__ == "__main__":
    IN_CHANNELS, N_FILTERS = 16, 8
    N, H, W = 8, 16, 16      # -> 2048 total rows, 1024-row tiles, grid=(2,)

    key = jax.random.PRNGKey(0)
    kx, kp = jax.random.split(key)
    x = jax.random.normal(kx, (N, IN_CHANNELS, H, W), dtype=jnp.float32)
    params = init_params(kp, IN_CHANNELS, N_FILTERS)

    fwd = jax.jit(decoder_block)
    out = jax.block_until_ready(fwd(x, params))
    assert out.shape == (N, N_FILTERS, 2 * H, 2 * W), out.shape

    ref = reference_forward(x, params)
    # bf16 MXU inputs + bf16 HBM intermediates (per perf guidance) vs an f32
    # HIGHEST-precision reference: check with a magnitude-normalized bound.
    # Structural bugs give O(1) relative errors; bf16 rounding stays <~1.5%.
    max_err = float(jnp.max(jnp.abs(out - ref)))
    ref_mag = float(jnp.max(jnp.abs(ref)))
    if not max_err <= 5e-2 * max(1.0, ref_mag):
        raise RuntimeError(
            f"Pallas kernel mismatch vs reference: max_err={max_err}, "
            f"ref_mag={ref_mag}")
    print("KERNEL_OK")
</pallas_src>

<mosaic_0001>
module attributes {stable_mosaic.version = 11 : i64} {
  func.func @_conv1_kernel(%arg0: i32, %arg1: memref<1024x16xbf16, #tpu.memory_space<vmem>>, %arg2: memref<16x128xbf16, #tpu.memory_space<vmem>>, %arg3: memref<1x128xf32, #tpu.memory_space<vmem>>, %arg4: memref<1024x128xbf16, #tpu.memory_space<vmem>>, %arg5: memref<1x2x128xf32, #tpu.memory_space<vmem>>) attributes {dimension_semantics = [#tpu.dimension_semantics<parallel>], iteration_bounds = array<i64: 2>, scalar_prefetch = 0 : i64, scratch_operands = 0 : i64, tpu.core_type = #tpu.core_type<tc>, window_params = [{transform_indices = @transform_0, window_bounds = array<i64: 1024, 16>}, {pipeline_mode = #tpu.pipeline_mode<synchronous>, transform_indices = @transform_1, window_bounds = array<i64: 16, 128>}, {pipeline_mode = #tpu.pipeline_mode<synchronous>, transform_indices = @transform_2, window_bounds = array<i64: 1, 128>}, {transform_indices = @transform_3, window_bounds = array<i64: 1024, 128>}, {transform_indices = @transform_4, window_bounds = array<i64: 1, 2, 128>}]} {
    %c0 = arith.constant 0 : index
    %c0_0 = arith.constant 0 : index
    %0 = vector.load %arg1[%c0, %c0_0] : memref<1024x16xbf16, #tpu.memory_space<vmem>>, vector<1024x16xbf16>
    %c0_1 = arith.constant 0 : index
    %c0_2 = arith.constant 0 : index
    %1 = vector.load %arg2[%c0_1, %c0_2] : memref<16x128xbf16, #tpu.memory_space<vmem>>, vector<16x128xbf16>
    %cst = arith.constant dense<0.000000e+00> : vector<1024x128xf32>
    %2 = tpu.matmul %0, %1, %cst {dimension_numbers = #tpu.dot_dimension_numbers<[1], [0], [0], [1], [0, 0, 1, 1], [], []>} : vector<1024x16xbf16>, vector<16x128xbf16>, vector<1024x128xf32> -> vector<1024x128xf32>
    %c0_3 = arith.constant 0 : index
    %c0_4 = arith.constant 0 : index
    %3 = vector.load %arg3[%c0_3, %c0_4] : memref<1x128xf32, #tpu.memory_space<vmem>>, vector<1x128xf32>
    %4 = vector.broadcast %3 : vector<1x128xf32> to vector<1024x128xf32>
    %5 = arith.addf %2, %4 : vector<1024x128xf32>
    %cst_5 = arith.constant dense<0.000000e+00> : vector<128xf32>
    %6 = vector.multi_reduction <add>, %5, %cst_5 [0] : vector<1024x128xf32> to vector<128xf32>
    %7 = vector.shape_cast %6 : vector<128xf32> to vector<1x128xf32>
    %8 = arith.mulf %5, %5 : vector<1024x128xf32>
    %cst_6 = arith.constant dense<0.000000e+00> : vector<128xf32>
    %9 = vector.multi_reduction <add>, %8, %cst_6 [0] : vector<1024x128xf32> to vector<128xf32>
    %10 = vector.shape_cast %9 : vector<128xf32> to vector<1x128xf32>
    %11 = tpu.concatenate %7, %10 in 0 : vector<1x128xf32>, vector<1x128xf32> -> vector<2x128xf32>
    %c0_7 = arith.constant 0 : index
    %c0_8 = arith.constant 0 : index
    %c0_9 = arith.constant 0 : index
    %12 = vector.load %arg5[%c0_7, %c0_8, %c0_9] : memref<1x2x128xf32, #tpu.memory_space<vmem>>, vector<1x2x128xf32>
    %13 = vector.shape_cast %12 : vector<1x2x128xf32> to vector<2x128xf32>
    %14 = vector.shape_cast %11 : vector<2x128xf32> to vector<1x2x128xf32>
    tpu.vector_store %arg5[%c0_7, %c0_8, %c0_9], %14 {strides = array<i32>} : memref<1x2x128xf32, #tpu.memory_space<vmem>>, vector<1x2x128xf32>,
    %15 = arith.truncf %5 : vector<1024x128xf32> to vector<1024x128xbf16>
    %c0_10 = arith.constant 0 : index
    %c0_11 = arith.constant 0 : index
    %16 = vector.load %arg4[%c0_10, %c0_11] : memref<1024x128xbf16, #tpu.memory_space<vmem>>, vector<1024x128xbf16>
    tpu.vector_store %arg4[%c0_10, %c0_11], %15 {strides = array<i32>} : memref<1024x128xbf16, #tpu.memory_space<vmem>>, vector<1024x128xbf16>,
    return
  }
  func.func @transform_0(%arg0: i32) -> (i32, i32) {
    %c0_i32 = arith.constant 0 : i32
    %c0_i32_0 = arith.constant 0 : i32
    return %arg0, %c0_i32 : i32, i32
  }
  func.func @transform_1(%arg0: i32) -> (i32, i32) {
    %c0_i32 = arith.constant 0 : i32
    %c0_i32_0 = arith.constant 0 : i32
    %c0_i32_1 = arith.constant 0 : i32
    return %c0_i32, %c0_i32_0 : i32, i32
  }
  func.func @transform_2(%arg0: i32) -> (i32, i32) {
    %c0_i32 = arith.constant 0 : i32
    %c0_i32_0 = arith.constant 0 : i32
    %c0_i32_1 = arith.constant 0 : i32
    return %c0_i32, %c0_i32_0 : i32, i32
  }
  func.func @transform_3(%arg0: i32) -> (i32, i32) {
    %c0_i32 = arith.constant 0 : i32
    %c0_i32_0 = arith.constant 0 : i32
    return %arg0, %c0_i32 : i32, i32
  }
  func.func @transform_4(%arg0: i32) -> (i32, i32, i32) {
    %c0_i32 = arith.constant 0 : i32
    %c0_i32_0 = arith.constant 0 : i32
    %c0_i32_1 = arith.constant 0 : i32
    return %arg0, %c0_i32, %c0_i32_0 : i32, i32, i32
  }
}

module attributes {stable_mosaic.version = 11 : i64} {
  func.func @_deconv_kernel(%arg0: i32, %arg1: memref<1024x128xbf16, #tpu.memory_space<vmem>>, %arg2: memref<1x128xf32, #tpu.memory_space<vmem>>, %arg3: memref<1x128xf32, #tpu.memory_space<vmem>>, %arg4: memref<4x128x128xbf16, #tpu.memory_space<vmem>>, %arg5: memref<1x128xf32, #tpu.memory_space<vmem>>, %arg6: memref<1024x128xbf16, #tpu.memory_space<vmem>>, %arg7: memref<1x2x128xf32, #tpu.memory_space<vmem>>) attributes {dimension_semantics = [#tpu.dimension_semantics<parallel>], iteration_bounds = array<i64: 2>, scalar_prefetch = 0 : i64, scratch_operands = 0 : i64, tpu.core_type = #tpu.core_type<tc>, window_params = [{transform_indices = @transform_0, window_bounds = array<i64: 1024, 128>}, {pipeline_mode = #tpu.pipeline_mode<synchronous>, transform_indices = @transform_1, window_bounds = array<i64: 1, 128>}, {pipeline_mode = #tpu.pipeline_mode<synchronous>, transform_indices = @transform_2, window_bounds = array<i64: 1, 128>}, {pipeline_mode = #tpu.pipeline_mode<synchronous>, transform_indices = @transform_3, window_bounds = array<i64: 4, 128, 128>}, {pipeline_mode = #tpu.pipeline_mode<synchronous>, transform_indices = @transform_4, window_bounds = array<i64: 1, 128>}, {transform_indices = @transform_5, window_bounds = array<i64: 1024, 128>}, {transform_indices = @transform_6, window_bounds = array<i64: 1, 2, 128>}]} {
    %c0 = arith.constant 0 : index
    %c0_0 = arith.constant 0 : index
    %0 = vector.load %arg1[%c0, %c0_0] : memref<1024x128xbf16, #tpu.memory_space<vmem>>, vector<1024x128xbf16>
    %1 = arith.extf %0 : vector<1024x128xbf16> to vector<1024x128xf32>
    %c0_1 = arith.constant 0 : index
    %c0_2 = arith.constant 0 : index
    %2 = vector.load %arg2[%c0_1, %c0_2] : memref<1x128xf32, #tpu.memory_space<vmem>>, vector<1x128xf32>
    %3 = vector.broadcast %2 : vector<1x128xf32> to vector<1024x128xf32>
    %4 = arith.mulf %1, %3 : vector<1024x128xf32>
    %c0_3 = arith.constant 0 : index
    %c0_4 = arith.constant 0 : index
    %5 = vector.load %arg3[%c0_3, %c0_4] : memref<1x128xf32, #tpu.memory_space<vmem>>, vector<1x128xf32>
    %6 = vector.broadcast %5 : vector<1x128xf32> to vector<1024x128xf32>
    %7 = arith.addf %4, %6 : vector<1024x128xf32>
    %cst = arith.constant 0.000000e+00 : f32
    %8 = vector.broadcast %cst : f32 to vector<1024x128xf32>
    %9 = arith.maximumf %7, %8 : vector<1024x128xf32>
    %10 = tpu.iota {dimensions = array<i32: 0>} : vector<1024x1xi32>
    %c256_i32 = arith.constant 256 : i32
    %c0_i32 = arith.constant 0 : i32
    %11 = arith.cmpi eq, %c256_i32, %c0_i32 : i32
    %c1_i32 = arith.constant 1 : i32
    %12 = arith.select %11, %c1_i32, %c256_i32 : i32
    %13 = vector.broadcast %12 : i32 to vector<1024x1xi32>
    %14 = arith.remsi %10, %13 : vector<1024x1xi32>
    %c0_i32_5 = arith.constant 0 : i32
    %15 = vector.broadcast %c0_i32_5 : i32 to vector<1024x1xi32>
    %16 = arith.cmpi ne, %14, %15 : vector<1024x1xi32>
    %c0_i32_6 = arith.constant 0 : i32
    %17 = vector.broadcast %c0_i32_6 : i32 to vector<1024x1xi32>
    %18 = arith.cmpi slt, %14, %17 : vector<1024x1xi32>
    %c0_i32_7 = arith.constant 0 : i32
    %19 = arith.cmpi slt, %12, %c0_i32_7 : i32
    %20 = vector.broadcast %19 : i1 to vector<1024x1xi1>
    %21 = vector.broadcast %20 : vector<1024x1xi1> to vector<1024x1xi1>
    %22 = arith.xori %18, %21 : vector<1024x1xi1>
    %23 = arith.andi %22, %16 : vector<1024x1xi1>
    %24 = vector.broadcast %12 : i32 to vector<1024x1xi32>
    %25 = arith.addi %14, %24 : vector<1024x1xi32>
    %26 = arith.select %23, %25, %14 : vector<1024x1xi1>, vector<1024x1xi32>
    %c16_i32 = arith.constant 16 : i32
    %c0_i32_8 = arith.constant 0 : i32
    %27 = arith.cmpi eq, %c16_i32, %c0_i32_8 : i32
    %c1_i32_9 = arith.constant 1 : i32
    %28 = arith.select %27, %c1_i32_9, %c16_i32 : i32
    %29 = vector.broadcast %28 : i32 to vector<1024x1xi32>
    %30 = arith.remsi %26, %29 : vector<1024x1xi32>
    %c0_i32_10 = arith.constant 0 : i32
    %31 = vector.broadcast %c0_i32_10 : i32 to vector<1024x1xi32>
    %32 = arith.cmpi ne, %30, %31 : vector<1024x1xi32>
    %c0_i32_11 = arith.constant 0 : i32
    %33 = vector.broadcast %c0_i32_11 : i32 to vector<1024x1xi32>
    %34 = arith.cmpi slt, %30, %33 : vector<1024x1xi32>
    %c0_i32_12 = arith.constant 0 : i32
    %35 = arith.cmpi slt, %28, %c0_i32_12 : i32
    %36 = vector.broadcast %35 : i1 to vector<1024x1xi1>
    %37 = vector.broadcast %36 : vector<1024x1xi1> to vector<1024x1xi1>
    %38 = arith.xori %34, %37 : vector<1024x1xi1>
    %39 = arith.andi %38, %32 : vector<1024x1xi1>
    %40 = vector.broadcast %28 : i32 to vector<1024x1xi32>
    %41 = arith.addi %30, %40 : vector<1024x1xi32>
    %42 = arith.select %39, %41, %30 : vector<1024x1xi1>, vector<1024x1xi32>
    %c15_i32 = arith.constant 15 : i32
    %43 = vector.broadcast %c15_i32 : i32 to vector<1024x1xi32>
    %44 = arith.cmpi slt, %42, %43 : vector<1024x1xi32>
    %c240_i32 = arith.constant 240 : i32
    %45 = vector.broadcast %c240_i32 : i32 to vector<1024x1xi32>
    %46 = arith.cmpi slt, %26, %45 : vector<1024x1xi32>
    %cst_13 = arith.constant 0.000000e+00 : f32
    %47 = vector.broadcast %cst_13 : f32 to vector<24x128xf32>
    %48 = tpu.concatenate %9, %47 in 0 : vector<1024x128xf32>, vector<24x128xf32> -> vector<1048x128xf32>
    %49 = vector.extract_strided_slice %48 {offsets = [1, 0], sizes = [1024, 128], strides = [1, 1]} : vector<1048x128xf32> to vector<1024x128xf32>
    %cst_14 = arith.constant 0.000000e+00 : f32
    %50 = vector.shape_cast %44 : vector<1024x1xi1> to vector<1024x1xi1>
    %51 = vector.broadcast %50 : vector<1024x1xi1> to vector<1024x128xi1>
    %52 = vector.broadcast %cst_14 : f32 to vector<1024x128xf32>
    %53 = arith.select %51, %49, %52 : vector<1024x128xi1>, vector<1024x128xf32>
    %54 = vector.extract_strided_slice %48 {offsets = [16, 0], sizes = [1024, 128], strides = [1, 1]} : vector<1048x128xf32> to vector<1024x128xf32>
    %cst_15 = arith.constant 0.000000e+00 : f32
    %55 = vector.shape_cast %46 : vector<1024x1xi1> to vector<1024x1xi1>
    %56 = vector.broadcast %55 : vector<1024x1xi1> to vector<1024x128xi1>
    %57 = vector.broadcast %cst_15 : f32 to vector<1024x128xf32>
    %58 = arith.select %56, %54, %57 : vector<1024x128xi1>, vector<1024x128xf32>
    %59 = arith.andi %44, %46 : vector<1024x1xi1>
    %60 = vector.extract_strided_slice %48 {offsets = [17, 0], sizes = [1024, 128], strides = [1, 1]} : vector<1048x128xf32> to vector<1024x128xf32>
    %cst_16 = arith.constant 0.000000e+00 : f32
    %61 = vector.shape_cast %59 : vector<1024x1xi1> to vector<1024x1xi1>
    %62 = vector.broadcast %61 : vector<1024x1xi1> to vector<1024x128xi1>
    %63 = vector.broadcast %cst_16 : f32 to vector<1024x128xf32>
    %64 = arith.select %62, %60, %63 : vector<1024x128xi1>, vector<1024x128xf32>
    %65 = arith.truncf %9 : vector<1024x128xf32> to vector<1024x128xbf16>
    %c0_17 = arith.constant 0 : index
    %c0_18 = arith.constant 0 : index
    %c0_19 = arith.constant 0 : index
    %66 = vector.load %arg4[%c0_17, %c0_18, %c0_19] : memref<4x128x128xbf16, #tpu.memory_space<vmem>>, vector<1x128x128xbf16>
    %67 = vector.shape_cast %66 : vector<1x128x128xbf16> to vector<128x128xbf16>
    %cst_20 = arith.constant dense<0.000000e+00> : vector<1024x128xf32>
    %68 = tpu.matmul %65, %67, %cst_20 {dimension_numbers = #tpu.dot_dimension_numbers<[1], [0], [0], [1], [0, 0, 1, 1], [], []>} : vector<1024x128xbf16>, vector<128x128xbf16>, vector<1024x128xf32> -> vector<1024x128xf32>
    %69 = arith.truncf %53 : vector<1024x128xf32> to vector<1024x128xbf16>
    %c1 = arith.constant 1 : index
    %c0_21 = arith.constant 0 : index
    %c0_22 = arith.constant 0 : index
    %70 = vector.load %arg4[%c1, %c0_21, %c0_22] : memref<4x128x128xbf16, #tpu.memory_space<vmem>>, vector<1x128x128xbf16>
    %71 = vector.shape_cast %70 : vector<1x128x128xbf16> to vector<128x128xbf16>
    %cst_23 = arith.constant dense<0.000000e+00> : vector<1024x128xf32>
    %72 = tpu.matmul %69, %71, %cst_23 {dimension_numbers = #tpu.dot_dimension_numbers<[1], [0], [0], [1], [0, 0, 1, 1], [], []>} : vector<1024x128xbf16>, vector<128x128xbf16>, vector<1024x128xf32> -> vector<1024x128xf32>
    %73 = arith.addf %68, %72 : vector<1024x128xf32>
    %74 = arith.truncf %58 : vector<1024x128xf32> to vector<1024x128xbf16>
    %c2 = arith.constant 2 : index
    %c0_24 = arith.constant 0 : index
    %c0_25 = arith.constant 0 : index
    %75 = vector.load %arg4[%c2, %c0_24, %c0_25] : memref<4x128x128xbf16, #tpu.memory_space<vmem>>, vector<1x128x128xbf16>
    %76 = vector.shape_cast %75 : vector<1x128x128xbf16> to vector<128x128xbf16>
    %cst_26 = arith.constant dense<0.000000e+00> : vector<1024x128xf32>
    %77 = tpu.matmul %74, %76, %cst_26 {dimension_numbers = #tpu.dot_dimension_numbers<[1], [0], [0], [1], [0, 0, 1, 1], [], []>} : vector<1024x128xbf16>, vector<128x128xbf16>, vector<1024x128xf32> -> vector<1024x128xf32>
    %78 = arith.addf %73, %77 : vector<1024x128xf32>
    %79 = arith.truncf %64 : vector<1024x128xf32> to vector<1024x128xbf16>
    %c3 = arith.constant 3 : index
    %c0_27 = arith.constant 0 : index
    %c0_28 = arith.constant 0 : index
    %80 = vector.load %arg4[%c3, %c0_27, %c0_28] : memref<4x128x128xbf16, #tpu.memory_space<vmem>>, vector<1x128x128xbf16>
    %81 = vector.shape_cast %80 : vector<1x128x128xbf16> to vector<128x128xbf16>
    %cst_29 = arith.constant dense<0.000000e+00> : vector<1024x128xf32>
    %82 = tpu.matmul %79, %81, %cst_29 {dimension_numbers = #tpu.dot_dimension_numbers<[1], [0], [0], [1], [0, 0, 1, 1], [], []>} : vector<1024x128xbf16>, vector<128x128xbf16>, vector<1024x128xf32> -> vector<1024x128xf32>
    %83 = arith.addf %78, %82 : vector<1024x128xf32>
    %c0_30 = arith.constant 0 : index
    %c0_31 = arith.constant 0 : index
    %84 = vector.load %arg5[%c0_30, %c0_31] : memref<1x128xf32, #tpu.memory_space<vmem>>, vector<1x128xf32>
    %85 = vector.broadcast %84 : vector<1x128xf32> to vector<1024x128xf32>
    %86 = arith.addf %83, %85 : vector<1024x128xf32>
    %cst_32 = arith.constant dense<0.000000e+00> : vector<128xf32>
    %87 = vector.multi_reduction <add>, %86, %cst_32 [0] : vector<1024x128xf32> to vector<128xf32>
    %88 = vector.shape_cast %87 : vector<128xf32> to vector<1x128xf32>
    %89 = arith.mulf %86, %86 : vector<1024x128xf32>
    %cst_33 = arith.constant dense<0.000000e+00> : vector<128xf32>
    %90 = vector.multi_reduction <add>, %89, %cst_33 [0] : vector<1024x128xf32> to vector<128xf32>
    %91 = vector.shape_cast %90 : vector<128xf32> to vector<1x128xf32>
    %92 = tpu.concatenate %88, %91 in 0 : vector<1x128xf32>, vector<1x128xf32> -> vector<2x128xf32>
    %c0_34 = arith.constant 0 : index
    %c0_35 = arith.constant 0 : index
    %c0_36 = arith.constant 0 : index
    %93 = vector.load %arg7[%c0_34, %c0_35, %c0_36] : memref<1x2x128xf32, #tpu.memory_space<vmem>>, vector<1x2x128xf32>
    %94 = vector.shape_cast %93 : vector<1x2x128xf32> to vector<2x128xf32>
    %95 = vector.shape_cast %92 : vector<2x128xf32> to vector<1x2x128xf32>
    tpu.vector_store %arg7[%c0_34, %c0_35, %c0_36], %95 {strides = array<i32>} : memref<1x2x128xf32, #tpu.memory_space<vmem>>, vector<1x2x128xf32>,
    %96 = arith.truncf %86 : vector<1024x128xf32> to vector<1024x128xbf16>
    %c0_37 = arith.constant 0 : index
    %c0_38 = arith.constant 0 : index
    %97 = vector.load %arg6[%c0_37, %c0_38] : memref<1024x128xbf16, #tpu.memory_space<vmem>>, vector<1024x128xbf16>
    tpu.vector_store %arg6[%c0_37, %c0_38], %96 {strides = array<i32>} : memref<1024x128xbf16, #tpu.memory_space<vmem>>, vector<1024x128xbf16>,
    return
  }
  func.func @transform_0(%arg0: i32) -> (i32, i32) {
    %c0_i32 = arith.constant 0 : i32
    %c0_i32_0 = arith.constant 0 : i32
    return %arg0, %c0_i32 : i32, i32
  }
  func.func @transform_1(%arg0: i32) -> (i32, i32) {
    %c0_i32 = arith.constant 0 : i32
    %c0_i32_0 = arith.constant 0 : i32
    %c0_i32_1 = arith.constant 0 : i32
    return %c0_i32, %c0_i32_0 : i32, i32
  }
  func.func @transform_2(%arg0: i32) -> (i32, i32) {
    %c0_i32 = arith.constant 0 : i32
    %c0_i32_0 = arith.constant 0 : i32
    %c0_i32_1 = arith.constant 0 : i32
    return %c0_i32, %c0_i32_0 : i32, i32
  }
  func.func @transform_3(%arg0: i32) -> (i32, i32, i32) {
    %c0_i32 = arith.constant 0 : i32
    %c0_i32_0 = arith.constant 0 : i32
    %c0_i32_1 = arith.constant 0 : i32
    %c0_i32_2 = arith.constant 0 : i32
    return %c0_i32, %c0_i32_0, %c0_i32_1 : i32, i32, i32
  }
  func.func @transform_4(%arg0: i32) -> (i32, i32) {
    %c0_i32 = arith.constant 0 : i32
    %c0_i32_0 = arith.constant 0 : i32
    %c0_i32_1 = arith.constant 0 : i32
    return %c0_i32, %c0_i32_0 : i32, i32
  }
  func.func @transform_5(%arg0: i32) -> (i32, i32) {
    %c0_i32 = arith.constant 0 : i32
    %c0_i32_0 = arith.constant 0 : i32
    return %arg0, %c0_i32 : i32, i32
  }
  func.func @transform_6(%arg0: i32) -> (i32, i32, i32) {
    %c0_i32 = arith.constant 0 : i32
    %c0_i32_0 = arith.constant 0 : i32
    %c0_i32_1 = arith.constant 0 : i32
    return %arg0, %c0_i32, %c0_i32_0 : i32, i32, i32
  }
}

module attributes {stable_mosaic.version = 11 : i64} {
  func.func @_conv3_kernel(%arg0: i32, %arg1: memref<1024x128xbf16, #tpu.memory_space<vmem>>, %arg2: memref<1x128xf32, #tpu.memory_space<vmem>>, %arg3: memref<1x128xf32, #tpu.memory_space<vmem>>, %arg4: memref<128x128xbf16, #tpu.memory_space<vmem>>, %arg5: memref<1x128xf32, #tpu.memory_space<vmem>>, %arg6: memref<1024x128xbf16, #tpu.memory_space<vmem>>, %arg7: memref<1x2x128xf32, #tpu.memory_space<vmem>>) attributes {dimension_semantics = [#tpu.dimension_semantics<parallel>], iteration_bounds = array<i64: 2>, scalar_prefetch = 0 : i64, scratch_operands = 0 : i64, tpu.core_type = #tpu.core_type<tc>, window_params = [{transform_indices = @transform_0, window_bounds = array<i64: 1024, 128>}, {pipeline_mode = #tpu.pipeline_mode<synchronous>, transform_indices = @transform_1, window_bounds = array<i64: 1, 128>}, {pipeline_mode = #tpu.pipeline_mode<synchronous>, transform_indices = @transform_2, window_bounds = array<i64: 1, 128>}, {pipeline_mode = #tpu.pipeline_mode<synchronous>, transform_indices = @transform_3, window_bounds = array<i64: 128, 128>}, {pipeline_mode = #tpu.pipeline_mode<synchronous>, transform_indices = @transform_4, window_bounds = array<i64: 1, 128>}, {transform_indices = @transform_5, window_bounds = array<i64: 1024, 128>}, {transform_indices = @transform_6, window_bounds = array<i64: 1, 2, 128>}]} {
    %c0 = arith.constant 0 : index
    %c0_0 = arith.constant 0 : index
    %0 = vector.load %arg1[%c0, %c0_0] : memref<1024x128xbf16, #tpu.memory_space<vmem>>, vector<1024x128xbf16>
    %1 = arith.extf %0 : vector<1024x128xbf16> to vector<1024x128xf32>
    %c0_1 = arith.constant 0 : index
    %c0_2 = arith.constant 0 : index
    %2 = vector.load %arg2[%c0_1, %c0_2] : memref<1x128xf32, #tpu.memory_space<vmem>>, vector<1x128xf32>
    %3 = vector.broadcast %2 : vector<1x128xf32> to vector<1024x128xf32>
    %4 = arith.mulf %1, %3 : vector<1024x128xf32>
    %c0_3 = arith.constant 0 : index
    %c0_4 = arith.constant 0 : index
    %5 = vector.load %arg3[%c0_3, %c0_4] : memref<1x128xf32, #tpu.memory_space<vmem>>, vector<1x128xf32>
    %6 = vector.broadcast %5 : vector<1x128xf32> to vector<1024x128xf32>
    %7 = arith.addf %4, %6 : vector<1024x128xf32>
    %cst = arith.constant 0.000000e+00 : f32
    %8 = vector.broadcast %cst : f32 to vector<1024x128xf32>
    %9 = arith.maximumf %7, %8 : vector<1024x128xf32>
    %10 = arith.truncf %9 : vector<1024x128xf32> to vector<1024x128xbf16>
    %c0_5 = arith.constant 0 : index
    %c0_6 = arith.constant 0 : index
    %11 = vector.load %arg4[%c0_5, %c0_6] : memref<128x128xbf16, #tpu.memory_space<vmem>>, vector<128x128xbf16>
    %cst_7 = arith.constant dense<0.000000e+00> : vector<1024x128xf32>
    %12 = tpu.matmul %10, %11, %cst_7 {dimension_numbers = #tpu.dot_dimension_numbers<[1], [0], [0], [1], [0, 0, 1, 1], [], []>} : vector<1024x128xbf16>, vector<128x128xbf16>, vector<1024x128xf32> -> vector<1024x128xf32>
    %c0_8 = arith.constant 0 : index
    %c0_9 = arith.constant 0 : index
    %13 = vector.load %arg5[%c0_8, %c0_9] : memref<1x128xf32, #tpu.memory_space<vmem>>, vector<1x128xf32>
    %14 = vector.broadcast %13 : vector<1x128xf32> to vector<1024x128xf32>
    %15 = arith.addf %12, %14 : vector<1024x128xf32>
    %cst_10 = arith.constant dense<0.000000e+00> : vector<128xf32>
    %16 = vector.multi_reduction <add>, %15, %cst_10 [0] : vector<1024x128xf32> to vector<128xf32>
    %17 = vector.shape_cast %16 : vector<128xf32> to vector<1x128xf32>
    %18 = arith.mulf %15, %15 : vector<1024x128xf32>
    %cst_11 = arith.constant dense<0.000000e+00> : vector<128xf32>
    %19 = vector.multi_reduction <add>, %18, %cst_11 [0] : vector<1024x128xf32> to vector<128xf32>
    %20 = vector.shape_cast %19 : vector<128xf32> to vector<1x128xf32>
    %21 = tpu.concatenate %17, %20 in 0 : vector<1x128xf32>, vector<1x128xf32> -> vector<2x128xf32>
    %c0_12 = arith.constant 0 : index
    %c0_13 = arith.constant 0 : index
    %c0_14 = arith.constant 0 : index
    %22 = vector.load %arg7[%c0_12, %c0_13, %c0_14] : memref<1x2x128xf32, #tpu.memory_space<vmem>>, vector<1x2x128xf32>
    %23 = vector.shape_cast %22 : vector<1x2x128xf32> to vector<2x128xf32>
    %24 = vector.shape_cast %21 : vector<2x128xf32> to vector<1x2x128xf32>
    tpu.vector_store %arg7[%c0_12, %c0_13, %c0_14], %24 {strides = array<i32>} : memref<1x2x128xf32, #tpu.memory_space<vmem>>, vector<1x2x128xf32>,
    %25 = arith.truncf %15 : vector<1024x128xf32> to vector<1024x128xbf16>
    %c0_15 = arith.constant 0 : index
    %c0_16 = arith.constant 0 : index
    %26 = vector.load %arg6[%c0_15, %c0_16] : memref<1024x128xbf16, #tpu.memory_space<vmem>>, vector<1024x128xbf16>
    tpu.vector_store %arg6[%c0_15, %c0_16], %25 {strides = array<i32>} : memref<1024x128xbf16, #tpu.memory_space<vmem>>, vector<1024x128xbf16>,
    return
  }
  func.func @transform_0(%arg0: i32) -> (i32, i32) {
    %c0_i32 = arith.constant 0 : i32
    %c0_i32_0 = arith.constant 0 : i32
    return %arg0, %c0_i32 : i32, i32
  }
  func.func @transform_1(%arg0: i32) -> (i32, i32) {
    %c0_i32 = arith.constant 0 : i32
    %c0_i32_0 = arith.constant 0 : i32
    %c0_i32_1 = arith.constant 0 : i32
    return %c0_i32, %c0_i32_0 : i32, i32
  }
  func.func @transform_2(%arg0: i32) -> (i32, i32) {
    %c0_i32 = arith.constant 0 : i32
    %c0_i32_0 = arith.constant 0 : i32
    %c0_i32_1 = arith.constant 0 : i32
    return %c0_i32, %c0_i32_0 : i32, i32
  }
  func.func @transform_3(%arg0: i32) -> (i32, i32) {
    %c0_i32 = arith.constant 0 : i32
    %c0_i32_0 = arith.constant 0 : i32
    %c0_i32_1 = arith.constant 0 : i32
    return %c0_i32, %c0_i32_0 : i32, i32
  }
  func.func @transform_4(%arg0: i32) -> (i32, i32) {
    %c0_i32 = arith.constant 0 : i32
    %c0_i32_0 = arith.constant 0 : i32
    %c0_i32_1 = arith.constant 0 : i32
    return %c0_i32, %c0_i32_0 : i32, i32
  }
  func.func @transform_5(%arg0: i32) -> (i32, i32) {
    %c0_i32 = arith.constant 0 : i32
    %c0_i32_0 = arith.constant 0 : i32
    return %arg0, %c0_i32 : i32, i32
  }
  func.func @transform_6(%arg0: i32) -> (i32, i32, i32) {
    %c0_i32 = arith.constant 0 : i32
    %c0_i32_0 = arith.constant 0 : i32
    %c0_i32_1 = arith.constant 0 : i32
    return %arg0, %c0_i32, %c0_i32_0 : i32, i32, i32
  }
}

</mosaic_0001>

<bundles_post_ra>
// kernel: decoder_block.3
= control target key start
LH: loop header
LB: loop body
LE: loop exit
PB: predicated region body
PF: predicated region fallthrough
CT: control target
= control target key end

     0   :  { %s3623_s15 = smov 0   ;;  %s4376_s0 = inlined_call_operand.vmem [shape: bf16[2048,16], index: 0, kind: input, shape index: {}]   ;;  %s4377_s1 = inlined_call_operand.vmem [shape: bf16[16,128], index: 1, kind: input, shape index: {}]   ;;  %s4378_s2 = inlined_call_operand.vmem [shape: f32[1,128], index: 2, kind: input, shape index: {}]   ;;  %s4379_s3 = inlined_call_operand.vmem [shape: bf16[2048,128], index: 3, kind: output, shape index: {0}]   ;;  %s4380_s4 = inlined_call_operand.vmem [shape: f32[2,2,128], index: 4, kind: output, shape index: {1}]  }
   0x1 LB: > { %s3629_s16 = sadd.s32 4294967295, %s3596_s15   ;;  %p2542_p0 = scmp.ge.s32.totalorder %s3596_s15, 1  ;;  %s3596_s15 = sphi %s3623_s15, %s15_s15  }
   0x2   : > { %p166_p1 = scmp.lt.s32.totalorder %s3596_s15, 3 }
   0x4   : > { %p167_p2 = pnand %p2542_p0, %p166_p1 }
   0x6   : > { %170 = sbr.rel (%p167_p2) target bundleno = 490 (0x1ea), region = 32 }
   0xb   : > { %v3524_v0 = vld [vmem:[%s4377_s1] sm:$0xff]   ;;  %s2543_s19 = sshll.u32 %s3629_s16, 7  ;;  %vm676_vm0 = vcmask 130048   ;;  %p208_p4 = scmp.lt.s32.totalorder %s3629_s16, 1  ;;  %vm1808_vm1 = vcmask 1040384  }
   0xc   : > { %p197_p3 = scmp.lt.s32.totalorder %s2543_s19, 255  ;;  %3384 = vmatprep.subr.bf16.mxu0 %v3524_v0  ;;  %3514 = vmatprep.subr.bf16.mxu1 %v3524_v0 }
   0xd   : > { %3385 = vmatpush3.bf16.msra.mxu0 %v3524_v0  ;;  %3515 = vmatpush3.bf16.msra.mxu1 %v3524_v0  ;;  %s4404_s16 = smov (!%p208_p4, %s3629_s16), 1 }
   0xe   : > { %s4402_s19 = smov (!%p197_p3, %s2543_s19), 255  ;;  %s2547_s5 = sshll.u32 %s4404_s16, 1 }
   0xf   : > { %s2544_s20 = sshll.u32 %s4402_s19, 2  ;;  %s211_s8 = scalar_lea.vmem %s4380_s4, %s2547_s5 }
  0x10   : > { %s3645_s23 = scalar_lea.vmem %s4376_s0, %s2544_s20  ;;  %s3788_s28 = scalar_lea.vmem %s4379_s3, %s2544_s20 }
  0x11   : > { %v3525_v1 = vld [vmem:[%s3645_s23] sm:$0xff]   ;;  %v3526_v2 = vld [vmem:[%s3645_s23 + $0x8] sm:$0xff]   ;;  %v3527_v3 = vld [vmem:[%s3645_s23 + $0x10] sm:$0xff]  }
  0x12   : > { %3386 = vmatprep.mubr.msk.bf16.mxu0 %vm676_vm0, %v3525_v1  ;;  %v3528_v4 = vld [vmem:[%s3645_s23 + $0x18] sm:$0xff]   ;;  %v3529_v5 = vld [vmem:[%s3645_s23 + $0x20] sm:$0xff]   ;;  %v3530_v6 = vld [vmem:[%s3645_s23 + $0x28] sm:$0xff]  }
  0x13   : > { %3387 = vmatmul.mubr.msk.bf16.vlgmr.msra.gmra.mxu0 %vm676_vm0, %v3526_v2  ;;  %v3531_v7 = vld [vmem:[%s3645_s23 + $0x30] sm:$0xff]   ;;  %v3532_v8 = vld [vmem:[%s3645_s23 + $0x38] sm:$0xff]   ;;  %v3533_v9 = vld [vmem:[%s3645_s23 + $0x40] sm:$0xff]  }
  0x14   : > { %3390 = vmatprep.mubr.msk.bf16.mxu0 %vm676_vm0, %v3527_v3  ;;  %v3534_v10 = vld [vmem:[%s3645_s23 + $0x48] sm:$0xff]   ;;  %v3535_v11 = vld [vmem:[%s3645_s23 + $0x50] sm:$0xff]   ;;  %v3557_v12 = vld [vmem:[%s3645_s23 + $0x100] sm:$0xff]  }
  0x15   : > { %v3558_v13 = vld [vmem:[%s3645_s23 + $0x108] sm:$0xff]   ;;  %3450 = vmatprep.mubr.msk.bf16.mxu1 %vm676_vm0, %v3557_v12  ;;  %v3559_v14 = vld [vmem:[%s3645_s23 + $0x110] sm:$0xff]   ;;  %v3536_v15 = vld [vmem:[%s3645_s23 + $0x58] sm:$0xff]  }
  0x16   : > { %3451 = vmatmul.mubr.msk.bf16.vlgmr.msra.gmra.mxu1 %vm676_vm0, %v3558_v13  ;;  %v3537_v16 = vld [vmem:[%s3645_s23 + $0x60] sm:$0xff]   ;;  %v3560_v17 = vld [vmem:[%s3645_s23 + $0x118] sm:$0xff]   ;;  %v3538_v19 = vld [vmem:[%s3645_s23 + $0x68] sm:$0xff]  }
  0x17   : > { %3454 = vmatprep.mubr.msk.bf16.mxu1 %vm676_vm0, %v3559_v14  ;;  %v3561_v18 = vld [vmem:[%s3645_s23 + $0x120] sm:$0xff]   ;;  %v3539_v20 = vld [vmem:[%s3645_s23 + $0x70] sm:$0xff]   ;;  %v3562_v21 = vld [vmem:[%s3645_s23 + $0x128] sm:$0xff]  }
  0x18   : > { %v3563_v22 = vld [vmem:[%s3645_s23 + $0x130] sm:$0xff]   ;;  %v3540_v23 = vld [vmem:[%s3645_s23 + $0x78] sm:$0xff]   ;;  %v3541_v25 = vld [vmem:[%s3645_s23 + $0x80] sm:$0xff]  }
  0x19   : > { %v3564_v24 = vld [vmem:[%s3645_s23 + $0x138] sm:$0xff]   ;;  %v3565_v26 = vld [vmem:[%s3645_s23 + $0x140] sm:$0xff]   ;;  %v3542_v27 = vld [vmem:[%s3645_s23 + $0x88] sm:$0xff]  }
  0x1a   : > { %v3566_v28 = vld [vmem:[%s3645_s23 + $0x148] sm:$0xff]   ;;  %v3543_v29 = vld [vmem:[%s3645_s23 + $0x90] sm:$0xff]   ;;  %v3544_v31 = vld [vmem:[%s3645_s23 + $0x98] sm:$0xff]  }
  0x1b   : > { %3391 = vmatmul.mubr.msk.bf16.gmra.mxu0 %vm676_vm0, %v3528_v4  ;;  %v3567_v30 = vld [vmem:[%s3645_s23 + $0x150] sm:$0xff]   ;;  %v3568_v32 = vld [vmem:[%s3645_s23 + $0x158] sm:$0xff]   ;;  %v3545_v33 = vld [vmem:[%s3645_s23 + $0xa0] sm:$0xff]  }
  0x1c   : > { %3394 = vmatprep.mubr.msk.bf16.mxu0 %vm676_vm0, %v3529_v5  ;;  %v3569_v34 = vld [vmem:[%s3645_s23 + $0x160] sm:$0xff]   ;;  %v3546_v35 = vld [vmem:[%s3645_s23 + $0xa8] sm:$0xff]   ;;  %v3547_v37 = vld [vmem:[%s3645_s23 + $0xb0] sm:$0xff]  }
  0x1d   : > { %v3570_v36 = vld [vmem:[%s3645_s23 + $0x168] sm:$0xff]   ;;  %v3571_v38 = vld [vmem:[%s3645_s23 + $0x170] sm:$0xff]   ;;  %v3548_v39 = vld [vmem:[%s3645_s23 + $0xb8] sm:$0xff]  }
  0x1e   : > { %3455 = vmatmul.mubr.msk.bf16.gmra.mxu1 %vm676_vm0, %v3560_v17  ;;  %v3572_v40 = vld [vmem:[%s3645_s23 + $0x178] sm:$0xff]   ;;  %v3549_v41 = vld [vmem:[%s3645_s23 + $0xc0] sm:$0xff]   ;;  %v3550_v43 = vld [vmem:[%s3645_s23 + $0xc8] sm:$0xff]  }
  0x1f   : > { %3458 = vmatprep.mubr.msk.bf16.mxu1 %vm676_vm0, %v3561_v18  ;;  %v3573_v42 = vld [vmem:[%s3645_s23 + $0x180] sm:$0xff]   ;;  %v3574_v44 = vld [vmem:[%s3645_s23 + $0x188] sm:$0xff]   ;;  %v3551_v45 = vld [vmem:[%s3645_s23 + $0xd0] sm:$0xff]  }
  0x20   : > { %v3575_v46 = vld [vmem:[%s3645_s23 + $0x190] sm:$0xff]   ;;  %v3552_v47 = vld [vmem:[%s3645_s23 + $0xd8] sm:$0xff]   ;;  %v3553_v49 = vld [vmem:[%s3645_s23 + $0xe0] sm:$0xff]  }
  0x21   : > { %v3576_v48 = vld [vmem:[%s3645_s23 + $0x198] sm:$0xff]   ;;  %v3577_v50 = vld [vmem:[%s3645_s23 + $0x1a0] sm:$0xff]   ;;  %v3554_v51 = vld [vmem:[%s3645_s23 + $0xe8] sm:$0xff]  }
  0x22   : > { %v3578_v52 = vld [vmem:[%s3645_s23 + $0x1a8] sm:$0xff]   ;;  %v3555_v53 = vld [vmem:[%s3645_s23 + $0xf0] sm:$0xff]   ;;  %v3556_v55 = vld [vmem:[%s3645_s23 + $0xf8] sm:$0xff]  }
  0x23   : > { %3395 = vmatmul.mubr.msk.bf16.gmra.mxu0 %vm676_vm0, %v3530_v6  ;;  %v3579_v54 = vld [vmem:[%s3645_s23 + $0x1b0] sm:$0xff]   ;;  %v3580_v56 = vld [vmem:[%s3645_s23 + $0x1b8] sm:$0xff]   ;;  %v3581_v57 = vld [vmem:[%s3645_s23 + $0x1c0] sm:$0xff]  }
  0x24   : > { %3398 = vmatprep.mubr.msk.bf16.mxu0 %vm676_vm0, %v3531_v7  ;;  %v3582_v58 = vld [vmem:[%s3645_s23 + $0x1c8] sm:$0xff]   ;;  %v3583_v59 = vld [vmem:[%s3645_s23 + $0x1d0] sm:$0xff]   ;;  %v3584_v60 = vld [vmem:[%s3645_s23 + $0x1d8] sm:$0xff]  }
  0x25   : > { %v3585_v61 = vld [vmem:[%s3645_s23 + $0x1e0] sm:$0xff]   ;;  %v3586_v62 = vld [vmem:[%s3645_s23 + $0x1e8] sm:$0xff]   ;;  %v3587_v63 = vld [vmem:[%s3645_s23 + $0x1f0] sm:$0xff]  }
  0x26   : > { %3459 = vmatmul.mubr.msk.bf16.gmra.mxu1 %vm676_vm0, %v3562_v21  ;;  %v3588_v0 = vld [vmem:[%s3645_s23 + $0x1f8] sm:$0xff]   ;;  %v3778_v2 = vld [vmem:[%s4378_s2] ss:$0 sm:$0xff] }
  0x27   : > { %3462 = vmatprep.mubr.msk.bf16.mxu1 %vm676_vm0, %v3563_v22 }
  0x2b   : > { %3399 = vmatmul.mubr.msk.bf16.gmra.mxu0 %vm676_vm0, %v3532_v8 }
  0x2c   : > { %3402 = vmatprep.mubr.msk.bf16.mxu0 %vm676_vm0, %v3533_v9 }
  0x2e   : > { %3463 = vmatmul.mubr.msk.bf16.gmra.mxu1 %vm676_vm0, %v3564_v24 }
  0x2f   : > { %3466 = vmatprep.mubr.msk.bf16.mxu1 %vm676_vm0, %v3565_v26 }
  0x33   : > { %3403 = vmatmul.mubr.msk.bf16.gmra.mxu0 %vm676_vm0, %v3534_v10 }
  0x34   : > { %3406 = vmatprep.mubr.msk.bf16.mxu0 %vm676_vm0, %v3535_v11 }
  0x36   : > { %3467 = vmatmul.mubr.msk.bf16.gmra.mxu1 %vm676_vm0, %v3566_v28 }
  0x37   : > { %3470 = vmatprep.mubr.msk.bf16.mxu1 %vm676_vm0, %v3567_v30 }
  0x3b   : > { %3407 = vmatmul.mubr.msk.bf16.gmra.mxu0 %vm676_vm0, %v3536_v15 }
  0x3c   : > { %3410 = vmatprep.mubr.msk.bf16.mxu0 %vm676_vm0, %v3537_v16 }
  0x3e   : > { %3471 = vmatmul.mubr.msk.bf16.gmra.mxu1 %vm676_vm0, %v3568_v32 }
  0x3f   : > { %3474 = vmatprep.mubr.msk.bf16.mxu1 %vm676_vm0, %v3569_v34 }
  0x43   : > { %3411 = vmatmul.mubr.msk.bf16.gmra.mxu0 %vm676_vm0, %v3538_v19 }
  0x44   : > { %3414 = vmatprep.mubr.msk.bf16.mxu0 %vm676_vm0, %v3539_v20 }
  0x46   : > { %3475 = vmatmul.mubr.msk.bf16.gmra.mxu1 %vm676_vm0, %v3570_v36 }
  0x47   : > { %3478 = vmatprep.mubr.msk.bf16.mxu1 %vm676_vm0, %v3571_v38 }
  0x4b   : > { %3415 = vmatmul.mubr.msk.bf16.gmra.mxu0 %vm676_vm0, %v3540_v23 }
  0x4c   : > { %3418 = vmatprep.mubr.msk.bf16.mxu0 %vm676_vm0, %v3541_v25 }
  0x4e   : > { %3479 = vmatmul.mubr.msk.bf16.gmra.mxu1 %vm676_vm0, %v3572_v40 }
  0x4f   : > { %3482 = vmatprep.mubr.msk.bf16.mxu1 %vm676_vm0, %v3573_v42 }
  0x53   : > { %3419 = vmatmul.mubr.msk.bf16.gmra.mxu0 %vm676_vm0, %v3542_v27 }
  0x54   : > { %3422 = vmatprep.mubr.msk.bf16.mxu0 %vm676_vm0, %v3543_v29 }
  0x56   : > { %3483 = vmatmul.mubr.msk.bf16.gmra.mxu1 %vm676_vm0, %v3574_v44 }
  0x57   : > { %3486 = vmatprep.mubr.msk.bf16.mxu1 %vm676_vm0, %v3575_v46 }
  0x5b   : > { %3423 = vmatmul.mubr.msk.bf16.gmra.mxu0 %vm676_vm0, %v3544_v31 }
  0x5c   : > { %3426 = vmatprep.mubr.msk.bf16.mxu0 %vm676_vm0, %v3545_v33 }
  0x5e   : > { %3487 = vmatmul.mubr.msk.bf16.gmra.mxu1 %vm676_vm0, %v3576_v48 }
  0x5f   : > { %3490 = vmatprep.mubr.msk.bf16.mxu1 %vm676_vm0, %v3577_v50 }
  0x63   : > { %3427 = vmatmul.mubr.msk.bf16.gmra.mxu0 %vm676_vm0, %v3546_v35 }
  0x64   : > { %3430 = vmatprep.mubr.msk.bf16.mxu0 %vm676_vm0, %v3547_v37 }
  0x66   : > { %3491 = vmatmul.mubr.msk.bf16.gmra.mxu1 %vm676_vm0, %v3578_v52 }
  0x67   : > { %3494 = vmatprep.mubr.msk.bf16.mxu1 %vm676_vm0, %v3579_v54 }
  0x6b   : > { %3431 = vmatmul.mubr.msk.bf16.gmra.mxu0 %vm676_vm0, %v3548_v39 }
  0x6c   : > { %3434 = vmatprep.mubr.msk.bf16.mxu0 %vm676_vm0, %v3549_v41 }
  0x6e   : > { %3495 = vmatmul.mubr.msk.bf16.gmra.mxu1 %vm676_vm0, %v3580_v56 }
  0x6f   : > { %3498 = vmatprep.mubr.msk.bf16.mxu1 %vm676_vm0, %v3581_v57 }
  0x73   : > { %3435 = vmatmul.mubr.msk.bf16.gmra.mxu0 %vm676_vm0, %v3550_v43 }
  0x74   : > { %3438 = vmatprep.mubr.msk.bf16.mxu0 %vm676_vm0, %v3551_v45 }
  0x76   : > { %3499 = vmatmul.mubr.msk.bf16.gmra.mxu1 %vm676_vm0, %v3582_v58 }
  0x77   : > { %3502 = vmatprep.mubr.msk.bf16.mxu1 %vm676_vm0, %v3583_v59 }
  0x7b   : > { %3439 = vmatmul.mubr.msk.bf16.gmra.mxu0 %vm676_vm0, %v3552_v47 }
  0x7c   : > { %3442 = vmatprep.mubr.msk.bf16.mxu0 %vm676_vm0, %v3553_v49 }
  0x7e   : > { %3503 = vmatmul.mubr.msk.bf16.gmra.mxu1 %vm676_vm0, %v3584_v60 }
  0x7f   : > { %3506 = vmatprep.mubr.msk.bf16.mxu1 %vm676_vm0, %v3585_v61 }
  0x83   : > { %3443 = vmatmul.mubr.msk.bf16.gmra.mxu0 %vm676_vm0, %v3554_v51 }
  0x84   : > { %3446 = vmatprep.mubr.msk.bf16.mxu0 %vm676_vm0, %v3555_v53 }
  0x86   : > { %3507 = vmatmul.mubr.msk.bf16.gmra.mxu1 %vm676_vm0, %v3586_v62 }
  0x87   : > { %3510 = vmatprep.mubr.msk.bf16.mxu1 %vm676_vm0, %v3587_v63 }
  0x8b   : > { %3447 = vmatmul.mubr.msk.bf16.gmra.mxu0 %vm676_vm0, %v3556_v55 }
  0x8e   : > { %3511 = vmatmul.mubr.msk.bf16.gmra.mxu1 %vm676_vm0, %v3588_v0 }
  0xd3   : > { %v3388_v1 = vpop.f32.mrf.mxu0 }
  0xd4   : > { %v912_v5 = vadd.f32 %v3388_v1, %v3778_v2 }
  0xd5   : > { %v903_v3 = vpop.f32.mrf.mxu0 }
  0xd6   : > { %v904_v6 = vadd.f32 %v3778_v2, %v903_v3  ;;  %v1549_v17 = vmul.f32 %v912_v5, %v912_v5 }
  0xd7   : > { %v3389_v4 = vpop.f32.mrf.mxu0 }
  0xd8   : > { %v915_v7 = vadd.f32 %v3389_v4, %v3778_v2  ;;  %v1547_v12 = vmul.f32 %v904_v6, %v904_v6 }
  0xd9   : > { %v906_v8 = vpop.f32.mrf.mxu0 }
  0xda   : > { %v2944_v9 = vpack.c.bf16 %v915_v7, %v912_v5  ;;  %v907_v10 = vadd.f32 %v3778_v2, %v906_v8  ;;  %v1550_v21 = vmul.f32 %v915_v7, %v915_v7 }
  0xdb   : > { %v3392_v11 = vpop.f32.mrf.mxu0 }
  0xdc   : > { %3256 = vst [vmem:[%s3788_s28 + $0x8] sm:$0xff] %v2944_v9   ;;  %v1414_v13 = vadd.f32 %v907_v10, %v904_v6  ;;  %v1548_v14 = vmul.f32 %v907_v10, %v907_v10  ;;  %v2939_v15 = vpack.c.bf16 %v907_v10, %v904_v6  ;;  %v928_v25 = vadd.f32 %v3392_v11, %v3778_v2 }
  0xdd   : > { %v919_v16 = vpop.f32.mrf.mxu0 }
  0xde   : > { %v1415_v18 = vadd.f32 %v1414_v13, %v912_v5  ;;  %v1675_v19 = vadd.f32 %v1548_v14, %v1547_v12  ;;  %2940 = vst [vmem:[%s3788_s28] sm:$0xff] %v2939_v15   ;;  %v920_v20 = vadd.f32 %v3778_v2, %v919_v16  ;;  %v1553_v39 = vmul.f32 %v928_v25, %v928_v25  ;;  %v3452_v15 = vpop.f32.mrf.mxu1 }
  0xdf   : > { %v3393_v22 = vpop.f32.mrf.mxu0 }
  0xe0   : > { %v1416_v23 = vadd.f32 %v1415_v18, %v915_v7  ;;  %v1676_v24 = vadd.f32 %v1675_v19, %v1549_v17  ;;  %v931_v26 = vadd.f32 %v3393_v22, %v3778_v2  ;;  %v1551_v30 = vmul.f32 %v920_v20, %v920_v20 }
  0xe1   : > { %v922_v27 = vpop.f32.mrf.mxu0 }
  0xe2   : > { %v1677_v28 = vadd.f32 %v1676_v24, %v1550_v21  ;;  %v1417_v29 = vadd.f32 %v1416_v23, %v920_v20  ;;  %v2954_v31 = vpack.c.bf16 %v931_v26, %v928_v25  ;;  %v923_v32 = vadd.f32 %v3778_v2, %v922_v27  ;;  %v1159_v21 = vpop.f32.mrf.mxu1 }
  0xe3   : > { %v3396_v33 = vpop.f32.mrf.mxu0  ;;  %v1554_v46 = vmul.f32 %v931_v26, %v931_v26  ;;  %v3813_v27 = vadd.f32 %v3452_v15, %v3778_v2 }
  0xe4   : > { %v1678_v34 = vadd.f32 %v1677_v28, %v1551_v30  ;;  %3258 = vst [vmem:[%s3788_s28 + $0x18] sm:$0xff] %v2954_v31   ;;  %v1418_v35 = vadd.f32 %v1417_v29, %v923_v32  ;;  %v1552_v36 = vmul.f32 %v923_v32, %v923_v32  ;;  %v2949_v37 = vpack.c.bf16 %v923_v32, %v920_v20  ;;  %v3453_v28 = vpop.f32.mrf.mxu1 }
  0xe5   : > { %v935_v38 = vpop.f32.mrf.mxu0  ;;  %v944_v44 = vadd.f32 %v3396_v33, %v3778_v2  ;;  %v3818_v31 = vadd.f32 %v3453_v28, %v3778_v2 }
  0xe6   : > { %v1419_v40 = vadd.f32 %v1418_v35, %v928_v25  ;;  %v1679_v41 = vadd.f32 %v1678_v34, %v1552_v36  ;;  %3257 = vst [vmem:[%s3788_s28 + $0x10] sm:$0xff] %v2949_v37   ;;  %v936_v42 = vadd.f32 %v3778_v2, %v935_v38  ;;  %v3821_v36 = vadd.f32 %v3778_v2, %v1159_v21  ;;  %v1162_v37 = vpop.f32.mrf.mxu1 }
  0xe7   : > { %v3397_v43 = vpop.f32.mrf.mxu0  ;;  %v1557_v61 = vmul.f32 %v944_v44, %v944_v44 }
  0xe8   : > { %v947_v45 = vadd.f32 %v3397_v43, %v3778_v2  ;;  %v1420_v47 = vadd.f32 %v1419_v40, %v931_v26  ;;  %v1680_v48 = vadd.f32 %v1679_v41, %v1553_v39  ;;  %v1555_v54 = vmul.f32 %v936_v42, %v936_v42 }
  0xe9   : > { %v938_v49 = vpop.f32.mrf.mxu0 }
  0xea   : > { %v2964_v50 = vpack.c.bf16 %v947_v45, %v944_v44  ;;  %v939_v51 = vadd.f32 %v3778_v2, %v938_v49  ;;  %v1681_v52 = vadd.f32 %v1680_v48, %v1554_v46  ;;  %v1421_v53 = vadd.f32 %v1420_v47, %v936_v42  ;;  %v3456_v46 = vpop.f32.mrf.mxu1 }
  0xeb   : > { %v3400_v55 = vpop.f32.mrf.mxu0  ;;  %v1558_v5 = vmul.f32 %v947_v45, %v947_v45 }
  0xec   : > { %3260 = vst [vmem:[%s3788_s28 + $0x28] sm:$0xff] %v2964_v50   ;;  %v1556_v56 = vmul.f32 %v939_v51, %v939_v51  ;;  %v2959_v57 = vpack.c.bf16 %v939_v51, %v936_v42  ;;  %v1682_v58 = vadd.f32 %v1681_v52, %v1555_v54  ;;  %v1422_v59 = vadd.f32 %v1421_v53, %v939_v51  ;;  %v1175_v53 = vpop.f32.mrf.mxu1 }
  0xed   : > { %v951_v60 = vpop.f32.mrf.mxu0  ;;  %v960_v3 = vadd.f32 %v3400_v55, %v3778_v2 }
  0xee   : > { %3259 = vst [vmem:[%s3788_s28 + $0x20] sm:$0xff] %v2959_v57   ;;  %v1423_v62 = vadd.f32 %v1422_v59, %v944_v44  ;;  %v1683_v63 = vadd.f32 %v1682_v58, %v1556_v56  ;;  %v952_v0 = vadd.f32 %v3778_v2, %v951_v60  ;;  %v3104_v44 = vpack.c.bf16 %v3818_v31, %v3813_v27  ;;  %v3457_v60 = vpop.f32.mrf.mxu1 }
  0xef   : > { %v3401_v1 = vpop.f32.mrf.mxu0  ;;  %v1561_v23 = vmul.f32 %v960_v3, %v960_v3  ;;  %v3837_v59 = vadd.f32 %v3456_v46, %v3778_v2 }
  0xf0   : > { %v963_v4 = vadd.f32 %v3401_v1, %v3778_v2  ;;  %v1424_v6 = vadd.f32 %v1423_v62, %v947_v45  ;;  %v1684_v7 = vadd.f32 %v1683_v63, %v1557_v61  ;;  %v1559_v13 = vmul.f32 %v952_v0, %v952_v0  ;;  %3288 = vst [vmem:[%s3788_s28 + $0x108] sm:$0xff] %v3104_v44  }
  0xf1   : > { %v954_v8 = vpop.f32.mrf.mxu0  ;;  %v3827_v45 = vadd.f32 %v3778_v2, %v1162_v37  ;;  %v3842_v63 = vadd.f32 %v3457_v60, %v3778_v2 }
  0xf2   : > { %v2974_v9 = vpack.c.bf16 %v963_v4, %v960_v3  ;;  %v955_v10 = vadd.f32 %v3778_v2, %v954_v8  ;;  %v1685_v11 = vadd.f32 %v1684_v7, %v1558_v5  ;;  %v1425_v12 = vadd.f32 %v1424_v6, %v952_v0  ;;  %v1178_v6 = vpop.f32.mrf.mxu1 }
  0xf3   : > { %v3404_v14 = vpop.f32.mrf.mxu0  ;;  %v1562_v32 = vmul.f32 %v963_v4, %v963_v4  ;;  %v3099_v52 = vpack.c.bf16 %v3827_v45, %v3821_v36  ;;  %v3845_v5 = vadd.f32 %v3778_v2, %v1175_v53 }
  0xf4   : > { %3262 = vst [vmem:[%s3788_s28 + $0x38] sm:$0xff] %v2974_v9   ;;  %v1560_v16 = vmul.f32 %v955_v10, %v955_v10  ;;  %v2969_v17 = vpack.c.bf16 %v955_v10, %v952_v0  ;;  %v1686_v18 = vadd.f32 %v1685_v11, %v1559_v13  ;;  %v1426_v19 = vadd.f32 %v1425_v12, %v955_v10  ;;  %v3460_v15 = vpop.f32.mrf.mxu1 }
  0xf5   : > { %v967_v20 = vpop.f32.mrf.mxu0  ;;  %v976_v29 = vadd.f32 %v3404_v14, %v3778_v2  ;;  %3287 = vst [vmem:[%s3788_s28 + $0x100] sm:$0xff] %v3099_v52   ;;  %v3114_v13 = vpack.c.bf16 %v3842_v63, %v3837_v59  ;;  %v3851_v14 = vadd.f32 %v3778_v2, %v1178_v6 }
  0xf6   : > { %3261 = vst [vmem:[%s3788_s28 + $0x30] sm:$0xff] %v2969_v17   ;;  %v968_v22 = vadd.f32 %v3778_v2, %v967_v20  ;;  %v1427_v24 = vadd.f32 %v1426_v19, %v960_v3  ;;  %v1687_v25 = vadd.f32 %v1686_v18, %v1560_v16 }
  0xf7   : > { %v3405_v26 = vpop.f32.mrf.mxu0  ;;  %v1565_v55 = vmul.f32 %v976_v29, %v976_v29  ;;  %3290 = vst [vmem:[%s3788_s28 + $0x118] sm:$0xff] %v3114_v13   ;;  %v3109_v21 = vpack.c.bf16 %v3851_v14, %v3845_v5 }
  0xf8   : > { %v979_v30 = vadd.f32 %v3405_v26, %v3778_v2  ;;  %v1428_v33 = vadd.f32 %v1427_v24, %v963_v4  ;;  %v1688_v34 = vadd.f32 %v1687_v25, %v1561_v23  ;;  %v1563_v38 = vmul.f32 %v968_v22, %v968_v22 }
  0xf9   : > { %v970_v35 = vpop.f32.mrf.mxu0  ;;  %3289 = vst [vmem:[%s3788_s28 + $0x110] sm:$0xff] %v3109_v21  }
  0xfa   : > { %v2984_v39 = vpack.c.bf16 %v979_v30, %v976_v29  ;;  %v971_v40 = vadd.f32 %v3778_v2, %v970_v35  ;;  %v1689_v41 = vadd.f32 %v1688_v34, %v1562_v32  ;;  %v1429_v42 = vadd.f32 %v1428_v33, %v968_v22 }
  0xfb   : > { %v3408_v43 = vpop.f32.mrf.mxu0  ;;  %v1566_v0 = vmul.f32 %v979_v30, %v979_v30 }
  0xfc   : > { %3264 = vst [vmem:[%s3788_s28 + $0x48] sm:$0xff] %v2984_v39   ;;  %v1564_v47 = vmul.f32 %v971_v40, %v971_v40  ;;  %v2979_v48 = vpack.c.bf16 %v971_v40, %v968_v22  ;;  %v1690_v49 = vadd.f32 %v1689_v41, %v1563_v38  ;;  %v1430_v50 = vadd.f32 %v1429_v42, %v971_v40  ;;  %v1191_v22 = vpop.f32.mrf.mxu1 }
  0xfd   : > { %v983_v51 = vpop.f32.mrf.mxu0  ;;  %v992_v61 = vadd.f32 %v3408_v43, %v3778_v2  ;;  %v3869_v40 = vadd.f32 %v3778_v2, %v1191_v22 }
  0xfe   : > { %3263 = vst [vmem:[%s3788_s28 + $0x40] sm:$0xff] %v2979_v48   ;;  %v984_v54 = vadd.f32 %v3778_v2, %v983_v51  ;;  %v1431_v56 = vadd.f32 %v1430_v50, %v976_v29  ;;  %v1691_v57 = vadd.f32 %v1690_v49, %v1564_v47  ;;  %v3861_v29 = vadd.f32 %v3460_v15, %v3778_v2 }
  0xff   : > { %v3409_v58 = vpop.f32.mrf.mxu0  ;;  %v1569_v24 = vmul.f32 %v992_v61, %v992_v61 }
 0x100   : > { %v995_v62 = vadd.f32 %v3409_v58, %v3778_v2  ;;  %v1432_v1 = vadd.f32 %v1431_v56, %v979_v30  ;;  %v1692_v3 = vadd.f32 %v1691_v57, %v1565_v55  ;;  %v1567_v7 = vmul.f32 %v984_v54, %v984_v54  ;;  %v3461_v30 = vpop.f32.mrf.mxu1 }
 0x101   : > { %v986_v4 = vpop.f32.mrf.mxu0  ;;  %v3866_v34 = vadd.f32 %v3461_v30, %v3778_v2 }
 0x102   : > { %v2994_v8 = vpack.c.bf16 %v995_v62, %v992_v61  ;;  %v987_v9 = vadd.f32 %v3778_v2, %v986_v4  ;;  %v1693_v10 = vadd.f32 %v1692_v3, %v1566_v0  ;;  %v1433_v11 = vadd.f32 %v1432_v1, %v984_v54  ;;  %v1194_v41 = vpop.f32.mrf.mxu1 }
 0x103   : > { %v3412_v12 = vpop.f32.mrf.mxu0  ;;  %v1570_v35 = vmul.f32 %v995_v62, %v995_v62  ;;  %v3124_v49 = vpack.c.bf16 %v3866_v34, %v3861_v29  ;;  %v3875_v50 = vadd.f32 %v3778_v2, %v1194_v41 }
 0x104   : > { %3266 = vst [vmem:[%s3788_s28 + $0x58] sm:$0xff] %v2994_v8   ;;  %v1568_v16 = vmul.f32 %v987_v9, %v987_v9  ;;  %v2989_v17 = vpack.c.bf16 %v987_v9, %v984_v54  ;;  %v1694_v18 = vadd.f32 %v1693_v10, %v1567_v7  ;;  %v1434_v19 = vadd.f32 %v1433_v11, %v987_v9  ;;  %v3464_v51 = vpop.f32.mrf.mxu1 }
 0x105   : > { %v999_v20 = vpop.f32.mrf.mxu0  ;;  %v1008_v32 = vadd.f32 %v3412_v12, %v3778_v2  ;;  %3292 = vst [vmem:[%s3788_s28 + $0x128] sm:$0xff] %v3124_v49   ;;  %v3119_v57 = vpack.c.bf16 %v3875_v50, %v3869_v40  ;;  %v3885_v3 = vadd.f32 %v3464_v51, %v3778_v2 }
 0x106   : > { %3265 = vst [vmem:[%s3788_s28 + $0x50] sm:$0xff] %v2989_v17   ;;  %v1000_v23 = vadd.f32 %v3778_v2, %v999_v20  ;;  %v1435_v25 = vadd.f32 %v1434_v19, %v992_v61  ;;  %v1695_v26 = vadd.f32 %v1694_v18, %v1568_v16  ;;  %v1207_v58 = vpop.f32.mrf.mxu1 }
 0x107   : > { %v3413_v28 = vpop.f32.mrf.mxu0  ;;  %v1573_v61 = vmul.f32 %v1008_v32, %v1008_v32  ;;  %3291 = vst [vmem:[%s3788_s28 + $0x120] sm:$0xff] %v3119_v57   ;;  %v3893_v13 = vadd.f32 %v3778_v2, %v1207_v58 }
 0x108   : > { %v1011_v33 = vadd.f32 %v3413_v28, %v3778_v2  ;;  %v1436_v37 = vadd.f32 %v1435_v25, %v995_v62  ;;  %v1696_v38 = vadd.f32 %v1695_v26, %v1569_v24  ;;  %v1571_v42 = vmul.f32 %v1000_v23, %v1000_v23  ;;  %v3465_v4 = vpop.f32.mrf.mxu1 }
 0x109   : > { %v1002_v39 = vpop.f32.mrf.mxu0  ;;  %v3890_v8 = vadd.f32 %v3465_v4, %v3778_v2 }
 0x10a   : > { %v3004_v43 = vpack.c.bf16 %v1011_v33, %v1008_v32  ;;  %v1003_v44 = vadd.f32 %v3778_v2, %v1002_v39  ;;  %v1697_v46 = vadd.f32 %v1696_v38, %v1570_v35  ;;  %v1437_v47 = vadd.f32 %v1436_v37, %v1000_v23  ;;  %v1210_v15 = vpop.f32.mrf.mxu1 }
 0x10b   : > { %v3416_v48 = vpop.f32.mrf.mxu0  ;;  %v1574_v9 = vmul.f32 %v1011_v33, %v1011_v33  ;;  %v3134_v22 = vpack.c.bf16 %v3890_v8, %v3885_v3 }
 0x10c   : > { %3268 = vst [vmem:[%s3788_s28 + $0x68] sm:$0xff] %v3004_v43   ;;  %v1572_v52 = vmul.f32 %v1003_v44, %v1003_v44  ;;  %v2999_v53 = vpack.c.bf16 %v1003_v44, %v1000_v23  ;;  %v1698_v54 = vadd.f32 %v1697_v46, %v1571_v42  ;;  %v1438_v55 = vadd.f32 %v1437_v47, %v1003_v44  ;;  %v3468_v24 = vpop.f32.mrf.mxu1 }
 0x10d   : > { %v1015_v56 = vpop.f32.mrf.mxu0  ;;  %v1024_v6 = vadd.f32 %v3416_v48, %v3778_v2  ;;  %v3899_v23 = vadd.f32 %v3778_v2, %v1210_v15  ;;  %3294 = vst [vmem:[%s3788_s28 + $0x138] sm:$0xff] %v3134_v22   ;;  %v3909_v43 = vadd.f32 %v3468_v24, %v3778_v2 }
 0x10e   : > { %3267 = vst [vmem:[%s3788_s28 + $0x60] sm:$0xff] %v2999_v53   ;;  %v1016_v60 = vadd.f32 %v3778_v2, %v1015_v56  ;;  %v1439_v62 = vadd.f32 %v1438_v55, %v1008_v32  ;;  %v1699_v0 = vadd.f32 %v1698_v54, %v1572_v52  ;;  %v1223_v35 = vpop.f32.mrf.mxu1 }
 0x10f   : > { %v3417_v1 = vpop.f32.mrf.mxu0  ;;  %v1577_v38 = vmul.f32 %v1024_v6, %v1024_v6  ;;  %v3917_v54 = vadd.f32 %v3778_v2, %v1223_v35 }
 0x110   : > { %v1027_v7 = vadd.f32 %v3417_v1, %v3778_v2  ;;  %v1440_v10 = vadd.f32 %v1439_v62, %v1011_v33  ;;  %v1700_v11 = vadd.f32 %v1699_v0, %v1573_v61  ;;  %v1575_v16 = vmul.f32 %v1016_v60, %v1016_v60  ;;  %v3469_v44 = vpop.f32.mrf.mxu1 }
 0x111   : > { %v1018_v12 = vpop.f32.mrf.mxu0  ;;  %v3129_v33 = vpack.c.bf16 %v3899_v23, %v3893_v13  ;;  %v3914_v48 = vadd.f32 %v3469_v44, %v3778_v2 }
 0x112   : > { %v3014_v17 = vpack.c.bf16 %v1027_v7, %v1024_v6  ;;  %v1019_v18 = vadd.f32 %v3778_v2, %v1018_v12  ;;  %v1701_v19 = vadd.f32 %v1700_v11, %v1574_v9  ;;  %v1441_v20 = vadd.f32 %v1440_v10, %v1016_v60  ;;  %v1226_v55 = vpop.f32.mrf.mxu1 }
 0x113   : > { %v3420_v21 = vpop.f32.mrf.mxu0  ;;  %3293 = vst [vmem:[%s3788_s28 + $0x130] sm:$0xff] %v3129_v33   ;;  %v1578_v49 = vmul.f32 %v1027_v7, %v1027_v7  ;;  %v3144_v0 = vpack.c.bf16 %v3914_v48, %v3909_v43  ;;  %v3923_v1 = vadd.f32 %v3778_v2, %v1226_v55 }
 0x114   : > { %3270 = vst [vmem:[%s3788_s28 + $0x78] sm:$0xff] %v3014_v17   ;;  %v1576_v25 = vmul.f32 %v1019_v18, %v1019_v18  ;;  %v3009_v26 = vpack.c.bf16 %v1019_v18, %v1016_v60  ;;  %v1702_v28 = vadd.f32 %v1701_v19, %v1575_v16  ;;  %v1442_v30 = vadd.f32 %v1441_v20, %v1019_v18  ;;  %v3472_v4 = vpop.f32.mrf.mxu1 }
 0x115   : > { %v1031_v32 = vpop.f32.mrf.mxu0  ;;  %v1040_v46 = vadd.f32 %v3420_v21, %v3778_v2  ;;  %3296 = vst [vmem:[%s3788_s28 + $0x148] sm:$0xff] %v3144_v0   ;;  %v3139_v12 = vpack.c.bf16 %v3923_v1, %v3917_v54  ;;  %v3933_v21 = vadd.f32 %v3472_v4, %v3778_v2 }
 0x116   : > { %3269 = vst [vmem:[%s3788_s28 + $0x70] sm:$0xff] %v3009_v26   ;;  %v1032_v37 = vadd.f32 %v3778_v2, %v1031_v32  ;;  %v1443_v39 = vadd.f32 %v1442_v30, %v1024_v6  ;;  %v1703_v41 = vadd.f32 %v1702_v28, %v1576_v25  ;;  %v1239_v15 = vpop.f32.mrf.mxu1 }
 0x117   : > { %v3421_v42 = vpop.f32.mrf.mxu0  ;;  %v1581_v17 = vmul.f32 %v1040_v46, %v1040_v46  ;;  %3295 = vst [vmem:[%s3788_s28 + $0x140] sm:$0xff] %v3139_v12   ;;  %v3941_v35 = vadd.f32 %v3778_v2, %v1239_v15 }
 0x118   : > { %v1043_v47 = vadd.f32 %v3421_v42, %v3778_v2  ;;  %v1444_v51 = vadd.f32 %v1443_v39, %v1027_v7  ;;  %v1704_v52 = vadd.f32 %v1703_v41, %v1577_v38  ;;  %v1579_v56 = vmul.f32 %v1032_v37, %v1032_v37  ;;  %v3473_v22 = vpop.f32.mrf.mxu1 }
 0x119   : > { %v1034_v53 = vpop.f32.mrf.mxu0  ;;  %v3938_v26 = vadd.f32 %v3473_v22, %v3778_v2 }
 0x11a   : > { %v3024_v57 = vpack.c.bf16 %v1043_v47, %v1040_v46  ;;  %v1035_v58 = vadd.f32 %v3778_v2, %v1034_v53  ;;  %v1705_v60 = vadd.f32 %v1704_v52, %v1578_v49  ;;  %v1445_v61 = vadd.f32 %v1444_v51, %v1032_v37 }
 0x11b   : > { %v3424_v62 = vpop.f32.mrf.mxu0  ;;  %v1582_v28 = vmul.f32 %v1043_v47, %v1043_v47  ;;  %v3154_v49 = vpack.c.bf16 %v3938_v26, %v3933_v21 }
 0x11c   : > { %3272 = vst [vmem:[%s3788_s28 + $0x88] sm:$0xff] %v3024_v57   ;;  %v1580_v6 = vmul.f32 %v1035_v58, %v1035_v58  ;;  %v3019_v7 = vpack.c.bf16 %v1035_v58, %v1032_v37  ;;  %v1706_v9 = vadd.f32 %v1705_v60, %v1579_v56  ;;  %v1446_v10 = vadd.f32 %v1445_v61, %v1035_v58  ;;  %v1242_v37 = vpop.f32.mrf.mxu1 }
 0x11d   : > { %v1047_v11 = vpop.f32.mrf.mxu0  ;;  %v1056_v24 = vadd.f32 %v3424_v62, %v3778_v2  ;;  %3298 = vst [vmem:[%s3788_s28 + $0x158] sm:$0xff] %v3154_v49  }
 0x11e   : > { %3271 = vst [vmem:[%s3788_s28 + $0x80] sm:$0xff] %v3019_v7   ;;  %v1048_v16 = vadd.f32 %v3778_v2, %v1047_v11  ;;  %v1447_v18 = vadd.f32 %v1446_v10, %v1040_v46  ;;  %v1707_v19 = vadd.f32 %v1706_v9, %v1580_v6  ;;  %v3476_v51 = vpop.f32.mrf.mxu1 }
 0x11f   : > { %v3425_v20 = vpop.f32.mrf.mxu0  ;;  %v1585_v62 = vmul.f32 %v1056_v24, %v1056_v24  ;;  %v3957_v7 = vadd.f32 %v3476_v51, %v3778_v2 }
 0x120   : > { %v1059_v25 = vadd.f32 %v3425_v20, %v3778_v2  ;;  %v1448_v30 = vadd.f32 %v1447_v18, %v1043_v47  ;;  %v1708_v32 = vadd.f32 %v1707_v19, %v1581_v17  ;;  %v1583_v38 = vmul.f32 %v1048_v16, %v1048_v16  ;;  %v1255_v60 = vpop.f32.mrf.mxu1 }
 0x121   : > { %v1050_v33 = vpop.f32.mrf.mxu0  ;;  %v3947_v47 = vadd.f32 %v3778_v2, %v1242_v37  ;;  %v3965_v19 = vadd.f32 %v3778_v2, %v1255_v60 }
 0x122   : > { %v3034_v39 = vpack.c.bf16 %v1059_v25, %v1056_v24  ;;  %v1051_v41 = vadd.f32 %v3778_v2, %v1050_v33  ;;  %v1709_v42 = vadd.f32 %v1708_v32, %v1582_v28  ;;  %v1449_v44 = vadd.f32 %v1448_v30, %v1048_v16  ;;  %v3477_v9 = vpop.f32.mrf.mxu1 }
 0x123   : > { %v3428_v46 = vpop.f32.mrf.mxu0  ;;  %v3149_v58 = vpack.c.bf16 %v3947_v47, %v3941_v35  ;;  %v3962_v12 = vadd.f32 %v3477_v9, %v3778_v2  ;;  %v1586_v15 = vmul.f32 %v1059_v25, %v1059_v25 }
 0x124   : > { %3274 = vst [vmem:[%s3788_s28 + $0x98] sm:$0xff] %v3034_v39   ;;  %v1584_v52 = vmul.f32 %v1051_v41, %v1051_v41  ;;  %v3029_v53 = vpack.c.bf16 %v1051_v41, %v1048_v16  ;;  %v1710_v55 = vadd.f32 %v1709_v42, %v1583_v38  ;;  %v1450_v56 = vadd.f32 %v1449_v44, %v1051_v41  ;;  %v1258_v20 = vpop.f32.mrf.mxu1 }
 0x125   : > { %v1063_v57 = vpop.f32.mrf.mxu0  ;;  %3297 = vst [vmem:[%s3788_s28 + $0x150] sm:$0xff] %v3149_v58   ;;  %v1072_v10 = vadd.f32 %v3428_v46, %v3778_v2  ;;  %v3164_v37 = vpack.c.bf16 %v3962_v12, %v3957_v7 }
 0x126   : > { %3273 = vst [vmem:[%s3788_s28 + $0x90] sm:$0xff] %v3029_v53   ;;  %v1064_v61 = vadd.f32 %v3778_v2, %v1063_v57  ;;  %v1451_v0 = vadd.f32 %v1450_v56, %v1056_v24  ;;  %v1711_v4 = vadd.f32 %v1710_v55, %v1584_v52  ;;  %v3480_v38 = vpop.f32.mrf.mxu1 }
 0x127   : > { %v3429_v6 = vpop.f32.mrf.mxu0  ;;  %3300 = vst [vmem:[%s3788_s28 + $0x168] sm:$0xff] %v3164_v37   ;;  %v1589_v53 = vmul.f32 %v1072_v10, %v1072_v10  ;;  %v3981_v58 = vadd.f32 %v3480_v38, %v3778_v2 }
 0x128   : > { %v1075_v11 = vadd.f32 %v3429_v6, %v3778_v2  ;;  %v1452_v16 = vadd.f32 %v1451_v0, %v1059_v25  ;;  %v1712_v17 = vadd.f32 %v1711_v4, %v1585_v62  ;;  %v1587_v22 = vmul.f32 %v1064_v61, %v1064_v61  ;;  %v1271_v51 = vpop.f32.mrf.mxu1 }
 0x129   : > { %v1066_v18 = vpop.f32.mrf.mxu0  ;;  %v3971_v25 = vadd.f32 %v3778_v2, %v1258_v20 }
 0x12a   : > { %v3044_v24 = vpack.c.bf16 %v1075_v11, %v1072_v10  ;;  %v1067_v28 = vadd.f32 %v3778_v2, %v1066_v18  ;;  %v1713_v30 = vadd.f32 %v1712_v17, %v1586_v15  ;;  %v1453_v32 = vadd.f32 %v1452_v16, %v1064_v61  ;;  %v3481_v60 = vpop.f32.mrf.mxu1 }
 0x12b   : > { %v3432_v33 = vpop.f32.mrf.mxu0  ;;  %v3159_v49 = vpack.c.bf16 %v3971_v25, %v3965_v19  ;;  %v3986_v0 = vadd.f32 %v3481_v60, %v3778_v2  ;;  %v1590_v4 = vmul.f32 %v1075_v11, %v1075_v11 }
 0x12c   : > { %3276 = vst [vmem:[%s3788_s28 + $0xa8] sm:$0xff] %v3044_v24   ;;  %v1588_v39 = vmul.f32 %v1067_v28, %v1067_v28  ;;  %v3039_v41 = vpack.c.bf16 %v1067_v28, %v1064_v61  ;;  %v1714_v42 = vadd.f32 %v1713_v30, %v1587_v22  ;;  %v1454_v44 = vadd.f32 %v1453_v32, %v1067_v28  ;;  %v1274_v16 = vpop.f32.mrf.mxu1 }
 0x12d   : > { %v1079_v46 = vpop.f32.mrf.mxu0  ;;  %3299 = vst [vmem:[%s3788_s28 + $0x160] sm:$0xff] %v3159_v49   ;;  %v1088_v61 = vadd.f32 %v3432_v33, %v3778_v2  ;;  %v3174_v30 = vpack.c.bf16 %v3986_v0, %v3981_v58 }
 0x12e   : > { %3275 = vst [vmem:[%s3788_s28 + $0xa0] sm:$0xff] %v3039_v41   ;;  %v1080_v52 = vadd.f32 %v3778_v2, %v1079_v46  ;;  %v1455_v55 = vadd.f32 %v1454_v44, %v1072_v10  ;;  %v1715_v56 = vadd.f32 %v1714_v42, %v1588_v39  ;;  %v3989_v10 = vadd.f32 %v3778_v2, %v1271_v51  ;;  %v3484_v32 = vpop.f32.mrf.mxu1 }
 0x12f   : > { %v3433_v57 = vpop.f32.mrf.mxu0  ;;  %3302 = vst [vmem:[%s3788_s28 + $0x178] sm:$0xff] %v3174_v30   ;;  %v1593_v49 = vmul.f32 %v1088_v61, %v1088_v61 }
 0x130   : > { %v1091_v62 = vadd.f32 %v3433_v57, %v3778_v2  ;;  %v1456_v6 = vadd.f32 %v1455_v55, %v1075_v11  ;;  %v1716_v9 = vadd.f32 %v1715_v56, %v1589_v53  ;;  %v1591_v17 = vmul.f32 %v1080_v52, %v1080_v52  ;;  %v1287_v44 = vpop.f32.mrf.mxu1 }
 0x131   : > { %v1082_v15 = vpop.f32.mrf.mxu0  ;;  %v3995_v11 = vadd.f32 %v3778_v2, %v1274_v16  ;;  %v4005_v56 = vadd.f32 %v3484_v32, %v3778_v2 }
 0x132   : > { %v3054_v18 = vpack.c.bf16 %v1091_v62, %v1088_v61  ;;  %v1083_v20 = vadd.f32 %v3778_v2, %v1082_v15  ;;  %v1717_v22 = vadd.f32 %v1716_v9, %v1590_v4  ;;  %v1457_v24 = vadd.f32 %v1456_v6, %v1080_v52 }
 0x133   : > { %v3436_v28 = vpop.f32.mrf.mxu0  ;;  %v3169_v42 = vpack.c.bf16 %v3995_v11, %v3989_v10  ;;  %v1594_v6 = vmul.f32 %v1091_v62, %v1091_v62 }
 0x134   : > { %3278 = vst [vmem:[%s3788_s28 + $0xb8] sm:$0xff] %v3054_v18   ;;  %v1592_v33 = vmul.f32 %v1083_v20, %v1083_v20  ;;  %v3049_v37 = vpack.c.bf16 %v1083_v20, %v1080_v52  ;;  %v1718_v38 = vadd.f32 %v1717_v22, %v1591_v17  ;;  %v1458_v39 = vadd.f32 %v1457_v24, %v1083_v20  ;;  %v3485_v52 = vpop.f32.mrf.mxu1 }
 0x135   : > { %v1095_v41 = vpop.f32.mrf.mxu0  ;;  %3301 = vst [vmem:[%s3788_s28 + $0x170] sm:$0xff] %v3169_v42   ;;  %v1104_v57 = vadd.f32 %v3436_v28, %v3778_v2  ;;  %v4010_v4 = vadd.f32 %v3485_v52, %v3778_v2 }
 0x136   : > { %3277 = vst [vmem:[%s3788_s28 + $0xb0] sm:$0xff] %v3049_v37   ;;  %v1096_v46 = vadd.f32 %v3778_v2, %v1095_v41  ;;  %v1459_v51 = vadd.f32 %v1458_v39, %v1088_v61  ;;  %v1719_v53 = vadd.f32 %v1718_v38, %v1592_v33  ;;  %v4013_v61 = vadd.f32 %v3778_v2, %v1287_v44  ;;  %v1290_v17 = vpop.f32.mrf.mxu1 }
 0x137   : > { %v3437_v55 = vpop.f32.mrf.mxu0  ;;  %v3184_v32 = vpack.c.bf16 %v4010_v4, %v4005_v56 }
 0x138   : > { %v1107_v60 = vadd.f32 %v3437_v55, %v3778_v2  ;;  %v1460_v9 = vadd.f32 %v1459_v51, %v1091_v62  ;;  %v1720_v15 = vadd.f32 %v1719_v53, %v1593_v49  ;;  %v1595_v18 = vmul.f32 %v1096_v46, %v1096_v46  ;;  %v3488_v33 = vpop.f32.mrf.mxu1 }
 0x139   : > { %v1098_v16 = vpop.f32.mrf.mxu0  ;;  %v4019_v62 = vadd.f32 %v3778_v2, %v1290_v17  ;;  %3304 = vst [vmem:[%s3788_s28 + $0x188] sm:$0xff] %v3184_v32   ;;  %v1597_v53 = vmul.f32 %v1104_v57, %v1104_v57 }
 0x13a   : > { %v3064_v20 = vpack.c.bf16 %v1107_v60, %v1104_v57  ;;  %v1099_v22 = vadd.f32 %v3778_v2, %v1098_v16  ;;  %v1721_v24 = vadd.f32 %v1720_v15, %v1594_v6  ;;  %v1461_v28 = vadd.f32 %v1460_v9, %v1096_v46  ;;  %v1303_v49 = vpop.f32.mrf.mxu1 }
 0x13b   : > { %v3440_v30 = vpop.f32.mrf.mxu0  ;;  %v3179_v44 = vpack.c.bf16 %v4019_v62, %v4013_v61  ;;  %v4029_v9 = vadd.f32 %v3488_v33, %v3778_v2 }
 0x13c   : > { %3280 = vst [vmem:[%s3788_s28 + $0xc8] sm:$0xff] %v3064_v20   ;;  %v1596_v37 = vmul.f32 %v1099_v22, %v1099_v22  ;;  %v3059_v38 = vpack.c.bf16 %v1099_v22, %v1096_v46  ;;  %v1722_v39 = vadd.f32 %v1721_v24, %v1595_v18  ;;  %v1462_v41 = vadd.f32 %v1461_v28, %v1099_v22  ;;  %v3489_v46 = vpop.f32.mrf.mxu1 }
 0x13d   : > { %v1111_v42 = vpop.f32.mrf.mxu0  ;;  %3303 = vst [vmem:[%s3788_s28 + $0x180] sm:$0xff] %v3179_v44   ;;  %4391 = vst [vmem:[#allocation2_spill] sm:$0xff] %v4029_v9  ;;  %v1120_v15 = vadd.f32 %v3440_v30, %v3778_v2  ;;  %v4034_v17 = vadd.f32 %v3489_v46, %v3778_v2  ;;  %v1598_v18 = vmul.f32 %v1107_v60, %v1107_v60 }
 0x13e   : > { %3279 = vst [vmem:[%s3788_s28 + $0xc0] sm:$0xff] %v3059_v38   ;;  %v1112_v51 = vadd.f32 %v3778_v2, %v1111_v42  ;;  %v1463_v55 = vadd.f32 %v1462_v41, %v1104_v57  ;;  %v1723_v52 = vadd.f32 %v1722_v39, %v1596_v37  ;;  %v4037_v57 = vadd.f32 %v3778_v2, %v1303_v49  ;;  %v1306_v28 = vpop.f32.mrf.mxu1 }
 0x13f   : > { %v3441_v6 = vpop.f32.mrf.mxu0  ;;  %4392 = vst [vmem:[#allocation3_spill] sm:$0xff] %v4034_v17  ;;  %v3194_v41 = vpack.c.bf16 %v4034_v17, %v4029_v9 }
 0x140   : > { %v1123_v16 = vadd.f32 %v3441_v6, %v3778_v2  ;;  %v1464_v20 = vadd.f32 %v1463_v55, %v1107_v60  ;;  %v1724_v22 = vadd.f32 %v1723_v52, %v1597_v53  ;;  %v1599_v32 = vmul.f32 %v1112_v51, %v1112_v51  ;;  %v3492_v42 = vpop.f32.mrf.mxu1 }
 0x141   : > { %v1114_v24 = vpop.f32.mrf.mxu0  ;;  %v4043_v60 = vadd.f32 %v3778_v2, %v1306_v28  ;;  %3306 = vst [vmem:[%s3788_s28 + $0x198] sm:$0xff] %v3194_v41  }
 0x142   : > { %v3074_v33 = vpack.c.bf16 %v1123_v16, %v1120_v15  ;;  %v1115_v37 = vadd.f32 %v3778_v2, %v1114_v24  ;;  %v1725_v30 = vadd.f32 %v1724_v22, %v1598_v18  ;;  %v1465_v38 = vadd.f32 %v1464_v20, %v1112_v51  ;;  %v1319_v46 = vpop.f32.mrf.mxu1 }
 0x143   : > { %v3444_v39 = vpop.f32.mrf.mxu0  ;;  %v3189_v6 = vpack.c.bf16 %v4043_v60, %v4037_v57  ;;  %v1601_v20 = vmul.f32 %v1120_v15, %v1120_v15 }
 0x144   : > { %3282 = vst [vmem:[%s3788_s28 + $0xd8] sm:$0xff] %v3074_v33   ;;  %v1600_v44 = vmul.f32 %v1115_v37, %v1115_v37  ;;  %v3069_v49 = vpack.c.bf16 %v1115_v37, %v1112_v51  ;;  %v1726_v53 = vadd.f32 %v1725_v30, %v1599_v32  ;;  %v1466_v55 = vadd.f32 %v1465_v38, %v1115_v37  ;;  %v3493_v51 = vpop.f32.mrf.mxu1 }
 0x145   : > { %v1127_v52 = vpop.f32.mrf.mxu0  ;;  %3305 = vst [vmem:[%s3788_s28 + $0x190] sm:$0xff] %v3189_v6   ;;  %v4053_v33 = vadd.f32 %v3492_v42, %v3778_v2  ;;  %v1136_v32 = vadd.f32 %v3444_v39, %v3778_v2  ;;  %v4058_v30 = vadd.f32 %v3493_v51, %v3778_v2  ;;  %v1602_v38 = vmul.f32 %v1123_v16, %v1123_v16 }
 0x146   : > { %3281 = vst [vmem:[%s3788_s28 + $0xd0] sm:$0xff] %v3069_v49   ;;  %v1128_v18 = vadd.f32 %v3778_v2, %v1127_v52  ;;  %v1467_v22 = vadd.f32 %v1466_v55, %v1120_v15  ;;  %v1727_v24 = vadd.f32 %v1726_v53, %v1600_v44  ;;  %v4061_v15 = vadd.f32 %v3778_v2, %v1319_v46  ;;  %v1322_v44 = vpop.f32.mrf.mxu1 }
 0x147   : > { %v3445_v28 = vpop.f32.mrf.mxu0  ;;  %4393 = vst [vmem:[#allocation4_spill] sm:$0xff] %v4053_v33  ;;  %4394 = vst [vmem:[#allocation5_spill] sm:$0xff] %v4058_v30  ;;  %v3204_v51 = vpack.c.bf16 %v4058_v30, %v4053_v33 }
 0x148   : > { %v1139_v37 = vadd.f32 %v3445_v28, %v3778_v2  ;;  %v1468_v41 = vadd.f32 %v1467_v22, %v1123_v16  ;;  %v1728_v49 = vadd.f32 %v1727_v24, %v1601_v20  ;;  %v1603_v42 = vmul.f32 %v1128_v18, %v1128_v18  ;;  %v3496_v20 = vpop.f32.mrf.mxu1 }
 0x149   : > { %v1130_v52 = vpop.f32.mrf.mxu0  ;;  %v4067_v16 = vadd.f32 %v3778_v2, %v1322_v44  ;;  %3308 = vst [vmem:[%s3788_s28 + $0x1a8] sm:$0xff] %v3204_v51  }
 0x14a   : > { %v3084_v53 = vpack.c.bf16 %v1139_v37, %v1136_v32  ;;  %v1131_v55 = vadd.f32 %v3778_v2, %v1130_v52  ;;  %v1729_v39 = vadd.f32 %v1728_v49, %v1602_v38  ;;  %v1469_v6 = vadd.f32 %v1468_v41, %v1128_v18  ;;  %v1335_v41 = vpop.f32.mrf.mxu1 }
 0x14b   : > { %v3448_v28 = vpop.f32.mrf.mxu0  ;;  %4395 = vst [vmem:[#allocation6_spill] sm:$0xff] %v4067_v16  ;;  %v3199_v38 = vpack.c.bf16 %v4067_v16, %v4061_v15  ;;  %v1605_v52 = vmul.f32 %v1136_v32, %v1136_v32 }
 0x14c   : > { %3284 = vst [vmem:[%s3788_s28 + $0xe8] sm:$0xff] %v3084_v53   ;;  %v1604_v46 = vmul.f32 %v1131_v55, %v1131_v55  ;;  %v3079_v22 = vpack.c.bf16 %v1131_v55, %v1128_v18  ;;  %v1730_v24 = vadd.f32 %v1729_v39, %v1603_v42  ;;  %v1470_v17 = vadd.f32 %v1469_v6, %v1131_v55  ;;  %v3497_v18 = vpop.f32.mrf.mxu1 }
 0x14d   : > { %v1143_v9 = vpop.f32.mrf.mxu0  ;;  %3307 = vst [vmem:[%s3788_s28 + $0x1a0] sm:$0xff] %v3199_v38   ;;  %v4077_v53 = vadd.f32 %v3496_v20, %v3778_v2  ;;  %v1152_v42 = vadd.f32 %v3448_v28, %v3778_v2  ;;  %v4082_v39 = vadd.f32 %v3497_v18, %v3778_v2  ;;  %v1606_v6 = vmul.f32 %v1139_v37, %v1139_v37 }
 0x14e   : > { %3283 = vst [vmem:[%s3788_s28 + $0xe0] sm:$0xff] %v3079_v22   ;;  %v1144_v49 = vadd.f32 %v3778_v2, %v1143_v9  ;;  %v1471_v30 = vadd.f32 %v1470_v17, %v1136_v32  ;;  %v1731_v44 = vadd.f32 %v1730_v24, %v1604_v46  ;;  %v4085_v17 = vadd.f32 %v3778_v2, %v1335_v41  ;;  %v1338_v32 = vpop.f32.mrf.mxu1 }
 0x14f   : > { %v3449_v33 = vpop.f32.mrf.mxu0  ;;  %v3214_v38 = vpack.c.bf16 %v4082_v39, %v4077_v53  ;;  %v4091_v18 = vadd.f32 %v3778_v2, %v1338_v32 }
 0x150   : > { %v1155_v55 = vadd.f32 %v3449_v33, %v3778_v2  ;;  %v1472_v51 = vadd.f32 %v1471_v30, %v1139_v37  ;;  %v1732_v9 = vadd.f32 %v1731_v44, %v1605_v52  ;;  %v1607_v20 = vmul.f32 %v1144_v49, %v1144_v49  ;;  %v3500_v37 = vpop.f32.mrf.mxu1 }
 0x151   : > { %v1146_v22 = vpop.f32.mrf.mxu0  ;;  %3310 = vst [vmem:[%s3788_s28 + $0x1b8] sm:$0xff] %v3214_v38   ;;  %v3209_v16 = vpack.c.bf16 %v4091_v18, %v4085_v17 }
 0x152   : > { %v3094_v46 = vpack.c.bf16 %v1155_v55, %v1152_v42  ;;  %v1147_v28 = vadd.f32 %v3778_v2, %v1146_v22  ;;  %v1733_v24 = vadd.f32 %v1732_v9, %v1606_v6  ;;  %v1473_v33 = vadd.f32 %v1472_v51, %v1144_v49  ;;  %v1351_v22 = vpop.f32.mrf.mxu1  ;;  %v4101_v6 = vld [vmem:[%s4378_s2] ss:$0 sm:$0xff] }
 0x153   : > { %v4104_v2 = vadd.f32 %v4101_v6, %v3500_v37  ;;  %v1609_v51 = vmul.f32 %v1152_v42, %v1152_v42  ;;  %3309 = vst [vmem:[%s3788_s28 + $0x1b0] sm:$0xff] %v3209_v16   ;;  %v1611_v16 = vmul.f32 %v3821_v36, %v3821_v36 }
 0x154   : > { %3286 = vst [vmem:[%s3788_s28 + $0xf8] sm:$0xff] %v3094_v46   ;;  %v1608_v30 = vmul.f32 %v1147_v28, %v1147_v28  ;;  %v3089_v41 = vpack.c.bf16 %v1147_v28, %v1144_v49  ;;  %v1734_v52 = vadd.f32 %v1733_v24, %v1607_v20  ;;  %v1474_v44 = vadd.f32 %v1473_v33, %v1147_v28  ;;  %v3501_v32 = vpop.f32.mrf.mxu1 }
 0x155   : > { %v4108_v20 = vadd.f32 %v4101_v6, %v1351_v22  ;;  %v4111_v46 = vadd.f32 %v4101_v6, %v3501_v32  ;;  %v1610_v28 = vmul.f32 %v1155_v55, %v1155_v55 }
 0x156   : > { %3285 = vst [vmem:[%s3788_s28 + $0xf0] sm:$0xff] %v3089_v41   ;;  %v1475_v9 = vadd.f32 %v1474_v44, %v1152_v42  ;;  %v1735_v49 = vadd.f32 %v1734_v52, %v1608_v30  ;;  %v1354_v38 = vpop.f32.mrf.mxu1 }
 0x157   : > { %v3224_v37 = vpack.c.bf16 %v4111_v46, %v4104_v2  ;;  %v4116_v42 = vadd.f32 %v4101_v6, %v1354_v38 }
 0x158   : > { %v1476_v24 = vadd.f32 %v1475_v9, %v1155_v55  ;;  %v1736_v33 = vadd.f32 %v1735_v49, %v1609_v51  ;;  %v3504_v52 = vpop.f32.mrf.mxu1  ;;  %v1612_v51 = vmul.f32 %v3827_v45, %v3827_v45 }
 0x159   : > { %3312 = vst [vmem:[%s3788_s28 + $0x1c8] sm:$0xff] %v3224_v37   ;;  %v3219_v44 = vpack.c.bf16 %v4116_v42, %v4108_v20  ;;  %v4129_v49 = vadd.f32 %v4101_v6, %v3504_v52 }
 0x15a   : > { %v1477_v30 = vadd.f32 %v1476_v24, %v3821_v36  ;;  %v1737_v41 = vadd.f32 %v1736_v33, %v1610_v28  ;;  %v1367_v9 = vpop.f32.mrf.mxu1  ;;  %v1613_v36 = vmul.f32 %v3813_v27, %v3813_v27 }
 0x15b   : > { %3311 = vst [vmem:[%s3788_s28 + $0x1c0] sm:$0xff] %v3219_v44   ;;  %v4135_v33 = vadd.f32 %v4101_v6, %v1367_v9  ;;  %v1615_v44 = vmul.f32 %v3845_v5, %v3845_v5 }
 0x15c   : > { %v1738_v55 = vadd.f32 %v1737_v41, %v1611_v16  ;;  %v1478_v22 = vadd.f32 %v1477_v30, %v3827_v45  ;;  %v3505_v24 = vpop.f32.mrf.mxu1  ;;  %v1614_v45 = vmul.f32 %v3818_v31, %v3818_v31 }
 0x15d   : > { %v4138_v38 = vadd.f32 %v4101_v6, %v3505_v24 }
 0x15e   : > { %v1479_v32 = vadd.f32 %v1478_v22, %v3813_v27  ;;  %v1739_v28 = vadd.f32 %v1738_v55, %v1612_v51  ;;  %v1370_v30 = vpop.f32.mrf.mxu1 }
 0x15f   : > { %v3234_v41 = vpack.c.bf16 %v4138_v38, %v4129_v49  ;;  %v4146_v27 = vadd.f32 %v4101_v6, %v1370_v30 }
 0x160   : > { %v1740_v37 = vadd.f32 %v1739_v28, %v1613_v36  ;;  %v1480_v16 = vadd.f32 %v1479_v32, %v3818_v31  ;;  %v3508_v22 = vpop.f32.mrf.mxu1  ;;  %v1616_v36 = vmul.f32 %v3851_v14, %v3851_v14 }
 0x161   : > { %3314 = vst [vmem:[%s3788_s28 + $0x1d8] sm:$0xff] %v3234_v41   ;;  %v3229_v51 = vpack.c.bf16 %v4146_v27, %v4135_v33  ;;  %v4159_v28 = vadd.f32 %v4101_v6, %v3508_v22 }
 0x162   : > { %v1481_v52 = vadd.f32 %v1480_v16, %v3845_v5  ;;  %v1741_v55 = vadd.f32 %v1740_v37, %v1614_v45  ;;  %v1383_v32 = vpop.f32.mrf.mxu1  ;;  %v1617_v5 = vmul.f32 %v3837_v59, %v3837_v59 }
 0x163   : > { %3313 = vst [vmem:[%s3788_s28 + $0x1d0] sm:$0xff] %v3229_v51   ;;  %v4165_v16 = vadd.f32 %v4101_v6, %v1383_v32  ;;  %v1619_v51 = vmul.f32 %v3869_v40, %v3869_v40 }
 0x164   : > { %v1742_v9 = vadd.f32 %v1741_v55, %v1615_v44  ;;  %v1482_v31 = vadd.f32 %v1481_v52, %v3851_v14  ;;  %v3509_v37 = vpop.f32.mrf.mxu1  ;;  %v1618_v14 = vmul.f32 %v3842_v63, %v3842_v63 }
 0x165   : > { %v4168_v30 = vadd.f32 %v4101_v6, %v3509_v37 }
 0x166   : > { %v1483_v24 = vadd.f32 %v1482_v31, %v3837_v59  ;;  %v1743_v45 = vadd.f32 %v1742_v9, %v1616_v36  ;;  %v1386_v44 = vpop.f32.mrf.mxu1 }
 0x167   : > { %v3244_v55 = vpack.c.bf16 %v4168_v30, %v4159_v28  ;;  %v4176_v59 = vadd.f32 %v4101_v6, %v1386_v44 }
 0x168   : > { %v1744_v41 = vadd.f32 %v1743_v45, %v1617_v5  ;;  %v1484_v52 = vadd.f32 %v1483_v24, %v3842_v63  ;;  %v3512_v31 = vpop.f32.mrf.mxu1  ;;  %v1620_v5 = vmul.f32 %v3875_v50, %v3875_v50 }
 0x169   : > { %3316 = vst [vmem:[%s3788_s28 + $0x1e8] sm:$0xff] %v3244_v55   ;;  %v3239_v36 = vpack.c.bf16 %v4176_v59, %v4165_v16  ;;  %v4189_v45 = vadd.f32 %v4101_v6, %v3512_v31 }
 0x16a   : > { %v1485_v22 = vadd.f32 %v1484_v52, %v3869_v40  ;;  %v1745_v9 = vadd.f32 %v1744_v41, %v1618_v14  ;;  %v1399_v24 = vpop.f32.mrf.mxu1  ;;  %v1621_v40 = vmul.f32 %v3861_v29, %v3861_v29 }
 0x16b   : > { %3315 = vst [vmem:[%s3788_s28 + $0x1e0] sm:$0xff] %v3239_v36   ;;  %v4195_v52 = vadd.f32 %v4101_v6, %v1399_v24  ;;  %v1623_v36 = vmul.f32 %v3893_v13, %v3893_v13  ;;  %v1624_v24 = vmul.f32 %v3899_v23, %v3899_v23 }
 0x16c   : > { %v1746_v32 = vadd.f32 %v1745_v9, %v1619_v51  ;;  %v1486_v63 = vadd.f32 %v1485_v22, %v3875_v50  ;;  %v3513_v41 = vpop.f32.mrf.mxu1  ;;  %v1622_v50 = vmul.f32 %v3866_v34, %v3866_v34 }
 0x16d   : > { %v4198_v44 = vadd.f32 %v4101_v6, %v3513_v41 }
 0x16e   : > { %v1487_v37 = vadd.f32 %v1486_v63, %v3861_v29  ;;  %v1747_v14 = vadd.f32 %v1746_v32, %v1620_v5  ;;  %v1402_v51 = vpop.f32.mrf.mxu1 }
 0x16f   : > { %v3254_v9 = vpack.c.bf16 %v4198_v44, %v4189_v45  ;;  %v4206_v29 = vadd.f32 %v4101_v6, %v1402_v51  ;;  %v1625_v6 = vmul.f32 %v3885_v3, %v3885_v3 }
 0x170   : > { %v1748_v55 = vadd.f32 %v1747_v14, %v1621_v40  ;;  %v1488_v22 = vadd.f32 %v1487_v37, %v3866_v34 }
 0x171   : > { %3318 = vst [vmem:[%s3788_s28 + $0x1f8] sm:$0xff] %v3254_v9   ;;  %v3249_v63 = vpack.c.bf16 %v4206_v29, %v4195_v52  ;;  %v1628_v9 = vmul.f32 %v3923_v1, %v3923_v1 }
 0x172   : > { %v1489_v31 = vadd.f32 %v1488_v22, %v3893_v13  ;;  %v1749_v32 = vadd.f32 %v1748_v55, %v1622_v50  ;;  %v1626_v13 = vmul.f32 %v3890_v8, %v3890_v8  ;;  %v1627_v55 = vmul.f32 %v3917_v54, %v3917_v54 }
 0x173   : > { %3317 = vst [vmem:[%s3788_s28 + $0x1f0] sm:$0xff] %v3249_v63  }
 0x174   : > { %v1750_v5 = vadd.f32 %v1749_v32, %v1623_v36  ;;  %v1490_v34 = vadd.f32 %v1489_v31, %v3899_v23 }
 0x176   : > { %v1491_v40 = vadd.f32 %v1490_v34, %v3885_v3  ;;  %v1751_v37 = vadd.f32 %v1750_v5, %v1624_v24  ;;  %v1629_v3 = vmul.f32 %v3909_v43, %v3909_v43  ;;  %v1631_v5 = vmul.f32 %v3941_v35, %v3941_v35 }
 0x178   : > { %v1752_v14 = vadd.f32 %v1751_v37, %v1625_v6  ;;  %v1492_v41 = vadd.f32 %v1491_v40, %v3890_v8  ;;  %v1630_v8 = vmul.f32 %v3914_v48, %v3914_v48  ;;  %v1632_v6 = vmul.f32 %v3947_v47, %v3947_v47 }
 0x17a   : > { %v1493_v50 = vadd.f32 %v1492_v41, %v3917_v54  ;;  %v1753_v22 = vadd.f32 %v1752_v14, %v1626_v13  ;;  %v1635_v41 = vmul.f32 %v3965_v19, %v3965_v19 }
 0x17c   : > { %v1754_v23 = vadd.f32 %v1753_v22, %v1627_v55  ;;  %v1494_v51 = vadd.f32 %v1493_v50, %v3923_v1  ;;  %v1636_v22 = vmul.f32 %v3971_v25, %v3971_v25 }
 0x17e   : > { %v1495_v31 = vadd.f32 %v1494_v51, %v3909_v43  ;;  %v1755_v36 = vadd.f32 %v1754_v23, %v1628_v9  ;;  %v1633_v43 = vmul.f32 %v3933_v21, %v3933_v21 }
 0x180   : > { %v1756_v32 = vadd.f32 %v1755_v36, %v1629_v3  ;;  %v1496_v63 = vadd.f32 %v1495_v31, %v3914_v48  ;;  %v1634_v48 = vmul.f32 %v3938_v26, %v3938_v26  ;;  %v1639_v31 = vmul.f32 %v3989_v10, %v3989_v10 }
 0x182   : > { %v1497_v54 = vadd.f32 %v1496_v63, %v3941_v35  ;;  %v1757_v34 = vadd.f32 %v1756_v32, %v1630_v8  ;;  %v1640_v32 = vmul.f32 %v3995_v11, %v3995_v11 }
 0x184   : > { %v1758_v24 = vadd.f32 %v1757_v34, %v1631_v5  ;;  %v1498_v1 = vadd.f32 %v1497_v54, %v3947_v47 }
 0x186   : > { %v1499_v40 = vadd.f32 %v1498_v1, %v3933_v21  ;;  %v1759_v37 = vadd.f32 %v1758_v24, %v1632_v6  ;;  %v1637_v21 = vmul.f32 %v3957_v7, %v3957_v7  ;;  %v1643_v24 = vmul.f32 %v4013_v61, %v4013_v61 }
 0x188   : > { %v1760_v13 = vadd.f32 %v1759_v37, %v1633_v43  ;;  %v1500_v14 = vadd.f32 %v1499_v40, %v3938_v26  ;;  %v1638_v26 = vmul.f32 %v3962_v12, %v3962_v12  ;;  %v1644_v43 = vmul.f32 %v4019_v62, %v4019_v62 }
 0x18a   : > { %v1501_v35 = vadd.f32 %v1500_v14, %v3965_v19  ;;  %v1761_v50 = vadd.f32 %v1760_v13, %v1634_v48  ;;  %v1647_v14 = vmul.f32 %v4037_v57, %v4037_v57 }
 0x18c   : > { %v1762_v55 = vadd.f32 %v1761_v50, %v1635_v41  ;;  %v1502_v47 = vadd.f32 %v1501_v35, %v3971_v25  ;;  %v1648_v50 = vmul.f32 %v4043_v60, %v4043_v60 }
 0x18e   : > { %v1503_v23 = vadd.f32 %v1502_v47, %v3957_v7  ;;  %v1763_v51 = vadd.f32 %v1762_v55, %v1636_v22  ;;  %v1641_v7 = vmul.f32 %v3981_v58, %v3981_v58 }
 0x190   : > { %v1764_v9 = vadd.f32 %v1763_v51, %v1637_v21  ;;  %v1504_v3 = vadd.f32 %v1503_v23, %v3962_v12  ;;  %v1642_v12 = vmul.f32 %v3986_v0, %v3986_v0  ;;  %v4397_v21 = vld [vmem:[#allocation3_spill] sm:$0xff] }
 0x192   : > { %v1505_v19 = vadd.f32 %v1504_v3, %v3989_v10  ;;  %v1765_v36 = vadd.f32 %v1764_v9, %v1638_v26  ;;  %v1651_v26 = vmul.f32 %v4061_v15, %v4061_v15 }
 0x194   : > { %v1766_v8 = vadd.f32 %v1765_v36, %v1639_v31  ;;  %v1506_v25 = vadd.f32 %v1505_v19, %v3995_v11  ;;  %v4399_v36 = vld [vmem:[#allocation4_spill] sm:$0xff] }
 0x196   : > { %v1507_v63 = vadd.f32 %v1506_v25, %v3981_v58  ;;  %v1767_v54 = vadd.f32 %v1766_v8, %v1640_v32  ;;  %v1645_v58 = vmul.f32 %v4005_v56, %v4005_v56  ;;  %v1653_v8 = vmul.f32 %v4399_v36, %v4399_v36 }
 0x198   : > { %v1768_v5 = vadd.f32 %v1767_v54, %v1641_v7  ;;  %v1508_v34 = vadd.f32 %v1507_v63, %v3986_v0  ;;  %v1646_v0 = vmul.f32 %v4010_v4, %v4010_v4  ;;  %v4400_v7 = vld [vmem:[#allocation5_spill] sm:$0xff] }
 0x199   : > { %v1654_v63 = vmul.f32 %v4400_v7, %v4400_v7 }
 0x19a   : > { %v1509_v10 = vadd.f32 %v1508_v34, %v4013_v61  ;;  %v1769_v1 = vadd.f32 %v1768_v5, %v1642_v12  ;;  %v1655_v5 = vmul.f32 %v4085_v17, %v4085_v17 }
 0x19c   : > { %v1770_v6 = vadd.f32 %v1769_v1, %v1643_v24  ;;  %v1510_v11 = vadd.f32 %v1509_v10, %v4019_v62  ;;  %v1656_v1 = vmul.f32 %v4091_v18, %v4091_v18 }
 0x19e   : > { %v1511_v40 = vadd.f32 %v1510_v11, %v4005_v56  ;;  %v1771_v37 = vadd.f32 %v1770_v6, %v1644_v43  ;;  %v4396_v56 = vld [vmem:[#allocation2_spill] sm:$0xff]  ;;  %v1657_v6 = vmul.f32 %v4077_v53, %v4077_v53 }
 0x19f   : > { %v1649_v55 = vmul.f32 %v4396_v56, %v4396_v56 }
 0x1a0   : > { %v1772_v48 = vadd.f32 %v1771_v37, %v1645_v58  ;;  %v1512_v13 = vadd.f32 %v1511_v40, %v4010_v4  ;;  %v1650_v4 = vmul.f32 %v4397_v21, %v4397_v21  ;;  %v1658_v58 = vmul.f32 %v4082_v39, %v4082_v39 }
 0x1a2   : > { %v1513_v61 = vadd.f32 %v1512_v13, %v4037_v57  ;;  %v1773_v35 = vadd.f32 %v1772_v48, %v1646_v0  ;;  %v1659_v0 = vmul.f32 %v4108_v20, %v4108_v20 }
 0x1a4   : > { %v1774_v41 = vadd.f32 %v1773_v35, %v1647_v14  ;;  %v1514_v62 = vadd.f32 %v1513_v61, %v4043_v60  ;;  %v4398_v60 = vld [vmem:[#allocation6_spill] sm:$0xff]  ;;  %v1660_v61 = vmul.f32 %v4116_v42, %v4116_v42 }
 0x1a5   : > { %v1652_v31 = vmul.f32 %v4398_v60, %v4398_v60 }
 0x1a6   : > { %v1515_v47 = vadd.f32 %v1514_v62, %v4396_v56  ;;  %v1775_v22 = vadd.f32 %v1774_v41, %v1648_v50  ;;  %v1663_v50 = vmul.f32 %v4135_v33, %v4135_v33 }
 0x1a8   : > { %v1776_v23 = vadd.f32 %v1775_v22, %v1649_v55  ;;  %v1516_v51 = vadd.f32 %v1515_v47, %v4397_v21  ;;  %v1664_v47 = vmul.f32 %v4146_v27, %v4146_v27 }
 0x1aa   : > { %v1517_v57 = vadd.f32 %v1516_v51, %v4061_v15  ;;  %v1777_v9 = vadd.f32 %v1776_v23, %v1650_v4  ;;  %v1667_v51 = vmul.f32 %v4165_v16, %v4165_v16 }
 0x1ac   : > { %v1778_v3 = vadd.f32 %v1777_v9, %v1651_v26  ;;  %v1518_v19 = vadd.f32 %v1517_v57, %v4398_v60  ;;  %v1668_v9 = vmul.f32 %v4176_v59, %v4176_v59 }
 0x1ae   : > { %v1519_v25 = vadd.f32 %v1518_v19, %v4399_v36  ;;  %v1779_v32 = vadd.f32 %v1778_v3, %v1652_v31  ;;  %v1671_v36 = vmul.f32 %v4195_v52, %v4195_v52 }
 0x1b0   : > { %v1780_v54 = vadd.f32 %v1779_v32, %v1653_v8  ;;  %v1520_v12 = vadd.f32 %v1519_v25, %v4400_v7  ;;  %v1673_v32 = vmul.f32 %v4189_v45, %v4189_v45 }
 0x1b2   : > { %v1521_v15 = vadd.f32 %v1520_v12, %v4085_v17  ;;  %v1781_v34 = vadd.f32 %v1780_v54, %v1654_v63 }
 0x1b4   : > { %v1782_v10 = vadd.f32 %v1781_v34, %v1655_v5  ;;  %v1522_v24 = vadd.f32 %v1521_v15, %v4091_v18 }
 0x1b6   : > { %v1523_v11 = vadd.f32 %v1522_v24, %v4077_v53  ;;  %v1783_v43 = vadd.f32 %v1782_v10, %v1656_v1  ;;  %v1661_v53 = vmul.f32 %v4104_v2, %v4104_v2 }
 0x1b8   : > { %v1784_v40 = vadd.f32 %v1783_v43, %v1657_v6  ;;  %v1524_v37 = vadd.f32 %v1523_v11, %v4082_v39  ;;  %v1662_v39 = vmul.f32 %v4111_v46, %v4111_v46 }
 0x1ba   : > { %v1525_v17 = vadd.f32 %v1524_v37, %v4108_v20  ;;  %v1785_v48 = vadd.f32 %v1784_v40, %v1658_v58 }
 0x1bc   : > { %v1786_v13 = vadd.f32 %v1785_v48, %v1659_v0  ;;  %v1526_v18 = vadd.f32 %v1525_v17, %v4116_v42 }
 0x1be   : > { %v1527_v14 = vadd.f32 %v1526_v18, %v4104_v2  ;;  %v1787_v35 = vadd.f32 %v1786_v13, %v1660_v61  ;;  %v1665_v2 = vmul.f32 %v4129_v49, %v4129_v49 }
 0x1c0   : > { %v1788_v41 = vadd.f32 %v1787_v35, %v1661_v53  ;;  %v1528_v62 = vadd.f32 %v1527_v14, %v4111_v46  ;;  %v1666_v46 = vmul.f32 %v4138_v38, %v4138_v38 }
 0x1c2   : > { %v1529_v20 = vadd.f32 %v1528_v62, %v4135_v33  ;;  %v1789_v56 = vadd.f32 %v1788_v41, %v1662_v39 }
 0x1c4   : > { %v1790_v55 = vadd.f32 %v1789_v56, %v1663_v50  ;;  %v1530_v42 = vadd.f32 %v1529_v20, %v4146_v27 }
 0x1c6   : > { %v1531_v22 = vadd.f32 %v1530_v42, %v4129_v49  ;;  %v1791_v21 = vadd.f32 %v1790_v55, %v1664_v47  ;;  %v1669_v49 = vmul.f32 %v4159_v28, %v4159_v28 }
 0x1c8   : > { %v1792_v4 = vadd.f32 %v1791_v21, %v1665_v2  ;;  %v1532_v23 = vadd.f32 %v1531_v22, %v4138_v38  ;;  %v1670_v38 = vmul.f32 %v4168_v30, %v4168_v30 }
 0x1ca   : > { %v1533_v33 = vadd.f32 %v1532_v23, %v4165_v16  ;;  %v1793_v57 = vadd.f32 %v1792_v4, %v1666_v46 }
 0x1cc   : > { %v1794_v26 = vadd.f32 %v1793_v57, %v1667_v51  ;;  %v1534_v27 = vadd.f32 %v1533_v33, %v4176_v59 }
 0x1ce   : > { %v1535_v3 = vadd.f32 %v1534_v27, %v4159_v28  ;;  %v1795_v60 = vadd.f32 %v1794_v26, %v1668_v9  ;;  %v1672_v28 = vmul.f32 %v4206_v29, %v4206_v29 }
 0x1d0   : > { %v1796_v19 = vadd.f32 %v1795_v60, %v1669_v49  ;;  %v1536_v16 = vadd.f32 %v1535_v3, %v4168_v30  ;;  %v1674_v30 = vmul.f32 %v4198_v44, %v4198_v44 }
 0x1d2   : > { %v1537_v31 = vadd.f32 %v1536_v16, %v4195_v52  ;;  %v1797_v8 = vadd.f32 %v1796_v19, %v1670_v38 }
 0x1d4   : > { %v1798_v59 = vadd.f32 %v1797_v8, %v1671_v36  ;;  %v1538_v25 = vadd.f32 %v1537_v31, %v4206_v29 }
 0x1d6   : > { %v1539_v7 = vadd.f32 %v1538_v25, %v4189_v45  ;;  %v1799_v63 = vadd.f32 %v1798_v59, %v1672_v28 }
 0x1d8   : > { %v1540_v54 = vadd.f32 %v1539_v7, %v4198_v44  ;;  %v1800_v52 = vadd.f32 %v1799_v63, %v1673_v32 }
 0x1da   : > { %v1541_v12 = vrot.slane %v1540_v54, 4  ;;  %v1801_v15 = vadd.f32 %v1800_v52, %v1674_v30 }
 0x1dc   : > { %v1542_v5 = vadd.f32 %v1541_v12, %v1540_v54  ;;  %v1802_v34 = vrot.slane %v1801_v15, 4 }
 0x1de   : > { %v1543_v10 = vrot.slane %v1542_v5, 2  ;;  %v1803_v24 = vadd.f32 %v1802_v34, %v1801_v15 }
 0x1e0   : > { %v1544_v29 = vadd.f32 %v1543_v10, %v1542_v5  ;;  %v1804_v1 = vrot.slane %v1803_v24, 2 }
 0x1e2   : > { %v1545_v6 = vrot.slane %v1544_v29, 1  ;;  %v1805_v11 = vadd.f32 %v1804_v1, %v1803_v24 }
 0x1e4   : > { %v1806_v45 = vrot.slane %v1805_v11, 1  ;;  %v1546_v44 = vadd.f32 %v1545_v6, %v1544_v29 }
 0x1e6   : > { %v1807_v43 = vadd.f32 %v1806_v45, %v1805_v11 }
 0x1e8   : > { %v1809_v58 = vsel %vm1808_vm1, %v1546_v44, %v1807_v43 }
 0x1e9   : > { %1810 = vst [vmem:[%s211_s8] sm:$0x3] %v1809_v58 }
 0x1ea PF: > { %s15_s15 = sadd.s32 1, %s3596_s15  }
 0x1eb   : > { %p12_p5 = scmp.ge.s32.totalorder %s15_s15, 4  }
 0x1ed   :  { %14 = sbr.rel (!%p12_p5) target bundleno = 1 (0x1), region = 74 }

// kernel: decoder_block.5
= control target key start
LH: loop header
LB: loop body
LE: loop exit
PB: predicated region body
PF: predicated region fallthrough
CT: control target
= control target key end

     0   :  { %s4000_s21 = smov 0   ;;  %s5034_s0 = inlined_call_operand.vmem [shape: bf16[2048,128], index: 0, kind: input, shape index: {}]   ;;  %s5035_s1 = inlined_call_operand.vmem [shape: f32[1,128], index: 1, kind: input, shape index: {}]   ;;  %s5036_s2 = inlined_call_operand.vmem [shape: f32[1,128], index: 2, kind: input, shape index: {}]   ;;  %s5037_s3 = inlined_call_operand.vmem [shape: bf16[128,128], index: 3, kind: input, shape index: {}]   ;;  %s5038_s4 = inlined_call_operand.vmem [shape: f32[1,128], index: 4, kind: input, shape index: {}]   ;;  %s5039_s5 = inlined_call_operand.vmem [shape: bf16[2048,128], index: 5, kind: output, shape index: {0}]   ;;  %s5040_s6 = inlined_call_operand.vmem [shape: f32[2,2,128], index: 6, kind: output, shape index: {1}]  }
   0x1 LB: > { %s4006_s22 = sadd.s32 4294967295, %s3963_s21   ;;  %p2729_p0 = scmp.ge.s32.totalorder %s3963_s21, 1  ;;  %s3963_s21 = sphi %s4000_s21, %s17_s21  }
   0x2   : > { %p216_p1 = scmp.lt.s32.totalorder %s3963_s21, 3 }
   0x4   : > { %p217_p2 = pnand %p2729_p0, %p216_p1 }
   0x5   : > { %s2730_s25 = sshll.u32 (!%p217_p2), %s4006_s22, 7  ;;  %p262_p4 = scmp.lt.s32.totalorder (!%p217_p2), %s4006_s22, 1 }
   0x6   : > { %220 = sbr.rel (%p217_p2) target bundleno = 515 (0x203), region = 40  ;;  %p251_p3 = scmp.lt.s32.totalorder (!%p217_p2), %s2730_s25, 255 }
   0xb   : > { %v3946_v0 = vld [vmem:[%s5037_s3 + $0x38] sm:$0xff]   ;;  %v3947_v1 = vld [vmem:[%s5037_s3 + $0x30] sm:$0xff]   ;;  %s5042_s25 = smov (!%p251_p3, %s2730_s25), 255  ;;  %v3948_v2 = vld [vmem:[%s5037_s3 + $0x28] sm:$0xff]   ;;  %s5044_s22 = smov (!%p262_p4, %s4006_s22), 1  ;;  %vm1995_vm0 = vcmask 1040384  }
   0xc   : > { %3778 = vmatprep.subr.bf16.mxu0 %v3946_v0  ;;  %3922 = vmatprep.subr.bf16.mxu1 %v3946_v0  ;;  %s2731_s30 = sshll.u32 %s5042_s25, 2  ;;  %v3949_v3 = vld [vmem:[%s5037_s3 + $0x20] sm:$0xff]   ;;  %v3950_v12 = vld [vmem:[%s5037_s3 + $0x18] sm:$0xff]   ;;  %v3951_v22 = vld [vmem:[%s5037_s3 + $0x10] sm:$0xff]   ;;  %s2734_s13 = sshll.u32 %s5044_s22, 1 }
   0xd   : > { %3779 = vmatpush3.bf16.msra.mxu0 %v3946_v0  ;;  %3930 = vmatpush3.bf16.msra.mxu1 %v3946_v0  ;;  %s4028_s9 = scalar_lea.vmem %s5034_s0, %s2731_s30  ;;  %v4037_v5 = vld [vmem:[%s5035_s1] ss:$0 sm:$0xff]  ;;  %v3952_v29 = vld [vmem:[%s5037_s3 + $0x8] sm:$0xff]   ;;  %s4446_s12 = scalar_lea.vmem %s5039_s5, %s2731_s30 }
   0xe   : > { %3780 = vmatprep.subr.bf16.mxu0 %v3947_v1  ;;  %3923 = vmatprep.subr.bf16.mxu1 %v3947_v1  ;;  %v3005_v4 = vld [vmem:[%s4028_s9] sm:$0xff]   ;;  %v3580_v11 = vld [vmem:[%s4028_s9 + $0x8] sm:$0xff]   ;;  %v3581_v13 = vld [vmem:[%s4028_s9 + $0x10] sm:$0xff]   ;;  %s265_s16 = scalar_lea.vmem %s5040_s6, %s2734_s13 }
   0xf   : > { %v3006_v6 = vunpack.c.l.bf16 %v3005_v4  ;;  %v3007_v7 = vunpack.c.h.bf16 %v3005_v4  ;;  %v4042_v8 = vld [vmem:[%s5036_s2] ss:$0 sm:$0xff]  ;;  %v3010_v16 = vunpack.c.l.bf16 %v3580_v11  ;;  %v3011_v17 = vunpack.c.h.bf16 %v3580_v11  ;;  %v3582_v26 = vld [vmem:[%s4028_s9 + $0x18] sm:$0xff]   ;;  %v3584_v48 = vld [vmem:[%s4028_s9 + $0x28] sm:$0xff]  }
  0x10   : > { %v3014_v20 = vunpack.c.l.bf16 %v3581_v13  ;;  %v3015_v21 = vunpack.c.h.bf16 %v3581_v13  ;;  %v3583_v30 = vld [vmem:[%s4028_s9 + $0x20] sm:$0xff]   ;;  %v3018_v31 = vunpack.c.l.bf16 %v3582_v26  ;;  %v3019_v32 = vunpack.c.h.bf16 %v3582_v26  ;;  %v3585_v49 = vld [vmem:[%s4028_s9 + $0x30] sm:$0xff]   ;;  %v3590_v26 = vld [vmem:[%s4028_s9 + $0x58] sm:$0xff]  }
  0x11   : > { %3781 = vmatpush3.bf16.msra.mxu0 %v3947_v1  ;;  %3931 = vmatpush3.bf16.msra.mxu1 %v3947_v1  ;;  %v530_v9 = vmul.f32 %v3006_v6, %v4037_v5  ;;  %v531_v10 = vmul.f32 %v3007_v7, %v4037_v5  ;;  %v532_v24 = vmul.f32 %v3010_v16, %v4037_v5  ;;  %v3022_v37 = vunpack.c.l.bf16 %v3583_v30  ;;  %v3953_v39 = vld [vmem:[%s5037_s3] sm:$0xff]   ;;  %v3586_v1 = vld [vmem:[%s4028_s9 + $0x38] sm:$0xff]  }
  0x12   : > { %3782 = vmatprep.subr.bf16.mxu0 %v3948_v2  ;;  %3924 = vmatprep.subr.bf16.mxu1 %v3948_v2  ;;  %v533_v25 = vmul.f32 %v3011_v17, %v4037_v5  ;;  %v534_v27 = vmul.f32 %v3014_v20, %v4037_v5  ;;  %v535_v28 = vmul.f32 %v3015_v21, %v4037_v5  ;;  %v3023_v38 = vunpack.c.h.bf16 %v3583_v30  ;;  %v3587_v6 = vld [vmem:[%s4028_s9 + $0x40] sm:$0xff]   ;;  %v3589_v21 = vld [vmem:[%s4028_s9 + $0x50] sm:$0xff]  }
  0x13   : > { %v665_v14 = vadd.f32 %v4042_v8, %v530_v9  ;;  %v666_v15 = vadd.f32 %v4042_v8, %v531_v10  ;;  %v667_v33 = vadd.f32 %v4042_v8, %v532_v24  ;;  %v536_v40 = vmul.f32 %v3018_v31, %v4037_v5 }
  0x14   : > { %v668_v34 = vadd.f32 %v4042_v8, %v533_v25  ;;  %v669_v35 = vadd.f32 %v4042_v8, %v534_v27  ;;  %v670_v36 = vadd.f32 %v4042_v8, %v535_v28  ;;  %v537_v41 = vmul.f32 %v3019_v32, %v4037_v5 }
  0x15   : > { %3783 = vmatpush3.bf16.msra.mxu0 %v3948_v2  ;;  %3932 = vmatpush3.bf16.msra.mxu1 %v3948_v2  ;;  %v793_v18 = vmax.f32 %v665_v14, 0.0  ;;  %v794_v19 = vmax.f32 %v666_v15, 0.0  ;;  %v795_v42 = vmax.f32 %v667_v33, 0.0  ;;  %v538_v46 = vmul.f32 %v3022_v37, %v4037_v5 }
  0x16   : > { %3784 = vmatprep.subr.bf16.mxu0 %v3949_v3  ;;  %3925 = vmatprep.subr.bf16.mxu1 %v3949_v3  ;;  %v796_v43 = vmax.f32 %v668_v34, 0.0  ;;  %v797_v44 = vmax.f32 %v669_v35, 0.0  ;;  %v798_v45 = vmax.f32 %v670_v36, 0.0  ;;  %v539_v47 = vmul.f32 %v3023_v38, %v4037_v5 }
  0x17   : > { %v921_v23 = vpack.c.bf16 %v794_v19, %v793_v18  ;;  %v671_v50 = vadd.f32 %v4042_v8, %v536_v40  ;;  %v672_v51 = vadd.f32 %v4042_v8, %v537_v41  ;;  %v3026_v53 = vunpack.c.l.bf16 %v3584_v48  ;;  %v3588_v18 = vld [vmem:[%s4028_s9 + $0x48] sm:$0xff]  }
  0x18   : > { %v922_v52 = vpack.c.bf16 %v796_v43, %v795_v42  ;;  %v3027_v54 = vunpack.c.h.bf16 %v3584_v48  ;;  %v3030_v55 = vunpack.c.l.bf16 %v3585_v49  ;;  %v923_v56 = vpack.c.bf16 %v798_v45, %v797_v44  ;;  %v3591_v45 = vld [vmem:[%s4028_s9 + $0x60] sm:$0xff]  }
  0x19   : > { %3785 = vmatpush3.bf16.msra.mxu0 %v3949_v3  ;;  %3933 = vmatpush3.bf16.msra.mxu1 %v3949_v3  ;;  %v673_v57 = vadd.f32 %v4042_v8, %v538_v46  ;;  %v674_v58 = vadd.f32 %v4042_v8, %v539_v47  ;;  %v3031_v59 = vunpack.c.h.bf16 %v3585_v49  ;;  %v799_v60 = vmax.f32 %v671_v50, 0.0 }
  0x1a   : > { %3786 = vmatprep.subr.bf16.mxu0 %v3950_v12  ;;  %3926 = vmatprep.subr.bf16.mxu1 %v3950_v12  ;;  %v800_v61 = vmax.f32 %v672_v51, 0.0  ;;  %v540_v62 = vmul.f32 %v3026_v53, %v4037_v5  ;;  %v541_v63 = vmul.f32 %v3027_v54, %v4037_v5  ;;  %v542_v0 = vmul.f32 %v3030_v55, %v4037_v5 }
  0x1b   : > { %3794 = vmatprep.mubr.bf16.mxu0 %v921_v23  ;;  %v801_v2 = vmax.f32 %v673_v57, 0.0  ;;  %v802_v3 = vmax.f32 %v674_v58, 0.0  ;;  %v543_v4 = vmul.f32 %v3031_v59, %v4037_v5  ;;  %v3034_v7 = vunpack.c.l.bf16 %v3586_v1  ;;  %v3592_v57 = vld [vmem:[%s4028_s9 + $0x68] sm:$0xff]  }
  0x1c   : > { %v3035_v9 = vunpack.c.h.bf16 %v3586_v1  ;;  %v924_v10 = vpack.c.bf16 %v800_v61, %v799_v60  ;;  %v675_v11 = vadd.f32 %v4042_v8, %v540_v62  ;;  %v677_v13 = vadd.f32 %v4042_v8, %v542_v0 }
  0x1d   : > { %3787 = vmatpush3.bf16.msra.mxu0 %v3950_v12  ;;  %3934 = vmatpush3.bf16.msra.mxu1 %v3950_v12  ;;  %v676_v12 = vadd.f32 %v4042_v8, %v541_v63  ;;  %v925_v14 = vpack.c.bf16 %v802_v3, %v801_v2  ;;  %v678_v15 = vadd.f32 %v4042_v8, %v543_v4  ;;  %v3038_v16 = vunpack.c.l.bf16 %v3587_v6 }
  0x1e   : > { %3788 = vmatprep.subr.bf16.mxu0 %v3951_v22  ;;  %3927 = vmatprep.subr.bf16.mxu1 %v3951_v22  ;;  %v3039_v17 = vunpack.c.h.bf16 %v3587_v6  ;;  %v544_v19 = vmul.f32 %v3034_v7, %v4037_v5  ;;  %v545_v20 = vmul.f32 %v3035_v9, %v4037_v5  ;;  %v805_v24 = vmax.f32 %v677_v13, 0.0 }
  0x1f   : > { %v804_v23 = vmax.f32 %v676_v12, 0.0  ;;  %v3042_v25 = vunpack.c.l.bf16 %v3588_v18  ;;  %v806_v27 = vmax.f32 %v678_v15, 0.0  ;;  %v546_v28 = vmul.f32 %v3038_v16, %v4037_v5  ;;  %v3594_v12 = vld [vmem:[%s4028_s9 + $0x78] sm:$0xff]   ;;  %v3595_v16 = vld [vmem:[%s4028_s9 + $0x80] sm:$0xff]  }
  0x20   : > { %v3043_v30 = vunpack.c.h.bf16 %v3588_v18  ;;  %v3046_v31 = vunpack.c.l.bf16 %v3589_v21  ;;  %v3047_v32 = vunpack.c.h.bf16 %v3589_v21  ;;  %v3050_v33 = vunpack.c.l.bf16 %v3590_v26 }
  0x21   : > { %3789 = vmatpush3.bf16.msra.mxu0 %v3951_v22  ;;  %3935 = vmatpush3.bf16.msra.mxu1 %v3951_v22  ;;  %v803_v22 = vmax.f32 %v675_v11, 0.0  ;;  %v3051_v34 = vunpack.c.h.bf16 %v3590_v26  ;;  %v679_v36 = vadd.f32 %v4042_v8, %v544_v19  ;;  %v680_v37 = vadd.f32 %v4042_v8, %v545_v20  ;;  %v3593_v11 = vld [vmem:[%s4028_s9 + $0x70] sm:$0xff]  }
  0x22   : > { %3790 = vmatprep.subr.bf16.mxu0 %v3952_v29  ;;  %3928 = vmatprep.subr.bf16.mxu1 %v3952_v29  ;;  %v548_v38 = vmul.f32 %v3042_v25, %v4037_v5  ;;  %v681_v40 = vadd.f32 %v4042_v8, %v546_v28  ;;  %v549_v42 = vmul.f32 %v3043_v30, %v4037_v5  ;;  %v3054_v54 = vunpack.c.l.bf16 %v3591_v45 }
  0x23   : > { %v926_v35 = vpack.c.bf16 %v804_v23, %v803_v22  ;;  %v550_v43 = vmul.f32 %v3046_v31, %v4037_v5  ;;  %v551_v44 = vmul.f32 %v3047_v32, %v4037_v5  ;;  %v552_v46 = vmul.f32 %v3050_v33, %v4037_v5  ;;  %v3597_v22 = vld [vmem:[%s4028_s9 + $0x90] sm:$0xff]  }
  0x24   : > { %v553_v47 = vmul.f32 %v3051_v34, %v4037_v5  ;;  %v807_v48 = vmax.f32 %v679_v36, 0.0  ;;  %v808_v49 = vmax.f32 %v680_v37, 0.0  ;;  %v683_v50 = vadd.f32 %v4042_v8, %v548_v38 }
  0x25   : > { %3791 = vmatpush3.bf16.msra.mxu0 %v3952_v29  ;;  %3936 = vmatpush3.bf16.msra.mxu1 %v3952_v29  ;;  %v547_v29 = vmul.f32 %v3039_v17, %v4037_v5  ;;  %v809_v51 = vmax.f32 %v681_v40, 0.0  ;;  %v684_v53 = vadd.f32 %v4042_v8, %v549_v42  ;;  %v685_v55 = vadd.f32 %v4042_v8, %v550_v43  ;;  %v3596_v17 = vld [vmem:[%s4028_s9 + $0x88] sm:$0xff]   ;;  %v3599_v40 = vld [vmem:[%s4028_s9 + $0xa0] sm:$0xff]  }
  0x26   : > { %3792 = vmatprep.subr.bf16.mxu0 %v3953_v39  ;;  %3929 = vmatprep.subr.bf16.mxu1 %v3953_v39  ;;  %v687_v58 = vadd.f32 %v4042_v8, %v552_v46  ;;  %v688_v59 = vadd.f32 %v4042_v8, %v553_v47  ;;  %v3055_v60 = vunpack.c.h.bf16 %v3591_v45  ;;  %v928_v61 = vpack.c.bf16 %v808_v49, %v807_v48 }
  0x27   : > { %v682_v41 = vadd.f32 %v4042_v8, %v547_v29  ;;  %v811_v62 = vmax.f32 %v683_v50, 0.0  ;;  %v812_v0 = vmax.f32 %v684_v53, 0.0  ;;  %v554_v1 = vmul.f32 %v3054_v54, %v4037_v5 }
  0x28   : > { %v3058_v2 = vunpack.c.l.bf16 %v3592_v57  ;;  %v813_v3 = vmax.f32 %v685_v55, 0.0  ;;  %v3059_v6 = vunpack.c.h.bf16 %v3592_v57  ;;  %v815_v7 = vmax.f32 %v687_v58, 0.0 }
  0x29   : > { %3793 = vmatpush3.bf16.msra.mxu0 %v3953_v39  ;;  %3937 = vmatpush3.bf16.msra.mxu1 %v3953_v39  ;;  %v927_v39 = vpack.c.bf16 %v806_v27, %v805_v24  ;;  %v816_v9 = vmax.f32 %v688_v59, 0.0  ;;  %v930_v13 = vpack.c.bf16 %v812_v0, %v811_v62  ;;  %v3062_v20 = vunpack.c.l.bf16 %v3593_v11  ;;  %v3598_v27 = vld [vmem:[%s4028_s9 + $0x98] sm:$0xff]  }
  0x2a   : > { %v556_v15 = vmul.f32 %v3058_v2, %v4037_v5  ;;  %v557_v19 = vmul.f32 %v3059_v6, %v4037_v5  ;;  %v3063_v21 = vunpack.c.h.bf16 %v3593_v11  ;;  %v3066_v25 = vunpack.c.l.bf16 %v3594_v12 }
  0x2b   : > { %v932_v23 = vpack.c.bf16 %v816_v9, %v815_v7  ;;  %v3067_v26 = vunpack.c.h.bf16 %v3594_v12  ;;  %v3070_v28 = vunpack.c.l.bf16 %v3595_v16  ;;  %v3071_v29 = vunpack.c.h.bf16 %v3595_v16 }
  0x2c   : > { %3795 = vmatmul.mubr.bf16.vlgmr.msra.gmra.mxu0 %v922_v52  ;;  %v810_v52 = vmax.f32 %v682_v41, 0.0  ;;  %v3074_v30 = vunpack.c.l.bf16 %v3596_v17  ;;  %v3075_v31 = vunpack.c.h.bf16 %v3596_v17  ;;  %v691_v33 = vadd.f32 %v4042_v8, %v556_v15 }
  0x2d   : > { %3798 = vmatprep.mubr.bf16.mxu0 %v923_v56  ;;  %v686_v56 = vadd.f32 %v4042_v8, %v551_v44  ;;  %v3078_v34 = vunpack.c.l.bf16 %v3597_v22  ;;  %v692_v36 = vadd.f32 %v4042_v8, %v557_v19  ;;  %v558_v37 = vmul.f32 %v3062_v20, %v4037_v5  ;;  %v3601_v20 = vld [vmem:[%s4028_s9 + $0xb0] sm:$0xff]  }
  0x2e   : > { %v929_v63 = vpack.c.bf16 %v810_v52, %v809_v51  ;;  %v3082_v38 = vunpack.c.l.bf16 %v3598_v27  ;;  %v559_v42 = vmul.f32 %v3063_v21, %v4037_v5  ;;  %v560_v43 = vmul.f32 %v3066_v25, %v4037_v5 }
  0x2f   : > { %v814_v4 = vmax.f32 %v686_v56, 0.0  ;;  %v561_v44 = vmul.f32 %v3067_v26, %v4037_v5  ;;  %v562_v45 = vmul.f32 %v3070_v28, %v4037_v5  ;;  %v563_v46 = vmul.f32 %v3071_v29, %v4037_v5  ;;  %v3611_v26 = vld [vmem:[%s4028_s9 + $0x100] sm:$0xff]  }
  0x30   : > { %v564_v47 = vmul.f32 %v3074_v30, %v4037_v5  ;;  %v565_v48 = vmul.f32 %v3075_v31, %v4037_v5  ;;  %v819_v49 = vmax.f32 %v691_v33, 0.0  ;;  %v566_v50 = vmul.f32 %v3078_v34, %v4037_v5  ;;  %v4167_v34 = vld [vmem:[%s4028_s9 + $0xb8] sm:$0xff]  }
  0x31   : > { %v931_v18 = vpack.c.bf16 %v814_v4, %v813_v3  ;;  %v3086_v52 = vunpack.c.l.bf16 %v3599_v40  ;;  %v820_v53 = vmax.f32 %v692_v36, 0.0  ;;  %v693_v54 = vadd.f32 %v4042_v8, %v558_v37 }
  0x32   : > { %v568_v55 = vmul.f32 %v3082_v38, %v4037_v5  ;;  %v694_v58 = vadd.f32 %v4042_v8, %v559_v42  ;;  %v695_v59 = vadd.f32 %v4042_v8, %v560_v43  ;;  %v697_v62 = vadd.f32 %v4042_v8, %v562_v45 }
  0x33   : > { %v699_v0 = vadd.f32 %v4042_v8, %v564_v47  ;;  %v701_v2 = vadd.f32 %v4042_v8, %v566_v50  ;;  %v3087_v4 = vunpack.c.h.bf16 %v3599_v40  ;;  %v570_v6 = vmul.f32 %v3086_v52, %v4037_v5 }
  0x34   : > { %3799 = vmatmul.mubr.bf16.gmra.mxu0 %v924_v10  ;;  %v555_v10 = vmul.f32 %v3055_v60, %v4037_v5  ;;  %v696_v60 = vadd.f32 %v4042_v8, %v561_v44  ;;  %v821_v7 = vmax.f32 %v693_v54, 0.0  ;;  %v703_v9 = vadd.f32 %v4042_v8, %v568_v55  ;;  %v3613_v44 = vld [vmem:[%s4028_s9 + $0x110] sm:$0xff]  }
  0x35   : > { %3802 = vmatprep.mubr.bf16.mxu0 %v925_v14  ;;  %v689_v14 = vadd.f32 %v4042_v8, %v554_v1  ;;  %v700_v1 = vadd.f32 %v4042_v8, %v565_v48  ;;  %v822_v12 = vmax.f32 %v694_v58, 0.0  ;;  %v825_v16 = vmax.f32 %v697_v62, 0.0 }
  0x36   : > { %v690_v24 = vadd.f32 %v4042_v8, %v555_v10  ;;  %v829_v21 = vmax.f32 %v701_v2, 0.0  ;;  %v4161_v25 = vadd.f32 %v4042_v8, %v570_v6  ;;  %v831_v28 = vmax.f32 %v703_v9, 0.0  ;;  %v3615_v2 = vld [vmem:[%s4028_s9 + $0x120] sm:$0xff]  }
  0x37   : > { %v817_v32 = vmax.f32 %v689_v14, 0.0  ;;  %v824_v14 = vmax.f32 %v696_v60, 0.0  ;;  %v828_v19 = vmax.f32 %v700_v1, 0.0  ;;  %v935_v30 = vpack.c.bf16 %v822_v12, %v821_v7 }
  0x38   : > { %v818_v41 = vmax.f32 %v690_v24, 0.0  ;;  %v571_v24 = vmul.f32 %v3087_v4, %v4037_v5  ;;  %v3094_v33 = vunpack.c.l.bf16 %v3601_v20  ;;  %v3095_v37 = vunpack.c.h.bf16 %v3601_v20 }
  0x39   : > { %v3134_v38 = vunpack.c.l.bf16 %v3611_v26  ;;  %v833_v42 = vmax.f32 %v4161_v25, 0.0  ;;  %v3135_v43 = vunpack.c.h.bf16 %v3611_v26  ;;  %v3098_v47 = vunpack.c.l.bf16 %v4167_v34 }
  0x3a   : > { %v933_v57 = vpack.c.bf16 %v818_v41, %v817_v32  ;;  %v4175_v41 = vadd.f32 %v4042_v8, %v571_v24  ;;  %v4190_v50 = vmul.f32 %v3094_v33, %v4037_v5  ;;  %v4195_v54 = vmul.f32 %v3095_v37, %v4037_v5 }
  0x3b   : > { %v594_v48 = vmul.f32 %v3134_v38, %v4037_v5  ;;  %v3151_v24 = vunpack.c.h.bf16 %v3615_v2 }
  0x3c   : > { %3803 = vmatmul.mubr.bf16.gmra.mxu0 %v926_v35  ;;  %v3079_v35 = vunpack.c.h.bf16 %v3597_v22  ;;  %v834_v58 = vmax.f32 %v4175_v41, 0.0 }
  0x3d   : > { %3806 = vmatprep.mubr.bf16.mxu0 %v927_v39  ;;  %v3083_v39 = vunpack.c.h.bf16 %v3598_v27  ;;  %v934_v27 = vpack.c.bf16 %v820_v53, %v819_v49  ;;  %v3614_v53 = vld [vmem:[%s4028_s9 + $0x118] sm:$0xff]   ;;  %v729_v55 = vadd.f32 %v4042_v8, %v594_v48  ;;  %v603_v37 = vmul.f32 %v3151_v24, %v4037_v5 }
  0x3e   : > { %v567_v51 = vmul.f32 %v3079_v35, %v4037_v5  ;;  %v3146_v1 = vunpack.c.l.bf16 %v3614_v53 }
  0x3f   : > { %v569_v56 = vmul.f32 %v3083_v39, %v4037_v5  ;;  %v3612_v39 = vld [vmem:[%s4028_s9 + $0x108] sm:$0xff]   ;;  %v857_v62 = vmax.f32 %v729_v55, 0.0  ;;  %v738_v55 = vadd.f32 %v4042_v8, %v603_v37 }
  0x40   : > { %v702_v3 = vadd.f32 %v4042_v8, %v567_v51  ;;  %v595_v51 = vmul.f32 %v3135_v43, %v4037_v5  ;;  %v3138_v52 = vunpack.c.l.bf16 %v3612_v39  ;;  %v600_v12 = vmul.f32 %v3146_v1, %v4037_v5  ;;  %v3603_v43 = vld [vmem:[%s4028_s9 + $0xc0] sm:$0xff]  }
  0x41   : > { %v704_v10 = vadd.f32 %v4042_v8, %v569_v56  ;;  %v3139_v56 = vunpack.c.h.bf16 %v3612_v39 }
  0x42   : > { %v830_v22 = vmax.f32 %v702_v3, 0.0  ;;  %v596_v60 = vmul.f32 %v3138_v52, %v4037_v5  ;;  %v3618_v52 = vld [vmem:[%s4028_s9 + $0x138] sm:$0xff]  }
  0x43   : > { %v832_v29 = vmax.f32 %v704_v10, 0.0  ;;  %v3162_v1 = vunpack.c.l.bf16 %v3618_v52 }
  0x44   : > { %3807 = vmatmul.mubr.bf16.gmra.mxu0 %v928_v61  ;;  %v3600_v61 = vld [vmem:[%s4028_s9 + $0xa8] sm:$0xff]   ;;  %v4172_v40 = vpack.c.bf16 %v830_v22, %v829_v21  ;;  %v731_v6 = vadd.f32 %v4042_v8, %v596_v60  ;;  %v735_v21 = vadd.f32 %v4042_v8, %v600_v12 }
  0x45   : > { %3810 = vmatprep.mubr.bf16.mxu0 %v929_v63  ;;  %v698_v63 = vadd.f32 %v4042_v8, %v563_v46  ;;  %v3090_v11 = vunpack.c.l.bf16 %v3600_v61  ;;  %v3091_v15 = vunpack.c.h.bf16 %v3600_v61  ;;  %v4179_v45 = vpack.c.bf16 %v832_v29, %v831_v28  ;;  %v3617_v28 = vld [vmem:[%s4028_s9 + $0x130] sm:$0xff]  }
  0x46   : > { %v3143_v61 = vunpack.c.h.bf16 %v3613_v44  ;;  %v3158_v48 = vunpack.c.l.bf16 %v3617_v28 }
  0x47   : > { %v826_v17 = vmax.f32 %v698_v63, 0.0  ;;  %v573_v32 = vmul.f32 %v3091_v15, %v4037_v5  ;;  %v597_v63 = vmul.f32 %v3139_v56, %v4037_v5  ;;  %v859_v15 = vmax.f32 %v731_v6, 0.0 }
  0x48   : > { %v599_v7 = vmul.f32 %v3143_v61, %v4037_v5  ;;  %v606_v60 = vmul.f32 %v3158_v48, %v4037_v5 }
  0x49   : > { %v937_v35 = vpack.c.bf16 %v826_v17, %v825_v16  ;;  %v4187_v49 = vadd.f32 %v4042_v8, %v573_v32  ;;  %v732_v9 = vadd.f32 %v4042_v8, %v597_v63  ;;  %v3150_v17 = vunpack.c.l.bf16 %v3615_v2 }
  0x4a   : > { %v734_v16 = vadd.f32 %v4042_v8, %v599_v7  ;;  %v3102_v63 = vunpack.c.l.bf16 %v3603_v43  ;;  %v3163_v2 = vunpack.c.h.bf16 %v3618_v52  ;;  %v741_v6 = vadd.f32 %v4042_v8, %v606_v60 }
  0x4b   : > { %v602_v26 = vmul.f32 %v3150_v17, %v4037_v5 }
  0x4c   : > { %3811 = vmatmul.mubr.bf16.gmra.mxu0 %v930_v13  ;;  %v823_v13 = vmax.f32 %v695_v59, 0.0  ;;  %v730_v59 = vadd.f32 %v4042_v8, %v595_v51  ;;  %v862_v22 = vmax.f32 %v734_v16, 0.0  ;;  %v3159_v51 = vunpack.c.h.bf16 %v3617_v28  ;;  %v3605_v28 = vld [vmem:[%s4028_s9 + $0xd0] sm:$0xff]  }
  0x4d   : > { %3814 = vmatprep.mubr.bf16.mxu0 %v931_v18  ;;  %v827_v18 = vmax.f32 %v699_v0, 0.0  ;;  %v737_v38 = vadd.f32 %v4042_v8, %v602_v26  ;;  %v869_v41 = vmax.f32 %v741_v6, 0.0  ;;  %v3110_v52 = vunpack.c.l.bf16 %v3605_v28 }
  0x4e   : > { %v936_v31 = vpack.c.bf16 %v824_v14, %v823_v13  ;;  %v858_v4 = vmax.f32 %v730_v59, 0.0  ;;  %v3616_v13 = vld [vmem:[%s4028_s9 + $0x128] sm:$0xff]   ;;  %v709_v59 = vadd.f32 %v4042_v8, %v4190_v50  ;;  %v607_v61 = vmul.f32 %v3159_v51, %v4037_v5 }
  0x4f   : > { %v4169_v36 = vpack.c.bf16 %v828_v19, %v827_v18  ;;  %v860_v18 = vmax.f32 %v732_v9, 0.0  ;;  %v3155_v32 = vunpack.c.h.bf16 %v3616_v13  ;;  %v865_v56 = vmax.f32 %v737_v38, 0.0 }
  0x50   : > { %v953_v14 = vpack.c.bf16 %v858_v4, %v857_v62  ;;  %v3619_v62 = vld [vmem:[%s4028_s9 + $0x140] sm:$0xff]   ;;  %v742_v50 = vadd.f32 %v4042_v8, %v607_v61  ;;  %v837_v17 = vmax.f32 %v709_v59, 0.0 }
  0x51   : > { %v954_v29 = vpack.c.bf16 %v860_v18, %v859_v15  ;;  %v3166_v7 = vunpack.c.l.bf16 %v3619_v62  ;;  %v3167_v9 = vunpack.c.h.bf16 %v3619_v62  ;;  %v608_v15 = vmul.f32 %v3162_v1, %v4037_v5  ;;  %v3604_v18 = vld [vmem:[%s4028_s9 + $0xc8] sm:$0xff]   ;;  %v3622_v62 = vld [vmem:[%s4028_s9 + $0x158] sm:$0xff]  }
  0x52   : > { %3858 = vmatprep.mubr.bf16.mxu1 %v953_v14  ;;  %v941_v14 = vpack.c.bf16 %v834_v58, %v833_v42  ;;  %v870_v42 = vmax.f32 %v742_v50, 0.0  ;;  %v3107_v51 = vunpack.c.h.bf16 %v3604_v18 }
  0x53   : > { %3859 = vmatmul.mubr.bf16.vlgmr.msra.gmra.mxu1 %v954_v29  ;;  %v610_v58 = vmul.f32 %v3166_v7, %v4037_v5  ;;  %v743_v29 = vadd.f32 %v4042_v8, %v608_v15 }
  0x54   : > { %3815 = vmatmul.mubr.bf16.gmra.mxu0 %v932_v23  ;;  %v572_v23 = vmul.f32 %v3090_v11, %v4037_v5  ;;  %v3147_v11 = vunpack.c.h.bf16 %v3614_v53  ;;  %v3099_v53 = vunpack.c.h.bf16 %v4167_v34  ;;  %v959_v38 = vpack.c.bf16 %v870_v42, %v869_v41 }
  0x55   : > { %3818 = vmatprep.mubr.bf16.mxu0 %v933_v57  ;;  %v3142_v57 = vunpack.c.l.bf16 %v3613_v44 }
  0x56   : > { %v4182_v46 = vadd.f32 %v4042_v8, %v572_v23  ;;  %v601_v20 = vmul.f32 %v3147_v11, %v4037_v5  ;;  %v577_v11 = vmul.f32 %v3099_v53, %v4037_v5 }
  0x57   : > { %v598_v0 = vmul.f32 %v3142_v57, %v4037_v5  ;;  %v836_v57 = vmax.f32 %v4187_v49, 0.0 }
  0x58   : > { %v835_v3 = vmax.f32 %v4182_v46, 0.0  ;;  %v736_v23 = vadd.f32 %v4042_v8, %v601_v20  ;;  %v3620_v20 = vld [vmem:[%s4028_s9 + $0x148] sm:$0xff]   ;;  %v712_v46 = vadd.f32 %v4042_v8, %v577_v11 }
  0x59   : > { %v733_v10 = vadd.f32 %v4042_v8, %v598_v0  ;;  %v866_v0 = vmax.f32 %v738_v55, 0.0  ;;  %v3606_v55 = vld [vmem:[%s4028_s9 + $0xd8] sm:$0xff]  }
  0x5a   : > { %v864_v44 = vmax.f32 %v736_v23, 0.0  ;;  %v4255_v16 = vpack.c.bf16 %v836_v57, %v835_v3  ;;  %v840_v59 = vmax.f32 %v712_v46, 0.0  ;;  %v3114_v6 = vunpack.c.l.bf16 %v3606_v55 }
  0x5b   : > { %v861_v19 = vmax.f32 %v733_v10, 0.0  ;;  %v957_v49 = vpack.c.bf16 %v866_v0, %v865_v56  ;;  %v710_v10 = vadd.f32 %v4042_v8, %v4195_v54  ;;  %v609_v54 = vmul.f32 %v3163_v2, %v4037_v5 }
  0x5c   : > { %3819 = vmatmul.mubr.bf16.gmra.mxu0 %v934_v27  ;;  %v3154_v27 = vunpack.c.l.bf16 %v3616_v13  ;;  %v3103_v13 = vunpack.c.h.bf16 %v3603_v43  ;;  %v871_v56 = vmax.f32 %v743_v29, 0.0  ;;  %v3115_v41 = vunpack.c.h.bf16 %v3606_v55 }
  0x5d   : > { %3822 = vmatprep.mubr.bf16.mxu0 %v935_v30  ;;  %v863_v30 = vmax.f32 %v735_v21, 0.0  ;;  %v955_v33 = vpack.c.bf16 %v862_v22, %v861_v19  ;;  %v611_v19 = vmul.f32 %v3167_v9, %v4037_v5  ;;  %v3621_v21 = vld [vmem:[%s4028_s9 + $0x150] sm:$0xff]   ;;  %v838_v22 = vmax.f32 %v710_v10, 0.0 }
  0x5e   : > { %v604_v39 = vmul.f32 %v3154_v27, %v4037_v5  ;;  %v579_v24 = vmul.f32 %v3103_v13, %v4037_v5  ;;  %v3106_v27 = vunpack.c.l.bf16 %v3604_v18  ;;  %v744_v23 = vadd.f32 %v4042_v8, %v609_v54 }
  0x5f   : > { %3862 = vmatprep.mubr.bf16.mxu1 %v955_v33  ;;  %v956_v34 = vpack.c.bf16 %v864_v44, %v863_v30  ;;  %v3171_v33 = vunpack.c.h.bf16 %v3620_v20  ;;  %v3174_v37 = vunpack.c.l.bf16 %v3621_v21  ;;  %v746_v43 = vadd.f32 %v4042_v8, %v611_v19 }
  0x60   : > { %v3175_v44 = vunpack.c.h.bf16 %v3621_v21  ;;  %v714_v48 = vadd.f32 %v4042_v8, %v579_v24  ;;  %v580_v53 = vmul.f32 %v3106_v27, %v4037_v5  ;;  %v872_v57 = vmax.f32 %v744_v23, 0.0  ;;  %v3624_v24 = vld [vmem:[%s4028_s9 + $0x168] sm:$0xff]   ;;  %v3625_v23 = vld [vmem:[%s4028_s9 + $0x170] sm:$0xff]  }
  0x61   : > { %3863 = vmatmul.mubr.bf16.gmra.mxu1 %v956_v34  ;;  %v614_v61 = vmul.f32 %v3174_v37, %v4037_v5  ;;  %v874_v1 = vmax.f32 %v746_v43, 0.0  ;;  %v3178_v10 = vunpack.c.l.bf16 %v3622_v62  ;;  %v584_v19 = vmul.f32 %v3114_v6, %v4037_v5  ;;  %v3608_v43 = vld [vmem:[%s4028_s9 + $0xe8] sm:$0xff]  }
  0x62   : > { %3866 = vmatprep.mubr.bf16.mxu1 %v957_v49  ;;  %v615_v2 = vmul.f32 %v3175_v44, %v4037_v5  ;;  %v842_v34 = vmax.f32 %v714_v48, 0.0  ;;  %v3623_v49 = vld [vmem:[%s4028_s9 + $0x160] sm:$0xff]   ;;  %v715_v50 = vadd.f32 %v4042_v8, %v580_v53  ;;  %v960_v9 = vpack.c.bf16 %v872_v57, %v871_v56 }
  0x63   : > { %v749_v13 = vadd.f32 %v4042_v8, %v614_v61  ;;  %v3182_v54 = vunpack.c.l.bf16 %v3623_v49  ;;  %v616_v21 = vmul.f32 %v3178_v10, %v4037_v5  ;;  %v3190_v53 = vunpack.c.l.bf16 %v3625_v23 }
  0x64   : > { %3823 = vmatmul.mubr.bf16.gmra.mxu0 %v936_v31  ;;  %v605_v31 = vmul.f32 %v3155_v32, %v4037_v5  ;;  %v3170_v32 = vunpack.c.l.bf16 %v3620_v20  ;;  %v750_v15 = vadd.f32 %v4042_v8, %v615_v2  ;;  %v3607_v20 = vld [vmem:[%s4028_s9 + $0xe0] sm:$0xff]   ;;  %v3191_v57 = vunpack.c.h.bf16 %v3625_v23 }
  0x65   : > { %3826 = vmatprep.mubr.bf16.mxu0 %v937_v35  ;;  %v576_v35 = vmul.f32 %v3098_v47, %v4037_v5  ;;  %v739_v47 = vadd.f32 %v4042_v8, %v604_v39  ;;  %v745_v39 = vadd.f32 %v4042_v8, %v610_v58  ;;  %v843_v58 = vmax.f32 %v715_v50, 0.0  ;;  %v4342_v23 = vld [vmem:[%s5036_s2] ss:$0 sm:$0xff] }
  0x66   : > { %v740_v4 = vadd.f32 %v4042_v8, %v605_v31  ;;  %v943_v31 = vpack.c.bf16 %v838_v22, %v837_v17  ;;  %v612_v60 = vmul.f32 %v3170_v32, %v4037_v5  ;;  %v3183_v17 = vunpack.c.h.bf16 %v3623_v49  ;;  %v3626_v49 = vld [vmem:[%s4028_s9 + $0x178] sm:$0xff]  }
  0x67   : > { %v4243_v12 = vadd.f32 %v4042_v8, %v576_v35  ;;  %v867_v25 = vmax.f32 %v739_v47, 0.0  ;;  %v3111_v35 = vunpack.c.h.bf16 %v3605_v28  ;;  %v873_v0 = vmax.f32 %v745_v39, 0.0 }
  0x68   : > { %v581_v47 = vmul.f32 %v3107_v51, %v4037_v5  ;;  %v747_v11 = vadd.f32 %v4042_v8, %v612_v60  ;;  %v878_v27 = vmax.f32 %v750_v15, 0.0  ;;  %v618_v28 = vmul.f32 %v3182_v54, %v4037_v5 }
  0x69   : > { %v839_v3 = vmax.f32 %v4243_v12, 0.0  ;;  %v583_v7 = vmul.f32 %v3111_v35, %v4037_v5  ;;  %v619_v29 = vmul.f32 %v3183_v17, %v4037_v5  ;;  %v3118_v37 = vunpack.c.l.bf16 %v3607_v20 }
  0x6a   : > { %v3119_v39 = vunpack.c.h.bf16 %v3607_v20  ;;  %v751_v44 = vadd.f32 %v4042_v8, %v616_v21  ;;  %v753_v55 = vadd.f32 %v4042_v8, %v618_v28  ;;  %v3122_v61 = vunpack.c.l.bf16 %v3608_v43 }
  0x6b   : > { %v944_v18 = vpack.c.bf16 %v840_v59, %v839_v3  ;;  %v718_v22 = vadd.f32 %v4042_v8, %v583_v7  ;;  %v754_v56 = vadd.f32 %v4042_v8, %v619_v29  ;;  %v622_v6 = vmul.f32 %v3190_v53, %v4037_v5 }
  0x6c   : > { %3827 = vmatmul.mubr.bf16.gmra.mxu0 %v4169_v36  ;;  %v578_v36 = vmul.f32 %v3102_v63, %v4037_v5  ;;  %v879_v2 = vmax.f32 %v751_v44, 0.0  ;;  %v3123_v50 = vunpack.c.h.bf16 %v3608_v43  ;;  %v881_v7 = vmax.f32 %v753_v55, 0.0  ;;  %v3628_v44 = vld [vmem:[%s4028_s9 + $0x188] sm:$0xff]  }
  0x6d   : > { %3830 = vmatprep.mubr.bf16.mxu0 %v4172_v40  ;;  %v868_v40 = vmax.f32 %v740_v4, 0.0  ;;  %v582_v4 = vmul.f32 %v3110_v52, %v4037_v5  ;;  %v3187_v52 = vunpack.c.h.bf16 %v3624_v24  ;;  %v846_v60 = vmax.f32 %v718_v22, 0.0 }
  0x6e   : > { %v713_v26 = vadd.f32 %v4042_v8, %v578_v36  ;;  %v961_v36 = vpack.c.bf16 %v874_v1, %v873_v0  ;;  %v587_v0 = vmul.f32 %v3119_v39, %v4037_v5  ;;  %v3609_v1 = vld [vmem:[%s4028_s9 + $0xf0] sm:$0xff]   ;;  %v623_v10 = vmul.f32 %v3191_v57, %v4037_v5 }
  0x6f   : > { %v958_v30 = vpack.c.bf16 %v868_v40, %v867_v25  ;;  %v716_v25 = vadd.f32 %v4042_v8, %v581_v47  ;;  %v717_v40 = vadd.f32 %v4042_v8, %v582_v4  ;;  %v621_v4 = vmul.f32 %v3187_v52, %v4037_v5 }
  0x70   : > { %v841_v63 = vmax.f32 %v713_v26, 0.0  ;;  %v877_v26 = vmax.f32 %v749_v13, 0.0  ;;  %v588_v13 = vmul.f32 %v3122_v61, %v4037_v5  ;;  %v722_v15 = vadd.f32 %v4042_v8, %v587_v0 }
  0x71   : > { %3867 = vmatmul.mubr.bf16.gmra.mxu1 %v958_v30  ;;  %v844_v30 = vmax.f32 %v716_v25, 0.0  ;;  %v845_v32 = vmax.f32 %v717_v40, 0.0  ;;  %v3127_v54 = vunpack.c.h.bf16 %v3609_v1  ;;  %v3194_v17 = vunpack.c.l.bf16 %v3626_v49 }
  0x72   : > { %3870 = vmatprep.mubr.bf16.mxu1 %v959_v38  ;;  %v945_v42 = vpack.c.bf16 %v842_v34, %v841_v63  ;;  %v4303_v38 = vadd.f32 %v4042_v8, %v584_v19  ;;  %v963_v35 = vpack.c.bf16 %v878_v27, %v877_v26  ;;  %v758_v20 = vadd.f32 %v4042_v8, %v623_v10  ;;  %v4334_v27 = vld [vmem:[%s5035_s1] ss:$0 sm:$0xff] }
  0x73   : > { %v946_v59 = vpack.c.bf16 %v844_v30, %v843_v58  ;;  %v3610_v58 = vld [vmem:[%s4028_s9 + $0xf8] sm:$0xff]   ;;  %v850_v26 = vmax.f32 %v722_v15, 0.0  ;;  %v624_v28 = vmul.f32 %v4334_v27, %v3194_v17 }
  0x74   : > { %3831 = vmatmul.mubr.bf16.gmra.mxu0 %v4179_v45  ;;  %v613_v45 = vmul.f32 %v3171_v33, %v4037_v5  ;;  %v585_v33 = vmul.f32 %v3115_v41, %v4037_v5  ;;  %v847_v63 = vmax.f32 %v4303_v38, 0.0  ;;  %v756_v41 = vadd.f32 %v4042_v8, %v621_v4 }
  0x75   : > { %3834 = vmatprep.mubr.bf16.mxu0 %v941_v14  ;;  %v3179_v14 = vunpack.c.h.bf16 %v3622_v62  ;;  %v3130_v30 = vunpack.c.l.bf16 %v3610_v58  ;;  %v886_v38 = vmax.f32 %v758_v20, 0.0  ;;  %v3131_v53 = vunpack.c.h.bf16 %v3610_v58 }
  0x76   : > { %v748_v12 = vadd.f32 %v4042_v8, %v613_v45  ;;  %v586_v45 = vmul.f32 %v3118_v37, %v4037_v5  ;;  %v720_v62 = vadd.f32 %v4042_v8, %v585_v33  ;;  %v884_v33 = vmax.f32 %v756_v41, 0.0 }
  0x77   : > { %v617_v3 = vmul.f32 %v3179_v14, %v4037_v5  ;;  %v3126_v14 = vunpack.c.l.bf16 %v3609_v1  ;;  %v593_v4 = vmul.f32 %v4334_v27, %v3131_v53 }
  0x78   : > { %v876_v46 = vmax.f32 %v748_v12, 0.0  ;;  %v721_v12 = vadd.f32 %v4042_v8, %v586_v45  ;;  %v3203_v45 = vunpack.c.h.bf16 %v3628_v44 }
  0x79   : > { %3871 = vmatmul.mubr.bf16.gmra.mxu1 %v960_v9  ;;  %v752_v51 = vadd.f32 %v4042_v8, %v617_v3  ;;  %v882_v9 = vmax.f32 %v754_v56, 0.0  ;;  %v589_v3 = vmul.f32 %v3123_v50, %v4037_v5  ;;  %v759_v56 = vadd.f32 %v4342_v23, %v624_v28 }
  0x7a   : > { %3874 = vmatprep.mubr.bf16.mxu1 %v961_v36  ;;  %v3627_v36 = vld [vmem:[%s4028_s9 + $0x180] sm:$0xff]   ;;  %v629_v10 = vmul.f32 %v4334_v27, %v3203_v45  ;;  %v728_v17 = vadd.f32 %v4342_v23, %v593_v4 }
  0x7b   : > { %v880_v34 = vmax.f32 %v752_v51, 0.0  ;;  %v965_v19 = vpack.c.bf16 %v882_v9, %v881_v7  ;;  %v3198_v21 = vunpack.c.l.bf16 %v3627_v36  ;;  %v3199_v22 = vunpack.c.h.bf16 %v3627_v36 }
  0x7c   : > { %3835 = vmatmul.mubr.bf16.gmra.mxu0 %v4255_v16  ;;  %v875_v16 = vmax.f32 %v747_v11, 0.0  ;;  %v947_v11 = vpack.c.bf16 %v846_v60, %v845_v32  ;;  %v724_v51 = vadd.f32 %v4342_v23, %v589_v3  ;;  %v3202_v60 = vunpack.c.l.bf16 %v3628_v44 }
  0x7d   : > { %3838 = vmatprep.mubr.bf16.mxu0 %v943_v31  ;;  %v3186_v31 = vunpack.c.l.bf16 %v3624_v24  ;;  %v964_v25 = vpack.c.bf16 %v880_v34, %v879_v2  ;;  %v590_v24 = vmul.f32 %v3126_v14, %v4037_v5  ;;  %v626_v39 = vmul.f32 %v4334_v27, %v3198_v21 }
  0x7e   : > { %v962_v48 = vpack.c.bf16 %v876_v46, %v875_v16  ;;  %v848_v16 = vmax.f32 %v720_v62, 0.0  ;;  %v849_v46 = vmax.f32 %v721_v12, 0.0  ;;  %v627_v43 = vmul.f32 %v4334_v27, %v3199_v22  ;;  %v3630_v12 = vld [vmem:[%s4028_s9 + $0x198] sm:$0xff]  }
  0x7f   : > { %v620_v47 = vmul.f32 %v3186_v31, %v4037_v5  ;;  %v723_v5 = vadd.f32 %v4342_v23, %v588_v13  ;;  %v3629_v31 = vld [vmem:[%s4028_s9 + $0x190] sm:$0xff]   ;;  %v725_v52 = vadd.f32 %v4342_v23, %v590_v24  ;;  %v761_v0 = vadd.f32 %v4342_v23, %v626_v39 }
  0x80   : > { %v3206_v61 = vunpack.c.l.bf16 %v3629_v31  ;;  %v3207_v1 = vunpack.c.h.bf16 %v3629_v31  ;;  %v852_v34 = vmax.f32 %v724_v51, 0.0  ;;  %v887_v50 = vmax.f32 %v759_v56, 0.0 }
  0x81   : > { %3875 = vmatmul.mubr.bf16.gmra.mxu1 %v962_v48  ;;  %v755_v40 = vadd.f32 %v4042_v8, %v620_v47  ;;  %v948_v48 = vpack.c.bf16 %v848_v16, %v847_v63  ;;  %v762_v63 = vadd.f32 %v4342_v23, %v627_v43  ;;  %v851_v2 = vmax.f32 %v723_v5, 0.0  ;;  %v3632_v5 = vld [vmem:[%s4028_s9 + $0x1a8] sm:$0xff]  }
  0x82   : > { %3878 = vmatprep.mubr.bf16.mxu1 %v963_v35  ;;  %v949_v35 = vpack.c.bf16 %v850_v26, %v849_v46  ;;  %v592_v47 = vmul.f32 %v4334_v27, %v3130_v30  ;;  %v628_v9 = vmul.f32 %v4334_v27, %v3202_v60  ;;  %v889_v13 = vmax.f32 %v761_v0, 0.0 }
  0x83   : > { %v883_v32 = vmax.f32 %v755_v40, 0.0  ;;  %v890_v14 = vmax.f32 %v762_v63, 0.0  ;;  %v631_v36 = vmul.f32 %v4334_v27, %v3207_v1  ;;  %v950_v15 = vpack.c.bf16 %v852_v34, %v851_v2  ;;  %v3635_v2 = vld [vmem:[%s4028_s9 + $0x1c0] sm:$0xff]  }
  0x84   : > { %3839 = vmatmul.mubr.bf16.gmra.mxu0 %v944_v18  ;;  %v3195_v18 = vunpack.c.h.bf16 %v3626_v49  ;;  %v3210_v41 = vunpack.c.l.bf16 %v3630_v12  ;;  %v764_v58 = vadd.f32 %v4342_v23, %v629_v10  ;;  %v3211_v20 = vunpack.c.h.bf16 %v3630_v12 }
  0x85   : > { %3842 = vmatprep.mubr.bf16.mxu0 %v945_v42  ;;  %v757_v42 = vadd.f32 %v4042_v8, %v622_v6  ;;  %v591_v8 = vmul.f32 %v4334_v27, %v3127_v54  ;;  %v853_v6 = vmax.f32 %v725_v52, 0.0  ;;  %v727_v54 = vadd.f32 %v4342_v23, %v592_v47 }
  0x86   : > { %v625_v29 = vmul.f32 %v4334_v27, %v3195_v18  ;;  %v3631_v18 = vld [vmem:[%s4028_s9 + $0x1a0] sm:$0xff]   ;;  %v969_v21 = vpack.c.bf16 %v890_v14, %v889_v13  ;;  %v766_v22 = vadd.f32 %v4342_v23, %v631_v36  ;;  %v856_v24 = vmax.f32 %v728_v17, 0.0 }
  0x87   : > { %v885_v37 = vmax.f32 %v757_v42, 0.0  ;;  %v726_v55 = vadd.f32 %v4342_v23, %v591_v8  ;;  %v763_v42 = vadd.f32 %v4342_v23, %v628_v9  ;;  %v3214_v16 = vunpack.c.l.bf16 %v3631_v18 }
  0x88   : > { %v760_v57 = vadd.f32 %v4342_v23, %v625_v29  ;;  %v3215_v46 = vunpack.c.h.bf16 %v3631_v18  ;;  %v855_v3 = vmax.f32 %v727_v54, 0.0  ;;  %v632_v26 = vmul.f32 %v4334_v27, %v3210_v41 }
  0x89   : > { %3879 = vmatmul.mubr.bf16.gmra.mxu1 %v964_v25  ;;  %v967_v62 = vpack.c.bf16 %v886_v38, %v885_v37  ;;  %v854_v49 = vmax.f32 %v726_v55, 0.0  ;;  %v891_v8 = vmax.f32 %v763_v42, 0.0  ;;  %v892_v28 = vmax.f32 %v764_v58, 0.0  ;;  %v3633_v38 = vld [vmem:[%s4028_s9 + $0x1b0] sm:$0xff]  }
  0x8a   : > { %3882 = vmatprep.mubr.bf16.mxu1 %v965_v19  ;;  %v888_v7 = vmax.f32 %v760_v57, 0.0  ;;  %v633_v29 = vmul.f32 %v4334_v27, %v3211_v20  ;;  %v635_v37 = vmul.f32 %v4334_v27, %v3215_v46  ;;  %v952_v39 = vpack.c.bf16 %v856_v24, %v855_v3 }
  0x8b   : > { %v951_v25 = vpack.c.bf16 %v854_v49, %v853_v6  ;;  %v767_v43 = vadd.f32 %v4342_v23, %v632_v26  ;;  %v3218_v44 = vunpack.c.l.bf16 %v3632_v5  ;;  %v970_v31 = vpack.c.bf16 %v892_v28, %v891_v8 }
  0x8c   : > { %3843 = vmatmul.mubr.bf16.gmra.mxu0 %v946_v59  ;;  %v966_v59 = vpack.c.bf16 %v884_v33, %v883_v32  ;;  %v968_v40 = vpack.c.bf16 %v888_v7, %v887_v50  ;;  %v894_v32 = vmax.f32 %v766_v22, 0.0  ;;  %v634_v33 = vmul.f32 %v4334_v27, %v3214_v16 }
  0x8d   : > { %3846 = vmatprep.mubr.bf16.mxu0 %v947_v11  ;;  %v630_v11 = vmul.f32 %v4334_v27, %v3206_v61  ;;  %v3219_v51 = vunpack.c.h.bf16 %v3632_v5  ;;  %v3222_v52 = vunpack.c.l.bf16 %v3633_v38  ;;  %v770_v55 = vadd.f32 %v4342_v23, %v635_v37  ;;  %v3639_v37 = vld [vmem:[%s4028_s9 + $0x1e0] sm:$0xff]  }
  0x8e   : > { %v3223_v56 = vunpack.c.h.bf16 %v3633_v38  ;;  %v895_v57 = vmax.f32 %v767_v43, 0.0  ;;  %v636_v60 = vmul.f32 %v4334_v27, %v3218_v44  ;;  %v3230_v10 = vunpack.c.l.bf16 %v3635_v2 }
  0x8f   : > { %v765_v19 = vadd.f32 %v4342_v23, %v630_v11  ;;  %v637_v45 = vmul.f32 %v4334_v27, %v3219_v51  ;;  %v638_v61 = vmul.f32 %v4334_v27, %v3222_v52  ;;  %v898_v63 = vmax.f32 %v770_v55, 0.0 }
  0x90   : > { %v639_v1 = vmul.f32 %v4334_v27, %v3223_v56  ;;  %v771_v6 = vadd.f32 %v4342_v23, %v636_v60  ;;  %v3231_v11 = vunpack.c.h.bf16 %v3635_v2  ;;  %v642_v18 = vmul.f32 %v4334_v27, %v3230_v10 }
  0x91   : > { %3883 = vmatmul.mubr.bf16.gmra.mxu1 %v966_v59  ;;  %v893_v30 = vmax.f32 %v765_v19, 0.0  ;;  %v772_v49 = vadd.f32 %v4342_v23, %v637_v45  ;;  %v773_v50 = vadd.f32 %v4342_v23, %v638_v61  ;;  %v3640_v61 = vld [vmem:[%s4028_s9 + $0x1e8] sm:$0xff]  }
  0x92   : > { %3886 = vmatprep.mubr.bf16.mxu1 %v967_v62  ;;  %v3634_v62 = vld [vmem:[%s4028_s9 + $0x1b8] sm:$0xff]   ;;  %v774_v9 = vadd.f32 %v4342_v23, %v639_v1  ;;  %v899_v14 = vmax.f32 %v771_v6, 0.0  ;;  %v777_v46 = vadd.f32 %v4342_v23, %v642_v18  ;;  %v3250_v2 = vunpack.c.l.bf16 %v3640_v61 }
  0x93   : > { %v971_v53 = vpack.c.bf16 %v894_v32, %v893_v30  ;;  %v3226_v34 = vunpack.c.l.bf16 %v3634_v62  ;;  %v3227_v47 = vunpack.c.h.bf16 %v3634_v62  ;;  %v900_v36 = vmax.f32 %v772_v49, 0.0  ;;  %v3638_v30 = vld [vmem:[%s4028_s9 + $0x1d8] sm:$0xff]  }
  0x94   : > { %3847 = vmatmul.mubr.bf16.gmra.mxu0 %v948_v48  ;;  %v768_v48 = vadd.f32 %v4342_v23, %v633_v29  ;;  %v901_v54 = vmax.f32 %v773_v50, 0.0  ;;  %v902_v17 = vmax.f32 %v774_v9, 0.0  ;;  %v905_v32 = vmax.f32 %v777_v46, 0.0 }
  0x95   : > { %3850 = vmatprep.mubr.bf16.mxu0 %v949_v35  ;;  %v769_v35 = vadd.f32 %v4342_v23, %v634_v33  ;;  %v640_v12 = vmul.f32 %v4334_v27, %v3226_v34  ;;  %v641_v13 = vmul.f32 %v4334_v27, %v3227_v47  ;;  %v974_v19 = vpack.c.bf16 %v900_v36, %v899_v14 }
  0x96   : > { %v896_v59 = vmax.f32 %v768_v48, 0.0  ;;  %v975_v16 = vpack.c.bf16 %v902_v17, %v901_v54  ;;  %v3242_v43 = vunpack.c.l.bf16 %v3638_v30  ;;  %v3243_v51 = vunpack.c.h.bf16 %v3638_v30  ;;  %v3642_v17 = vld [vmem:[%s4028_s9 + $0x1f8] sm:$0xff]  }
  0x97   : > { %v897_v0 = vmax.f32 %v769_v35, 0.0  ;;  %v775_v41 = vadd.f32 %v4342_v23, %v640_v12  ;;  %v776_v42 = vadd.f32 %v4342_v23, %v641_v13  ;;  %v3247_v35 = vunpack.c.h.bf16 %v3639_v37 }
  0x98   : > { %v972_v4 = vpack.c.bf16 %v896_v59, %v895_v57  ;;  %v648_v56 = vmul.f32 %v4334_v27, %v3242_v43  ;;  %v649_v45 = vmul.f32 %v4334_v27, %v3243_v51  ;;  %v3251_v6 = vunpack.c.h.bf16 %v3640_v61 }
  0x99   : > { %3887 = vmatmul.mubr.bf16.gmra.mxu1 %v968_v40  ;;  %v973_v7 = vpack.c.bf16 %v898_v63, %v897_v0  ;;  %v3637_v40 = vld [vmem:[%s4028_s9 + $0x1d0] sm:$0xff]   ;;  %v903_v24 = vmax.f32 %v775_v41, 0.0  ;;  %v904_v26 = vmax.f32 %v776_v42, 0.0  ;;  %v651_v0 = vmul.f32 %v4334_v27, %v3247_v35 }
  0x9a   : > { %3890 = vmatprep.mubr.bf16.mxu1 %v969_v21  ;;  %v3238_v21 = vunpack.c.l.bf16 %v3637_v40  ;;  %v3239_v22 = vunpack.c.h.bf16 %v3637_v40  ;;  %v3641_v63 = vld [vmem:[%s4028_s9 + $0x1f0] sm:$0xff]   ;;  %v783_v1 = vadd.f32 %v4342_v23, %v648_v56  ;;  %v652_v10 = vmul.f32 %v4334_v27, %v3250_v2 }
  0x9b   : > { %v976_v38 = vpack.c.bf16 %v904_v26, %v903_v24  ;;  %v786_v50 = vadd.f32 %v4342_v23, %v651_v0  ;;  %v3255_v9 = vunpack.c.h.bf16 %v3641_v63  ;;  %v653_v13 = vmul.f32 %v4334_v27, %v3251_v6 }
  0x9c   : > { %3851 = vmatmul.mubr.bf16.gmra.mxu0 %v950_v15  ;;  %v3636_v15 = vld [vmem:[%s4028_s9 + $0x1c8] sm:$0xff]   ;;  %v646_v29 = vmul.f32 %v4334_v27, %v3238_v21  ;;  %v647_v5 = vmul.f32 %v4334_v27, %v3239_v22  ;;  %v787_v18 = vadd.f32 %v4342_v23, %v652_v10  ;;  %v3258_v41 = vunpack.c.l.bf16 %v3642_v17 }
  0x9d   : > { %3854 = vmatprep.mubr.bf16.mxu0 %v951_v25  ;;  %v643_v25 = vmul.f32 %v4334_v27, %v3231_v11  ;;  %v3234_v58 = vunpack.c.l.bf16 %v3636_v15  ;;  %v3235_v20 = vunpack.c.h.bf16 %v3636_v15  ;;  %v911_v11 = vmax.f32 %v783_v1, 0.0 }
  0x9e   : > { %v782_v48 = vadd.f32 %v4342_v23, %v647_v5  ;;  %v914_v36 = vmax.f32 %v786_v50, 0.0  ;;  %v655_v54 = vmul.f32 %v4334_v27, %v3255_v9  ;;  %v788_v40 = vadd.f32 %v4342_v23, %v653_v13 }
  0x9f   : > { %v778_v3 = vadd.f32 %v4342_v23, %v643_v25  ;;  %v644_v8 = vmul.f32 %v4334_v27, %v3234_v58  ;;  %v645_v28 = vmul.f32 %v4334_v27, %v3235_v20  ;;  %v3259_v42 = vunpack.c.h.bf16 %v3642_v17 }
  0xa0   : > { %v910_v60 = vmax.f32 %v782_v48, 0.0  ;;  %v790_v20 = vadd.f32 %v4342_v23, %v655_v54  ;;  %v915_v21 = vmax.f32 %v787_v18, 0.0  ;;  %v916_v22 = vmax.f32 %v788_v40, 0.0 }
  0xa1   : > { %3891 = vmatmul.mubr.bf16.gmra.mxu1 %v970_v31  ;;  %v906_v33 = vmax.f32 %v778_v3, 0.0  ;;  %v780_v44 = vadd.f32 %v4342_v23, %v645_v28  ;;  %v781_v31 = vadd.f32 %v4342_v23, %v646_v29  ;;  %v657_v46 = vmul.f32 %v4334_v27, %v3259_v42 }
  0xa2   : > { %3894 = vmatprep.mubr.bf16.mxu1 %v971_v53  ;;  %v3246_v53 = vunpack.c.l.bf16 %v3639_v37  ;;  %v918_v24 = vmax.f32 %v790_v20, 0.0  ;;  %v982_v26 = vpack.c.bf16 %v916_v22, %v915_v21 }
  0xa3   : > { %v977_v52 = vpack.c.bf16 %v906_v33, %v905_v32  ;;  %v908_v57 = vmax.f32 %v780_v44, 0.0  ;;  %v909_v59 = vmax.f32 %v781_v31, 0.0  ;;  %v792_v28 = vadd.f32 %v4342_v23, %v657_v46 }
  0xa4   : > { %3855 = vmatmul.mubr.bf16.gmra.mxu0 %v952_v39  ;;  %v779_v39 = vadd.f32 %v4342_v23, %v644_v8  ;;  %v650_v62 = vmul.f32 %v4334_v27, %v3246_v53 }
  0xa5   : > { %v979_v47 = vpack.c.bf16 %v910_v60, %v909_v59  ;;  %v920_v30 = vmax.f32 %v792_v28, 0.0 }
  0xa6   : > { %v907_v55 = vmax.f32 %v779_v39, 0.0  ;;  %v785_v49 = vadd.f32 %v4342_v23, %v650_v62 }
  0xa8   : > { %v978_v34 = vpack.c.bf16 %v908_v57, %v907_v55  ;;  %v913_v14 = vmax.f32 %v785_v49, 0.0 }
  0xa9   : > { %3895 = vmatmul.mubr.bf16.gmra.mxu1 %v972_v4  ;;  %v784_v4 = vadd.f32 %v4342_v23, %v649_v45 }
  0xaa   : > { %3898 = vmatprep.mubr.bf16.mxu1 %v973_v7  ;;  %v3254_v7 = vunpack.c.l.bf16 %v3641_v63  ;;  %v981_v58 = vpack.c.bf16 %v914_v36, %v913_v14 }
  0xab   : > { %v912_v12 = vmax.f32 %v784_v4, 0.0 }
  0xac   : > { %v654_v15 = vmul.f32 %v4334_v27, %v3254_v7 }
  0xad   : > { %v980_v25 = vpack.c.bf16 %v912_v12, %v911_v11 }
  0xb1   : > { %3899 = vmatmul.mubr.bf16.gmra.mxu1 %v974_v19  ;;  %v789_v19 = vadd.f32 %v4342_v23, %v654_v15 }
  0xb2   : > { %3902 = vmatprep.mubr.bf16.mxu1 %v975_v16  ;;  %v656_v16 = vmul.f32 %v4334_v27, %v3258_v41  ;;  %v4436_v27 = vld [vmem:[%s5038_s4] ss:$0 sm:$0xff] }
  0xb3   : > { %v917_v3 = vmax.f32 %v789_v19, 0.0 }
  0xb4   : > { %v791_v8 = vadd.f32 %v4342_v23, %v656_v16 }
  0xb5   : > { %v983_v29 = vpack.c.bf16 %v918_v24, %v917_v3 }
  0xb6   : > { %v919_v5 = vmax.f32 %v791_v8, 0.0 }
  0xb8   : > { %v984_v32 = vpack.c.bf16 %v920_v30, %v919_v5 }
  0xb9   : > { %3903 = vmatmul.mubr.bf16.gmra.mxu1 %v976_v38 }
  0xba   : > { %3906 = vmatprep.mubr.bf16.mxu1 %v977_v52 }
  0xc1   : > { %3907 = vmatmul.mubr.bf16.gmra.mxu1 %v978_v34 }
  0xc2   : > { %3910 = vmatprep.mubr.bf16.mxu1 %v979_v47 }
  0xc9   : > { %3911 = vmatmul.mubr.bf16.gmra.mxu1 %v980_v25 }
  0xca   : > { %3914 = vmatprep.mubr.bf16.mxu1 %v981_v58 }
  0xd1   : > { %3915 = vmatmul.mubr.bf16.gmra.mxu1 %v982_v26 }
  0xd2   : > { %3918 = vmatprep.mubr.bf16.mxu1 %v983_v29 }
  0xd9   : > { %3919 = vmatmul.mubr.bf16.gmra.mxu1 %v984_v32 }
  0xec   : > { %v3796_v33 = vpop.f32.mrf.mxu0 }
  0xed   : > { %v1099_v39 = vadd.f32 %v3796_v33, %v4436_v27 }
  0xee   : > { %v1090_v37 = vpop.f32.mrf.mxu0 }
  0xef   : > { %v1091_v43 = vadd.f32 %v4436_v27, %v1090_v37  ;;  %v1736_v57 = vmul.f32 %v1099_v39, %v1099_v39 }
  0xf0   : > { %v3797_v38 = vpop.f32.mrf.mxu0 }
  0xf1   : > { %v1102_v23 = vadd.f32 %v3797_v38, %v4436_v27  ;;  %v1734_v52 = vmul.f32 %v1091_v43, %v1091_v43 }
  0xf2   : > { %v1093_v44 = vpop.f32.mrf.mxu0 }
  0xf3   : > { %v3268_v31 = vpack.c.bf16 %v1102_v23, %v1099_v39  ;;  %v1094_v48 = vadd.f32 %v4436_v27, %v1093_v44  ;;  %v1737_v61 = vmul.f32 %v1102_v23, %v1102_v23 }
  0xf4   : > { %v3800_v51 = vpop.f32.mrf.mxu0 }
  0xf5   : > { %3643 = vst [vmem:[%s4446_s12 + $0x8] sm:$0xff] %v3268_v31   ;;  %v1601_v53 = vadd.f32 %v1094_v48, %v1091_v43  ;;  %v1735_v35 = vmul.f32 %v1094_v48, %v1094_v48  ;;  %v3263_v55 = vpack.c.bf16 %v1094_v48, %v1091_v43  ;;  %v1115_v1 = vadd.f32 %v3800_v51, %v4436_v27 }
  0xf6   : > { %v1106_v56 = vpop.f32.mrf.mxu0 }
  0xf7   : > { %v1602_v59 = vadd.f32 %v1601_v53, %v1099_v39  ;;  %v1862_v60 = vadd.f32 %v1735_v35, %v1734_v52  ;;  %3264 = vst [vmem:[%s4446_s12] sm:$0xff] %v3263_v55   ;;  %v1107_v45 = vadd.f32 %v4436_v27, %v1106_v56  ;;  %v1740_v14 = vmul.f32 %v1115_v1, %v1115_v1 }
  0xf8   : > { %v3801_v62 = vpop.f32.mrf.mxu0 }
  0xf9   : > { %v1603_v0 = vadd.f32 %v1602_v59, %v1102_v23  ;;  %v1863_v63 = vadd.f32 %v1862_v60, %v1736_v57  ;;  %v1118_v2 = vadd.f32 %v3801_v62, %v4436_v27  ;;  %v1738_v6 = vmul.f32 %v1107_v45, %v1107_v45 }
  0xfa   : > { %v1109_v34 = vpop.f32.mrf.mxu0 }
  0xfb   : > { %v1864_v47 = vadd.f32 %v1863_v63, %v1737_v61  ;;  %v1604_v4 = vadd.f32 %v1603_v0, %v1107_v45  ;;  %v3278_v49 = vpack.c.bf16 %v1118_v2, %v1115_v1  ;;  %v1110_v50 = vadd.f32 %v4436_v27, %v1109_v34 }
  0xfc   : > { %v3804_v7 = vpop.f32.mrf.mxu0  ;;  %v1741_v40 = vmul.f32 %v1118_v2, %v1118_v2 }
  0xfd   : > { %v1865_v9 = vadd.f32 %v1864_v47, %v1738_v6  ;;  %3645 = vst [vmem:[%s4446_s12 + $0x18] sm:$0xff] %v3278_v49   ;;  %v1605_v10 = vadd.f32 %v1604_v4, %v1110_v50  ;;  %v1739_v11 = vmul.f32 %v1110_v50, %v1110_v50  ;;  %v3273_v12 = vpack.c.bf16 %v1110_v50, %v1107_v45 }
  0xfe   : > { %v1122_v13 = vpop.f32.mrf.mxu0  ;;  %v1131_v18 = vadd.f32 %v3804_v7, %v4436_v27 }
  0xff   : > { %v1606_v36 = vadd.f32 %v1605_v10, %v1115_v1  ;;  %v1866_v15 = vadd.f32 %v1865_v9, %v1739_v11  ;;  %3644 = vst [vmem:[%s4446_s12 + $0x10] sm:$0xff] %v3273_v12   ;;  %v1123_v54 = vadd.f32 %v4436_v27, %v1122_v13 }
 0x100   : > { %v3805_v17 = vpop.f32.mrf.mxu0  ;;  %v1744_v29 = vmul.f32 %v1131_v18, %v1131_v18 }
 0x101   : > { %v1134_v25 = vadd.f32 %v3805_v17, %v4436_v27  ;;  %v1607_v41 = vadd.f32 %v1606_v36, %v1118_v2  ;;  %v1867_v42 = vadd.f32 %v1866_v15, %v1740_v14  ;;  %v1742_v16 = vmul.f32 %v1123_v54, %v1123_v54 }
 0x102   : > { %v1125_v58 = vpop.f32.mrf.mxu0 }
 0x103   : > { %v3288_v19 = vpack.c.bf16 %v1134_v25, %v1131_v18  ;;  %v1126_v20 = vadd.f32 %v4436_v27, %v1125_v58  ;;  %v1868_v21 = vadd.f32 %v1867_v42, %v1741_v40  ;;  %v1608_v22 = vadd.f32 %v1607_v41, %v1123_v54 }
 0x104   : > { %v3808_v46 = vpop.f32.mrf.mxu0  ;;  %v1745_v39 = vmul.f32 %v1134_v25, %v1134_v25 }
 0x105   : > { %3647 = vst [vmem:[%s4446_s12 + $0x28] sm:$0xff] %v3288_v19   ;;  %v1743_v3 = vmul.f32 %v1126_v20, %v1126_v20  ;;  %v3283_v24 = vpack.c.bf16 %v1126_v20, %v1123_v54  ;;  %v1869_v26 = vadd.f32 %v1868_v21, %v1742_v16  ;;  %v1609_v8 = vadd.f32 %v1608_v22, %v1126_v20 }
 0x106   : > { %v1138_v28 = vpop.f32.mrf.mxu0  ;;  %v1147_v37 = vadd.f32 %v3808_v46, %v4436_v27 }
 0x107   : > { %3646 = vst [vmem:[%s4446_s12 + $0x20] sm:$0xff] %v3283_v24   ;;  %v1610_v5 = vadd.f32 %v1609_v8, %v1131_v18  ;;  %v1870_v30 = vadd.f32 %v1869_v26, %v1743_v3  ;;  %v1139_v32 = vadd.f32 %v4436_v27, %v1138_v28 }
 0x108   : > { %v3809_v33 = vpop.f32.mrf.mxu0  ;;  %v1748_v45 = vmul.f32 %v1147_v37, %v1147_v37 }
 0x109   : > { %v1150_v38 = vadd.f32 %v3809_v33, %v4436_v27  ;;  %v1611_v43 = vadd.f32 %v1610_v5, %v1134_v25  ;;  %v1871_v23 = vadd.f32 %v1870_v30, %v1744_v29  ;;  %v1746_v53 = vmul.f32 %v1139_v32, %v1139_v32 }
 0x10a   : > { %v1141_v44 = vpop.f32.mrf.mxu0 }
 0x10b   : > { %v3298_v31 = vpack.c.bf16 %v1150_v38, %v1147_v37  ;;  %v1142_v48 = vadd.f32 %v4436_v27, %v1141_v44  ;;  %v1872_v51 = vadd.f32 %v1871_v23, %v1745_v39  ;;  %v1612_v52 = vadd.f32 %v1611_v43, %v1139_v32 }
 0x10c   : > { %v3812_v35 = vpop.f32.mrf.mxu0  ;;  %v1749_v34 = vmul.f32 %v1150_v38, %v1150_v38 }
 0x10d   : > { %3649 = vst [vmem:[%s4446_s12 + $0x38] sm:$0xff] %v3298_v31   ;;  %v1747_v55 = vmul.f32 %v1142_v48, %v1142_v48  ;;  %v3293_v56 = vpack.c.bf16 %v1142_v48, %v1139_v32  ;;  %v1873_v57 = vadd.f32 %v1872_v51, %v1746_v53  ;;  %v1613_v59 = vadd.f32 %v1612_v52, %v1142_v48 }
 0x10e   : > { %v1154_v60 = vpop.f32.mrf.mxu0  ;;  %v1163_v1 = vadd.f32 %v3812_v35, %v4436_v27 }
 0x10f   : > { %3648 = vst [vmem:[%s4446_s12 + $0x30] sm:$0xff] %v3293_v56   ;;  %v1614_v61 = vadd.f32 %v1613_v59, %v1147_v37  ;;  %v1874_v62 = vadd.f32 %v1873_v57, %v1747_v55  ;;  %v1155_v0 = vadd.f32 %v4436_v27, %v1154_v60 }
 0x110   : > { %v3813_v63 = vpop.f32.mrf.mxu0  ;;  %v1752_v54 = vmul.f32 %v1163_v1, %v1163_v1 }
 0x111   : > { %v1166_v2 = vadd.f32 %v3813_v63, %v4436_v27  ;;  %v1615_v47 = vadd.f32 %v1614_v61, %v1150_v38  ;;  %v1875_v4 = vadd.f32 %v1874_v62, %v1748_v45  ;;  %v1750_v10 = vmul.f32 %v1155_v0, %v1155_v0 }
 0x112   : > { %v1157_v6 = vpop.f32.mrf.mxu0 }
 0x113   : > { %v3308_v49 = vpack.c.bf16 %v1166_v2, %v1163_v1  ;;  %v1158_v50 = vadd.f32 %v4436_v27, %v1157_v6  ;;  %v1876_v7 = vadd.f32 %v1875_v4, %v1749_v34  ;;  %v1616_v9 = vadd.f32 %v1615_v47, %v1155_v0 }
 0x114   : > { %v3816_v11 = vpop.f32.mrf.mxu0  ;;  %v1753_v58 = vmul.f32 %v1166_v2, %v1166_v2 }
 0x115   : > { %3651 = vst [vmem:[%s4446_s12 + $0x48] sm:$0xff] %v3308_v49   ;;  %v1751_v12 = vmul.f32 %v1158_v50, %v1158_v50  ;;  %v3303_v13 = vpack.c.bf16 %v1158_v50, %v1155_v0  ;;  %v1877_v14 = vadd.f32 %v1876_v7, %v1750_v10  ;;  %v1617_v36 = vadd.f32 %v1616_v9, %v1158_v50  ;;  %v3860_v0 = vpop.f32.mrf.mxu1 }
 0x116   : > { %v1170_v15 = vpop.f32.mrf.mxu0  ;;  %v1179_v41 = vadd.f32 %v3816_v11, %v4436_v27  ;;  %v4491_v11 = vadd.f32 %v3860_v0, %v4436_v27 }
 0x117   : > { %3650 = vst [vmem:[%s4446_s12 + $0x40] sm:$0xff] %v3303_v13   ;;  %v1618_v17 = vadd.f32 %v1617_v36, %v1163_v1  ;;  %v1878_v18 = vadd.f32 %v1877_v14, %v1751_v12  ;;  %v1171_v25 = vadd.f32 %v4436_v27, %v1170_v15  ;;  %v1346_v4 = vpop.f32.mrf.mxu1 }
 0x118   : > { %v3817_v40 = vpop.f32.mrf.mxu0  ;;  %v1756_v32 = vmul.f32 %v1179_v41, %v1179_v41  ;;  %v4495_v36 = vadd.f32 %v4436_v27, %v1346_v4 }
 0x119   : > { %v1182_v42 = vadd.f32 %v3817_v40, %v4436_v27  ;;  %v1619_v19 = vadd.f32 %v1618_v17, %v1166_v2  ;;  %v1879_v20 = vadd.f32 %v1878_v18, %v1752_v54  ;;  %v1754_v24 = vmul.f32 %v1171_v25, %v1171_v25  ;;  %v3861_v12 = vpop.f32.mrf.mxu1 }
 0x11a   : > { %v1173_v21 = vpop.f32.mrf.mxu0 }
 0x11b   : > { %v3318_v22 = vpack.c.bf16 %v1182_v42, %v1179_v41  ;;  %v1174_v16 = vadd.f32 %v4436_v27, %v1173_v21  ;;  %v1880_v46 = vadd.f32 %v1879_v20, %v1753_v58  ;;  %v1620_v3 = vadd.f32 %v1619_v19, %v1171_v25  ;;  %v1349_v40 = vpop.f32.mrf.mxu1 }
 0x11c   : > { %v3820_v26 = vpop.f32.mrf.mxu0  ;;  %v1757_v44 = vmul.f32 %v1182_v42, %v1182_v42  ;;  %v4502_v58 = vadd.f32 %v4436_v27, %v1349_v40 }
 0x11d   : > { %3653 = vst [vmem:[%s4446_s12 + $0x58] sm:$0xff] %v3318_v22   ;;  %v1755_v8 = vmul.f32 %v1174_v16, %v1174_v16  ;;  %v3313_v28 = vpack.c.bf16 %v1174_v16, %v1171_v25  ;;  %v1881_v29 = vadd.f32 %v1880_v46, %v1754_v24  ;;  %v1621_v5 = vadd.f32 %v1620_v3, %v1174_v16 }
 0x11e   : > { %v1186_v30 = vpop.f32.mrf.mxu0  ;;  %v1195_v43 = vadd.f32 %v3820_v26, %v4436_v27  ;;  %v4498_v25 = vadd.f32 %v3861_v12, %v4436_v27  ;;  %v3423_v46 = vpack.c.bf16 %v4502_v58, %v4495_v36 }
 0x11f   : > { %3652 = vst [vmem:[%s4446_s12 + $0x50] sm:$0xff] %v3313_v28   ;;  %v1622_v33 = vadd.f32 %v1621_v5, %v1179_v41  ;;  %v1882_v37 = vadd.f32 %v1881_v29, %v1755_v8  ;;  %v1187_v38 = vadd.f32 %v4436_v27, %v1186_v30 }
 0x120   : > { %v3821_v39 = vpop.f32.mrf.mxu0  ;;  %v1760_v63 = vmul.f32 %v1195_v43, %v1195_v43  ;;  %v3428_v22 = vpack.c.bf16 %v4498_v25, %v4491_v11  ;;  %3674 = vst [vmem:[%s4446_s12 + $0x100] sm:$0xff] %v3423_v46  }
 0x121   : > { %v1198_v23 = vadd.f32 %v3821_v39, %v4436_v27  ;;  %v1623_v31 = vadd.f32 %v1622_v33, %v1182_v42  ;;  %v1883_v48 = vadd.f32 %v1882_v37, %v1756_v32  ;;  %v1758_v56 = vmul.f32 %v1187_v38, %v1187_v38  ;;  %v3864_v16 = vpop.f32.mrf.mxu1 }
 0x122   : > { %v1189_v51 = vpop.f32.mrf.mxu0  ;;  %3675 = vst [vmem:[%s4446_s12 + $0x108] sm:$0xff] %v3428_v22   ;;  %v4515_v39 = vadd.f32 %v3864_v16, %v4436_v27 }
 0x123   : > { %v3328_v52 = vpack.c.bf16 %v1198_v23, %v1195_v43  ;;  %v1190_v53 = vadd.f32 %v4436_v27, %v1189_v51  ;;  %v1884_v35 = vadd.f32 %v1883_v48, %v1757_v44  ;;  %v1624_v55 = vadd.f32 %v1623_v31, %v1187_v38  ;;  %v1362_v29 = vpop.f32.mrf.mxu1 }
 0x124   : > { %v3824_v57 = vpop.f32.mrf.mxu0  ;;  %v1761_v50 = vmul.f32 %v1198_v23, %v1198_v23  ;;  %v4519_v31 = vadd.f32 %v4436_v27, %v1362_v29 }
 0x125   : > { %3655 = vst [vmem:[%s4446_s12 + $0x68] sm:$0xff] %v3328_v52   ;;  %v1759_v59 = vmul.f32 %v1190_v53, %v1190_v53  ;;  %v3323_v60 = vpack.c.bf16 %v1190_v53, %v1187_v38  ;;  %v1885_v45 = vadd.f32 %v1884_v35, %v1758_v56  ;;  %v1625_v61 = vadd.f32 %v1624_v55, %v1190_v53 }
 0x126   : > { %v1202_v62 = vpop.f32.mrf.mxu0  ;;  %v1211_v6 = vadd.f32 %v3824_v57, %v4436_v27 }
 0x127   : > { %3654 = vst [vmem:[%s4446_s12 + $0x60] sm:$0xff] %v3323_v60   ;;  %v1626_v1 = vadd.f32 %v1625_v61, %v1195_v43  ;;  %v1886_v2 = vadd.f32 %v1885_v45, %v1759_v59  ;;  %v1203_v34 = vadd.f32 %v4436_v27, %v1202_v62  ;;  %v3865_v43 = vpop.f32.mrf.mxu1 }
 0x128   : > { %v3825_v47 = vpop.f32.mrf.mxu0  ;;  %v1764_v3 = vmul.f32 %v1211_v6, %v1211_v6  ;;  %v4522_v35 = vadd.f32 %v3865_v43, %v4436_v27 }
 0x129   : > { %v1214_v49 = vadd.f32 %v3825_v47, %v4436_v27  ;;  %v1627_v7 = vadd.f32 %v1626_v1, %v1198_v23  ;;  %v1887_v9 = vadd.f32 %v1886_v2, %v1760_v63  ;;  %v1762_v17 = vmul.f32 %v1203_v34, %v1203_v34  ;;  %v1365_v55 = vpop.f32.mrf.mxu1 }
 0x12a   : > { %v1205_v10 = vpop.f32.mrf.mxu0  ;;  %v4526_v59 = vadd.f32 %v4436_v27, %v1365_v55  ;;  %v3438_v62 = vpack.c.bf16 %v4522_v35, %v4515_v39 }
 0x12b   : > { %v3338_v13 = vpack.c.bf16 %v1214_v49, %v1211_v6  ;;  %v1206_v14 = vadd.f32 %v4436_v27, %v1205_v10  ;;  %v1888_v15 = vadd.f32 %v1887_v9, %v1761_v50  ;;  %v1628_v54 = vadd.f32 %v1627_v7, %v1203_v34 }
 0x12c   : > { %v3828_v18 = vpop.f32.mrf.mxu0  ;;  %v1765_v32 = vmul.f32 %v1214_v49, %v1214_v49  ;;  %v3433_v63 = vpack.c.bf16 %v4526_v59, %v4519_v31  ;;  %3677 = vst [vmem:[%s4446_s12 + $0x118] sm:$0xff] %v3438_v62  }
 0x12d   : > { %3657 = vst [vmem:[%s4446_s12 + $0x78] sm:$0xff] %v3338_v13   ;;  %v1763_v41 = vmul.f32 %v1206_v14, %v1206_v14  ;;  %v3333_v42 = vpack.c.bf16 %v1206_v14, %v1203_v34  ;;  %v1889_v19 = vadd.f32 %v1888_v15, %v1762_v17  ;;  %v1629_v20 = vadd.f32 %v1628_v54, %v1206_v14 }
 0x12e   : > { %v1218_v21 = vpop.f32.mrf.mxu0  ;;  %v1227_v5 = vadd.f32 %v3828_v18, %v4436_v27  ;;  %3676 = vst [vmem:[%s4446_s12 + $0x110] sm:$0xff] %v3433_v63  }
 0x12f   : > { %3656 = vst [vmem:[%s4446_s12 + $0x70] sm:$0xff] %v3333_v42   ;;  %v1630_v24 = vadd.f32 %v1629_v20, %v1211_v6  ;;  %v1890_v26 = vadd.f32 %v1889_v19, %v1763_v41  ;;  %v1219_v8 = vadd.f32 %v4436_v27, %v1218_v21 }
 0x130   : > { %v3829_v28 = vpop.f32.mrf.mxu0  ;;  %v1768_v1 = vmul.f32 %v1227_v5, %v1227_v5 }
 0x131   : > { %v1230_v30 = vadd.f32 %v3829_v28, %v4436_v27  ;;  %v1631_v33 = vadd.f32 %v1630_v24, %v1214_v49  ;;  %v1891_v37 = vadd.f32 %v1890_v26, %v1764_v3  ;;  %v1766_v52 = vmul.f32 %v1219_v8, %v1219_v8  ;;  %v3868_v0 = vpop.f32.mrf.mxu1 }
 0x132   : > { %v1221_v38 = vpop.f32.mrf.mxu0  ;;  %v4539_v13 = vadd.f32 %v3868_v0, %v4436_v27 }
 0x133   : > { %v3348_v23 = vpack.c.bf16 %v1230_v30, %v1227_v5  ;;  %v1222_v44 = vadd.f32 %v4436_v27, %v1221_v38  ;;  %v1892_v48 = vadd.f32 %v1891_v37, %v1765_v32  ;;  %v1632_v51 = vadd.f32 %v1631_v33, %v1219_v8  ;;  %v1378_v6 = vpop.f32.mrf.mxu1 }
 0x134   : > { %v3832_v53 = vpop.f32.mrf.mxu0  ;;  %v1769_v7 = vmul.f32 %v1230_v30, %v1230_v30  ;;  %v4543_v17 = vadd.f32 %v4436_v27, %v1378_v6 }
 0x135   : > { %3659 = vst [vmem:[%s4446_s12 + $0x88] sm:$0xff] %v3348_v23   ;;  %v1767_v56 = vmul.f32 %v1222_v44, %v1222_v44  ;;  %v3343_v57 = vpack.c.bf16 %v1222_v44, %v1219_v8  ;;  %v1893_v60 = vadd.f32 %v1892_v48, %v1766_v52  ;;  %v1633_v45 = vadd.f32 %v1632_v51, %v1222_v44  ;;  %v3869_v14 = vpop.f32.mrf.mxu1 }
 0x136   : > { %v1234_v61 = vpop.f32.mrf.mxu0  ;;  %v1243_v49 = vadd.f32 %v3832_v53, %v4436_v27  ;;  %v4546_v19 = vadd.f32 %v3869_v14, %v4436_v27 }
 0x137   : > { %3658 = vst [vmem:[%s4446_s12 + $0x80] sm:$0xff] %v3343_v57   ;;  %v1634_v2 = vadd.f32 %v1633_v45, %v1227_v5  ;;  %v1894_v34 = vadd.f32 %v1893_v60, %v1767_v56  ;;  %v1235_v47 = vadd.f32 %v4436_v27, %v1234_v61  ;;  %v1381_v20 = vpop.f32.mrf.mxu1 }
 0x138   : > { %v3833_v4 = vpop.f32.mrf.mxu0  ;;  %v4550_v16 = vadd.f32 %v4436_v27, %v1381_v20  ;;  %v3448_v26 = vpack.c.bf16 %v4546_v19, %v4539_v13  ;;  %v1772_v29 = vmul.f32 %v1243_v49, %v1243_v49 }
 0x139   : > { %v1246_v50 = vadd.f32 %v3833_v4, %v4436_v27  ;;  %v1635_v9 = vadd.f32 %v1634_v2, %v1230_v30  ;;  %v1895_v10 = vadd.f32 %v1894_v34, %v1768_v1  ;;  %v1770_v41 = vmul.f32 %v1235_v47, %v1235_v47  ;;  %v3872_v8 = vpop.f32.mrf.mxu1 }
 0x13a   : > { %v1237_v12 = vpop.f32.mrf.mxu0  ;;  %v3443_v28 = vpack.c.bf16 %v4550_v16, %v4543_v17  ;;  %3679 = vst [vmem:[%s4446_s12 + $0x128] sm:$0xff] %v3448_v26   ;;  %v4563_v52 = vadd.f32 %v3872_v8, %v4436_v27 }
 0x13b   : > { %v3358_v15 = vpack.c.bf16 %v1246_v50, %v1243_v49  ;;  %v1238_v54 = vadd.f32 %v4436_v27, %v1237_v12  ;;  %v1896_v18 = vadd.f32 %v1895_v10, %v1769_v7  ;;  %v1636_v40 = vadd.f32 %v1635_v9, %v1235_v47  ;;  %v1394_v37 = vpop.f32.mrf.mxu1 }
 0x13c   : > { %v3836_v42 = vpop.f32.mrf.mxu0  ;;  %3678 = vst [vmem:[%s4446_s12 + $0x120] sm:$0xff] %v3443_v28   ;;  %v1773_v23 = vmul.f32 %v1246_v50, %v1246_v50  ;;  %v4567_v57 = vadd.f32 %v4436_v27, %v1394_v37 }
 0x13d   : > { %3661 = vst [vmem:[%s4446_s12 + $0x98] sm:$0xff] %v3358_v15   ;;  %v1771_v21 = vmul.f32 %v1238_v54, %v1238_v54  ;;  %v3353_v22 = vpack.c.bf16 %v1238_v54, %v1235_v47  ;;  %v1897_v46 = vadd.f32 %v1896_v18, %v1770_v41  ;;  %v1637_v3 = vadd.f32 %v1636_v40, %v1238_v54  ;;  %v3873_v53 = vpop.f32.mrf.mxu1 }
 0x13e   : > { %v1250_v24 = vpop.f32.mrf.mxu0  ;;  %v1259_v38 = vadd.f32 %v3836_v42, %v4436_v27  ;;  %v4570_v0 = vadd.f32 %v3873_v53, %v4436_v27 }
 0x13f   : > { %3660 = vst [vmem:[%s4446_s12 + $0x90] sm:$0xff] %v3353_v22   ;;  %v1638_v5 = vadd.f32 %v1637_v3, %v1243_v49  ;;  %v1898_v30 = vadd.f32 %v1897_v46, %v1771_v21  ;;  %v1251_v32 = vadd.f32 %v4436_v27, %v1250_v24  ;;  %v1397_v63 = vpop.f32.mrf.mxu1 }
 0x140   : > { %v3837_v33 = vpop.f32.mrf.mxu0  ;;  %v4574_v34 = vadd.f32 %v4436_v27, %v1397_v63  ;;  %v3458_v49 = vpack.c.bf16 %v4570_v0, %v4563_v52  ;;  %v1776_v9 = vmul.f32 %v1259_v38, %v1259_v38 }
 0x141   : > { %v1262_v43 = vadd.f32 %v3837_v33, %v4436_v27  ;;  %v1639_v44 = vadd.f32 %v1638_v5, %v1246_v50  ;;  %v1899_v48 = vadd.f32 %v1898_v30, %v1772_v29  ;;  %v1774_v61 = vmul.f32 %v1251_v32, %v1251_v32  ;;  %v3876_v50 = vpop.f32.mrf.mxu1 }
 0x142   : > { %v1253_v51 = vpop.f32.mrf.mxu0  ;;  %v3453_v7 = vpack.c.bf16 %v4574_v34, %v4567_v57  ;;  %3681 = vst [vmem:[%s4446_s12 + $0x138] sm:$0xff] %v3458_v49   ;;  %v4587_v22 = vadd.f32 %v3876_v50, %v4436_v27 }
 0x143   : > { %v3368_v55 = vpack.c.bf16 %v1262_v43, %v1259_v38  ;;  %v1254_v56 = vadd.f32 %v4436_v27, %v1253_v51  ;;  %v1900_v60 = vadd.f32 %v1899_v48, %v1773_v23  ;;  %v1640_v45 = vadd.f32 %v1639_v44, %v1251_v32  ;;  %v1410_v54 = vpop.f32.mrf.mxu1 }
 0x144   : > { %v3840_v62 = vpop.f32.mrf.mxu0  ;;  %3680 = vst [vmem:[%s4446_s12 + $0x130] sm:$0xff] %v3453_v7   ;;  %v1777_v41 = vmul.f32 %v1262_v43, %v1262_v43  ;;  %v4591_v26 = vadd.f32 %v4436_v27, %v1410_v54 }
 0x145   : > { %3663 = vst [vmem:[%s4446_s12 + $0xa8] sm:$0xff] %v3368_v55   ;;  %v1775_v1 = vmul.f32 %v1254_v56, %v1254_v56  ;;  %v3363_v2 = vpack.c.bf16 %v1254_v56, %v1251_v32  ;;  %v1901_v47 = vadd.f32 %v1900_v60, %v1774_v61  ;;  %v1641_v4 = vadd.f32 %v1640_v45, %v1254_v56  ;;  %v3877_v46 = vpop.f32.mrf.mxu1 }
 0x146   : > { %v1266_v6 = vpop.f32.mrf.mxu0  ;;  %v1275_v18 = vadd.f32 %v3840_v62, %v4436_v27  ;;  %v4594_v30 = vadd.f32 %v3877_v46, %v4436_v27 }
 0x147   : > { %3662 = vst [vmem:[%s4446_s12 + $0xa0] sm:$0xff] %v3363_v2   ;;  %v1642_v10 = vadd.f32 %v1641_v4, %v1259_v38  ;;  %v1902_v12 = vadd.f32 %v1901_v47, %v1775_v1  ;;  %v1267_v14 = vadd.f32 %v4436_v27, %v1266_v6  ;;  %v1413_v32 = vpop.f32.mrf.mxu1 }
 0x148   : > { %v3841_v15 = vpop.f32.mrf.mxu0  ;;  %v4598_v38 = vadd.f32 %v4436_v27, %v1413_v32  ;;  %v3468_v48 = vpack.c.bf16 %v4594_v30, %v4587_v22  ;;  %v1780_v55 = vmul.f32 %v1275_v18, %v1275_v18 }
 0x149   : > { %v1278_v40 = vadd.f32 %v3841_v15, %v4436_v27  ;;  %v1643_v42 = vadd.f32 %v1642_v10, %v1262_v43  ;;  %v1903_v20 = vadd.f32 %v1902_v12, %v1776_v9  ;;  %v1778_v29 = vmul.f32 %v1267_v14, %v1267_v14  ;;  %v3880_v51 = vpop.f32.mrf.mxu1 }
 0x14a   : > { %v1269_v21 = vpop.f32.mrf.mxu0  ;;  %v3463_v53 = vpack.c.bf16 %v4598_v38, %v4591_v26  ;;  %3683 = vst [vmem:[%s4446_s12 + $0x148] sm:$0xff] %v3468_v48   ;;  %v4611_v49 = vadd.f32 %v3880_v51, %v4436_v27 }
 0x14b   : > { %v3378_v3 = vpack.c.bf16 %v1278_v40, %v1275_v18  ;;  %v1270_v24 = vadd.f32 %v4436_v27, %v1269_v21  ;;  %v1904_v8 = vadd.f32 %v1903_v20, %v1777_v41  ;;  %v1644_v28 = vadd.f32 %v1643_v42, %v1267_v14  ;;  %v1426_v62 = vpop.f32.mrf.mxu1 }
 0x14c   : > { %v3844_v5 = vpop.f32.mrf.mxu0  ;;  %3682 = vst [vmem:[%s4446_s12 + $0x140] sm:$0xff] %v3463_v53   ;;  %v1781_v2 = vmul.f32 %v1278_v40, %v1278_v40  ;;  %v4615_v10 = vadd.f32 %v4436_v27, %v1426_v62 }
 0x14d   : > { %3665 = vst [vmem:[%s4446_s12 + $0xb8] sm:$0xff] %v3378_v3   ;;  %v1779_v33 = vmul.f32 %v1270_v24, %v1270_v24  ;;  %v3373_v37 = vpack.c.bf16 %v1270_v24, %v1267_v14  ;;  %v1905_v43 = vadd.f32 %v1904_v8, %v1778_v29  ;;  %v1645_v23 = vadd.f32 %v1644_v28, %v1270_v24  ;;  %v3881_v50 = vpop.f32.mrf.mxu1 }
 0x14e   : > { %v1282_v44 = vpop.f32.mrf.mxu0  ;;  %v1291_v63 = vadd.f32 %v3844_v5, %v4436_v27 }
 0x14f   : > { %3664 = vst [vmem:[%s4446_s12 + $0xb0] sm:$0xff] %v3373_v37   ;;  %v1646_v56 = vadd.f32 %v1645_v23, %v1275_v18  ;;  %v1906_v60 = vadd.f32 %v1905_v43, %v1779_v33  ;;  %v1283_v45 = vadd.f32 %v4436_v27, %v1282_v44  ;;  %v4618_v18 = vadd.f32 %v3881_v50, %v4436_v27 }
 0x150   : > { %v3845_v61 = vpop.f32.mrf.mxu0  ;;  %v1784_v29 = vmul.f32 %v1291_v63, %v1291_v63 }
 0x151   : > { %v1294_v1 = vadd.f32 %v3845_v61, %v4436_v27  ;;  %v1647_v47 = vadd.f32 %v1646_v56, %v1278_v40  ;;  %v1907_v4 = vadd.f32 %v1906_v60, %v1780_v55  ;;  %v1782_v15 = vmul.f32 %v1283_v45, %v1283_v45  ;;  %v1429_v40 = vpop.f32.mrf.mxu1 }
 0x152   : > { %v1285_v6 = vpop.f32.mrf.mxu0  ;;  %v4622_v20 = vadd.f32 %v4436_v27, %v1429_v40  ;;  %v3478_v24 = vpack.c.bf16 %v4618_v18, %v4611_v49 }
 0x153   : > { %v3388_v7 = vpack.c.bf16 %v1294_v1, %v1291_v63  ;;  %v1286_v9 = vadd.f32 %v4436_v27, %v1285_v6  ;;  %v1908_v12 = vadd.f32 %v1907_v4, %v1781_v2  ;;  %v1648_v14 = vadd.f32 %v1647_v47, %v1283_v45  ;;  %v3884_v8 = vpop.f32.mrf.mxu1 }
 0x154   : > { %v3848_v54 = vpop.f32.mrf.mxu0  ;;  %v3473_v28 = vpack.c.bf16 %v4622_v20, %v4615_v10  ;;  %3685 = vst [vmem:[%s4446_s12 + $0x158] sm:$0xff] %v3478_v24   ;;  %v1785_v48 = vmul.f32 %v1294_v1, %v1294_v1  ;;  %v4635_v56 = vadd.f32 %v3884_v8, %v4436_v27 }
 0x155   : > { %3667 = vst [vmem:[%s4446_s12 + $0xc8] sm:$0xff] %v3388_v7   ;;  %v1783_v41 = vmul.f32 %v1286_v9, %v1286_v9  ;;  %v3383_v42 = vpack.c.bf16 %v1286_v9, %v1283_v45  ;;  %v1909_v21 = vadd.f32 %v1908_v12, %v1782_v15  ;;  %v1649_v46 = vadd.f32 %v1648_v14, %v1286_v9  ;;  %v1442_v43 = vpop.f32.mrf.mxu1 }
 0x156   : > { %v1298_v3 = vpop.f32.mrf.mxu0  ;;  %v1307_v23 = vadd.f32 %v3848_v54, %v4436_v27  ;;  %3684 = vst [vmem:[%s4446_s12 + $0x150] sm:$0xff] %v3473_v28   ;;  %v4639_v62 = vadd.f32 %v4436_v27, %v1442_v43 }
 0x157   : > { %3666 = vst [vmem:[%s4446_s12 + $0xc0] sm:$0xff] %v3383_v42   ;;  %v1650_v5 = vadd.f32 %v1649_v46, %v1291_v63  ;;  %v1910_v32 = vadd.f32 %v1909_v21, %v1783_v41  ;;  %v1299_v33 = vadd.f32 %v4436_v27, %v1298_v3  ;;  %v3885_v60 = vpop.f32.mrf.mxu1 }
 0x158   : > { %v3849_v37 = vpop.f32.mrf.mxu0  ;;  %v4642_v6 = vadd.f32 %v3885_v60, %v4436_v27  ;;  %v1788_v42 = vmul.f32 %v1307_v23, %v1307_v23 }
 0x159   : > { %v1310_v44 = vadd.f32 %v3849_v37, %v4436_v27  ;;  %v1651_v51 = vadd.f32 %v1650_v5, %v1294_v1  ;;  %v1911_v53 = vadd.f32 %v1910_v32, %v1784_v29  ;;  %v1786_v47 = vmul.f32 %v1299_v33, %v1299_v33  ;;  %v1445_v1 = vpop.f32.mrf.mxu1 }
 0x15a   : > { %v1301_v55 = vpop.f32.mrf.mxu0  ;;  %v4646_v9 = vadd.f32 %v4436_v27, %v1445_v1  ;;  %v3488_v54 = vpack.c.bf16 %v4642_v6, %v4635_v56 }
 0x15b   : > { %v3398_v45 = vpack.c.bf16 %v1310_v44, %v1307_v23  ;;  %v1302_v61 = vadd.f32 %v4436_v27, %v1301_v55  ;;  %v1912_v63 = vadd.f32 %v1911_v53, %v1785_v48  ;;  %v1652_v2 = vadd.f32 %v1651_v51, %v1299_v33  ;;  %v3888_v40 = vpop.f32.mrf.mxu1 }
 0x15c   : > { %v3852_v4 = vpop.f32.mrf.mxu0  ;;  %v3483_v41 = vpack.c.bf16 %v4646_v9, %v4639_v62  ;;  %3687 = vst [vmem:[%s4446_s12 + $0x168] sm:$0xff] %v3488_v54   ;;  %v1789_v5 = vmul.f32 %v1310_v44, %v1310_v44  ;;  %v4659_v43 = vadd.f32 %v3888_v40, %v4436_v27 }
 0x15d   : > { %3669 = vst [vmem:[%s4446_s12 + $0xd8] sm:$0xff] %v3398_v45   ;;  %v1787_v50 = vmul.f32 %v1302_v61, %v1302_v61  ;;  %v3393_v7 = vpack.c.bf16 %v1302_v61, %v1299_v33  ;;  %v1913_v12 = vadd.f32 %v1912_v63, %v1786_v47  ;;  %v1653_v14 = vadd.f32 %v1652_v2, %v1302_v61  ;;  %v1458_v8 = vpop.f32.mrf.mxu1 }
 0x15e   : > { %v1314_v15 = vpop.f32.mrf.mxu0  ;;  %v1323_v28 = vadd.f32 %v3852_v4, %v4436_v27  ;;  %3686 = vst [vmem:[%s4446_s12 + $0x160] sm:$0xff] %v3483_v41   ;;  %v4663_v53 = vadd.f32 %v4436_v27, %v1458_v8 }
 0x15f   : > { %3668 = vst [vmem:[%s4446_s12 + $0xd0] sm:$0xff] %v3393_v7   ;;  %v1654_v21 = vadd.f32 %v1653_v14, %v1307_v23  ;;  %v1914_v46 = vadd.f32 %v1913_v12, %v1787_v50  ;;  %v1315_v3 = vadd.f32 %v4436_v27, %v1314_v15  ;;  %v3889_v23 = vpop.f32.mrf.mxu1 }
 0x160   : > { %v3853_v24 = vpop.f32.mrf.mxu0  ;;  %v4666_v63 = vadd.f32 %v3889_v23, %v4436_v27  ;;  %v1792_v54 = vmul.f32 %v1323_v28, %v1323_v28 }
 0x161   : > { %v1326_v29 = vadd.f32 %v3853_v24, %v4436_v27  ;;  %v1655_v32 = vadd.f32 %v1654_v21, %v1310_v44  ;;  %v1915_v33 = vadd.f32 %v1914_v46, %v1788_v42  ;;  %v1790_v45 = vmul.f32 %v1315_v3, %v1315_v3  ;;  %v1461_v44 = vpop.f32.mrf.mxu1 }
 0x162   : > { %v1317_v37 = vpop.f32.mrf.mxu0  ;;  %v4670_v4 = vadd.f32 %v4436_v27, %v1461_v44  ;;  %v3498_v12 = vpack.c.bf16 %v4666_v63, %v4659_v43 }
 0x163   : > { %v3408_v48 = vpack.c.bf16 %v1326_v29, %v1323_v28  ;;  %v1318_v51 = vadd.f32 %v4436_v27, %v1317_v37  ;;  %v1916_v55 = vadd.f32 %v1915_v33, %v1789_v5  ;;  %v1656_v60 = vadd.f32 %v1655_v32, %v1315_v3  ;;  %v3892_v14 = vpop.f32.mrf.mxu1 }
 0x164   : > { %v3856_v61 = vpop.f32.mrf.mxu0  ;;  %v3493_v15 = vpack.c.bf16 %v4670_v4, %v4663_v53  ;;  %3689 = vst [vmem:[%s4446_s12 + $0x178] sm:$0xff] %v3498_v12   ;;  %v1793_v8 = vmul.f32 %v1326_v29, %v1326_v29  ;;  %v4683_v37 = vadd.f32 %v3892_v14, %v4436_v27 }
 0x165   : > { %3671 = vst [vmem:[%s4446_s12 + $0xe8] sm:$0xff] %v3408_v48   ;;  %v1791_v2 = vmul.f32 %v1318_v51, %v1318_v51  ;;  %v3403_v47 = vpack.c.bf16 %v1318_v51, %v1315_v3  ;;  %v1917_v1 = vadd.f32 %v1916_v55, %v1790_v45  ;;  %v1657_v50 = vadd.f32 %v1656_v60, %v1318_v51  ;;  %v1474_v46 = vpop.f32.mrf.mxu1 }
 0x166   : > { %v1330_v7 = vpop.f32.mrf.mxu0  ;;  %v1339_v3 = vadd.f32 %v3856_v61, %v4436_v27  ;;  %3688 = vst [vmem:[%s4446_s12 + $0x170] sm:$0xff] %v3493_v15   ;;  %v4687_v51 = vadd.f32 %v4436_v27, %v1474_v46 }
 0x167   : > { %3670 = vst [vmem:[%s4446_s12 + $0xe0] sm:$0xff] %v3403_v47   ;;  %v1658_v40 = vadd.f32 %v1657_v50, %v1323_v28  ;;  %v1918_v41 = vadd.f32 %v1917_v1, %v1791_v2  ;;  %v1331_v42 = vadd.f32 %v4436_v27, %v1330_v7  ;;  %v3893_v28 = vpop.f32.mrf.mxu1 }
 0x168   : > { %v3857_v21 = vpop.f32.mrf.mxu0  ;;  %v4690_v61 = vadd.f32 %v3893_v28, %v4436_v27  ;;  %v1796_v15 = vmul.f32 %v1339_v3, %v1339_v3 }
 0x169   : > { %v1342_v24 = vadd.f32 %v3857_v21, %v4436_v27  ;;  %v1659_v5 = vadd.f32 %v1658_v40, %v1326_v29  ;;  %v1919_v32 = vadd.f32 %v1918_v41, %v1792_v54  ;;  %v1794_v45 = vmul.f32 %v1331_v42, %v1331_v42  ;;  %v1477_v29 = vpop.f32.mrf.mxu1 }
 0x16a   : > { %v1333_v33 = vpop.f32.mrf.mxu0  ;;  %v4694_v47 = vadd.f32 %v4436_v27, %v1477_v29  ;;  %v3508_v7 = vpack.c.bf16 %v4690_v61, %v4683_v37  ;;  %v1799_v29 = vmul.f32 %v4502_v58, %v4502_v58 }
 0x16b   : > { %v3418_v23 = vpack.c.bf16 %v1342_v24, %v1339_v3  ;;  %v1334_v48 = vadd.f32 %v4436_v27, %v1333_v33  ;;  %v1920_v55 = vadd.f32 %v1919_v32, %v1793_v8  ;;  %v1660_v60 = vadd.f32 %v1659_v5, %v1331_v42  ;;  %v3896_v12 = vpop.f32.mrf.mxu1 }
 0x16c   : > { %v3503_v14 = vpack.c.bf16 %v4694_v47, %v4687_v51  ;;  %3691 = vst [vmem:[%s4446_s12 + $0x188] sm:$0xff] %v3508_v7   ;;  %v1797_v21 = vmul.f32 %v1342_v24, %v1342_v24 }
 0x16d   : > { %3673 = vst [vmem:[%s4446_s12 + $0xf8] sm:$0xff] %v3418_v23   ;;  %v1795_v44 = vmul.f32 %v1334_v48, %v1334_v48  ;;  %v3413_v2 = vpack.c.bf16 %v1334_v48, %v1331_v42  ;;  %v1921_v1 = vadd.f32 %v1920_v55, %v1794_v45  ;;  %v1661_v50 = vadd.f32 %v1660_v60, %v1334_v48  ;;  %v1490_v41 = vpop.f32.mrf.mxu1 }
 0x16e   : > { %3690 = vst [vmem:[%s4446_s12 + $0x180] sm:$0xff] %v3503_v14   ;;  %v4704_v42 = vadd.f32 %v3896_v12, %v4436_v27  ;;  %v4707_v32 = vadd.f32 %v4436_v27, %v1490_v41  ;;  %v1801_v12 = vmul.f32 %v4498_v25, %v4498_v25 }
 0x16f   : > { %3672 = vst [vmem:[%s4446_s12 + $0xf0] sm:$0xff] %v3413_v2   ;;  %v1662_v54 = vadd.f32 %v1661_v50, %v1339_v3  ;;  %v1922_v40 = vadd.f32 %v1921_v1, %v1795_v44  ;;  %v3897_v5 = vpop.f32.mrf.mxu1  ;;  %v1798_v3 = vmul.f32 %v4495_v36, %v4495_v36 }
 0x170   : > { %v4710_v33 = vadd.f32 %v3897_v5, %v4436_v27 }
 0x171   : > { %v1663_v46 = vadd.f32 %v1662_v54, %v1342_v24  ;;  %v1923_v8 = vadd.f32 %v1922_v40, %v1796_v15  ;;  %v1493_v48 = vpop.f32.mrf.mxu1 }
 0x172   : > { %v3518_v55 = vpack.c.bf16 %v4710_v33, %v4704_v42  ;;  %v4718_v24 = vadd.f32 %v4436_v27, %v1493_v48  ;;  %v4733_v27 = vld [vmem:[%s5038_s4] ss:$0 sm:$0xff] }
 0x173   : > { %v1664_v28 = vadd.f32 %v1663_v46, %v4495_v36  ;;  %v1924_v23 = vadd.f32 %v1923_v8, %v1797_v21  ;;  %v3900_v44 = vpop.f32.mrf.mxu1  ;;  %v1800_v36 = vmul.f32 %v4491_v11, %v4491_v11  ;;  %v1802_v21 = vmul.f32 %v4519_v31, %v4519_v31 }
 0x174   : > { %3693 = vst [vmem:[%s4446_s12 + $0x198] sm:$0xff] %v3518_v55   ;;  %v3513_v2 = vpack.c.bf16 %v4718_v24, %v4707_v32 }
 0x175   : > { %v1925_v60 = vadd.f32 %v1924_v23, %v1798_v3  ;;  %v1665_v45 = vadd.f32 %v1664_v28, %v4502_v58  ;;  %v1506_v7 = vpop.f32.mrf.mxu1  ;;  %v4736_v58 = vadd.f32 %v4733_v27, %v3900_v44  ;;  %v1803_v23 = vmul.f32 %v4526_v59, %v4526_v59 }
 0x176   : > { %3692 = vst [vmem:[%s4446_s12 + $0x190] sm:$0xff] %v3513_v2   ;;  %v1805_v2 = vmul.f32 %v4522_v35, %v4522_v35 }
 0x177   : > { %v1666_v1 = vadd.f32 %v1665_v45, %v4491_v11  ;;  %v1926_v50 = vadd.f32 %v1925_v60, %v1799_v29  ;;  %v3901_v54 = vpop.f32.mrf.mxu1  ;;  %v4742_v11 = vadd.f32 %v4733_v27, %v1506_v7 }
 0x178   : > { %v4745_v40 = vadd.f32 %v4733_v27, %v3901_v54 }
 0x179   : > { %v1927_v14 = vadd.f32 %v1926_v50, %v1800_v36  ;;  %v1667_v15 = vadd.f32 %v1666_v1, %v4498_v25  ;;  %v1509_v8 = vpop.f32.mrf.mxu1 }
 0x17a   : > { %v3528_v5 = vpack.c.bf16 %v4745_v40, %v4736_v58  ;;  %v4753_v25 = vadd.f32 %v4733_v27, %v1509_v8 }
 0x17b   : > { %v1668_v41 = vadd.f32 %v1667_v15, %v4519_v31  ;;  %v1928_v46 = vadd.f32 %v1927_v14, %v1801_v12  ;;  %v3904_v48 = vpop.f32.mrf.mxu1  ;;  %v1804_v31 = vmul.f32 %v4515_v39, %v4515_v39  ;;  %v1806_v12 = vmul.f32 %v4543_v17, %v4543_v17 }
 0x17c   : > { %3695 = vst [vmem:[%s4446_s12 + $0x1a8] sm:$0xff] %v3528_v5   ;;  %v3523_v55 = vpack.c.bf16 %v4753_v25, %v4742_v11  ;;  %v4766_v44 = vadd.f32 %v4733_v27, %v3904_v48 }
 0x17d   : > { %v1929_v3 = vadd.f32 %v1928_v46, %v1802_v21  ;;  %v1669_v28 = vadd.f32 %v1668_v41, %v4526_v59  ;;  %v1522_v29 = vpop.f32.mrf.mxu1  ;;  %v1807_v46 = vmul.f32 %v4550_v16, %v4550_v16 }
 0x17e   : > { %3694 = vst [vmem:[%s4446_s12 + $0x1a0] sm:$0xff] %v3523_v55   ;;  %v4772_v50 = vadd.f32 %v4733_v27, %v1522_v29  ;;  %v1809_v55 = vmul.f32 %v4546_v19, %v4546_v19 }
 0x17f   : > { %v1670_v60 = vadd.f32 %v1669_v28, %v4515_v39  ;;  %v1930_v45 = vadd.f32 %v1929_v3, %v1803_v23  ;;  %v3905_v1 = vpop.f32.mrf.mxu1 }
 0x180   : > { %v4775_v7 = vadd.f32 %v4733_v27, %v3905_v1 }
 0x181   : > { %v1931_v59 = vadd.f32 %v1930_v45, %v1804_v31  ;;  %v1671_v36 = vadd.f32 %v1670_v60, %v4522_v35  ;;  %v1525_v15 = vpop.f32.mrf.mxu1 }
 0x182   : > { %v3538_v54 = vpack.c.bf16 %v4775_v7, %v4766_v44  ;;  %v4783_v35 = vadd.f32 %v4733_v27, %v1525_v15 }
 0x183   : > { %v1672_v39 = vadd.f32 %v1671_v36, %v4543_v17  ;;  %v1932_v14 = vadd.f32 %v1931_v59, %v1805_v2  ;;  %v3908_v8 = vpop.f32.mrf.mxu1  ;;  %v1808_v17 = vmul.f32 %v4539_v13, %v4539_v13  ;;  %v1810_v2 = vmul.f32 %v4567_v57, %v4567_v57 }
 0x184   : > { %3697 = vst [vmem:[%s4446_s12 + $0x1b8] sm:$0xff] %v3538_v54   ;;  %v3533_v5 = vpack.c.bf16 %v4783_v35, %v4772_v50  ;;  %v4796_v48 = vadd.f32 %v4733_v27, %v3908_v8 }
 0x185   : > { %v1933_v41 = vadd.f32 %v1932_v14, %v1806_v12  ;;  %v1673_v21 = vadd.f32 %v1672_v39, %v4550_v16  ;;  %v1538_v23 = vpop.f32.mrf.mxu1  ;;  %v1811_v14 = vmul.f32 %v4574_v34, %v4574_v34 }
 0x186   : > { %3696 = vst [vmem:[%s4446_s12 + $0x1b0] sm:$0xff] %v3533_v5   ;;  %v4802_v45 = vadd.f32 %v4733_v27, %v1538_v23  ;;  %v1813_v5 = vmul.f32 %v4570_v0, %v4570_v0 }
 0x187   : > { %v1674_v3 = vadd.f32 %v1673_v21, %v4539_v13  ;;  %v1934_v28 = vadd.f32 %v1933_v41, %v1807_v46  ;;  %v3909_v60 = vpop.f32.mrf.mxu1 }
 0x188   : > { %v4805_v29 = vadd.f32 %v4733_v27, %v3909_v60 }
 0x189   : > { %v1935_v16 = vadd.f32 %v1934_v28, %v1808_v17  ;;  %v1675_v31 = vadd.f32 %v1674_v3, %v4546_v19  ;;  %v1541_v36 = vpop.f32.mrf.mxu1 }
 0x18a   : > { %v3548_v1 = vpack.c.bf16 %v4805_v29, %v4796_v48  ;;  %v4813_v19 = vadd.f32 %v4733_v27, %v1541_v36 }
 0x18b   : > { %v1676_v13 = vadd.f32 %v1675_v31, %v4567_v57  ;;  %v1936_v59 = vadd.f32 %v1935_v16, %v1809_v55  ;;  %v3912_v15 = vpop.f32.mrf.mxu1  ;;  %v1812_v57 = vmul.f32 %v4563_v52, %v4563_v52  ;;  %v1814_v55 = vmul.f32 %v4591_v26, %v4591_v26 }
 0x18c   : > { %3699 = vst [vmem:[%s4446_s12 + $0x1c8] sm:$0xff] %v3548_v1   ;;  %v3543_v54 = vpack.c.bf16 %v4813_v19, %v4802_v45  ;;  %v4826_v8 = vadd.f32 %v4733_v27, %v3912_v15 }
 0x18d   : > { %v1937_v39 = vadd.f32 %v1936_v59, %v1810_v2  ;;  %v1677_v12 = vadd.f32 %v1676_v13, %v4574_v34  ;;  %v1554_v46 = vpop.f32.mrf.mxu1  ;;  %v1815_v59 = vmul.f32 %v4598_v38, %v4598_v38 }
 0x18e   : > { %3698 = vst [vmem:[%s4446_s12 + $0x1c0] sm:$0xff] %v3543_v54   ;;  %v4832_v28 = vadd.f32 %v4733_v27, %v1554_v46  ;;  %v1817_v54 = vmul.f32 %v4594_v30, %v4594_v30 }
 0x18f   : > { %v1678_v41 = vadd.f32 %v1677_v12, %v4563_v52  ;;  %v1938_v21 = vadd.f32 %v1937_v39, %v1811_v14  ;;  %v3913_v3 = vpop.f32.mrf.mxu1 }
 0x190   : > { %v4835_v23 = vadd.f32 %v4733_v27, %v3913_v3 }
 0x191   : > { %v1939_v34 = vadd.f32 %v1938_v21, %v1812_v57  ;;  %v1679_v17 = vadd.f32 %v1678_v41, %v4570_v0  ;;  %v1557_v31 = vpop.f32.mrf.mxu1 }
 0x192   : > { %v3558_v60 = vpack.c.bf16 %v4835_v23, %v4826_v8  ;;  %v4843_v0 = vadd.f32 %v4733_v27, %v1557_v31 }
 0x193   : > { %v1680_v52 = vadd.f32 %v1679_v17, %v4591_v26  ;;  %v1940_v16 = vadd.f32 %v1939_v34, %v1813_v5  ;;  %v3916_v36 = vpop.f32.mrf.mxu1  ;;  %v1816_v26 = vmul.f32 %v4587_v22, %v4587_v22  ;;  %v1818_v5 = vmul.f32 %v4615_v10, %v4615_v10 }
 0x194   : > { %3701 = vst [vmem:[%s4446_s12 + $0x1d8] sm:$0xff] %v3558_v60   ;;  %v3553_v1 = vpack.c.bf16 %v4843_v0, %v4832_v28  ;;  %v4856_v15 = vadd.f32 %v4733_v27, %v3916_v36 }
 0x195   : > { %v1941_v13 = vadd.f32 %v1940_v16, %v1814_v55  ;;  %v1681_v2 = vadd.f32 %v1680_v52, %v4598_v38  ;;  %v1570_v14 = vpop.f32.mrf.mxu1  ;;  %v1819_v16 = vmul.f32 %v4622_v20, %v4622_v20 }
 0x196   : > { %3700 = vst [vmem:[%s4446_s12 + $0x1d0] sm:$0xff] %v3553_v1   ;;  %v4862_v21 = vadd.f32 %v4733_v27, %v1570_v14 }
 0x197   : > { %v1682_v39 = vadd.f32 %v1681_v2, %v4587_v22  ;;  %v1942_v12 = vadd.f32 %v1941_v13, %v1815_v59  ;;  %v3917_v41 = vpop.f32.mrf.mxu1 }
 0x198   : > { %v4865_v46 = vadd.f32 %v4733_v27, %v3917_v41 }
 0x199   : > { %v1943_v38 = vadd.f32 %v1942_v12, %v1816_v26  ;;  %v1683_v57 = vadd.f32 %v1682_v39, %v4594_v30  ;;  %v1573_v17 = vpop.f32.mrf.mxu1 }
 0x19a   : > { %v3568_v3 = vpack.c.bf16 %v4865_v46, %v4856_v15  ;;  %v4873_v30 = vadd.f32 %v4733_v27, %v1573_v17 }
 0x19b   : > { %v1684_v22 = vadd.f32 %v1683_v57, %v4615_v10  ;;  %v1944_v34 = vadd.f32 %v1943_v38, %v1817_v54  ;;  %v3920_v31 = vpop.f32.mrf.mxu1  ;;  %v1820_v10 = vmul.f32 %v4611_v49, %v4611_v49  ;;  %v1822_v54 = vmul.f32 %v4639_v62, %v4639_v62 }
 0x19c   : > { %3703 = vst [vmem:[%s4446_s12 + $0x1e8] sm:$0xff] %v3568_v3   ;;  %v3563_v60 = vpack.c.bf16 %v4873_v30, %v4862_v21  ;;  %v4886_v36 = vadd.f32 %v4733_v27, %v3920_v31 }
 0x19d   : > { %v1945_v52 = vadd.f32 %v1944_v34, %v1818_v5  ;;  %v1685_v55 = vadd.f32 %v1684_v22, %v4622_v20  ;;  %v1586_v59 = vpop.f32.mrf.mxu1  ;;  %v1821_v20 = vmul.f32 %v4618_v18, %v4618_v18  ;;  %v1823_v34 = vmul.f32 %v4646_v9, %v4646_v9 }
 0x19e   : > { %3702 = vst [vmem:[%s4446_s12 + $0x1e0] sm:$0xff] %v3563_v60   ;;  %v4892_v12 = vadd.f32 %v4733_v27, %v1586_v59 }
 0x19f   : > { %v1686_v13 = vadd.f32 %v1685_v55, %v4611_v49  ;;  %v1946_v2 = vadd.f32 %v1945_v52, %v1819_v16  ;;  %v3921_v39 = vpop.f32.mrf.mxu1 }
 0x1a0   : > { %v4895_v49 = vadd.f32 %v4733_v27, %v3921_v39  ;;  %v1830_v39 = vmul.f32 %v4687_v51, %v4687_v51 }
 0x1a1   : > { %v1947_v1 = vadd.f32 %v1946_v2, %v1820_v10  ;;  %v1687_v26 = vadd.f32 %v1686_v13, %v4618_v18  ;;  %v1589_v57 = vpop.f32.mrf.mxu1  ;;  %v1828_v2 = vmul.f32 %v4659_v43, %v4659_v43 }
 0x1a2   : > { %v3578_v41 = vpack.c.bf16 %v4895_v49, %v4886_v36  ;;  %v4903_v18 = vadd.f32 %v4733_v27, %v1589_v57  ;;  %v1825_v27 = vmul.f32 %v4642_v6, %v4642_v6 }
 0x1a3   : > { %v1688_v14 = vadd.f32 %v1687_v26, %v4639_v62  ;;  %v1948_v38 = vadd.f32 %v1947_v1, %v1821_v20  ;;  %v1824_v62 = vmul.f32 %v4635_v56, %v4635_v56 }
 0x1a4   : > { %3705 = vst [vmem:[%s4446_s12 + $0x1f8] sm:$0xff] %v3578_v41   ;;  %v3573_v17 = vpack.c.bf16 %v4903_v18, %v4892_v12 }
 0x1a5   : > { %v1949_v22 = vadd.f32 %v1948_v38, %v1822_v54  ;;  %v1689_v5 = vadd.f32 %v1688_v14, %v4646_v9  ;;  %v1826_v9 = vmul.f32 %v4663_v53, %v4663_v53  ;;  %v1831_v38 = vmul.f32 %v4694_v47, %v4694_v47 }
 0x1a6   : > { %3704 = vst [vmem:[%s4446_s12 + $0x1f0] sm:$0xff] %v3573_v17  }
 0x1a7   : > { %v1690_v3 = vadd.f32 %v1689_v5, %v4635_v56  ;;  %v1950_v52 = vadd.f32 %v1949_v22, %v1823_v34  ;;  %v1827_v56 = vmul.f32 %v4670_v4, %v4670_v4  ;;  %v1834_v34 = vmul.f32 %v4707_v32, %v4707_v32 }
 0x1a9   : > { %v1951_v55 = vadd.f32 %v1950_v52, %v1824_v62  ;;  %v1691_v16 = vadd.f32 %v1690_v3, %v4642_v6  ;;  %v1829_v6 = vmul.f32 %v4666_v63, %v4666_v63  ;;  %v1835_v3 = vmul.f32 %v4718_v24, %v4718_v24 }
 0x1ab   : > { %v1692_v31 = vadd.f32 %v1691_v16, %v4663_v53  ;;  %v1952_v60 = vadd.f32 %v1951_v55, %v1825_v27 }
 0x1ad   : > { %v1953_v10 = vadd.f32 %v1952_v60, %v1826_v9  ;;  %v1693_v13 = vadd.f32 %v1692_v31, %v4670_v4  ;;  %v1838_v31 = vmul.f32 %v4742_v11, %v4742_v11 }
 0x1af   : > { %v1694_v59 = vadd.f32 %v1693_v13, %v4659_v43  ;;  %v1954_v20 = vadd.f32 %v1953_v10, %v1827_v56  ;;  %v1832_v43 = vmul.f32 %v4683_v37, %v4683_v37  ;;  %v1839_v10 = vmul.f32 %v4753_v25, %v4753_v25 }
 0x1b1   : > { %v1955_v1 = vadd.f32 %v1954_v20, %v1828_v2  ;;  %v1695_v26 = vadd.f32 %v1694_v59, %v4666_v63  ;;  %v1833_v63 = vmul.f32 %v4690_v61, %v4690_v61  ;;  %v1842_v20 = vmul.f32 %v4772_v50, %v4772_v50 }
 0x1b3   : > { %v1696_v53 = vadd.f32 %v1695_v26, %v4687_v51  ;;  %v1956_v14 = vadd.f32 %v1955_v1, %v1829_v6  ;;  %v1843_v26 = vmul.f32 %v4783_v35, %v4783_v35 }
 0x1b5   : > { %v1957_v54 = vadd.f32 %v1956_v14, %v1830_v39  ;;  %v1697_v4 = vadd.f32 %v1696_v53, %v4694_v47 }
 0x1b7   : > { %v1698_v57 = vadd.f32 %v1697_v4, %v4683_v37  ;;  %v1958_v41 = vadd.f32 %v1957_v54, %v1831_v38  ;;  %v1836_v37 = vmul.f32 %v4704_v42, %v4704_v42  ;;  %v1846_v4 = vmul.f32 %v4802_v45, %v4802_v45 }
 0x1b9   : > { %v1959_v22 = vadd.f32 %v1958_v41, %v1832_v43  ;;  %v1699_v5 = vadd.f32 %v1698_v57, %v4690_v61  ;;  %v1837_v61 = vmul.f32 %v4710_v33, %v4710_v33  ;;  %v1847_v57 = vmul.f32 %v4813_v19, %v4813_v19 }
 0x1bb   : > { %v1700_v51 = vadd.f32 %v1699_v5, %v4707_v32  ;;  %v1960_v17 = vadd.f32 %v1959_v22, %v1833_v63 }
 0x1bd   : > { %v1961_v62 = vadd.f32 %v1960_v17, %v1834_v34  ;;  %v1701_v47 = vadd.f32 %v1700_v51, %v4718_v24  ;;  %v1850_v51 = vmul.f32 %v4832_v28, %v4832_v28 }
 0x1bf   : > { %v1702_v52 = vadd.f32 %v1701_v47, %v4704_v42  ;;  %v1962_v27 = vadd.f32 %v1961_v62, %v1835_v3  ;;  %v1840_v42 = vmul.f32 %v4736_v58, %v4736_v58  ;;  %v1851_v62 = vmul.f32 %v4843_v0, %v4843_v0 }
 0x1c1   : > { %v1963_v55 = vadd.f32 %v1962_v27, %v1836_v37  ;;  %v1703_v16 = vadd.f32 %v1702_v52, %v4710_v33  ;;  %v1841_v33 = vmul.f32 %v4745_v40, %v4745_v40  ;;  %v1854_v27 = vmul.f32 %v4862_v21, %v4862_v21 }
 0x1c3   : > { %v1704_v32 = vadd.f32 %v1703_v16, %v4742_v11  ;;  %v1964_v9 = vadd.f32 %v1963_v55, %v1837_v61  ;;  %v1855_v16 = vmul.f32 %v4873_v30, %v4873_v30 }
 0x1c5   : > { %v1965_v60 = vadd.f32 %v1964_v9, %v1838_v31  ;;  %v1705_v24 = vadd.f32 %v1704_v32, %v4753_v25 }
 0x1c7   : > { %v1706_v13 = vadd.f32 %v1705_v24, %v4736_v58  ;;  %v1966_v56 = vadd.f32 %v1965_v60, %v1839_v10  ;;  %v1844_v58 = vmul.f32 %v4766_v44, %v4766_v44  ;;  %v1858_v24 = vmul.f32 %v4892_v12, %v4892_v12 }
 0x1c9   : > { %v1967_v2 = vadd.f32 %v1966_v56, %v1840_v42  ;;  %v1707_v59 = vadd.f32 %v1706_v13, %v4745_v40  ;;  %v1845_v40 = vmul.f32 %v4775_v7, %v4775_v7  ;;  %v1860_v13 = vmul.f32 %v4886_v36, %v4886_v36 }
 0x1cb   : > { %v1708_v11 = vadd.f32 %v1707_v59, %v4772_v50  ;;  %v1968_v6 = vadd.f32 %v1967_v2, %v1841_v33 }
 0x1cd   : > { %v1969_v1 = vadd.f32 %v1968_v6, %v1842_v20  ;;  %v1709_v25 = vadd.f32 %v1708_v11, %v4783_v35 }
 0x1cf   : > { %v1710_v53 = vadd.f32 %v1709_v25, %v4766_v44  ;;  %v1970_v39 = vadd.f32 %v1969_v1, %v1843_v26  ;;  %v1848_v44 = vmul.f32 %v4796_v48, %v4796_v48 }
 0x1d1   : > { %v1971_v14 = vadd.f32 %v1970_v39, %v1844_v58  ;;  %v1711_v54 = vadd.f32 %v1710_v53, %v4775_v7  ;;  %v1849_v7 = vmul.f32 %v4805_v29, %v4805_v29 }
 0x1d3   : > { %v1712_v50 = vadd.f32 %v1711_v54, %v4802_v45  ;;  %v1972_v38 = vadd.f32 %v1971_v14, %v1845_v40 }
 0x1d5   : > { %v1973_v43 = vadd.f32 %v1972_v38, %v1846_v4  ;;  %v1713_v35 = vadd.f32 %v1712_v50, %v4813_v19 }
 0x1d7   : > { %v1714_v41 = vadd.f32 %v1713_v35, %v4796_v48  ;;  %v1974_v63 = vadd.f32 %v1973_v43, %v1847_v57  ;;  %v1852_v48 = vmul.f32 %v4826_v8, %v4826_v8 }
 0x1d9   : > { %v1975_v22 = vadd.f32 %v1974_v63, %v1848_v44  ;;  %v1715_v5 = vadd.f32 %v1714_v41, %v4805_v29  ;;  %v1853_v29 = vmul.f32 %v4835_v23, %v4835_v23 }
 0x1db   : > { %v1716_v45 = vadd.f32 %v1715_v5, %v4832_v28  ;;  %v1976_v34 = vadd.f32 %v1975_v22, %v1849_v7 }
 0x1dd   : > { %v1977_v17 = vadd.f32 %v1976_v34, %v1850_v51  ;;  %v1717_v19 = vadd.f32 %v1716_v45, %v4843_v0 }
 0x1df   : > { %v1718_v47 = vadd.f32 %v1717_v19, %v4826_v8  ;;  %v1978_v3 = vadd.f32 %v1977_v17, %v1851_v62  ;;  %v1856_v8 = vmul.f32 %v4856_v15, %v4856_v15 }
 0x1e1   : > { %v1979_v37 = vadd.f32 %v1978_v3, %v1852_v48  ;;  %v1719_v52 = vadd.f32 %v1718_v47, %v4835_v23  ;;  %v1857_v23 = vmul.f32 %v4865_v46, %v4865_v46 }
 0x1e3   : > { %v1720_v28 = vadd.f32 %v1719_v52, %v4862_v21  ;;  %v1980_v61 = vadd.f32 %v1979_v37, %v1853_v29 }
 0x1e5   : > { %v1981_v55 = vadd.f32 %v1980_v61, %v1854_v27  ;;  %v1721_v0 = vadd.f32 %v1720_v28, %v4873_v30 }
 0x1e7   : > { %v1722_v32 = vadd.f32 %v1721_v0, %v4856_v15  ;;  %v1982_v31 = vadd.f32 %v1981_v55, %v1855_v16  ;;  %v1859_v15 = vmul.f32 %v4903_v18, %v4903_v18 }
 0x1e9   : > { %v1983_v9 = vadd.f32 %v1982_v31, %v1856_v8  ;;  %v1723_v21 = vadd.f32 %v1722_v32, %v4865_v46  ;;  %v1861_v46 = vmul.f32 %v4895_v49, %v4895_v49 }
 0x1eb   : > { %v1724_v60 = vadd.f32 %v1723_v21, %v4892_v12  ;;  %v1984_v10 = vadd.f32 %v1983_v9, %v1857_v23 }
 0x1ed   : > { %v1985_v30 = vadd.f32 %v1984_v10, %v1858_v24  ;;  %v1725_v42 = vadd.f32 %v1724_v60, %v4903_v18 }
 0x1ef   : > { %v1726_v56 = vadd.f32 %v1725_v42, %v4886_v36  ;;  %v1986_v33 = vadd.f32 %v1985_v30, %v1859_v15 }
 0x1f1   : > { %v1727_v2 = vadd.f32 %v1726_v56, %v4895_v49  ;;  %v1987_v12 = vadd.f32 %v1986_v33, %v1860_v13 }
 0x1f3   : > { %v1728_v59 = vrot.slane %v1727_v2, 4  ;;  %v1988_v11 = vadd.f32 %v1987_v12, %v1861_v46 }
 0x1f5   : > { %v1729_v20 = vadd.f32 %v1728_v59, %v1727_v2  ;;  %v1989_v6 = vrot.slane %v1988_v11, 4 }
 0x1f7   : > { %v1730_v1 = vrot.slane %v1729_v20, 2  ;;  %v1990_v25 = vadd.f32 %v1989_v6, %v1988_v11 }
 0x1f9   : > { %v1731_v18 = vadd.f32 %v1730_v1, %v1729_v20  ;;  %v1991_v26 = vrot.slane %v1990_v25, 2 }
 0x1fb   : > { %v1732_v58 = vrot.slane %v1731_v18, 1  ;;  %v1992_v53 = vadd.f32 %v1991_v26, %v1990_v25 }
 0x1fd   : > { %v1993_v36 = vrot.slane %v1992_v53, 1  ;;  %v1733_v49 = vadd.f32 %v1732_v58, %v1731_v18 }
 0x1ff   : > { %v1994_v39 = vadd.f32 %v1993_v36, %v1992_v53 }
 0x201   : > { %v1996_v40 = vsel %vm1995_vm0, %v1733_v49, %v1994_v39 }
 0x202   : > { %1997 = vst [vmem:[%s265_s16] sm:$0x3] %v1996_v40 }
 0x203 PF: > { %s17_s21 = sadd.s32 1, %s3963_s21  }
 0x204   : > { %p14_p5 = scmp.ge.s32.totalorder %s17_s21, 4  }
 0x206   :  { %16 = sbr.rel (!%p14_p5) target bundleno = 1 (0x1), region = 82 }

// kernel: decoder_block.4
= control target key start
LH: loop header
LB: loop body
LE: loop exit
PB: predicated region body
PF: predicated region fallthrough
CT: control target
= control target key end

     0   :  { %s12765_s21 = smov 0   ;;  %s15333_s0 = inlined_call_operand.vmem [shape: bf16[2048,128], index: 0, kind: input, shape index: {}]   ;;  %s15334_s1 = inlined_call_operand.vmem [shape: f32[1,128], index: 1, kind: input, shape index: {}]   ;;  %s15335_s2 = inlined_call_operand.vmem [shape: f32[1,128], index: 2, kind: input, shape index: {}]   ;;  %s15336_s3 = inlined_call_operand.vmem [shape: bf16[4,128,128], index: 3, kind: input, shape index: {}]   ;;  %s15337_s4 = inlined_call_operand.vmem [shape: f32[1,128], index: 4, kind: input, shape index: {}]   ;;  %s15338_s5 = inlined_call_operand.vmem [shape: bf16[2048,128], index: 5, kind: output, shape index: {0}]   ;;  %s15339_s6 = inlined_call_operand.vmem [shape: f32[2,2,128], index: 6, kind: output, shape index: {1}]  }
   0x1 LB: > { %s12771_s22 = sadd.s32 4294967295, %s12725_s21   ;;  %p10383_p0 = scmp.ge.s32.totalorder %s12725_s21, 1  ;;  %s12725_s21 = sphi %s12765_s21, %s17_s21  }
   0x2   : > { %p216_p1 = scmp.lt.s32.totalorder %s12725_s21, 3 }
   0x4   : > { %p217_p2 = pnand %p10383_p0, %p216_p1 }
   0x6   : > { %220 = sbr.rel (%p217_p2) target bundleno = 827 (0x33b), region = 40 }
   0xb   : > { %v12679_v0 = vld [vmem:[%s15336_s3 + $0x78] sm:$0xff]   ;;  %s10384_s25 = sshll.u32 %s12771_s22, 7  ;;  %v921_v1 = vlaneseq  ;;  %v12681_v3 = vld [vmem:[%s15336_s3 + $0x70] sm:$0xff]   ;;  %v12683_v6 = vld [vmem:[%s15336_s3 + $0x68] sm:$0xff]   ;;  %vm15504_vm1 = vcmask 1046528   ;;  %vm15482_vm4 = vmmov 1  }
   0xc   : > { %v12680_v2 = vld [vmem:[%s15336_s3 + $0x38] sm:$0xff]   ;;  %p251_p3 = scmp.lt.s32.totalorder %s10384_s25, 255  ;;  %12092 = vmatprep.subr.bf16.mxu0 %v12679_v0  ;;  %v12682_v5 = vld [vmem:[%s15336_s3 + $0x30] sm:$0xff]   ;;  %v12684_v8 = vld [vmem:[%s15336_s3 + $0x28] sm:$0xff]   ;;  %p262_p4 = scmp.lt.s32.totalorder %s12771_s22, 1 }
   0xd   : > { %v12785_v4 = vshrl.u32 %v921_v1, 7  ;;  %12236 = vmatprep.subr.bf16.mxu1 %v12680_v2  ;;  %12093 = vmatpush3.bf16.msra.mxu0 %v12679_v0  ;;  %v12685_v9 = vld [vmem:[%s15336_s3 + $0x60] sm:$0xff]   ;;  %v12687_v12 = vld [vmem:[%s15336_s3 + $0x58] sm:$0xff]   ;;  %v12689_v19 = vld [vmem:[%s15336_s3 + $0x50] sm:$0xff]  }
   0xe   : > { %12237 = vmatpush3.bf16.msra.mxu1 %v12680_v2  ;;  %12094 = vmatprep.subr.bf16.mxu0 %v12681_v3  ;;  %s16250_s25 = smov (!%p251_p3, %s10384_s25), 255  ;;  %v12686_v11 = vld [vmem:[%s15336_s3 + $0x20] sm:$0xff]   ;;  %v12688_v16 = vld [vmem:[%s15336_s3 + $0x18] sm:$0xff]   ;;  %v12690_v26 = vld [vmem:[%s15336_s3 + $0x10] sm:$0xff]   ;;  %s16252_s22 = smov (!%p262_p4, %s12771_s22), 1 }
   0xf   : > { %v923_v7 = vadd.s32 8, %v12785_v4  ;;  %12238 = vmatprep.subr.bf16.mxu1 %v12682_v5  ;;  %s10385_s16 = sshll.u32 %s16250_s25, 2  ;;  %v925_v13 = vadd.s32 24, %v12785_v4  ;;  %v927_v15 = vadd.s32 40, %v12785_v4  ;;  %v12833_v23 = vld [vmem:[%s15334_s1] ss:$0 sm:$0xff] }
  0x10   : > { %s12821_s26 = scalar_lea.vmem %s15333_s0, %s10385_s16  ;;  %v12839_v25 = vadd.s32 56, %v12785_v4  ;;  %v12848_v32 = vld [vmem:[%s15335_s2] ss:$0 sm:$0xff]  ;;  %v12691_v39 = vld [vmem:[%s15336_s3 + $0x48] sm:$0xff]   ;;  %s14958_s9 = scalar_lea.vmem %s15338_s5, %s10385_s16 }
  0x11   : > { %12095 = vmatpush3.bf16.msra.mxu0 %v12681_v3  ;;  %v1061_v10 = vand.u32 255, %v923_v7  ;;  %v1075_v17 = vand.u32 255, %v925_v13  ;;  %v1089_v18 = vand.u32 255, %v927_v15  ;;  %v11103_v21 = vld [vmem:[%s12821_s26] sm:$0xff]   ;;  %v11678_v22 = vld [vmem:[%s12821_s26 + $0x8] sm:$0xff]   ;;  %v11679_v31 = vld [vmem:[%s12821_s26 + $0x10] sm:$0xff]  }
  0x12   : > { %12239 = vmatpush3.bf16.msra.mxu1 %v12682_v5  ;;  %12096 = vmatprep.subr.bf16.mxu0 %v12683_v6  ;;  %v11104_v27 = vunpack.c.l.bf16 %v11103_v21  ;;  %v11105_v28 = vunpack.c.h.bf16 %v11103_v21  ;;  %v11108_v29 = vunpack.c.l.bf16 %v11678_v22  ;;  %v11109_v30 = vunpack.c.h.bf16 %v11678_v22  ;;  %v11680_v41 = vld [vmem:[%s12821_s26 + $0x18] sm:$0xff]   ;;  %v12692_v44 = vld [vmem:[%s15336_s3 + $0x8] sm:$0xff]   ;;  %v12870_v49 = vld [vmem:[%s12821_s26 + $0x20] sm:$0xff]   ;;  %s10388_s12 = sshll.u32 %s16252_s22, 1 }
  0x13   : > { %12240 = vmatprep.subr.bf16.mxu1 %v12684_v8  ;;  %v12810_v14 = vand.u32 15, %v1061_v10  ;;  %v12826_v20 = vand.u32 15, %v1075_v17  ;;  %v12836_v24 = vand.u32 15, %v1089_v18  ;;  %v11112_v33 = vunpack.c.l.bf16 %v11679_v31  ;;  %v12693_v54 = vld [vmem:[%s15336_s3 + $0x40] sm:$0xff]   ;;  %v11682_v15 = vld [vmem:[%s12821_s26 + $0x28] sm:$0xff]   ;;  %v12696_v22 = vld [vmem:[%s15336_s3 + $0xf8] sm:$0xff]   ;;  %s265_s15 = scalar_lea.vmem %s15339_s6, %s10388_s12 }
  0x14   : > { %v11113_v34 = vunpack.c.h.bf16 %v11679_v31  ;;  %v530_v35 = vmul.f32 %v11104_v27, %v12833_v23  ;;  %v531_v36 = vmul.f32 %v11105_v28, %v12833_v23  ;;  %v532_v37 = vmul.f32 %v11108_v29, %v12833_v23  ;;  %v12694_v63 = vld [vmem:[%s15336_s3] sm:$0xff]  }
  0x15   : > { %12097 = vmatpush3.bf16.msra.mxu0 %v12683_v6  ;;  %vm4123_vm0 = vcmp.lt.s32.totalorder %v12810_v14, 15  ;;  %v533_v38 = vmul.f32 %v11109_v30, %v12833_v23  ;;  %v534_v40 = vmul.f32 %v11112_v33, %v12833_v23  ;;  %vm4125_vm2 = vcmp.lt.s32.totalorder %v12826_v20, 15  ;;  %v12695_v14 = vld [vmem:[%s15336_s3 + $0xb8] sm:$0xff]  }
  0x16   : > { %12241 = vmatpush3.bf16.msra.mxu1 %v12684_v8  ;;  %12098 = vmatprep.subr.bf16.mxu0 %v12685_v9  ;;  %v535_v42 = vmul.f32 %v11113_v34, %v12833_v23  ;;  %v1103_v43 = vand.u32 255, %v12839_v25  ;;  %v665_v45 = vadd.f32 %v12848_v32, %v530_v35  ;;  %v666_v46 = vadd.f32 %v12848_v32, %v531_v36  ;;  %vm12891_vm5 = vmpackc.low %vm4123_vm0, %vm15482_vm4 }
  0x17   : > { %12242 = vmatprep.subr.bf16.mxu1 %v12686_v11  ;;  %v667_v47 = vadd.f32 %v12848_v32, %v532_v37  ;;  %v668_v48 = vadd.f32 %v12848_v32, %v533_v38  ;;  %v669_v50 = vadd.f32 %v12848_v32, %v534_v40  ;;  %v11116_v51 = vunpack.c.l.bf16 %v11680_v41  ;;  %vm12917_vm6 = vmpackc.low %vm4125_vm2, %vm15482_vm4  ;;  %v12925_v38 = vld [vmem:[%s12821_s26 + $0x30] sm:$0xff]  }
  0x18   : > { %v670_v52 = vadd.f32 %v12848_v32, %v535_v42  ;;  %vm4127_vm3 = vcmp.lt.s32.totalorder %v12836_v24, 15  ;;  %v11117_v53 = vunpack.c.h.bf16 %v11680_v41  ;;  %v793_v55 = vmax.f32 %v665_v45, 0.0 }
  0x19   : > { %12099 = vmatpush3.bf16.msra.mxu0 %v12685_v9  ;;  %v794_v56 = vmax.f32 %v666_v46, 0.0  ;;  %v795_v57 = vmax.f32 %v667_v47, 0.0  ;;  %v796_v58 = vmax.f32 %v668_v48, 0.0  ;;  %v797_v59 = vmax.f32 %v669_v50, 0.0  ;;  %vm12933_vm8 = vmpackc.low %vm4127_vm3, %vm15482_vm4  ;;  %v12697_v46 = vld [vmem:[%s15336_s3 + $0xb0] sm:$0xff]  }
  0x1a   : > { %12243 = vmatpush3.bf16.msra.mxu1 %v12686_v11  ;;  %12100 = vmatprep.subr.bf16.mxu0 %v12687_v12  ;;  %v536_v60 = vmul.f32 %v11116_v51, %v12833_v23  ;;  %v798_v61 = vmax.f32 %v670_v52, 0.0  ;;  %v11120_v62 = vunpack.c.l.bf16 %v12870_v49  ;;  %v4764_v0 = vrot.slane %v793_v55, 1  ;;  %v12698_v50 = vld [vmem:[%s15336_s3 + $0xf0] sm:$0xff]  }
  0x1b   : > { %12244 = vmatprep.subr.bf16.mxu1 %v12688_v16  ;;  %v4765_v1 = vrot.slane %v794_v56, 1  ;;  %v4767_v2 = vrot.slane %v795_v57, 1  ;;  %v6169_v3 = vpack.c.bf16 %v794_v56, %v793_v55  ;;  %v4769_v5 = vrot.slane %v796_v58, 1 }
  0x1c   : > { %v4771_v6 = vrot.slane %v797_v59, 1  ;;  %v12883_v7 = vpack.c.bf16 %v796_v58, %v795_v57  ;;  %v671_v8 = vadd.f32 %v12848_v32, %v536_v60  ;;  %v12895_v13 = vpack.c.bf16 %v798_v61, %v797_v59  ;;  %v12699_v59 = vld [vmem:[%s15336_s3 + $0xa8] sm:$0xff]  }
  0x1d   : > { %12101 = vmatpush3.bf16.msra.mxu0 %v12687_v12  ;;  %v4766_v9 = vsel %vm15504_vm1, %v4764_v0, %v4765_v1  ;;  %v4768_v10 = vsel %vm15504_vm1, %v4765_v1, %v4767_v2  ;;  %12252 = vmatprep.mubr.bf16.mxu1 %v6169_v3  ;;  %v4773_v12 = vrot.slane %v798_v61, 1  ;;  %v4770_v17 = vsel %vm15504_vm1, %v4767_v2, %v4769_v5  ;;  %v12700_v0 = vld [vmem:[%s15336_s3 + $0xe8] sm:$0xff]  }
  0x1e   : > { %12245 = vmatpush3.bf16.msra.mxu1 %v12688_v16  ;;  %12102 = vmatprep.subr.bf16.mxu0 %v12689_v19  ;;  %v10416_v16 = vpack.c.bf16 %v4768_v10, %v4766_v9  ;;  %v4772_v18 = vsel %vm15504_vm1, %v4769_v5, %v4771_v6  ;;  %v538_v27 = vmul.f32 %v11120_v62, %v12833_v23  ;;  %v2639_v29 = vand.u32 15, %v1103_v43 }
  0x1f   : > { %12246 = vmatprep.subr.bf16.mxu1 %v12690_v26  ;;  %v12903_v21 = vpack.c.bf16 %v4772_v18, %v4770_v17  ;;  %v4774_v25 = vsel %vm15504_vm1, %v4771_v6, %v4773_v12  ;;  %v11121_v30 = vunpack.c.h.bf16 %v12870_v49  ;;  %v11124_v31 = vunpack.c.l.bf16 %v11682_v15 }
  0x20   : > { %12108 = vmatprep.mubr.msk.bf16.mxu0 %vm12891_vm5, %v10416_v16  ;;  %v673_v35 = vadd.f32 %v12848_v32, %v538_v27  ;;  %v931_v36 = vadd.s32 72, %v12785_v4  ;;  %v11125_v37 = vunpack.c.h.bf16 %v11682_v15  ;;  %vm4129_vm7 = vcmp.lt.s32.totalorder %v2639_v29, 15  ;;  %v11685_v15 = vld [vmem:[%s12821_s26 + $0x40] sm:$0xff]  }
  0x21   : > { %12103 = vmatpush3.bf16.msra.mxu0 %v12689_v19  ;;  %v799_v19 = vmax.f32 %v671_v8, 0.0  ;;  %v539_v20 = vmul.f32 %v11121_v30, %v12833_v23  ;;  %v540_v40 = vmul.f32 %v11124_v31, %v12833_v23  ;;  %v11128_v48 = vunpack.c.l.bf16 %v12925_v38  ;;  %vm12977_vm10 = vmpackc.low %vm4129_vm7, %vm15482_vm4 }
  0x22   : > { %12247 = vmatpush3.bf16.msra.mxu1 %v12690_v26  ;;  %12104 = vmatprep.subr.bf16.mxu0 %v12691_v39  ;;  %v537_v26 = vmul.f32 %v11117_v53, %v12833_v23  ;;  %v1117_v45 = vand.u32 255, %v931_v36  ;;  %v541_v49 = vmul.f32 %v11125_v37, %v12833_v23  ;;  %v933_v62 = vadd.s32 88, %v12785_v4 }
  0x23   : > { %12248 = vmatprep.subr.bf16.mxu1 %v12692_v44  ;;  %v4775_v28 = vrot.slane %v799_v19, 1  ;;  %v674_v47 = vadd.f32 %v12848_v32, %v539_v20  ;;  %v675_v24 = vadd.f32 %v12848_v32, %v540_v40  ;;  %v542_v57 = vmul.f32 %v11128_v48, %v12833_v23 }
  0x24   : > { %v672_v34 = vadd.f32 %v12848_v32, %v537_v26  ;;  %v676_v58 = vadd.f32 %v12848_v32, %v541_v49  ;;  %v1131_v10 = vand.u32 255, %v933_v62 }
  0x25   : > { %12105 = vmatpush3.bf16.msra.mxu0 %v12691_v39  ;;  %v4776_v39 = vsel %vm15504_vm1, %v4773_v12, %v4775_v28  ;;  %v802_v55 = vmax.f32 %v674_v47, 0.0  ;;  %v803_v56 = vmax.f32 %v675_v24, 0.0  ;;  %v677_v8 = vadd.f32 %v12848_v32, %v542_v57 }
  0x26   : > { %12249 = vmatpush3.bf16.msra.mxu1 %v12692_v44  ;;  %12106 = vmatprep.subr.bf16.mxu0 %v12693_v54  ;;  %v12937_v42 = vpack.c.bf16 %v4776_v39, %v4774_v25  ;;  %v800_v43 = vmax.f32 %v672_v34, 0.0  ;;  %v801_v44 = vmax.f32 %v673_v35, 0.0  ;;  %v804_v9 = vmax.f32 %v676_v58, 0.0  ;;  %v12702_v35 = vld [vmem:[%s15336_s3 + $0xe0] sm:$0xff]  }
  0x27   : > { %12250 = vmatprep.subr.bf16.mxu1 %v12694_v63  ;;  %v4781_v2 = vrot.slane %v802_v55, 1  ;;  %v4783_v3 = vrot.slane %v803_v56, 1  ;;  %v11129_v12 = vunpack.c.h.bf16 %v12925_v38  ;;  %v805_v25 = vmax.f32 %v677_v8, 0.0 }
  0x28   : > { %v4777_v51 = vrot.slane %v800_v43, 1  ;;  %v4779_v52 = vrot.slane %v801_v44, 1  ;;  %v12953_v53 = vpack.c.bf16 %v800_v43, %v799_v19  ;;  %v12973_v5 = vpack.c.bf16 %v802_v55, %v801_v44  ;;  %v13017_v44 = vld [vmem:[%s12821_s26 + $0x48] sm:$0xff]  }
  0x29   : > { %12107 = vmatpush3.bf16.msra.mxu0 %v12693_v54  ;;  %v2653_v54 = vand.u32 15, %v1117_v45  ;;  %v4784_v17 = vsel %vm15504_vm1, %v4781_v2, %v4783_v3  ;;  %v935_v19 = vadd.s32 104, %v12785_v4  ;;  %v2667_v26 = vand.u32 15, %v1131_v10 }
  0x2a   : > { %12251 = vmatpush3.bf16.msra.mxu1 %v12694_v63  ;;  %12380 = vmatprep.subr.bf16.mxu0 %v12695_v14  ;;  %v4778_v60 = vsel %vm15504_vm1, %v4775_v28, %v4777_v51  ;;  %v4780_v61 = vsel %vm15504_vm1, %v4777_v51, %v4779_v52  ;;  %v11684_v63 = vld [vmem:[%s12821_s26 + $0x38] sm:$0xff]   ;;  %v4782_v16 = vsel %vm15504_vm1, %v4779_v52, %v4781_v2  ;;  %v4785_v27 = vrot.slane %v804_v9, 1  ;;  %v12701_v28 = vld [vmem:[%s15336_s3 + $0xa0] sm:$0xff]  }
  0x2b   : > { %12524 = vmatprep.subr.bf16.mxu1 %v12696_v22  ;;  %vm4131_vm9 = vcmp.lt.s32.totalorder %v2653_v54, 15  ;;  %v12971_v1 = vpack.c.bf16 %v4780_v61, %v4778_v60  ;;  %v13001_v29 = vpack.c.bf16 %v804_v9, %v803_v56  ;;  %v543_v30 = vmul.f32 %v11129_v12, %v12833_v23  ;;  %v12703_v51 = vld [vmem:[%s15336_s3 + $0x98] sm:$0xff]  }
  0x2c   : > { %12109 = vmatmul.mubr.msk.bf16.vlgmr.msra.gmra.mxu0 %vm12917_vm6, %v12903_v21  ;;  %vm12988_vm11 = vmpackc.low %vm4131_vm9, %vm15482_vm4  ;;  %v1145_v34 = vand.u32 255, %v935_v19  ;;  %vm4133_vm12 = vcmp.lt.s32.totalorder %v2667_v26, 15  ;;  %v4786_v36 = vsel %vm15504_vm1, %v4783_v3, %v4785_v27  ;;  %v4787_v37 = vrot.slane %v805_v25, 1  ;;  %v12704_v52 = vld [vmem:[%s15336_s3 + $0xd8] sm:$0xff]  }
  0x2d   : > { %12253 = vmatmul.mubr.bf16.vlgmr.msra.gmra.mxu1 %v12883_v7  ;;  %12381 = vmatpush3.bf16.msra.mxu0 %v12695_v14  ;;  %v11132_v14 = vunpack.c.l.bf16 %v11684_v63  ;;  %v11133_v38 = vunpack.c.h.bf16 %v11684_v63  ;;  %v678_v39 = vadd.f32 %v12848_v32, %v543_v30  ;;  %v11136_v43 = vunpack.c.l.bf16 %v11685_v15  ;;  %vm13032_vm14 = vmpackc.low %vm4133_vm12, %vm15482_vm4 }
  0x2e   : > { %12525 = vmatpush3.bf16.msra.mxu1 %v12696_v22  ;;  %12112 = vmatprep.mubr.msk.bf16.mxu0 %vm12933_vm8, %v12937_v42  ;;  %v12993_v22 = vpack.c.bf16 %v4784_v17, %v4782_v16  ;;  %v2681_v40 = vand.u32 15, %v1145_v34  ;;  %v4788_v45 = vsel %vm15504_vm1, %v4785_v27, %v4787_v37  ;;  %v937_v47 = vadd.s32 120, %v12785_v4  ;;  %v11687_v16 = vld [vmem:[%s12821_s26 + $0x50] sm:$0xff]  }
  0x2f   : > { %12256 = vmatprep.mubr.bf16.mxu1 %v12895_v13  ;;  %12382 = vmatprep.subr.bf16.mxu0 %v12697_v46  ;;  %v544_v31 = vmul.f32 %v11132_v14, %v12833_v23  ;;  %v11137_v24 = vunpack.c.h.bf16 %v11685_v15  ;;  %v13022_v48 = vpack.c.bf16 %v4788_v45, %v4786_v36  ;;  %v806_v49 = vmax.f32 %v678_v39, 0.0 }
  0x30   : > { %12526 = vmatprep.subr.bf16.mxu1 %v12698_v50  ;;  %vm4135_vm13 = vcmp.lt.s32.totalorder %v2681_v40, 15  ;;  %v546_v55 = vmul.f32 %v11136_v43, %v12833_v23  ;;  %v1159_v57 = vand.u32 255, %v937_v47  ;;  %v11140_v58 = vunpack.c.l.bf16 %v13017_v44 }
  0x31   : > { %12383 = vmatpush3.bf16.msra.mxu0 %v12697_v46  ;;  %v679_v20 = vadd.f32 %v12848_v32, %v544_v31  ;;  %v545_v46 = vmul.f32 %v11133_v38, %v12833_v23  ;;  %v13039_v61 = vpack.c.bf16 %v806_v49, %v805_v25  ;;  %v547_v62 = vmul.f32 %v11137_v24, %v12833_v23  ;;  %vm13051_vm15 = vmpackc.low %vm4135_vm13, %vm15482_vm4 }
  0x32   : > { %12527 = vmatpush3.bf16.msra.mxu1 %v12698_v50  ;;  %12384 = vmatprep.subr.bf16.mxu0 %v12699_v59  ;;  %v681_v63 = vadd.f32 %v12848_v32, %v546_v55  ;;  %v2695_v2 = vand.u32 15, %v1159_v57  ;;  %v548_v3 = vmul.f32 %v11140_v58, %v12833_v23  ;;  %v939_v15 = vadd.s32 136, %v12785_v4 }
  0x33   : > { %12528 = vmatprep.subr.bf16.mxu1 %v12700_v0  ;;  %v807_v50 = vmax.f32 %v679_v20, 0.0  ;;  %v680_v56 = vadd.f32 %v12848_v32, %v545_v46  ;;  %v682_v12 = vadd.f32 %v12848_v32, %v547_v62  ;;  %v11141_v34 = vunpack.c.h.bf16 %v13017_v44  ;;  %v11688_v46 = vld [vmem:[%s12821_s26 + $0x58] sm:$0xff]  }
  0x34   : > { %12113 = vmatmul.mubr.msk.bf16.gmra.mxu0 %vm12977_vm10, %v12971_v1  ;;  %v809_v14 = vmax.f32 %v681_v63, 0.0  ;;  %vm4137_vm0 = vcmp.lt.s32.totalorder %v2695_v2, 15  ;;  %v683_v26 = vadd.f32 %v12848_v32, %v548_v3  ;;  %v15561_v40 = vmov 0 }
  0x35   : > { %12257 = vmatmul.mubr.bf16.gmra.mxu1 %v12953_v53  ;;  %12116 = vmatprep.mubr.msk.bf16.mxu0 %vm12988_vm11, %v12993_v22  ;;  %v4791_v60 = vrot.slane %v807_v50, 1  ;;  %v810_v27 = vmax.f32 %v682_v12, 0.0  ;;  %vm13075_vm2 = vmpackc.low %vm4137_vm0, %vm15482_vm4  ;;  %v549_v43 = vmul.f32 %v11141_v34, %v12833_v23  ;;  %v941_v45 = vadd.s32 152, %v12785_v4 }
  0x36   : > { %12260 = vmatprep.mubr.bf16.mxu1 %v12973_v5  ;;  %12385 = vmatpush3.bf16.msra.mxu0 %v12699_v59  ;;  %v4789_v59 = vrot.slane %v806_v49, 1  ;;  %v4795_v31 = vrot.slane %v809_v14, 1  ;;  %v811_v36 = vmax.f32 %v683_v26, 0.0  ;;  %v15562_v40 = vsel %vm13075_vm2, 4294967295, %v15561_v40 }
  0x37   : > { %12529 = vmatpush3.bf16.msra.mxu1 %v12700_v0  ;;  %12386 = vmatprep.subr.bf16.mxu0 %v12701_v28  ;;  %v808_v0 = vmax.f32 %v680_v56, 0.0  ;;  %v4797_v38 = vrot.slane %v810_v27, 1  ;;  %v13070_v39 = vpack.c.bf16 %v810_v27, %v809_v14  ;;  %15563 = vst [vmem:[#allocation3_spill] sm:$0xff] %v15562_v40  ;;  %v11145_v55 = vunpack.c.h.bf16 %v11687_v16  ;;  %v11689_v56 = vld [vmem:[%s12821_s26 + $0x60] sm:$0xff]  }
  0x38   : > { %12530 = vmatprep.subr.bf16.mxu1 %v12702_v35  ;;  %v4790_v8 = vsel %vm15504_vm1, %v4787_v37, %v4789_v59  ;;  %v4792_v9 = vsel %vm15504_vm1, %v4789_v59, %v4791_v60  ;;  %v4799_v49 = vrot.slane %v811_v36, 1  ;;  %v15564_v58 = vmov 0 }
  0x39   : > { %v13059_v17 = vpack.c.bf16 %v4792_v9, %v4790_v8  ;;  %v4793_v19 = vrot.slane %v808_v0, 1  ;;  %v13062_v25 = vpack.c.bf16 %v808_v0, %v807_v50  ;;  %15560 = vst [vmem:[#allocation2_spill] sm:$0xff] %v13070_v39  ;;  %v4798_v24 = vsel %vm15504_vm1, %v4795_v31, %v4797_v38 }
  0x3a   : > { %12387 = vmatpush3.bf16.msra.mxu0 %v12701_v28  ;;  %v1173_v28 = vand.u32 255, %v939_v15  ;;  %v684_v50 = vadd.f32 %v12848_v32, %v549_v43  ;;  %v4800_v57 = vsel %vm15504_vm1, %v4797_v38, %v4799_v49  ;;  %v11148_v59 = vunpack.c.l.bf16 %v11688_v46  ;;  %v11690_v38 = vld [vmem:[%s12821_s26 + $0x68] sm:$0xff]  }
  0x3b   : > { %12531 = vmatpush3.bf16.msra.mxu1 %v12702_v35  ;;  %12388 = vmatprep.subr.bf16.mxu0 %v12703_v51  ;;  %v4794_v30 = vsel %vm15504_vm1, %v4791_v60, %v4793_v19  ;;  %v11144_v35 = vunpack.c.l.bf16 %v11687_v16  ;;  %v4796_v20 = vsel %vm15504_vm1, %v4793_v19, %v4795_v31  ;;  %v943_v60 = vadd.s32 168, %v12785_v4 }
  0x3c   : > { %12117 = vmatmul.mubr.msk.bf16.gmra.mxu0 %vm13032_vm14, %v13022_v48  ;;  %12532 = vmatprep.subr.bf16.mxu1 %v12704_v52  ;;  %v2709_v37 = vand.u32 15, %v1173_v28  ;;  %v13083_v47 = vpack.c.bf16 %v4796_v20, %v4794_v30  ;;  %v11149_v62 = vunpack.c.h.bf16 %v11688_v46  ;;  %v13100_v63 = vpack.c.bf16 %v4800_v57, %v4798_v24 }
  0x3d   : > { %12261 = vmatmul.mubr.bf16.gmra.mxu1 %v13001_v29  ;;  %12120 = vmatprep.mubr.msk.bf16.mxu0 %vm13051_vm15, %v13059_v17  ;;  %v550_v44 = vmul.f32 %v11144_v35, %v12833_v23  ;;  %v812_v0 = vmax.f32 %v684_v50, 0.0  ;;  %v551_v8 = vmul.f32 %v11145_v55, %v12833_v23  ;;  %v552_v9 = vmul.f32 %v11148_v59, %v12833_v23 }
  0x3e   : > { %12264 = vmatprep.mubr.bf16.mxu1 %v13039_v61  ;;  %12389 = vmatpush3.bf16.msra.mxu0 %v12703_v51  ;;  %vm4139_vm3 = vcmp.lt.s32.totalorder %v2709_v37, 15  ;;  %v1201_v12 = vand.u32 255, %v943_v60  ;;  %v11152_v15 = vunpack.c.l.bf16 %v11689_v56  ;;  %v553_v30 = vmul.f32 %v11149_v62, %v12833_v23 }
  0x3f   : > { %12533 = vmatpush3.bf16.msra.mxu1 %v12704_v52  ;;  %v685_v51 = vadd.f32 %v12848_v32, %v550_v44  ;;  %v1187_v52 = vand.u32 255, %v941_v45  ;;  %vm13094_vm7 = vmpackc.low %vm4139_vm3, %vm15482_vm4  ;;  %v4801_v16 = vrot.slane %v812_v0, 1  ;;  %v13108_v19 = vpack.c.bf16 %v812_v0, %v811_v36 }
  0x40   : > { %v15565_v58 = vsel %vm13094_vm7, 4294967295, %v15564_v58  ;;  %v686_v26 = vadd.f32 %v12848_v32, %v551_v8  ;;  %v687_v27 = vadd.f32 %v12848_v32, %v552_v9  ;;  %v2737_v28 = vand.u32 15, %v1201_v12  ;;  %v11691_v9 = vld [vmem:[%s12821_s26 + $0x70] sm:$0xff]  }
  0x41   : > { %15566 = vst [vmem:[#allocation4_spill] sm:$0xff] %v15565_v58  ;;  %v813_v2 = vmax.f32 %v685_v51, 0.0  ;;  %v2723_v3 = vand.u32 15, %v1187_v52  ;;  %15567 = vst [vmem:[#allocation5_spill] sm:$0xff] %v13108_v19  ;;  %v4802_v31 = vsel %vm15504_vm1, %v4799_v49, %v4801_v16  ;;  %v15568_v35 = vmov 0 }
  0x42   : > { %v554_v37 = vmul.f32 %v11152_v15, %v12833_v23  ;;  %v945_v36 = vadd.s32 184, %v12785_v4  ;;  %v814_v43 = vmax.f32 %v686_v26, 0.0  ;;  %v815_v44 = vmax.f32 %v687_v27, 0.0 }
  0x43   : > { %vm4141_vm9 = vcmp.lt.s32.totalorder %v2723_v3, 15  ;;  %v4803_v14 = vrot.slane %v813_v2, 1  ;;  %vm4143_vm13 = vcmp.lt.s32.totalorder %v2737_v28, 15  ;;  %v688_v45 = vadd.f32 %v12848_v32, %v553_v30 }
  0x44   : > { %12121 = vmatmul.mubr.msk.bf16.gmra.mxu0 %vm13075_vm2, %v13083_v47  ;;  %vm13116_vm12 = vmpackc.low %vm4141_vm9, %vm15482_vm4  ;;  %v689_v46 = vadd.f32 %v12848_v32, %v554_v37  ;;  %v1215_v24 = vand.u32 255, %v945_v36  ;;  %v11153_v49 = vunpack.c.h.bf16 %v11689_v56  ;;  %v4805_v50 = vrot.slane %v814_v43, 1 }
  0x45   : > { %12265 = vmatmul.mubr.bf16.gmra.mxu1 %v13062_v25  ;;  %12124 = vmatprep.mubr.msk.bf16.mxu0 %vm13094_vm7, %v13100_v63  ;;  %v4804_v34 = vsel %vm15504_vm1, %v4801_v16, %v4803_v14  ;;  %v15569_v35 = vsel %vm13116_vm12, 4294967295, %v15568_v35  ;;  %v4807_v51 = vrot.slane %v815_v44, 1  ;;  %v13130_v52 = vpack.c.bf16 %v814_v43, %v813_v2  ;;  %vm13138_vm0 = vmpackc.low %vm4143_vm13, %vm15482_vm4 }
  0x46   : > { %12268 = vmatprep.mubr.bf16.mxu1 %v13070_v39  ;;  %15570 = vst [vmem:[#allocation6_spill] sm:$0xff] %v15569_v35  ;;  %v13123_v20 = vpack.c.bf16 %v4804_v34, %v4802_v31  ;;  %v11156_v55 = vunpack.c.l.bf16 %v11690_v38  ;;  %v816_v57 = vmax.f32 %v688_v45, 0.0  ;;  %v817_v59 = vmax.f32 %v689_v46, 0.0 }
  0x47   : > { %15572 = vst [vmem:[#allocation8_spill] sm:$0xff] %v13130_v52  ;;  %v2751_v60 = vand.u32 15, %v1215_v24  ;;  %v555_v62 = vmul.f32 %v11153_v49, %v12833_v23  ;;  %v4806_v0 = vsel %vm15504_vm1, %v4803_v14, %v4805_v50  ;;  %v4808_v56 = vsel %vm15504_vm1, %v4805_v50, %v4807_v51  ;;  %v11692_v24 = vld [vmem:[%s12821_s26 + $0x78] sm:$0xff]  }
  0x48   : > { %15571 = vst [vmem:[#allocation7_spill] sm:$0xff] %v13123_v20  ;;  %v15573_v3 = vmov 0  ;;  %v556_v2 = vmul.f32 %v11156_v55, %v12833_v23  ;;  %v947_v8 = vadd.s32 200, %v12785_v4  ;;  %v13146_v12 = vpack.c.bf16 %v4808_v56, %v4806_v0 }
  0x49   : > { %v15574_v3 = vsel %vm13138_vm0, 4294967295, %v15573_v3  ;;  %vm4145_vm3 = vcmp.lt.s32.totalorder %v2751_v60, 15  ;;  %v4809_v15 = vrot.slane %v816_v57, 1  ;;  %v4811_v16 = vrot.slane %v817_v59, 1 }
  0x4a   : > { %15575 = vst [vmem:[#allocation9_spill] sm:$0xff] %v15574_v3  ;;  %15576 = vst [vmem:[#allocation10_spill] sm:$0xff] %v13146_v12  ;;  %v13148_v14 = vpack.c.bf16 %v816_v57, %v815_v44  ;;  %v690_v26 = vadd.f32 %v12848_v32, %v555_v62  ;;  %v691_v27 = vadd.f32 %v12848_v32, %v556_v2  ;;  %v1229_v28 = vand.u32 255, %v947_v8 }
  0x4b   : > { %v4810_v30 = vsel %vm15504_vm1, %v4807_v51, %v4809_v15  ;;  %v4812_v31 = vsel %vm15504_vm1, %v4809_v15, %v4811_v16  ;;  %vm13158_vm9 = vmpackc.low %vm4145_vm3, %vm15482_vm4  ;;  %v15578_v34 = vmov 0  ;;  %v11157_v37 = vunpack.c.h.bf16 %v11690_v38 }
  0x4c   : > { %12125 = vmatmul.mubr.msk.bf16.gmra.mxu0 %vm13116_vm12, %v13123_v20  ;;  %15577 = vst [vmem:[#allocation11_spill] sm:$0xff] %v13148_v14  ;;  %v15579_v34 = vsel %vm13158_vm9, 4294967295, %v15578_v34  ;;  %v11160_v36 = vunpack.c.l.bf16 %v11691_v9  ;;  %v13162_v43 = vpack.c.bf16 %v4812_v31, %v4810_v30  ;;  %v818_v44 = vmax.f32 %v690_v26, 0.0 }
  0x4d   : > { %12269 = vmatmul.mubr.bf16.gmra.mxu1 %v13108_v19  ;;  %12128 = vmatprep.mubr.msk.bf16.mxu0 %vm13138_vm0, %v13146_v12  ;;  %15580 = vst [vmem:[#allocation12_spill] sm:$0xff] %v15579_v34  ;;  %v819_v45 = vmax.f32 %v691_v27, 0.0  ;;  %v2765_v46 = vand.u32 15, %v1229_v28  ;;  %v557_v49 = vmul.f32 %v11157_v37, %v12833_v23  ;;  %v949_v51 = vadd.s32 216, %v12785_v4  ;;  %v11693_v37 = vld [vmem:[%s12821_s26 + $0x80] sm:$0xff]   ;;  %v11728_v12 = vld [vmem:[%s12821_s26 + $0x198] sm:$0xff]  }
  0x4e   : > { %12272 = vmatprep.mubr.bf16.mxu1 %v13130_v52  ;;  %15581 = vst [vmem:[#allocation13_spill] sm:$0xff] %v13162_v43  ;;  %v558_v50 = vmul.f32 %v11160_v36, %v12833_v23  ;;  %v11161_v55 = vunpack.c.h.bf16 %v11691_v9  ;;  %v4813_v38 = vrot.slane %v818_v44, 1  ;;  %v13171_v60 = vpack.c.bf16 %v818_v44, %v817_v59 }
  0x4f   : > { %vm4147_vm13 = vcmp.lt.s32.totalorder %v2765_v46, 15  ;;  %v4815_v57 = vrot.slane %v819_v45, 1  ;;  %v692_v62 = vadd.f32 %v12848_v32, %v557_v49  ;;  %v1243_v56 = vand.u32 255, %v949_v51 }
  0x50   : > { %15582 = vst [vmem:[#allocation14_spill] sm:$0xff] %v13171_v60  ;;  %v693_v0 = vadd.f32 %v12848_v32, %v558_v50  ;;  %v11164_v2 = vunpack.c.l.bf16 %v11692_v24  ;;  %v4814_v8 = vsel %vm15504_vm1, %v4811_v16, %v4813_v38  ;;  %vm13179_vm3 = vmpackc.low %vm4147_vm13, %vm15482_vm4  ;;  %v15583_v15 = vmov 0 }
  0x51   : > { %v4816_v9 = vsel %vm15504_vm1, %v4813_v38, %v4815_v57  ;;  %v15584_v15 = vsel %vm13179_vm3, 4294967295, %v15583_v15  ;;  %v559_v59 = vmul.f32 %v11161_v55, %v12833_v23  ;;  %v951_v26 = vadd.s32 232, %v12785_v4 }
  0x52   : > { %15585 = vst [vmem:[#allocation15_spill] sm:$0xff] %v15584_v15  ;;  %v13186_v27 = vpack.c.bf16 %v4816_v9, %v4814_v8  ;;  %v820_v28 = vmax.f32 %v692_v62, 0.0  ;;  %v821_v30 = vmax.f32 %v693_v0, 0.0  ;;  %v2779_v31 = vand.u32 15, %v1243_v56 }
  0x53   : > { %v560_v16 = vmul.f32 %v11164_v2, %v12833_v23  ;;  %v694_v36 = vadd.f32 %v12848_v32, %v559_v59  ;;  %v1257_v44 = vand.u32 255, %v951_v26  ;;  %v11165_v46 = vunpack.c.h.bf16 %v11692_v24 }
  0x54   : > { %12129 = vmatmul.mubr.msk.bf16.gmra.mxu0 %vm13158_vm9, %v13162_v43  ;;  %15586 = vst [vmem:[#allocation16_spill] sm:$0xff] %v13186_v27  ;;  %vm4149_vm13 = vcmp.lt.s32.totalorder %v2779_v31, 15  ;;  %v4817_v49 = vrot.slane %v820_v28, 1  ;;  %v4819_v50 = vrot.slane %v821_v30, 1  ;;  %v13194_v51 = vpack.c.bf16 %v820_v28, %v819_v45  ;;  %v11694_v45 = vld [vmem:[%s12821_s26 + $0x88] sm:$0xff]   ;;  %v12706_v31 = vld [vmem:[%s15336_s3 + $0xd0] sm:$0xff]  }
  0x55   : > { %12273 = vmatmul.mubr.bf16.gmra.mxu1 %v13148_v14  ;;  %12132 = vmatprep.mubr.msk.bf16.mxu0 %vm13179_vm3, %v13186_v27  ;;  %v695_v55 = vadd.f32 %v12848_v32, %v560_v16  ;;  %v822_v38 = vmax.f32 %v694_v36, 0.0  ;;  %v2793_v62 = vand.u32 15, %v1257_v44  ;;  %v11168_v0 = vunpack.c.l.bf16 %v11693_v37  ;;  %vm13200_vm9 = vmpackc.low %vm4149_vm13, %vm15482_vm4 }
  0x56   : > { %12276 = vmatprep.mubr.bf16.mxu1 %v13171_v60  ;;  %15587 = vst [vmem:[#allocation17_spill] sm:$0xff] %v13194_v51  ;;  %v4818_v56 = vsel %vm15504_vm1, %v4815_v57, %v4817_v49  ;;  %v4820_v2 = vsel %vm15504_vm1, %v4817_v49, %v4819_v50  ;;  %v15588_v24 = vmov 0  ;;  %v561_v8 = vmul.f32 %v11165_v46, %v12833_v23  ;;  %v12705_v57 = vld [vmem:[%s15336_s3 + $0x90] sm:$0xff]  }
  0x57   : > { %v15589_v24 = vsel %vm13200_vm9, 4294967295, %v15588_v24  ;;  %v953_v9 = vadd.s32 248, %v12785_v4  ;;  %v13207_v59 = vpack.c.bf16 %v4820_v2, %v4818_v56  ;;  %v823_v26 = vmax.f32 %v695_v55, 0.0  ;;  %12390 = vmatprep.subr.bf16.mxu0 %v12705_v57  ;;  %12534 = vmatprep.subr.bf16.mxu1 %v12706_v31 }
  0x58   : > { %15590 = vst [vmem:[#allocation18_spill] sm:$0xff] %v15589_v24  ;;  %vm4151_vm3 = vcmp.lt.s32.totalorder %v2793_v62, 15  ;;  %v4821_v28 = vrot.slane %v822_v38, 1  ;;  %v13216_v16 = vpack.c.bf16 %v822_v38, %v821_v30  ;;  %v562_v36 = vmul.f32 %v11168_v0, %v12833_v23  ;;  %12391 = vmatpush3.bf16.msra.mxu0 %v12705_v57  ;;  %12535 = vmatpush3.bf16.msra.mxu1 %v12706_v31 }
  0x59   : > { %15591 = vst [vmem:[#allocation19_spill] sm:$0xff] %v13207_v59  ;;  %v696_v44 = vadd.f32 %v12848_v32, %v561_v8  ;;  %v1271_v46 = vand.u32 255, %v953_v9  ;;  %v4823_v55 = vrot.slane %v823_v26, 1  ;;  %v11169_v56 = vunpack.c.h.bf16 %v11693_v37  ;;  %vm13230_vm13 = vmpackc.low %vm4151_vm3, %vm15482_vm4 }
  0x5a   : > { %15592 = vst [vmem:[#allocation20_spill] sm:$0xff] %v13216_v16  ;;  %v4822_v49 = vsel %vm15504_vm1, %v4819_v50, %v4821_v28  ;;  %v11172_v2 = vunpack.c.l.bf16 %v11694_v45  ;;  %v697_v30 = vadd.f32 %v12848_v32, %v562_v36  ;;  %v955_v8 = vadd.s32 264, %v12785_v4 }
  0x5b   : > { %v824_v38 = vmax.f32 %v696_v44, 0.0  ;;  %v2807_v0 = vand.u32 15, %v1271_v46  ;;  %v4824_v9 = vsel %vm15504_vm1, %v4821_v28, %v4823_v55  ;;  %v15593_v50 = vmov 0 }
  0x5c   : > { %12133 = vmatmul.mubr.msk.bf16.gmra.mxu0 %vm13200_vm9, %v13207_v59  ;;  %v15594_v50 = vsel %vm13230_vm13, 4294967295, %v15593_v50  ;;  %v563_v37 = vmul.f32 %v11169_v56, %v12833_v23  ;;  %v564_v24 = vmul.f32 %v11172_v2, %v12833_v23  ;;  %v13237_v36 = vpack.c.bf16 %v4824_v9, %v4822_v49 }
  0x5d   : > { %12277 = vmatmul.mubr.bf16.gmra.mxu1 %v13194_v51  ;;  %15595 = vst [vmem:[#allocation21_spill] sm:$0xff] %v15594_v50  ;;  %v11695_v51 = vld [vmem:[%s12821_s26 + $0x90] sm:$0xff]   ;;  %v825_v44 = vmax.f32 %v697_v30, 0.0  ;;  %vm4153_vm9 = vcmp.lt.s32.totalorder %v2807_v0, 15  ;;  %v4825_v57 = vrot.slane %v824_v38, 1  ;;  %v13239_v28 = vpack.c.bf16 %v824_v38, %v823_v26 }
  0x5e   : > { %12280 = vmatprep.mubr.bf16.mxu1 %v13216_v16  ;;  %v11173_v16 = vunpack.c.h.bf16 %v11694_v45  ;;  %15596 = vst [vmem:[#allocation22_spill] sm:$0xff] %v13237_v36  ;;  %v698_v62 = vadd.f32 %v12848_v32, %v563_v37  ;;  %v699_v46 = vadd.f32 %v12848_v32, %v564_v24  ;;  %v1285_v60 = vand.u32 255, %v955_v8  ;;  %12136 = vmatprep.mubr.msk.bf16.mxu0 %vm13230_vm13, %v13237_v36  ;;  %vm10460_vm3 = vmpackc.low %vm4153_vm9, %vm15482_vm4  ;;  %v11696_v37 = vld [vmem:[%s12821_s26 + $0x98] sm:$0xff]  }
  0x5f   : > { %15597 = vst [vmem:[#allocation23_spill] sm:$0xff] %v13239_v28  ;;  %v4826_v45 = vsel %vm15504_vm1, %v4823_v55, %v4825_v57  ;;  %v4827_v49 = vrot.slane %v825_v44, 1  ;;  %v11176_v56 = vunpack.c.l.bf16 %v11695_v51  ;;  %v957_v38 = vadd.s32 280, %v12785_v4 }
  0x60   : > { %v565_v2 = vmul.f32 %v11173_v16, %v12833_v23  ;;  %v826_v30 = vmax.f32 %v698_v62, 0.0  ;;  %v827_v31 = vmax.f32 %v699_v46, 0.0  ;;  %v2821_v26 = vand.u32 15, %v1285_v60 }
  0x61   : > { %v4828_v9 = vsel %vm15504_vm1, %v4825_v57, %v4827_v49  ;;  %v566_v24 = vmul.f32 %v11176_v56, %v12833_v23  ;;  %v11177_v8 = vunpack.c.h.bf16 %v11695_v51  ;;  %v1299_v0 = vand.u32 255, %v957_v38  ;;  %v11697_v38 = vld [vmem:[%s12821_s26 + $0xa0] sm:$0xff]  }
  0x62   : > { %v700_v55 = vadd.f32 %v12848_v32, %v565_v2  ;;  %v13256_v50 = vpack.c.bf16 %v4828_v9, %v4826_v45  ;;  %vm4155_vm13 = vcmp.lt.s32.totalorder %v2821_v26, 15  ;;  %v4829_v16 = vrot.slane %v826_v30, 1 }
  0x63   : > { %v4831_v60 = vrot.slane %v827_v31, 1  ;;  %v6185_v62 = vpack.c.bf16 %v826_v30, %v825_v44  ;;  %v701_v57 = vadd.f32 %v12848_v32, %v566_v24  ;;  %vm13263_vm9 = vmpackc.low %vm4155_vm13, %vm15482_vm4  ;;  %v15599_v51 = vmov 0 }
  0x64   : > { %15598 = vst [vmem:[#allocation24_spill] sm:$0xff] %v13256_v50  ;;  %v828_v46 = vmax.f32 %v700_v55, 0.0  ;;  %12137 = vmatmul.mubr.msk.bf16.gmra.mxu0 %vm10460_vm3, %v13256_v50  ;;  %v15600_v51 = vsel %vm13263_vm9, 4294967295, %v15599_v51  ;;  %v11180_v45 = vunpack.c.l.bf16 %v11696_v37  ;;  %v567_v2 = vmul.f32 %v11177_v8, %v12833_v23 }
  0x65   : > { %12281 = vmatmul.mubr.bf16.gmra.mxu1 %v13239_v28  ;;  %v4830_v28 = vsel %vm15504_vm1, %v4827_v49, %v4829_v16  ;;  %v4832_v56 = vsel %vm15504_vm1, %v4829_v16, %v4831_v60  ;;  %15601 = vst [vmem:[#allocation25_spill] sm:$0xff] %v15600_v51  ;;  %v829_v44 = vmax.f32 %v701_v57, 0.0  ;;  %v2835_v30 = vand.u32 15, %v1299_v0 }
  0x66   : > { %v10464_v26 = vpack.c.bf16 %v4832_v56, %v4830_v28  ;;  %12284 = vmatprep.mubr.bf16.mxu1 %v6185_v62  ;;  %v4833_v9 = vrot.slane %v828_v46, 1  ;;  %v13269_v24 = vpack.c.bf16 %v828_v46, %v827_v31  ;;  %v568_v49 = vmul.f32 %v11180_v45, %v12833_v23 }
  0x67   : > { %v702_v55 = vadd.f32 %v12848_v32, %v567_v2  ;;  %v959_v16 = vadd.s32 296, %v12785_v4  ;;  %vm4157_vm13 = vcmp.lt.s32.totalorder %v2835_v30, 15  ;;  %v4835_v8 = vrot.slane %v829_v44, 1 }
  0x68   : > { %15602 = vst [vmem:[#allocation26_spill] sm:$0xff] %v13269_v24  ;;  %12140 = vmatprep.mubr.msk.bf16.mxu0 %vm13263_vm9, %v10464_v26  ;;  %v4834_v28 = vsel %vm15504_vm1, %v4831_v60, %v4833_v9  ;;  %v11181_v62 = vunpack.c.h.bf16 %v11696_v37  ;;  %v703_v57 = vadd.f32 %v12848_v32, %v568_v49  ;;  %v11184_v46 = vunpack.c.l.bf16 %v11697_v38  ;;  %vm13280_vm3 = vmpackc.low %vm4157_vm13, %vm15482_vm4  ;;  %v11698_v37 = vld [vmem:[%s12821_s26 + $0xa8] sm:$0xff]  }
  0x69   : > { %v830_v0 = vmax.f32 %v702_v55, 0.0  ;;  %v1313_v31 = vand.u32 255, %v959_v16  ;;  %v4836_v56 = vsel %vm15504_vm1, %v4833_v9, %v4835_v8  ;;  %v15603_v45 = vmov 0 }
  0x6a   : > { %v15604_v45 = vsel %vm13280_vm3, 4294967295, %v15603_v45  ;;  %v569_v2 = vmul.f32 %v11181_v62, %v12833_v23  ;;  %v961_v60 = vadd.s32 312, %v12785_v4  ;;  %v11185_v26 = vunpack.c.h.bf16 %v11697_v38 }
  0x6b   : > { %15605 = vst [vmem:[#allocation27_spill] sm:$0xff] %v15604_v45  ;;  %v13288_v30 = vpack.c.bf16 %v4836_v56, %v4834_v28  ;;  %v831_v49 = vmax.f32 %v703_v57, 0.0  ;;  %v2849_v55 = vand.u32 15, %v1313_v31  ;;  %v4837_v16 = vrot.slane %v830_v0, 1 }
  0x6c   : > { %v13290_v51 = vpack.c.bf16 %v830_v0, %v829_v44  ;;  %v570_v9 = vmul.f32 %v11184_v46, %v12833_v23  ;;  %v704_v50 = vadd.f32 %v12848_v32, %v569_v2  ;;  %v1327_v36 = vand.u32 255, %v961_v60  ;;  %v13303_v23 = vld [vmem:[%s15334_s1] ss:$0 sm:$0xff] }
  0x6d   : > { %12285 = vmatmul.mubr.bf16.gmra.mxu1 %v13269_v24  ;;  %15606 = vst [vmem:[#allocation28_spill] sm:$0xff] %v13288_v30  ;;  %12141 = vmatmul.mubr.msk.bf16.gmra.mxu0 %vm13280_vm3, %v13288_v30  ;;  %vm4159_vm13 = vcmp.lt.s32.totalorder %v2849_v55, 15  ;;  %v4838_v38 = vsel %vm15504_vm1, %v4835_v8, %v4837_v16  ;;  %v4839_v28 = vrot.slane %v831_v49, 1  ;;  %v11188_v62 = vunpack.c.l.bf16 %v11698_v37  ;;  %v11712_v30 = vld [vmem:[%s12821_s26 + $0x118] sm:$0xff]  }
  0x6e   : > { %15607 = vst [vmem:[#allocation29_spill] sm:$0xff] %v13290_v51  ;;  %12288 = vmatprep.mubr.bf16.mxu1 %v13290_v51  ;;  %v705_v44 = vadd.f32 %v12848_v32, %v570_v9  ;;  %v832_v57 = vmax.f32 %v704_v50, 0.0  ;;  %v2863_v0 = vand.u32 15, %v1327_v36  ;;  %v571_v31 = vmul.f32 %v13303_v23, %v11185_v26  ;;  %vm13308_vm3 = vmpackc.low %vm4159_vm13, %vm15482_vm4  ;;  %v11699_v36 = vld [vmem:[%s12821_s26 + $0xb0] sm:$0xff]   ;;  %v13322_v26 = vld [vmem:[%s15335_s2] ss:$0 sm:$0xff] }
  0x6f   : > { %v4840_v46 = vsel %vm15504_vm1, %v4837_v16, %v4839_v28  ;;  %v15608_v8 = vmov 0  ;;  %v572_v56 = vmul.f32 %v13303_v23, %v11188_v62  ;;  %v963_v32 = vadd.s32 328, %v12785_v4 }
  0x70   : > { %v15609_v8 = vsel %vm13308_vm3, 4294967295, %v15608_v8  ;;  %v11189_v50 = vunpack.c.h.bf16 %v11698_v37  ;;  %v13315_v2 = vpack.c.bf16 %v4840_v46, %v4838_v38  ;;  %v833_v60 = vmax.f32 %v705_v44, 0.0 }
  0x71   : > { %15610 = vst [vmem:[#allocation30_spill] sm:$0xff] %v15609_v8  ;;  %vm4161_vm9 = vcmp.lt.s32.totalorder %v2863_v0, 15  ;;  %v4841_v55 = vrot.slane %v832_v57, 1  ;;  %v13317_v9 = vpack.c.bf16 %v832_v57, %v831_v49  ;;  %v706_v16 = vadd.f32 %v13322_v26, %v571_v31 }
  0x72   : > { %15611 = vst [vmem:[#allocation31_spill] sm:$0xff] %v13315_v2  ;;  %v707_v62 = vadd.f32 %v13322_v26, %v572_v56  ;;  %v1341_v51 = vand.u32 255, %v963_v32  ;;  %12144 = vmatprep.mubr.msk.bf16.mxu0 %vm13308_vm3, %v13315_v2  ;;  %v4843_v38 = vrot.slane %v833_v60, 1  ;;  %v11192_v49 = vunpack.c.l.bf16 %v11699_v36  ;;  %vm13336_vm13 = vmpackc.low %vm4161_vm9, %vm15482_vm4  ;;  %v11700_v2 = vld [vmem:[%s12821_s26 + $0xb8] sm:$0xff]  }
  0x73   : > { %15612 = vst [vmem:[#allocation32_spill] sm:$0xff] %v13317_v9  ;;  %v4842_v37 = vsel %vm15504_vm1, %v4839_v28, %v4841_v55  ;;  %v573_v44 = vmul.f32 %v13303_v23, %v11189_v50  ;;  %v834_v57 = vmax.f32 %v706_v16, 0.0  ;;  %v965_v31 = vadd.s32 344, %v12785_v4 }
  0x74   : > { %v835_v46 = vmax.f32 %v707_v62, 0.0  ;;  %v2877_v45 = vand.u32 15, %v1341_v51  ;;  %v4844_v56 = vsel %vm15504_vm1, %v4841_v55, %v4843_v38  ;;  %v15613_v32 = vmov 0 }
  0x75   : > { %12289 = vmatmul.mubr.bf16.gmra.mxu1 %v13317_v9  ;;  %v15614_v32 = vsel %vm13336_vm13, 4294967295, %v15613_v32  ;;  %v574_v28 = vmul.f32 %v13303_v23, %v11192_v49  ;;  %v708_v8 = vadd.f32 %v13322_v26, %v573_v44  ;;  %v11193_v50 = vunpack.c.h.bf16 %v11699_v36 }
  0x76   : > { %15615 = vst [vmem:[#allocation33_spill] sm:$0xff] %v15614_v32  ;;  %v13343_v9 = vpack.c.bf16 %v4844_v56, %v4842_v37  ;;  %vm4163_vm3 = vcmp.lt.s32.totalorder %v2877_v45, 15  ;;  %v4845_v51 = vrot.slane %v834_v57, 1  ;;  %v4847_v16 = vrot.slane %v835_v46, 1  ;;  %v11701_v56 = vld [vmem:[%s12821_s26 + $0xc0] sm:$0xff]  }
  0x77   : > { %v13345_v62 = vpack.c.bf16 %v834_v57, %v833_v60  ;;  %v709_v0 = vadd.f32 %v13322_v26, %v574_v28  ;;  %v836_v55 = vmax.f32 %v708_v8, 0.0  ;;  %v1355_v24 = vand.u32 255, %v965_v31  ;;  %vm13354_vm9 = vmpackc.low %vm4163_vm3, %vm15482_vm4 }
  0x78   : > { %15616 = vst [vmem:[#allocation34_spill] sm:$0xff] %v13343_v9  ;;  %12145 = vmatmul.mubr.msk.bf16.gmra.mxu0 %vm13336_vm13, %v13343_v9  ;;  %v4846_v49 = vsel %vm15504_vm1, %v4843_v38, %v4845_v51  ;;  %v4848_v36 = vsel %vm15504_vm1, %v4845_v51, %v4847_v16  ;;  %v15618_v45 = vmov 0  ;;  %v11196_v37 = vunpack.c.l.bf16 %v11700_v2 }
  0x79   : > { %15617 = vst [vmem:[#allocation35_spill] sm:$0xff] %v13345_v62  ;;  %v15619_v45 = vsel %vm13354_vm9, 4294967295, %v15618_v45  ;;  %v575_v60 = vmul.f32 %v13303_v23, %v11193_v50  ;;  %v13359_v44 = vpack.c.bf16 %v4848_v36, %v4846_v49  ;;  %12292 = vmatprep.mubr.bf16.mxu1 %v13345_v62  ;;  %v837_v8 = vmax.f32 %v709_v0, 0.0 }
  0x7a   : > { %15620 = vst [vmem:[#allocation36_spill] sm:$0xff] %v15619_v45  ;;  %v2891_v57 = vand.u32 15, %v1355_v24  ;;  %v4849_v31 = vrot.slane %v836_v55, 1  ;;  %v13363_v28 = vpack.c.bf16 %v836_v55, %v835_v46  ;;  %v576_v38 = vmul.f32 %v13303_v23, %v11196_v37 }
  0x7b   : > { %15621 = vst [vmem:[#allocation37_spill] sm:$0xff] %v13359_v44  ;;  %v710_v51 = vadd.f32 %v13322_v26, %v575_v60  ;;  %v967_v32 = vadd.s32 360, %v12785_v4  ;;  %12148 = vmatprep.mubr.msk.bf16.mxu0 %vm13354_vm9, %v13359_v44  ;;  %v4851_v0 = vrot.slane %v837_v8, 1  ;;  %v11197_v24 = vunpack.c.h.bf16 %v11700_v2  ;;  %v11702_v2 = vld [vmem:[%s12821_s26 + $0xc8] sm:$0xff]  }
  0x7c   : > { %15622 = vst [vmem:[#allocation38_spill] sm:$0xff] %v13363_v28  ;;  %vm4165_vm3 = vcmp.lt.s32.totalorder %v2891_v57, 15  ;;  %v4850_v50 = vsel %vm15504_vm1, %v4847_v16, %v4849_v31  ;;  %v711_v46 = vadd.f32 %v13322_v26, %v576_v38  ;;  %v11200_v36 = vunpack.c.l.bf16 %v11701_v56 }
  0x7d   : > { %12293 = vmatmul.mubr.bf16.gmra.mxu1 %v13363_v28  ;;  %v838_v55 = vmax.f32 %v710_v51, 0.0  ;;  %v1369_v49 = vand.u32 255, %v967_v32  ;;  %v4852_v37 = vsel %vm15504_vm1, %v4849_v31, %v4851_v0  ;;  %vm13376_vm13 = vmpackc.low %vm4165_vm3, %vm15482_vm4  ;;  %v15623_v60 = vmov 0  ;;  %v12707_v32 = vld [vmem:[%s15336_s3 + $0x88] sm:$0xff]  }
  0x7e   : > { %v15624_v60 = vsel %vm13376_vm13, 4294967295, %v15623_v60  ;;  %v577_v57 = vmul.f32 %v13303_v23, %v11197_v24  ;;  %v969_v16 = vadd.s32 376, %v12785_v4  ;;  %v11201_v62 = vunpack.c.h.bf16 %v11701_v56  ;;  %v12708_v31 = vld [vmem:[%s15336_s3 + $0xc8] sm:$0xff]   ;;  %12392 = vmatprep.subr.bf16.mxu0 %v12707_v32 }
  0x7f   : > { %15625 = vst [vmem:[#allocation39_spill] sm:$0xff] %v15624_v60  ;;  %v13383_v45 = vpack.c.bf16 %v4852_v37, %v4850_v50  ;;  %v839_v28 = vmax.f32 %v711_v46, 0.0  ;;  %v2905_v38 = vand.u32 15, %v1369_v49  ;;  %v4853_v51 = vrot.slane %v838_v55, 1  ;;  %12393 = vmatpush3.bf16.msra.mxu0 %v12707_v32  ;;  %12536 = vmatprep.subr.bf16.mxu1 %v12708_v31 }
  0x80   : > { %v13391_v44 = vpack.c.bf16 %v838_v55, %v837_v8  ;;  %v578_v24 = vmul.f32 %v13303_v23, %v11200_v36  ;;  %v712_v56 = vadd.f32 %v13322_v26, %v577_v57  ;;  %v1383_v9 = vand.u32 255, %v969_v16  ;;  %12537 = vmatpush3.bf16.msra.mxu1 %v12708_v31 }
  0x81   : > { %15626 = vst [vmem:[#allocation40_spill] sm:$0xff] %v13383_v45  ;;  %12149 = vmatmul.mubr.msk.bf16.gmra.mxu0 %vm13376_vm13, %v13383_v45  ;;  %vm4167_vm3 = vcmp.lt.s32.totalorder %v2905_v38, 15  ;;  %v4854_v50 = vsel %vm15504_vm1, %v4851_v0, %v4853_v51  ;;  %v4855_v46 = vrot.slane %v839_v28, 1  ;;  %v11204_v49 = vunpack.c.l.bf16 %v11702_v2 }
  0x82   : > { %15627 = vst [vmem:[#allocation41_spill] sm:$0xff] %v13391_v44  ;;  %12296 = vmatprep.mubr.bf16.mxu1 %v13391_v44  ;;  %v713_v8 = vadd.f32 %v13322_v26, %v578_v24  ;;  %v840_v55 = vmax.f32 %v712_v56, 0.0  ;;  %v2919_v36 = vand.u32 15, %v1383_v9  ;;  %v579_v37 = vmul.f32 %v13303_v23, %v11201_v62  ;;  %vm13404_vm13 = vmpackc.low %vm4167_vm3, %vm15482_vm4  ;;  %v11703_v44 = vld [vmem:[%s12821_s26 + $0xd0] sm:$0xff]  }
  0x83   : > { %v4856_v57 = vsel %vm15504_vm1, %v4853_v51, %v4855_v46  ;;  %v15628_v16 = vmov 0  ;;  %v580_v0 = vmul.f32 %v13303_v23, %v11204_v49  ;;  %v971_v38 = vadd.s32 392, %v12785_v4 }
  0x84   : > { %v15629_v16 = vsel %vm13404_vm13, 4294967295, %v15628_v16  ;;  %v11205_v60 = vunpack.c.h.bf16 %v11702_v2  ;;  %v13411_v24 = vpack.c.bf16 %v4856_v57, %v4854_v50  ;;  %v841_v9 = vmax.f32 %v713_v8, 0.0 }
  0x85   : > { %15630 = vst [vmem:[#allocation42_spill] sm:$0xff] %v15629_v16  ;;  %vm4169_vm9 = vcmp.lt.s32.totalorder %v2919_v36, 15  ;;  %v4857_v62 = vrot.slane %v840_v55, 1  ;;  %v13413_v32 = vpack.c.bf16 %v840_v55, %v839_v28  ;;  %v714_v51 = vadd.f32 %v13322_v26, %v579_v37  ;;  %v11704_v16 = vld [vmem:[%s12821_s26 + $0xd8] sm:$0xff]  }
  0x86   : > { %15631 = vst [vmem:[#allocation43_spill] sm:$0xff] %v13411_v24  ;;  %v715_v56 = vadd.f32 %v13322_v26, %v580_v0  ;;  %v1397_v45 = vand.u32 255, %v971_v38  ;;  %12152 = vmatprep.mubr.msk.bf16.mxu0 %vm13404_vm13, %v13411_v24  ;;  %v4859_v50 = vrot.slane %v841_v9, 1  ;;  %v11208_v49 = vunpack.c.l.bf16 %v11703_v44  ;;  %vm13427_vm3 = vmpackc.low %vm4169_vm9, %vm15482_vm4 }
  0x87   : > { %15632 = vst [vmem:[#allocation44_spill] sm:$0xff] %v13413_v32  ;;  %v4858_v2 = vsel %vm15504_vm1, %v4855_v46, %v4857_v62  ;;  %v581_v8 = vmul.f32 %v13303_v23, %v11205_v60  ;;  %12297 = vmatmul.mubr.bf16.gmra.mxu1 %v13413_v32  ;;  %v842_v28 = vmax.f32 %v714_v51, 0.0  ;;  %v973_v37 = vadd.s32 408, %v12785_v4 }
  0x88   : > { %v843_v31 = vmax.f32 %v715_v56, 0.0  ;;  %v2933_v55 = vand.u32 15, %v1397_v45  ;;  %v4860_v57 = vsel %vm15504_vm1, %v4857_v62, %v4859_v50  ;;  %v15633_v0 = vmov 0 }
  0x89   : > { %v15634_v0 = vsel %vm13427_vm3, 4294967295, %v15633_v0  ;;  %v582_v46 = vmul.f32 %v13303_v23, %v11208_v49  ;;  %v716_v38 = vadd.f32 %v13322_v26, %v581_v8  ;;  %v11209_v60 = vunpack.c.h.bf16 %v11703_v44 }
  0x8a   : > { %15635 = vst [vmem:[#allocation45_spill] sm:$0xff] %v15634_v0  ;;  %v13434_v32 = vpack.c.bf16 %v4860_v57, %v4858_v2  ;;  %vm4171_vm13 = vcmp.lt.s32.totalorder %v2933_v55, 15  ;;  %v4861_v45 = vrot.slane %v842_v28, 1  ;;  %v4863_v51 = vrot.slane %v843_v31, 1 }
  0x8b   : > { %v13436_v56 = vpack.c.bf16 %v842_v28, %v841_v9  ;;  %v717_v36 = vadd.f32 %v13322_v26, %v582_v46  ;;  %v844_v62 = vmax.f32 %v716_v38, 0.0  ;;  %v1411_v24 = vand.u32 255, %v973_v37  ;;  %vm13445_vm9 = vmpackc.low %vm4171_vm13, %vm15482_vm4  ;;  %v11705_v46 = vld [vmem:[%s12821_s26 + $0xe0] sm:$0xff]  }
  0x8c   : > { %15636 = vst [vmem:[#allocation46_spill] sm:$0xff] %v13434_v32  ;;  %12153 = vmatmul.mubr.msk.bf16.gmra.mxu0 %vm13427_vm3, %v13434_v32  ;;  %v4862_v49 = vsel %vm15504_vm1, %v4859_v50, %v4861_v45  ;;  %v4864_v44 = vsel %vm15504_vm1, %v4861_v45, %v4863_v51  ;;  %v15638_v2 = vmov 0  ;;  %v11212_v8 = vunpack.c.l.bf16 %v11704_v16 }
  0x8d   : > { %15637 = vst [vmem:[#allocation47_spill] sm:$0xff] %v13436_v56  ;;  %v15639_v2 = vsel %vm13445_vm9, 4294967295, %v15638_v2  ;;  %v583_v9 = vmul.f32 %v13303_v23, %v11209_v60  ;;  %v13450_v28 = vpack.c.bf16 %v4864_v44, %v4862_v49  ;;  %12300 = vmatprep.mubr.bf16.mxu1 %v13436_v56  ;;  %v845_v55 = vmax.f32 %v717_v36, 0.0 }
  0x8e   : > { %15640 = vst [vmem:[#allocation48_spill] sm:$0xff] %v15639_v2  ;;  %v2947_v37 = vand.u32 15, %v1411_v24  ;;  %v4865_v57 = vrot.slane %v844_v62, 1  ;;  %v13454_v38 = vpack.c.bf16 %v844_v62, %v843_v31  ;;  %v584_v50 = vmul.f32 %v13303_v23, %v11212_v8 }
  0x8f   : > { %15641 = vst [vmem:[#allocation49_spill] sm:$0xff] %v13450_v28  ;;  %v718_v45 = vadd.f32 %v13322_v26, %v583_v9  ;;  %v975_v0 = vadd.s32 424, %v12785_v4  ;;  %12156 = vmatprep.mubr.msk.bf16.mxu0 %vm13445_vm9, %v13450_v28  ;;  %v4867_v36 = vrot.slane %v845_v55, 1  ;;  %v11213_v24 = vunpack.c.h.bf16 %v11704_v16  ;;  %v11706_v16 = vld [vmem:[%s12821_s26 + $0xe8] sm:$0xff]  }
  0x90   : > { %15642 = vst [vmem:[#allocation50_spill] sm:$0xff] %v13454_v38  ;;  %vm4173_vm13 = vcmp.lt.s32.totalorder %v2947_v37, 15  ;;  %v4866_v60 = vsel %vm15504_vm1, %v4863_v51, %v4865_v57  ;;  %12301 = vmatmul.mubr.bf16.gmra.mxu1 %v13454_v38  ;;  %v719_v31 = vadd.f32 %v13322_v26, %v584_v50  ;;  %v11216_v44 = vunpack.c.l.bf16 %v11705_v46 }
  0x91   : > { %v846_v62 = vmax.f32 %v718_v45, 0.0  ;;  %v1425_v49 = vand.u32 255, %v975_v0  ;;  %v4868_v8 = vsel %vm15504_vm1, %v4865_v57, %v4867_v36  ;;  %vm13467_vm3 = vmpackc.low %vm4173_vm13, %vm15482_vm4  ;;  %v15643_v9 = vmov 0 }
  0x92   : > { %v15644_v9 = vsel %vm13467_vm3, 4294967295, %v15643_v9  ;;  %v585_v37 = vmul.f32 %v13303_v23, %v11213_v24  ;;  %v977_v51 = vadd.s32 440, %v12785_v4  ;;  %v11217_v56 = vunpack.c.h.bf16 %v11705_v46 }
  0x93   : > { %15645 = vst [vmem:[#allocation51_spill] sm:$0xff] %v15644_v9  ;;  %v13474_v2 = vpack.c.bf16 %v4868_v8, %v4866_v60  ;;  %v847_v38 = vmax.f32 %v719_v31, 0.0  ;;  %v2961_v50 = vand.u32 15, %v1425_v49  ;;  %v4869_v45 = vrot.slane %v846_v62, 1 }
  0x94   : > { %v13476_v0 = vpack.c.bf16 %v846_v62, %v845_v55  ;;  %v586_v57 = vmul.f32 %v13303_v23, %v11216_v44  ;;  %v720_v28 = vadd.f32 %v13322_v26, %v585_v37  ;;  %v1439_v32 = vand.u32 255, %v977_v51 }
  0x95   : > { %15646 = vst [vmem:[#allocation52_spill] sm:$0xff] %v13474_v2  ;;  %12157 = vmatmul.mubr.msk.bf16.gmra.mxu0 %vm13467_vm3, %v13474_v2  ;;  %vm4175_vm13 = vcmp.lt.s32.totalorder %v2961_v50, 15  ;;  %v4870_v46 = vsel %vm15504_vm1, %v4867_v36, %v4869_v45  ;;  %v4871_v60 = vrot.slane %v847_v38, 1  ;;  %v11220_v24 = vunpack.c.l.bf16 %v11706_v16  ;;  %v11707_v50 = vld [vmem:[%s12821_s26 + $0xf0] sm:$0xff]  }
  0x96   : > { %15647 = vst [vmem:[#allocation53_spill] sm:$0xff] %v13476_v0  ;;  %12304 = vmatprep.mubr.bf16.mxu1 %v13476_v0  ;;  %v721_v55 = vadd.f32 %v13322_v26, %v586_v57  ;;  %v848_v31 = vmax.f32 %v720_v28, 0.0  ;;  %v2975_v62 = vand.u32 15, %v1439_v32  ;;  %v587_v49 = vmul.f32 %v13303_v23, %v11217_v56  ;;  %vm13489_vm9 = vmpackc.low %vm4175_vm13, %vm15482_vm4 }
  0x97   : > { %v4872_v44 = vsel %vm15504_vm1, %v4869_v45, %v4871_v60  ;;  %v15648_v8 = vmov 0  ;;  %v588_v37 = vmul.f32 %v13303_v23, %v11220_v24  ;;  %v979_v36 = vadd.s32 456, %v12785_v4 }
  0x98   : > { %v15649_v8 = vsel %vm13489_vm9, 4294967295, %v15648_v8  ;;  %v11221_v51 = vunpack.c.h.bf16 %v11706_v16  ;;  %v13496_v0 = vpack.c.bf16 %v4872_v44, %v4870_v46  ;;  %v849_v57 = vmax.f32 %v721_v55, 0.0 }
  0x99   : > { %15650 = vst [vmem:[#allocation54_spill] sm:$0xff] %v15649_v8  ;;  %vm4177_vm3 = vcmp.lt.s32.totalorder %v2975_v62, 15  ;;  %v4873_v32 = vrot.slane %v848_v31, 1  ;;  %v13498_v28 = vpack.c.bf16 %v848_v31, %v847_v38  ;;  %v722_v56 = vadd.f32 %v13322_v26, %v587_v49 }
  0x9a   : > { %15651 = vst [vmem:[#allocation55_spill] sm:$0xff] %v13496_v0  ;;  %v723_v45 = vadd.f32 %v13322_v26, %v588_v37  ;;  %v1453_v9 = vand.u32 255, %v979_v36  ;;  %12160 = vmatprep.mubr.msk.bf16.mxu0 %vm13489_vm9, %v13496_v0  ;;  %v4875_v24 = vrot.slane %v849_v57, 1  ;;  %v11224_v46 = vunpack.c.l.bf16 %v11707_v50  ;;  %vm13512_vm13 = vmpackc.low %vm4177_vm3, %vm15482_vm4  ;;  %v11708_v0 = vld [vmem:[%s12821_s26 + $0xf8] sm:$0xff]  }
  0x9b   : > { %15652 = vst [vmem:[#allocation56_spill] sm:$0xff] %v13498_v28  ;;  %v4874_v16 = vsel %vm15504_vm1, %v4871_v60, %v4873_v32  ;;  %v589_v55 = vmul.f32 %v13303_v23, %v11221_v51  ;;  %12305 = vmatmul.mubr.bf16.gmra.mxu1 %v13498_v28  ;;  %v850_v38 = vmax.f32 %v722_v56, 0.0  ;;  %v981_v49 = vadd.s32 472, %v12785_v4 }
  0x9c   : > { %v851_v31 = vmax.f32 %v723_v45, 0.0  ;;  %v2989_v44 = vand.u32 15, %v1453_v9  ;;  %v4876_v37 = vsel %vm15504_vm1, %v4873_v32, %v4875_v24  ;;  %v15653_v36 = vmov 0 }
  0x9d   : > { %v15654_v36 = vsel %vm13512_vm13, 4294967295, %v15653_v36  ;;  %v590_v60 = vmul.f32 %v13303_v23, %v11224_v46  ;;  %v724_v8 = vadd.f32 %v13322_v26, %v589_v55  ;;  %v11225_v51 = vunpack.c.h.bf16 %v11707_v50 }
  0x9e   : > { %15655 = vst [vmem:[#allocation57_spill] sm:$0xff] %v15654_v36  ;;  %v13519_v28 = vpack.c.bf16 %v4876_v37, %v4874_v16  ;;  %vm4179_vm9 = vcmp.lt.s32.totalorder %v2989_v44, 15  ;;  %v4877_v9 = vrot.slane %v850_v38, 1  ;;  %v4879_v56 = vrot.slane %v851_v31, 1  ;;  %v11709_v37 = vld [vmem:[%s12821_s26 + $0x100] sm:$0xff]  }
  0x9f   : > { %v13521_v45 = vpack.c.bf16 %v850_v38, %v849_v57  ;;  %v725_v62 = vadd.f32 %v13322_v26, %v590_v60  ;;  %v852_v32 = vmax.f32 %v724_v8, 0.0  ;;  %v1467_v2 = vand.u32 255, %v981_v49  ;;  %vm13530_vm3 = vmpackc.low %vm4179_vm9, %vm15482_vm4 }
  0xa0   : > { %15656 = vst [vmem:[#allocation58_spill] sm:$0xff] %v13519_v28  ;;  %12161 = vmatmul.mubr.msk.bf16.gmra.mxu0 %vm13512_vm13, %v13519_v28  ;;  %v4878_v46 = vsel %vm15504_vm1, %v4875_v24, %v4877_v9  ;;  %v4880_v50 = vsel %vm15504_vm1, %v4877_v9, %v4879_v56  ;;  %v15658_v16 = vmov 0  ;;  %v11228_v55 = vunpack.c.l.bf16 %v11708_v0 }
  0xa1   : > { %15657 = vst [vmem:[#allocation59_spill] sm:$0xff] %v13521_v45  ;;  %v15659_v16 = vsel %vm13530_vm3, 4294967295, %v15658_v16  ;;  %v591_v57 = vmul.f32 %v13303_v23, %v11225_v51  ;;  %v13535_v38 = vpack.c.bf16 %v4880_v50, %v4878_v46  ;;  %12308 = vmatprep.mubr.bf16.mxu1 %v13521_v45  ;;  %v853_v8 = vmax.f32 %v725_v62, 0.0 }
  0xa2   : > { %15660 = vst [vmem:[#allocation60_spill] sm:$0xff] %v15659_v16  ;;  %v3003_v44 = vand.u32 15, %v1467_v2  ;;  %v4881_v49 = vrot.slane %v852_v32, 1  ;;  %v13539_v60 = vpack.c.bf16 %v852_v32, %v851_v31  ;;  %v592_v24 = vmul.f32 %v13303_v23, %v11228_v55 }
  0xa3   : > { %15661 = vst [vmem:[#allocation61_spill] sm:$0xff] %v13535_v38  ;;  %v726_v9 = vadd.f32 %v13322_v26, %v591_v57  ;;  %v983_v36 = vadd.s32 488, %v12785_v4  ;;  %12164 = vmatprep.mubr.msk.bf16.mxu0 %vm13530_vm3, %v13535_v38  ;;  %v4883_v62 = vrot.slane %v853_v8, 1  ;;  %v11229_v2 = vunpack.c.h.bf16 %v11708_v0  ;;  %v11710_v0 = vld [vmem:[%s12821_s26 + $0x108] sm:$0xff]  }
  0xa4   : > { %15662 = vst [vmem:[#allocation62_spill] sm:$0xff] %v13539_v60  ;;  %vm4181_vm9 = vcmp.lt.s32.totalorder %v3003_v44, 15  ;;  %v4882_v51 = vsel %vm15504_vm1, %v4879_v56, %v4881_v49  ;;  %12309 = vmatmul.mubr.bf16.gmra.mxu1 %v13539_v60  ;;  %v727_v31 = vadd.f32 %v13322_v26, %v592_v24  ;;  %v11232_v50 = vunpack.c.l.bf16 %v11709_v37 }
  0xa5   : > { %v854_v32 = vmax.f32 %v726_v9, 0.0  ;;  %v1481_v46 = vand.u32 255, %v983_v36  ;;  %v4884_v55 = vsel %vm15504_vm1, %v4881_v49, %v4883_v62  ;;  %vm13552_vm13 = vmpackc.low %vm4181_vm9, %vm15482_vm4  ;;  %v15663_v57 = vmov 0 }
  0xa6   : > { %v15664_v57 = vsel %vm13552_vm13, 4294967295, %v15663_v57  ;;  %v593_v44 = vmul.f32 %v13303_v23, %v11229_v2  ;;  %v985_v56 = vadd.s32 504, %v12785_v4  ;;  %v11233_v45 = vunpack.c.h.bf16 %v11709_v37 }
  0xa7   : > { %15665 = vst [vmem:[#allocation63_spill] sm:$0xff] %v15664_v57  ;;  %v13559_v16 = vpack.c.bf16 %v4884_v55, %v4882_v51  ;;  %v855_v60 = vmax.f32 %v727_v31, 0.0  ;;  %v3017_v24 = vand.u32 15, %v1481_v46  ;;  %v4885_v36 = vrot.slane %v854_v32, 1 }
  0xa8   : > { %v13561_v9 = vpack.c.bf16 %v854_v32, %v853_v8  ;;  %v594_v49 = vmul.f32 %v13303_v23, %v11232_v50  ;;  %v728_v38 = vadd.f32 %v13322_v26, %v593_v44  ;;  %v1495_v28 = vand.u32 255, %v985_v56  ;;  %v11711_v50 = vld [vmem:[%s12821_s26 + $0x110] sm:$0xff]  }
  0xa9   : > { %15666 = vst [vmem:[#allocation64_spill] sm:$0xff] %v13559_v16  ;;  %12165 = vmatmul.mubr.msk.bf16.gmra.mxu0 %vm13552_vm13, %v13559_v16  ;;  %vm4183_vm9 = vcmp.lt.s32.totalorder %v3017_v24, 15  ;;  %v4886_v37 = vsel %vm15504_vm1, %v4883_v62, %v4885_v36  ;;  %v4887_v51 = vrot.slane %v855_v60, 1  ;;  %v11236_v2 = vunpack.c.l.bf16 %v11710_v0 }
  0xaa   : > { %15667 = vst [vmem:[#allocation65_spill] sm:$0xff] %v13561_v9  ;;  %12312 = vmatprep.mubr.bf16.mxu1 %v13561_v9  ;;  %v729_v31 = vadd.f32 %v13322_v26, %v594_v49  ;;  %v856_v8 = vmax.f32 %v728_v38, 0.0  ;;  %v3031_v32 = vand.u32 15, %v1495_v28  ;;  %v595_v46 = vmul.f32 %v13303_v23, %v11233_v45  ;;  %vm13575_vm3 = vmpackc.low %vm4183_vm9, %vm15482_vm4  ;;  %v12709_v38 = vld [vmem:[%s15336_s3 + $0x80] sm:$0xff]  }
  0xab   : > { %v4888_v55 = vsel %vm15504_vm1, %v4885_v36, %v4887_v51  ;;  %v15668_v44 = vmov 0  ;;  %v596_v62 = vmul.f32 %v13303_v23, %v11236_v2  ;;  %v987_v56 = vadd.s32 520, %v12785_v4  ;;  %v12710_v28 = vld [vmem:[%s15336_s3 + $0xc0] sm:$0xff]   ;;  %12394 = vmatprep.subr.bf16.mxu0 %v12709_v38 }
  0xac   : > { %v15669_v44 = vsel %vm13575_vm3, 4294967295, %v15668_v44  ;;  %v11237_v24 = vunpack.c.h.bf16 %v11710_v0  ;;  %v13587_v45 = vpack.c.bf16 %v4888_v55, %v4886_v37  ;;  %v857_v36 = vmax.f32 %v729_v31, 0.0  ;;  %12538 = vmatprep.subr.bf16.mxu1 %v12710_v28  ;;  %12395 = vmatpush3.bf16.msra.mxu0 %v12709_v38 }
  0xad   : > { %15670 = vst [vmem:[#allocation66_spill] sm:$0xff] %v15669_v44  ;;  %vm4185_vm9 = vcmp.lt.s32.totalorder %v3031_v32, 15  ;;  %v4889_v49 = vrot.slane %v856_v8, 1  ;;  %v13589_v9 = vpack.c.bf16 %v856_v8, %v855_v60  ;;  %v730_v2 = vadd.f32 %v13322_v26, %v595_v46  ;;  %12539 = vmatpush3.bf16.msra.mxu1 %v12710_v28 }
  0xae   : > { %15671 = vst [vmem:[#allocation67_spill] sm:$0xff] %v13587_v45  ;;  %v731_v57 = vadd.f32 %v13322_v26, %v596_v62  ;;  %v1509_v0 = vand.u32 255, %v987_v56  ;;  %12168 = vmatprep.mubr.msk.bf16.mxu0 %vm13575_vm3, %v13587_v45  ;;  %v4891_v55 = vrot.slane %v857_v36, 1  ;;  %v11240_v31 = vunpack.c.l.bf16 %v11711_v50  ;;  %vm10508_vm3 = vmpackc.low %vm4185_vm9, %vm15482_vm4 }
  0xaf   : > { %15672 = vst [vmem:[#allocation68_spill] sm:$0xff] %v13589_v9  ;;  %v4890_v37 = vsel %vm15504_vm1, %v4887_v51, %v4889_v49  ;;  %v597_v16 = vmul.f32 %v13303_v23, %v11237_v24  ;;  %12313 = vmatmul.mubr.bf16.gmra.mxu1 %v13589_v9  ;;  %v858_v60 = vmax.f32 %v730_v2, 0.0  ;;  %v989_v62 = vadd.s32 536, %v12785_v4 }
  0xb0   : > { %v859_v8 = vmax.f32 %v731_v57, 0.0  ;;  %v3045_v46 = vand.u32 15, %v1509_v0  ;;  %v4892_v56 = vsel %vm15504_vm1, %v4889_v49, %v4891_v55  ;;  %v598_v44 = vmul.f32 %v13303_v23, %v11240_v31 }
  0xb1   : > { %v732_v51 = vadd.f32 %v13322_v26, %v597_v16  ;;  %v11241_v45 = vunpack.c.h.bf16 %v11711_v50  ;;  %v13606_v24 = vpack.c.bf16 %v4892_v56, %v4890_v37  ;;  %v4893_v38 = vrot.slane %v858_v60, 1 }
  0xb2   : > { %vm4187_vm13 = vcmp.lt.s32.totalorder %v3045_v46, 15  ;;  %v4895_v57 = vrot.slane %v859_v8, 1  ;;  %v6201_v2 = vpack.c.bf16 %v858_v60, %v857_v36  ;;  %v733_v0 = vadd.f32 %v13322_v26, %v598_v44  ;;  %v11713_v46 = vld [vmem:[%s12821_s26 + $0x120] sm:$0xff]  }
  0xb3   : > { %15673 = vst [vmem:[#allocation69_spill] sm:$0xff] %v13606_v24  ;;  %v860_v49 = vmax.f32 %v732_v51, 0.0  ;;  %v1523_v9 = vand.u32 255, %v989_v62  ;;  %12169 = vmatmul.mubr.msk.bf16.gmra.mxu0 %vm10508_vm3, %v13606_v24  ;;  %v4894_v32 = vsel %vm15504_vm1, %v4891_v55, %v4893_v38  ;;  %vm13613_vm9 = vmpackc.low %vm4187_vm13, %vm15482_vm4  ;;  %v15674_v50 = vmov 0 }
  0xb4   : > { %v4896_v16 = vsel %vm15504_vm1, %v4893_v38, %v4895_v57  ;;  %v15675_v50 = vsel %vm13613_vm9, 4294967295, %v15674_v50  ;;  %v11244_v28 = vunpack.c.l.bf16 %v11712_v30  ;;  %v599_v37 = vmul.f32 %v13303_v23, %v11241_v45  ;;  %12316 = vmatprep.mubr.bf16.mxu1 %v6201_v2 }
  0xb5   : > { %15676 = vst [vmem:[#allocation70_spill] sm:$0xff] %v15675_v50  ;;  %v10512_v31 = vpack.c.bf16 %v4896_v16, %v4894_v32  ;;  %v861_v36 = vmax.f32 %v733_v0, 0.0  ;;  %v3059_v44 = vand.u32 15, %v1523_v9  ;;  %v4897_v60 = vrot.slane %v860_v49, 1 }
  0xb6   : > { %v13619_v62 = vpack.c.bf16 %v860_v49, %v859_v8  ;;  %v600_v55 = vmul.f32 %v13303_v23, %v11244_v28  ;;  %v734_v56 = vadd.f32 %v13322_v26, %v599_v37  ;;  %v991_v51 = vadd.s32 552, %v12785_v4 }
  0xb7   : > { %12172 = vmatprep.mubr.msk.bf16.mxu0 %vm13613_vm9, %v10512_v31  ;;  %vm4189_vm13 = vcmp.lt.s32.totalorder %v3059_v44, 15  ;;  %v4898_v45 = vsel %vm15504_vm1, %v4895_v57, %v4897_v60  ;;  %v4899_v38 = vrot.slane %v861_v36, 1  ;;  %v11245_v2 = vunpack.c.h.bf16 %v11712_v30  ;;  %v11714_v30 = vld [vmem:[%s12821_s26 + $0x128] sm:$0xff]  }
  0xb8   : > { %15677 = vst [vmem:[#allocation71_spill] sm:$0xff] %v13619_v62  ;;  %12317 = vmatmul.mubr.bf16.gmra.mxu1 %v13619_v62  ;;  %v735_v9 = vadd.f32 %v13322_v26, %v600_v55  ;;  %v862_v8 = vmax.f32 %v734_v56, 0.0  ;;  %v1537_v0 = vand.u32 255, %v991_v51  ;;  %v11248_v49 = vunpack.c.l.bf16 %v11713_v46  ;;  %vm13631_vm3 = vmpackc.low %vm4189_vm13, %vm15482_vm4 }
  0xb9   : > { %v4900_v32 = vsel %vm15504_vm1, %v4897_v60, %v4899_v38  ;;  %v15678_v16 = vmov 0  ;;  %v601_v28 = vmul.f32 %v13303_v23, %v11245_v2  ;;  %v993_v57 = vadd.s32 568, %v12785_v4 }
  0xba   : > { %v15679_v16 = vsel %vm13631_vm3, 4294967295, %v15678_v16  ;;  %v11249_v37 = vunpack.c.h.bf16 %v11713_v46  ;;  %v13638_v31 = vpack.c.bf16 %v4900_v32, %v4898_v45  ;;  %v863_v44 = vmax.f32 %v735_v9, 0.0 }
  0xbb   : > { %15680 = vst [vmem:[#allocation72_spill] sm:$0xff] %v15679_v16  ;;  %v3073_v55 = vand.u32 15, %v1537_v0  ;;  %v4901_v56 = vrot.slane %v862_v8, 1  ;;  %v13640_v51 = vpack.c.bf16 %v862_v8, %v861_v36  ;;  %v602_v60 = vmul.f32 %v13303_v23, %v11248_v49 }
  0xbc   : > { %15681 = vst [vmem:[#allocation73_spill] sm:$0xff] %v13638_v31  ;;  %v736_v62 = vadd.f32 %v13322_v26, %v601_v28  ;;  %v1551_v50 = vand.u32 255, %v993_v57  ;;  %12173 = vmatmul.mubr.msk.bf16.gmra.mxu0 %vm13631_vm3, %v13638_v31  ;;  %v4903_v45 = vrot.slane %v863_v44, 1  ;;  %v11252_v2 = vunpack.c.l.bf16 %v11714_v30 }
  0xbd   : > { %15682 = vst [vmem:[#allocation74_spill] sm:$0xff] %v13640_v51  ;;  %vm4191_vm13 = vcmp.lt.s32.totalorder %v3073_v55, 15  ;;  %v4902_v46 = vsel %vm15504_vm1, %v4899_v38, %v4901_v56  ;;  %12320 = vmatprep.mubr.bf16.mxu1 %v13640_v51  ;;  %v737_v36 = vadd.f32 %v13322_v26, %v602_v60  ;;  %v603_v0 = vmul.f32 %v13303_v23, %v11249_v37  ;;  %v11715_v55 = vld [vmem:[%s12821_s26 + $0x130] sm:$0xff]  }
  0xbe   : > { %v864_v9 = vmax.f32 %v736_v62, 0.0  ;;  %v3087_v8 = vand.u32 15, %v1551_v50  ;;  %v4904_v49 = vsel %vm15504_vm1, %v4901_v56, %v4903_v45  ;;  %vm13653_vm9 = vmpackc.low %vm4191_vm13, %vm15482_vm4  ;;  %v15683_v32 = vmov 0 }
  0xbf   : > { %v15684_v32 = vsel %vm13653_vm9, 4294967295, %v15683_v32  ;;  %v604_v28 = vmul.f32 %v13303_v23, %v11252_v2  ;;  %v995_v38 = vadd.s32 584, %v12785_v4  ;;  %v11253_v57 = vunpack.c.h.bf16 %v11714_v30 }
  0xc0   : > { %15685 = vst [vmem:[#allocation75_spill] sm:$0xff] %v15684_v32  ;;  %v13660_v51 = vpack.c.bf16 %v4904_v49, %v4902_v46  ;;  %v865_v60 = vmax.f32 %v737_v36, 0.0  ;;  %vm4193_vm3 = vcmp.lt.s32.totalorder %v3087_v8, 15  ;;  %v4905_v50 = vrot.slane %v864_v9, 1 }
  0xc1   : > { %v13662_v62 = vpack.c.bf16 %v864_v9, %v863_v44  ;;  %v738_v37 = vadd.f32 %v13322_v26, %v603_v0  ;;  %v739_v56 = vadd.f32 %v13322_v26, %v604_v28  ;;  %v1565_v16 = vand.u32 255, %v995_v38  ;;  %vm13676_vm13 = vmpackc.low %vm4193_vm3, %vm15482_vm4 }
  0xc2   : > { %15686 = vst [vmem:[#allocation76_spill] sm:$0xff] %v13660_v51  ;;  %12176 = vmatprep.mubr.msk.bf16.mxu0 %vm13653_vm9, %v13660_v51  ;;  %v4906_v30 = vsel %vm15504_vm1, %v4903_v45, %v4905_v50  ;;  %v4907_v2 = vrot.slane %v865_v60, 1  ;;  %v11256_v46 = vunpack.c.l.bf16 %v11715_v55  ;;  %v605_v36 = vmul.f32 %v13303_v23, %v11253_v57  ;;  %v11716_v51 = vld [vmem:[%s12821_s26 + $0x138] sm:$0xff]  }
  0xc3   : > { %15687 = vst [vmem:[#allocation77_spill] sm:$0xff] %v13662_v62  ;;  %12321 = vmatmul.mubr.bf16.gmra.mxu1 %v13662_v62  ;;  %v866_v44 = vmax.f32 %v738_v37, 0.0  ;;  %v867_v9 = vmax.f32 %v739_v56, 0.0  ;;  %v3101_v49 = vand.u32 15, %v1565_v16  ;;  %v997_v0 = vadd.s32 600, %v12785_v4 }
  0xc4   : > { %v4908_v28 = vsel %vm15504_vm1, %v4905_v50, %v4907_v2  ;;  %v15688_v38 = vmov 0  ;;  %v606_v45 = vmul.f32 %v13303_v23, %v11256_v46  ;;  %v740_v32 = vadd.f32 %v13322_v26, %v605_v36 }
  0xc5   : > { %v15689_v38 = vsel %vm13676_vm13, 4294967295, %v15688_v38  ;;  %v11257_v57 = vunpack.c.h.bf16 %v11715_v55  ;;  %v13683_v62 = vpack.c.bf16 %v4908_v28, %v4906_v30  ;;  %vm4195_vm9 = vcmp.lt.s32.totalorder %v3101_v49, 15  ;;  %v11717_v28 = vld [vmem:[%s12821_s26 + $0x140] sm:$0xff]  }
  0xc6   : > { %15690 = vst [vmem:[#allocation78_spill] sm:$0xff] %v15689_v38  ;;  %v4909_v16 = vrot.slane %v866_v44, 1  ;;  %v4911_v37 = vrot.slane %v867_v9, 1  ;;  %v13685_v56 = vpack.c.bf16 %v866_v44, %v865_v60  ;;  %v741_v8 = vadd.f32 %v13322_v26, %v606_v45  ;;  %vm13694_vm3 = vmpackc.low %vm4195_vm9, %vm15482_vm4 }
  0xc7   : > { %15691 = vst [vmem:[#allocation79_spill] sm:$0xff] %v13683_v62  ;;  %v868_v50 = vmax.f32 %v740_v32, 0.0  ;;  %v1579_v31 = vand.u32 255, %v997_v0  ;;  %12177 = vmatmul.mubr.msk.bf16.gmra.mxu0 %vm13676_vm13, %v13683_v62  ;;  %v15693_v30 = vmov 0  ;;  %v11260_v36 = vunpack.c.l.bf16 %v11716_v51 }
  0xc8   : > { %15692 = vst [vmem:[#allocation80_spill] sm:$0xff] %v13685_v56  ;;  %v4910_v46 = vsel %vm15504_vm1, %v4907_v2, %v4909_v16  ;;  %v4912_v55 = vsel %vm15504_vm1, %v4909_v16, %v4911_v37  ;;  %v15694_v30 = vsel %vm13694_vm3, 4294967295, %v15693_v30  ;;  %v607_v60 = vmul.f32 %v13303_v23, %v11257_v57  ;;  %12324 = vmatprep.mubr.bf16.mxu1 %v13685_v56 }
  0xc9   : > { %15695 = vst [vmem:[#allocation81_spill] sm:$0xff] %v15694_v30  ;;  %v13699_v44 = vpack.c.bf16 %v4912_v55, %v4910_v46  ;;  %v869_v32 = vmax.f32 %v741_v8, 0.0  ;;  %v3115_v49 = vand.u32 15, %v1579_v31  ;;  %v4913_v0 = vrot.slane %v868_v50, 1 }
  0xca   : > { %v13703_v45 = vpack.c.bf16 %v868_v50, %v867_v9  ;;  %v608_v2 = vmul.f32 %v13303_v23, %v11260_v36  ;;  %v742_v16 = vadd.f32 %v13322_v26, %v607_v60  ;;  %v999_v38 = vadd.s32 616, %v12785_v4 }
  0xcb   : > { %15696 = vst [vmem:[#allocation82_spill] sm:$0xff] %v13699_v44  ;;  %12180 = vmatprep.mubr.msk.bf16.mxu0 %vm13694_vm3, %v13699_v44  ;;  %vm4197_vm9 = vcmp.lt.s32.totalorder %v3115_v49, 15  ;;  %v4914_v57 = vsel %vm15504_vm1, %v4911_v37, %v4913_v0  ;;  %v4915_v8 = vrot.slane %v869_v32, 1  ;;  %v11261_v31 = vunpack.c.h.bf16 %v11716_v51  ;;  %v11718_v51 = vld [vmem:[%s12821_s26 + $0x148] sm:$0xff]  }
  0xcc   : > { %15697 = vst [vmem:[#allocation83_spill] sm:$0xff] %v13703_v45  ;;  %12325 = vmatmul.mubr.bf16.gmra.mxu1 %v13703_v45  ;;  %v743_v9 = vadd.f32 %v13322_v26, %v608_v2  ;;  %v870_v50 = vmax.f32 %v742_v16, 0.0  ;;  %v1593_v46 = vand.u32 255, %v999_v38  ;;  %v11264_v55 = vunpack.c.l.bf16 %v11717_v28  ;;  %vm13716_vm13 = vmpackc.low %vm4197_vm9, %vm15482_vm4 }
  0xcd   : > { %v4916_v36 = vsel %vm15504_vm1, %v4913_v0, %v4915_v8  ;;  %v15698_v60 = vmov 0  ;;  %v609_v49 = vmul.f32 %v13303_v23, %v11261_v31  ;;  %v1001_v37 = vadd.s32 632, %v12785_v4 }
  0xce   : > { %v15699_v60 = vsel %vm13716_vm13, 4294967295, %v15698_v60  ;;  %v11265_v56 = vunpack.c.h.bf16 %v11717_v28  ;;  %v13723_v30 = vpack.c.bf16 %v4916_v36, %v4914_v57  ;;  %v871_v45 = vmax.f32 %v743_v9, 0.0 }
  0xcf   : > { %15700 = vst [vmem:[#allocation84_spill] sm:$0xff] %v15699_v60  ;;  %v3129_v2 = vand.u32 15, %v1593_v46  ;;  %v4917_v16 = vrot.slane %v870_v50, 1  ;;  %v13725_v38 = vpack.c.bf16 %v870_v50, %v869_v32  ;;  %v610_v0 = vmul.f32 %v13303_v23, %v11264_v55 }
  0xd0   : > { %15701 = vst [vmem:[#allocation85_spill] sm:$0xff] %v13723_v30  ;;  %v744_v44 = vadd.f32 %v13322_v26, %v609_v49  ;;  %v1607_v62 = vand.u32 255, %v1001_v37  ;;  %12181 = vmatmul.mubr.msk.bf16.gmra.mxu0 %vm13716_vm13, %v13723_v30  ;;  %v4919_v57 = vrot.slane %v871_v45, 1  ;;  %v11268_v31 = vunpack.c.l.bf16 %v11718_v51 }
  0xd1   : > { %15702 = vst [vmem:[#allocation86_spill] sm:$0xff] %v13725_v38  ;;  %vm4199_vm9 = vcmp.lt.s32.totalorder %v3129_v2, 15  ;;  %v4918_v28 = vsel %vm15504_vm1, %v4915_v8, %v4917_v16  ;;  %12328 = vmatprep.mubr.bf16.mxu1 %v13725_v38  ;;  %v745_v32 = vadd.f32 %v13322_v26, %v610_v0  ;;  %v611_v46 = vmul.f32 %v13303_v23, %v11265_v56  ;;  %v11719_v2 = vld [vmem:[%s12821_s26 + $0x150] sm:$0xff]  }
  0xd2   : > { %v872_v9 = vmax.f32 %v744_v44, 0.0  ;;  %v3143_v50 = vand.u32 15, %v1607_v62  ;;  %v4920_v55 = vsel %vm15504_vm1, %v4917_v16, %v4919_v57  ;;  %vm13738_vm3 = vmpackc.low %vm4199_vm9, %vm15482_vm4  ;;  %v15703_v36 = vmov 0 }
  0xd3   : > { %v15704_v36 = vsel %vm13738_vm3, 4294967295, %v15703_v36  ;;  %v612_v49 = vmul.f32 %v13303_v23, %v11268_v31  ;;  %v1003_v8 = vadd.s32 648, %v12785_v4  ;;  %v11269_v37 = vunpack.c.h.bf16 %v11718_v51 }
  0xd4   : > { %15705 = vst [vmem:[#allocation87_spill] sm:$0xff] %v15704_v36  ;;  %v13745_v38 = vpack.c.bf16 %v4920_v55, %v4918_v28  ;;  %v873_v0 = vmax.f32 %v745_v32, 0.0  ;;  %vm4201_vm13 = vcmp.lt.s32.totalorder %v3143_v50, 15  ;;  %v4921_v62 = vrot.slane %v872_v9, 1 }
  0xd5   : > { %v13747_v44 = vpack.c.bf16 %v872_v9, %v871_v45  ;;  %v746_v56 = vadd.f32 %v13322_v26, %v611_v46  ;;  %v747_v16 = vadd.f32 %v13322_v26, %v612_v49  ;;  %v1621_v60 = vand.u32 255, %v1003_v8  ;;  %vm13761_vm9 = vmpackc.low %vm4201_vm13, %vm15482_vm4 }
  0xd6   : > { %15706 = vst [vmem:[#allocation88_spill] sm:$0xff] %v13745_v38  ;;  %12184 = vmatprep.mubr.msk.bf16.mxu0 %vm13738_vm3, %v13745_v38  ;;  %v4922_v51 = vsel %vm15504_vm1, %v4919_v57, %v4921_v62  ;;  %v4923_v31 = vrot.slane %v873_v0, 1  ;;  %v11272_v28 = vunpack.c.l.bf16 %v11719_v2  ;;  %v613_v32 = vmul.f32 %v13303_v23, %v11269_v37  ;;  %v11720_v38 = vld [vmem:[%s12821_s26 + $0x158] sm:$0xff]  }
  0xd7   : > { %15707 = vst [vmem:[#allocation89_spill] sm:$0xff] %v13747_v44  ;;  %12329 = vmatmul.mubr.bf16.gmra.mxu1 %v13747_v44  ;;  %v874_v45 = vmax.f32 %v746_v56, 0.0  ;;  %v875_v9 = vmax.f32 %v747_v16, 0.0  ;;  %v3157_v55 = vand.u32 15, %v1621_v60  ;;  %v1005_v46 = vadd.s32 664, %v12785_v4 }
  0xd8   : > { %v4924_v49 = vsel %vm15504_vm1, %v4921_v62, %v4923_v31  ;;  %v15708_v8 = vmov 0  ;;  %v614_v57 = vmul.f32 %v13303_v23, %v11272_v28  ;;  %v748_v36 = vadd.f32 %v13322_v26, %v613_v32 }
  0xd9   : > { %v15709_v8 = vsel %vm13761_vm9, 4294967295, %v15708_v8  ;;  %v11273_v37 = vunpack.c.h.bf16 %v11719_v2  ;;  %v13768_v44 = vpack.c.bf16 %v4924_v49, %v4922_v51  ;;  %vm4203_vm3 = vcmp.lt.s32.totalorder %v3157_v55, 15  ;;  %v11721_v49 = vld [vmem:[%s12821_s26 + $0x160] sm:$0xff]  }
  0xda   : > { %15710 = vst [vmem:[#allocation90_spill] sm:$0xff] %v15709_v8  ;;  %v4925_v60 = vrot.slane %v874_v45, 1  ;;  %v4927_v56 = vrot.slane %v875_v9, 1  ;;  %v13770_v16 = vpack.c.bf16 %v874_v45, %v873_v0  ;;  %v749_v50 = vadd.f32 %v13322_v26, %v614_v57  ;;  %vm13779_vm13 = vmpackc.low %vm4203_vm3, %vm15482_vm4 }
  0xdb   : > { %15711 = vst [vmem:[#allocation91_spill] sm:$0xff] %v13768_v44  ;;  %v876_v62 = vmax.f32 %v748_v36, 0.0  ;;  %v1635_v30 = vand.u32 255, %v1005_v46  ;;  %12185 = vmatmul.mubr.msk.bf16.gmra.mxu0 %vm13761_vm9, %v13768_v44  ;;  %v15713_v51 = vmov 0  ;;  %v11276_v32 = vunpack.c.l.bf16 %v11720_v38 }
  0xdc   : > { %15712 = vst [vmem:[#allocation92_spill] sm:$0xff] %v13770_v16  ;;  %v4926_v28 = vsel %vm15504_vm1, %v4923_v31, %v4925_v60  ;;  %v4928_v2 = vsel %vm15504_vm1, %v4925_v60, %v4927_v56  ;;  %v15714_v51 = vsel %vm13779_vm13, 4294967295, %v15713_v51  ;;  %v615_v0 = vmul.f32 %v13303_v23, %v11273_v37  ;;  %12332 = vmatprep.mubr.bf16.mxu1 %v13770_v16 }
  0xdd   : > { %15715 = vst [vmem:[#allocation93_spill] sm:$0xff] %v15714_v51  ;;  %v13784_v45 = vpack.c.bf16 %v4928_v2, %v4926_v28  ;;  %v877_v36 = vmax.f32 %v749_v50, 0.0  ;;  %v3171_v55 = vand.u32 15, %v1635_v30  ;;  %v4929_v46 = vrot.slane %v876_v62, 1  ;;  %v13821_v51 = vld [vmem:[%s15335_s2] ss:$0 sm:$0xff] }
  0xde   : > { %v13788_v57 = vpack.c.bf16 %v876_v62, %v875_v9  ;;  %v616_v31 = vmul.f32 %v13303_v23, %v11276_v32  ;;  %v750_v60 = vadd.f32 %v13322_v26, %v615_v0  ;;  %v1007_v8 = vadd.s32 680, %v12785_v4 }
  0xdf   : > { %15716 = vst [vmem:[#allocation94_spill] sm:$0xff] %v13784_v45  ;;  %12188 = vmatprep.mubr.msk.bf16.mxu0 %vm13779_vm13, %v13784_v45  ;;  %vm4205_vm3 = vcmp.lt.s32.totalorder %v3171_v55, 15  ;;  %v4930_v37 = vsel %vm15504_vm1, %v4927_v56, %v4929_v46  ;;  %v4931_v50 = vrot.slane %v877_v36, 1  ;;  %v11277_v30 = vunpack.c.h.bf16 %v11720_v38  ;;  %v13808_v56 = vld [vmem:[%s15334_s1] ss:$0 sm:$0xff]  ;;  %v11722_v55 = vld [vmem:[%s12821_s26 + $0x168] sm:$0xff]  }
  0xe0   : > { %15717 = vst [vmem:[#allocation95_spill] sm:$0xff] %v13788_v57  ;;  %12333 = vmatmul.mubr.bf16.gmra.mxu1 %v13788_v57  ;;  %v751_v9 = vadd.f32 %v13322_v26, %v616_v31  ;;  %v878_v62 = vmax.f32 %v750_v60, 0.0  ;;  %v1649_v23 = vand.u32 255, %v1007_v8  ;;  %v11280_v28 = vunpack.c.l.bf16 %v11721_v49  ;;  %vm13801_vm9 = vmpackc.low %vm4205_vm3, %vm15482_vm4 }
  0xe1   : > { %v4932_v2 = vsel %vm15504_vm1, %v4929_v46, %v4931_v50  ;;  %v15718_v32 = vmov 0  ;;  %v617_v38 = vmul.f32 %v13808_v56, %v11277_v30  ;;  %v1009_v0 = vadd.s32 696, %v12785_v4 }
  0xe2   : > { %v15719_v32 = vsel %vm13801_vm9, 4294967295, %v15718_v32  ;;  %v11281_v26 = vunpack.c.h.bf16 %v11721_v49  ;;  %v13813_v8 = vpack.c.bf16 %v4932_v2, %v4930_v37  ;;  %v879_v31 = vmax.f32 %v751_v9, 0.0 }
  0xe3   : > { %15720 = vst [vmem:[#allocation96_spill] sm:$0xff] %v15719_v32  ;;  %v3185_v46 = vand.u32 15, %v1649_v23  ;;  %v4933_v60 = vrot.slane %v878_v62, 1  ;;  %v13815_v57 = vpack.c.bf16 %v878_v62, %v877_v36  ;;  %v618_v16 = vmul.f32 %v13808_v56, %v11280_v28  ;;  %v11723_v32 = vld [vmem:[%s12821_s26 + $0x170] sm:$0xff]  }
  0xe4   : > { %15721 = vst [vmem:[#allocation97_spill] sm:$0xff] %v13813_v8  ;;  %v752_v30 = vadd.f32 %v13821_v51, %v617_v38  ;;  %v1663_v45 = vand.u32 255, %v1009_v0  ;;  %12189 = vmatmul.mubr.msk.bf16.gmra.mxu0 %vm13801_vm9, %v13813_v8  ;;  %v4935_v36 = vrot.slane %v879_v31, 1  ;;  %v11284_v37 = vunpack.c.l.bf16 %v11722_v55 }
  0xe5   : > { %15722 = vst [vmem:[#allocation98_spill] sm:$0xff] %v13815_v57  ;;  %vm4207_vm3 = vcmp.lt.s32.totalorder %v3185_v46, 15  ;;  %v4934_v49 = vsel %vm15504_vm1, %v4931_v50, %v4933_v60  ;;  %12336 = vmatprep.mubr.bf16.mxu1 %v13815_v57  ;;  %v753_v9 = vadd.f32 %v13821_v51, %v618_v16  ;;  %v619_v28 = vmul.f32 %v13808_v56, %v11281_v26 }
  0xe6   : > { %v880_v62 = vmax.f32 %v752_v30, 0.0  ;;  %v3199_v23 = vand.u32 15, %v1663_v45  ;;  %v4936_v2 = vsel %vm15504_vm1, %v4933_v60, %v4935_v36  ;;  %vm13833_vm13 = vmpackc.low %vm4207_vm3, %vm15482_vm4  ;;  %v15723_v38 = vmov 0 }
  0xe7   : > { %v15724_v38 = vsel %vm13833_vm13, 4294967295, %v15723_v38  ;;  %v620_v0 = vmul.f32 %v13808_v56, %v11284_v37  ;;  %v1011_v50 = vadd.s32 712, %v12785_v4  ;;  %v11285_v46 = vunpack.c.h.bf16 %v11722_v55 }
  0xe8   : > { %15725 = vst [vmem:[#allocation99_spill] sm:$0xff] %v15724_v38  ;;  %v13840_v57 = vpack.c.bf16 %v4936_v2, %v4934_v49  ;;  %v881_v16 = vmax.f32 %v753_v9, 0.0  ;;  %vm4209_vm9 = vcmp.lt.s32.totalorder %v3199_v23, 15  ;;  %v4937_v45 = vrot.slane %v880_v62, 1 }
  0xe9   : > { %v13842_v30 = vpack.c.bf16 %v880_v62, %v879_v31  ;;  %v754_v26 = vadd.f32 %v13821_v51, %v619_v28  ;;  %v755_v60 = vadd.f32 %v13821_v51, %v620_v0  ;;  %v1677_v8 = vand.u32 255, %v1011_v50  ;;  %vm13856_vm3 = vmpackc.low %vm4209_vm9, %vm15482_vm4 }
  0xea   : > { %15726 = vst [vmem:[#allocation100_spill] sm:$0xff] %v13840_v57  ;;  %12192 = vmatprep.mubr.msk.bf16.mxu0 %vm13833_vm13, %v13840_v57  ;;  %v4938_v55 = vsel %vm15504_vm1, %v4935_v36, %v4937_v45  ;;  %v4939_v37 = vrot.slane %v881_v16, 1  ;;  %v11288_v49 = vunpack.c.l.bf16 %v11723_v32  ;;  %v621_v9 = vmul.f32 %v13808_v56, %v11285_v46  ;;  %v11724_v57 = vld [vmem:[%s12821_s26 + $0x178] sm:$0xff]  }
  0xeb   : > { %15727 = vst [vmem:[#allocation101_spill] sm:$0xff] %v13842_v30  ;;  %12337 = vmatmul.mubr.bf16.gmra.mxu1 %v13842_v30  ;;  %v882_v31 = vmax.f32 %v754_v26, 0.0  ;;  %v883_v62 = vmax.f32 %v755_v60, 0.0  ;;  %v3213_v2 = vand.u32 15, %v1677_v8  ;;  %v1013_v28 = vadd.s32 728, %v12785_v4 }
  0xec   : > { %v4940_v0 = vsel %vm15504_vm1, %v4937_v45, %v4939_v37  ;;  %v15728_v50 = vmov 0  ;;  %v622_v36 = vmul.f32 %v13808_v56, %v11288_v49  ;;  %v756_v38 = vadd.f32 %v13821_v51, %v621_v9 }
  0xed   : > { %v15729_v50 = vsel %vm13856_vm3, 4294967295, %v15728_v50  ;;  %v11289_v46 = vunpack.c.h.bf16 %v11723_v32  ;;  %v13863_v30 = vpack.c.bf16 %v4940_v0, %v4938_v55  ;;  %vm4211_vm13 = vcmp.lt.s32.totalorder %v3213_v2, 15  ;;  %v11725_v0 = vld [vmem:[%s12821_s26 + $0x180] sm:$0xff]   ;;  %v12254_v15 = vpop.f32.mrf.mxu1 }
  0xee   : > { %15730 = vst [vmem:[#allocation102_spill] sm:$0xff] %v15729_v50  ;;  %v4941_v8 = vrot.slane %v882_v31, 1  ;;  %v4943_v26 = vrot.slane %v883_v62, 1  ;;  %v13865_v60 = vpack.c.bf16 %v882_v31, %v881_v16  ;;  %v757_v23 = vadd.f32 %v13821_v51, %v622_v36  ;;  %vm13874_vm9 = vmpackc.low %vm4211_vm13, %vm15482_vm4 }
  0xef   : > { %15731 = vst [vmem:[#allocation103_spill] sm:$0xff] %v13863_v30  ;;  %v884_v45 = vmax.f32 %v756_v38, 0.0  ;;  %v1691_v44 = vand.u32 255, %v1013_v28  ;;  %12193 = vmatmul.mubr.msk.bf16.gmra.mxu0 %vm13856_vm3, %v13863_v30  ;;  %v15733_v55 = vmov 0  ;;  %v11292_v9 = vunpack.c.l.bf16 %v11724_v57 }
  0xf0   : > { %15732 = vst [vmem:[#allocation104_spill] sm:$0xff] %v13865_v60  ;;  %v4942_v49 = vsel %vm15504_vm1, %v4939_v37, %v4941_v8  ;;  %v4944_v32 = vsel %vm15504_vm1, %v4941_v8, %v4943_v26  ;;  %v15734_v55 = vsel %vm13874_vm9, 4294967295, %v15733_v55  ;;  %v623_v16 = vmul.f32 %v13808_v56, %v11289_v46  ;;  %12340 = vmatprep.mubr.bf16.mxu1 %v13865_v60 }
  0xf1   : > { %15735 = vst [vmem:[#allocation105_spill] sm:$0xff] %v15734_v55  ;;  %v13879_v31 = vpack.c.bf16 %v4944_v32, %v4942_v49  ;;  %v885_v38 = vmax.f32 %v757_v23, 0.0  ;;  %v3227_v2 = vand.u32 15, %v1691_v44  ;;  %v4945_v28 = vrot.slane %v884_v45, 1 }
  0xf2   : > { %v13883_v36 = vpack.c.bf16 %v884_v45, %v883_v62  ;;  %v624_v37 = vmul.f32 %v13808_v56, %v11292_v9  ;;  %v758_v8 = vadd.f32 %v13821_v51, %v623_v16  ;;  %v1015_v50 = vadd.s32 744, %v12785_v4 }
  0xf3   : > { %15736 = vst [vmem:[#allocation106_spill] sm:$0xff] %v13879_v31  ;;  %12196 = vmatprep.mubr.msk.bf16.mxu0 %vm13874_vm9, %v13879_v31  ;;  %vm4213_vm13 = vcmp.lt.s32.totalorder %v3227_v2, 15  ;;  %v4946_v46 = vsel %vm15504_vm1, %v4943_v26, %v4945_v28  ;;  %v4947_v23 = vrot.slane %v885_v38, 1  ;;  %v11293_v44 = vunpack.c.h.bf16 %v11724_v57  ;;  %v11726_v57 = vld [vmem:[%s12821_s26 + $0x188] sm:$0xff]  }
  0xf4   : > { %15737 = vst [vmem:[#allocation107_spill] sm:$0xff] %v13883_v36  ;;  %12341 = vmatmul.mubr.bf16.gmra.mxu1 %v13883_v36  ;;  %v759_v62 = vadd.f32 %v13821_v51, %v624_v37  ;;  %v886_v45 = vmax.f32 %v758_v8, 0.0  ;;  %v1705_v49 = vand.u32 255, %v1015_v50  ;;  %v11296_v32 = vunpack.c.l.bf16 %v11725_v0  ;;  %vm13896_vm3 = vmpackc.low %vm4213_vm13, %vm15482_vm4  ;;  %v12110_v50 = vpop.f32.mrf.mxu0 }
  0xf5   : > { %v4948_v9 = vsel %vm15504_vm1, %v4945_v28, %v4947_v23  ;;  %v15738_v16 = vmov 0  ;;  %v625_v2 = vmul.f32 %v13808_v56, %v11293_v44  ;;  %v1017_v26 = vadd.s32 760, %v12785_v4 }
  0xf6   : > { %v15739_v16 = vsel %vm13896_vm3, 4294967295, %v15738_v16  ;;  %v11297_v60 = vunpack.c.h.bf16 %v11725_v0  ;;  %v13903_v55 = vpack.c.bf16 %v4948_v9, %v4946_v46  ;;  %v887_v36 = vmax.f32 %v759_v62, 0.0  ;;  %v6412_v62 = vpop.f32.mrf.mxu0  ;;  %v7005_v9 = vpop.f32.mrf.mxu1 }
  0xf7   : > { %15740 = vst [vmem:[#allocation108_spill] sm:$0xff] %v15739_v16  ;;  %v3241_v37 = vand.u32 15, %v1705_v49  ;;  %v4949_v8 = vrot.slane %v886_v45, 1  ;;  %v13905_v31 = vpack.c.bf16 %v886_v45, %v885_v38  ;;  %v626_v28 = vmul.f32 %v13808_v56, %v11296_v32 }
  0xf8   : > { %15741 = vst [vmem:[#allocation109_spill] sm:$0xff] %v13903_v55  ;;  %v760_v30 = vadd.f32 %v13821_v51, %v625_v2  ;;  %v1719_v24 = vand.u32 255, %v1017_v26  ;;  %12197 = vmatmul.mubr.msk.bf16.gmra.mxu0 %vm13896_vm3, %v13903_v55  ;;  %v4951_v46 = vrot.slane %v887_v36, 1  ;;  %v11300_v44 = vunpack.c.l.bf16 %v11726_v57  ;;  %v12255_v55 = vpop.f32.mrf.mxu1 }
  0xf9   : > { %15742 = vst [vmem:[#allocation110_spill] sm:$0xff] %v13905_v31  ;;  %vm4215_vm13 = vcmp.lt.s32.totalorder %v3241_v37, 15  ;;  %v4950_v0 = vsel %vm15504_vm1, %v4947_v23, %v4949_v8  ;;  %12344 = vmatprep.mubr.bf16.mxu1 %v13905_v31  ;;  %v761_v38 = vadd.f32 %v13821_v51, %v626_v28  ;;  %v627_v32 = vmul.f32 %v13808_v56, %v11297_v60  ;;  %v13925_v31 = vld [vmem:[%s12821_s26 + $0x190] sm:$0xff]   ;;  %v12111_v28 = vpop.f32.mrf.mxu0 }
  0xfa   : > { %v888_v45 = vmax.f32 %v760_v30, 0.0  ;;  %v3255_v49 = vand.u32 15, %v1719_v24  ;;  %v4952_v2 = vsel %vm15504_vm1, %v4949_v8, %v4951_v46  ;;  %vm13918_vm3 = vmpackc.low %vm4215_vm13, %vm15482_vm4  ;;  %v15743_v26 = vmov 0  ;;  %v7008_v14 = vpop.f32.mrf.mxu1 }
  0xfb   : > { %v15744_v26 = vsel %vm13918_vm3, 4294967295, %v15743_v26  ;;  %v628_v23 = vmul.f32 %v13808_v56, %v11300_v44  ;;  %v1019_v37 = vadd.s32 776, %v12785_v4  ;;  %v11301_v16 = vunpack.c.h.bf16 %v11726_v57  ;;  %v6415_v44 = vpop.f32.mrf.mxu0 }
  0xfc   : > { %15745 = vst [vmem:[#allocation111_spill] sm:$0xff] %v15744_v26  ;;  %v13927_v30 = vpack.c.bf16 %v4952_v2, %v4950_v0  ;;  %v889_v24 = vmax.f32 %v761_v38, 0.0  ;;  %vm4217_vm9 = vcmp.lt.s32.totalorder %v3255_v49, 15  ;;  %v4953_v60 = vrot.slane %v888_v45, 1 }
  0xfd   : > { %v13929_v8 = vpack.c.bf16 %v888_v45, %v887_v36  ;;  %v762_v59 = vadd.f32 %v13821_v51, %v627_v32  ;;  %v763_v34 = vadd.f32 %v13821_v51, %v628_v23  ;;  %v1733_v27 = vand.u32 255, %v1019_v37  ;;  %v12114_v37 = vpop.f32.mrf.mxu0  ;;  %vm13944_vm13 = vmpackc.low %vm4217_vm9, %vm15482_vm4 }
  0xfe   : > { %15746 = vst [vmem:[#allocation112_spill] sm:$0xff] %v13927_v30  ;;  %12200 = vmatprep.mubr.msk.bf16.mxu0 %vm13918_vm3, %v13927_v30  ;;  %v4954_v57 = vsel %vm15504_vm1, %v4951_v46, %v4953_v60  ;;  %v4955_v0 = vrot.slane %v889_v24, 1  ;;  %v11304_v38 = vunpack.c.l.bf16 %v13925_v31  ;;  %v629_v2 = vmul.f32 %v13808_v56, %v11301_v16  ;;  %v13974_v46 = vld [vmem:[%s12821_s26 + $0x1a0] sm:$0xff]  }
  0xff   : > { %15747 = vst [vmem:[#allocation113_spill] sm:$0xff] %v13929_v8  ;;  %12345 = vmatmul.mubr.bf16.gmra.mxu1 %v13929_v8  ;;  %v890_v36 = vmax.f32 %v762_v59, 0.0  ;;  %v891_v45 = vmax.f32 %v763_v34, 0.0  ;;  %v3269_v32 = vand.u32 15, %v1733_v27  ;;  %v1021_v23 = vadd.s32 792, %v12785_v4  ;;  %v12258_v34 = vpop.f32.mrf.mxu1  ;;  %v6428_v3 = vpop.f32.mrf.mxu0 }
 0x100   : > { %v4956_v26 = vsel %vm15504_vm1, %v4953_v60, %v4955_v0  ;;  %v630_v16 = vmul.f32 %v13808_v56, %v11304_v38  ;;  %v764_v30 = vadd.f32 %v13821_v51, %v629_v2  ;;  %v13950_v8 = vadd.f32 %v12254_v15, %v12110_v50 }
 0x101   : > { %v13952_v27 = vpack.c.bf16 %v4956_v26, %v4954_v57  ;;  %vm4219_vm3 = vcmp.lt.s32.totalorder %v3269_v32, 15  ;;  %v4957_v59 = vrot.slane %v890_v36, 1  ;;  %v4959_v52 = vrot.slane %v891_v45, 1  ;;  %v7021_v38 = vpop.f32.mrf.mxu1  ;;  %v12115_v57 = vpop.f32.mrf.mxu0 }
 0x102   : > { %15750 = vst [vmem:[#allocation114_spill] sm:$0xff] %v13950_v8  ;;  %v6217_v60 = vpack.c.bf16 %v890_v36, %v889_v24  ;;  %v13955_v49 = vadd.f32 %v13821_v51, %v630_v16  ;;  %v892_v43 = vmax.f32 %v764_v30, 0.0  ;;  %v1747_v35 = vand.u32 255, %v1021_v23  ;;  %vm13964_vm9 = vmpackc.low %vm4219_vm3, %vm15482_vm4 }
 0x103   : > { %15751 = vst [vmem:[#allocation115_spill] sm:$0xff] %v13952_v27  ;;  %12201 = vmatmul.mubr.msk.bf16.gmra.mxu0 %vm13944_vm13, %v13952_v27  ;;  %v4958_v15 = vsel %vm15504_vm1, %v4955_v0, %v4957_v59  ;;  %v4960_v50 = vsel %vm15504_vm1, %v4957_v59, %v4959_v52  ;;  %v15752_v26 = vmov 0  ;;  %v13968_v24 = vadd.f32 %v7005_v9, %v6412_v62  ;;  %v12259_v0 = vpop.f32.mrf.mxu1  ;;  %v6431_v9 = vpop.f32.mrf.mxu0 }
 0x104   : > { %v15753_v26 = vsel %vm13964_vm9, 4294967295, %v15752_v26  ;;  %v13970_v30 = vadd.f32 %v12255_v55, %v12111_v28  ;;  %v10560_v2 = vpack.c.bf16 %v4960_v50, %v4958_v15  ;;  %12348 = vmatprep.mubr.bf16.mxu1 %v6217_v60  ;;  %v893_v36 = vmax.f32 %v13955_v49, 0.0 }
 0x105   : > { %15754 = vst [vmem:[#allocation116_spill] sm:$0xff] %v15753_v26  ;;  %15755 = vst [vmem:[#allocation117_spill] sm:$0xff] %v13968_v24  ;;  %v3283_v32 = vand.u32 15, %v1747_v35  ;;  %v4961_v23 = vrot.slane %v892_v43, 1  ;;  %v13976_v16 = vpack.c.bf16 %v892_v43, %v891_v45  ;;  %v13978_v59 = vadd.f32 %v7008_v14, %v6415_v44  ;;  %v7024_v60 = vpop.f32.mrf.mxu1  ;;  %v13989_v45 = vpop.f32.mrf.mxu0 }
 0x106   : > { %15756 = vst [vmem:[#allocation118_spill] sm:$0xff] %v13970_v30  ;;  %v11305_v8 = vunpack.c.h.bf16 %v13925_v31  ;;  %v11308_v62 = vunpack.c.l.bf16 %v11728_v12  ;;  %12204 = vmatprep.mubr.msk.bf16.mxu0 %vm13964_vm9, %v10560_v2  ;;  %v4963_v28 = vrot.slane %v893_v36, 1  ;;  %v1023_v35 = vadd.s32 808, %v12785_v4 }
 0x107   : > { %15757 = vst [vmem:[#allocation119_spill] sm:$0xff] %v13976_v16  ;;  %15758 = vst [vmem:[#allocation120_spill] sm:$0xff] %v13978_v59  ;;  %vm4221_vm3 = vcmp.lt.s32.totalorder %v3283_v32, 15  ;;  %v4962_v55 = vsel %vm15504_vm1, %v4959_v52, %v4961_v23  ;;  %12349 = vmatmul.mubr.bf16.gmra.mxu1 %v13976_v16  ;;  %v11309_v44 = vunpack.c.h.bf16 %v11728_v12  ;;  %v11312_v31 = vunpack.c.l.bf16 %v13974_v46  ;;  %v14007_v59 = vpop.f32.mrf.mxu0 }
 0x108   : > { %v631_v43 = vmul.f32 %v13808_v56, %v11305_v8  ;;  %v632_v14 = vmul.f32 %v13808_v56, %v11308_v62  ;;  %v4964_v49 = vsel %vm15504_vm1, %v4961_v23, %v4963_v28  ;;  %vm13993_vm13 = vmpackc.low %vm4221_vm3, %vm15482_vm4  ;;  %v15759_v52 = vmov 0  ;;  %v14000_v8 = vpop.f32.mrf.mxu1 }
 0x109   : > { %v15760_v52 = vsel %vm13993_vm13, 4294967295, %v15759_v52  ;;  %v1761_v15 = vand.u32 255, %v1023_v35  ;;  %v1025_v50 = vadd.s32 824, %v12785_v4  ;;  %v13998_v2 = vadd.f32 %v12258_v34, %v12114_v37 }
 0x10a   : > { %15761 = vst [vmem:[#allocation121_spill] sm:$0xff] %v15760_v52  ;;  %v14002_v12 = vpack.c.bf16 %v4964_v49, %v4962_v55  ;;  %v766_v32 = vadd.f32 %v13821_v51, %v631_v43  ;;  %v767_v62 = vadd.f32 %v13821_v51, %v632_v14  ;;  %v633_v23 = vmul.f32 %v13808_v56, %v11309_v44  ;;  %v14012_v37 = vpop.f32.mrf.mxu1  ;;  %v11730_v44 = vld [vmem:[%s12821_s26 + $0x1a8] sm:$0xff]   ;;  %v14021_v49 = vpop.f32.mrf.mxu0 }
 0x10b   : > { %15762 = vst [vmem:[#allocation122_spill] sm:$0xff] %v13998_v2  ;;  %v3297_v30 = vand.u32 15, %v1761_v15  ;;  %v634_v35 = vmul.f32 %v13808_v56, %v11312_v31  ;;  %v1775_v24 = vand.u32 255, %v1025_v50  ;;  %v14010_v16 = vadd.f32 %v7021_v38, %v6428_v3 }
 0x10c   : > { %15763 = vst [vmem:[#allocation123_spill] sm:$0xff] %v14002_v12  ;;  %12205 = vmatmul.mubr.msk.bf16.gmra.mxu0 %vm13993_vm13, %v14002_v12  ;;  %v894_v34 = vmax.f32 %v766_v32, 0.0  ;;  %v895_v55 = vmax.f32 %v767_v62, 0.0  ;;  %v768_v43 = vadd.f32 %v13821_v51, %v633_v23  ;;  %v14018_v14 = vadd.f32 %v12259_v0, %v12115_v57  ;;  %v12263_v15 = vpop.f32.mrf.mxu1  ;;  %v14028_v62 = vpop.f32.mrf.mxu0 }
 0x10d   : > { %15764 = vst [vmem:[#allocation124_spill] sm:$0xff] %v14010_v16  ;;  %v769_v3 = vadd.f32 %v13821_v51, %v634_v35  ;;  %v3311_v38 = vand.u32 15, %v1775_v24  ;;  %v14024_v31 = vadd.f32 %v7024_v60, %v6431_v9  ;;  %v11313_v0 = vunpack.c.h.bf16 %v13974_v46 }
 0x10e   : > { %15765 = vst [vmem:[#allocation125_spill] sm:$0xff] %v14018_v14  ;;  %v4965_v50 = vrot.slane %v894_v34, 1  ;;  %v4967_v16 = vrot.slane %v895_v55, 1  ;;  %v14026_v2 = vpack.c.bf16 %v894_v34, %v893_v36  ;;  %v896_v32 = vmax.f32 %v768_v43, 0.0  ;;  %v14032_v14 = vld [vmem:[%s12821_s26 + $0x1b0] sm:$0xff]   ;;  %v7040_v52 = vpop.f32.mrf.mxu1  ;;  %v14045_v46 = vpop.f32.mrf.mxu0 }
 0x10f   : > { %15766 = vst [vmem:[#allocation126_spill] sm:$0xff] %v14024_v31  ;;  %v897_v57 = vmax.f32 %v769_v3, 0.0  ;;  %vm4225_vm4 = vcmp.lt.s32.totalorder %v3311_v38, 15  ;;  %v11316_v23 = vunpack.c.l.bf16 %v11730_v44  ;;  %vm15768_vm3 = vmmov 1  }
 0x110   : > { %15767 = vst [vmem:[#allocation127_spill] sm:$0xff] %v14026_v2  ;;  %v4966_v24 = vsel %vm15504_vm1, %v4963_v28, %v4965_v50  ;;  %v4968_v9 = vsel %vm15504_vm1, %v4965_v50, %v4967_v16  ;;  %vm15769_vm13 = vcmp.lt.s32.totalorder %v3297_v30, 15  ;;  %v15770_v36 = vmov 0  ;;  %12352 = vmatprep.mubr.bf16.mxu1 %v14026_v2  ;;  %v14051_v50 = vpop.f32.mrf.mxu1 }
 0x111   : > { %vm14038_vm9 = vmpackc.low %vm15769_vm13, %vm15768_vm3  ;;  %v4969_v60 = vrot.slane %v896_v32, 1  ;;  %v14043_v35 = vpack.c.bf16 %v896_v32, %v895_v55  ;;  %v14047_v34 = vpack.c.bf16 %v4968_v9, %v4966_v24  ;;  %v4971_v43 = vrot.slane %v897_v57, 1  ;;  %v14057_v32 = vpop.f32.mrf.mxu0 }
 0x112   : > { %v15771_v36 = vsel %vm14038_vm9, 4294967295, %v15770_v36  ;;  %v635_v28 = vmul.f32 %v13808_v56, %v11313_v0  ;;  %v636_v3 = vmul.f32 %v13808_v56, %v11316_v23  ;;  %v1027_v31 = vadd.s32 840, %v12785_v4  ;;  %vm14065_vm13 = vmpackc.low %vm4225_vm4, %vm15768_vm3  ;;  %v14072_v9 = vpop.f32.mrf.mxu1 }
 0x113   : > { %15772 = vst [vmem:[#allocation128_spill] sm:$0xff] %v15771_v36  ;;  %15773 = vst [vmem:[#allocation129_spill] sm:$0xff] %v14043_v35  ;;  %v4970_v30 = vsel %vm15504_vm1, %v4967_v16, %v4969_v60  ;;  %12353 = vmatmul.mubr.bf16.gmra.mxu1 %v14043_v35  ;;  %v11317_v2 = vunpack.c.h.bf16 %v11730_v44  ;;  %v11320_v55 = vunpack.c.l.bf16 %v14032_v14  ;;  %12208 = vmatprep.mubr.msk.bf16.mxu0 %vm14038_vm9, %v14047_v34  ;;  %v15775_v23 = vmov 0  ;;  %v14078_v38 = vpop.f32.mrf.mxu0 }
 0x114   : > { %15774 = vst [vmem:[#allocation130_spill] sm:$0xff] %v14047_v34  ;;  %v4972_v0 = vsel %vm15504_vm1, %v4969_v60, %v4971_v43  ;;  %v15776_v23 = vsel %vm14065_vm13, 4294967295, %v15775_v23  ;;  %v770_v16 = vadd.f32 %v13821_v51, %v635_v28  ;;  %v771_v44 = vadd.f32 %v13821_v51, %v636_v3  ;;  %v14084_v3 = vpop.f32.mrf.mxu1 }
 0x115   : > { %15777 = vst [vmem:[#allocation131_spill] sm:$0xff] %v15776_v23  ;;  %v1029_v24 = vadd.s32 856, %v12785_v4  ;;  %v14074_v35 = vpack.c.bf16 %v4972_v0, %v4970_v30  ;;  %v1789_v36 = vand.u32 255, %v1027_v31  ;;  %v637_v34 = vmul.f32 %v13808_v56, %v11317_v2  ;;  %v14097_v0 = vpop.f32.mrf.mxu0 }
 0x116   : > { %v638_v60 = vmul.f32 %v13808_v56, %v11320_v55  ;;  %v898_v26 = vmax.f32 %v770_v16, 0.0  ;;  %v899_v12 = vmax.f32 %v771_v44, 0.0  ;;  %v14082_v28 = vadd.f32 %v14000_v8, %v13989_v45 }
 0x117   : > { %15778 = vst [vmem:[#allocation132_spill] sm:$0xff] %v14074_v35  ;;  %v1803_v27 = vand.u32 255, %v1029_v24  ;;  %12209 = vmatmul.mubr.msk.bf16.gmra.mxu0 %vm14065_vm13, %v14074_v35  ;;  %v3325_v31 = vand.u32 15, %v1789_v36  ;;  %v772_v2 = vadd.f32 %v13821_v51, %v637_v34  ;;  %v14095_v55 = vadd.f32 %v14012_v37, %v14007_v59  ;;  %v7056_v24 = vpop.f32.mrf.mxu1  ;;  %v14106_v23 = vpop.f32.mrf.mxu0 }
 0x118   : > { %15779 = vst [vmem:[#allocation133_spill] sm:$0xff] %v14082_v28  ;;  %v14091_v30 = vadd.f32 %v13821_v51, %v638_v60  ;;  %v4973_v45 = vrot.slane %v898_v26, 1  ;;  %v4975_v8 = vrot.slane %v899_v12, 1  ;;  %v14099_v16 = vpack.c.bf16 %v898_v26, %v897_v57  ;;  %v11732_v28 = vld [vmem:[%s12821_s26 + $0x1b8] sm:$0xff]  }
 0x119   : > { %15780 = vst [vmem:[#allocation134_spill] sm:$0xff] %v14095_v55  ;;  %v3339_v44 = vand.u32 15, %v1803_v27  ;;  %vm4227_vm4 = vcmp.lt.s32.totalorder %v3325_v31, 15  ;;  %v900_v36 = vmax.f32 %v772_v2, 0.0  ;;  %v14103_v60 = vadd.f32 %v12263_v15, %v14021_v49  ;;  %v14120_v49 = vld [vmem:[%s12821_s26 + $0x1c0] sm:$0xff]   ;;  %v14122_v15 = vpop.f32.mrf.mxu1 }
 0x11a   : > { %15781 = vst [vmem:[#allocation135_spill] sm:$0xff] %v14099_v16  ;;  %v15497_v34 = vmax.f32 %v14091_v30, 0.0  ;;  %v4974_v59 = vsel %vm15504_vm1, %v4971_v43, %v4973_v45  ;;  %v4976_v37 = vsel %vm15504_vm1, %v4973_v45, %v4975_v8  ;;  %vm14111_vm13 = vmpackc.low %vm4227_vm4, %vm15768_vm3  ;;  %v15783_v26 = vmov 0  ;;  %12356 = vmatprep.mubr.bf16.mxu1 %v14099_v16  ;;  %v14130_v45 = vpop.f32.mrf.mxu0 }
 0x11b   : > { %15782 = vst [vmem:[#allocation136_spill] sm:$0xff] %v14103_v60  ;;  %v15784_v26 = vsel %vm14111_vm13, 4294967295, %v15783_v26  ;;  %vm4229_vm9 = vcmp.lt.s32.totalorder %v3339_v44, 15  ;;  %v14117_v27 = vadd.f32 %v7040_v52, %v14028_v62  ;;  %v14124_v57 = vpack.c.bf16 %v4976_v37, %v4974_v59 }
 0x11c   : > { %15785 = vst [vmem:[#allocation137_spill] sm:$0xff] %v15784_v26  ;;  %v4977_v43 = vrot.slane %v900_v36, 1  ;;  %v4979_v31 = vrot.slane %v15497_v34, 1  ;;  %v14128_v2 = vpack.c.bf16 %v900_v36, %v899_v12  ;;  %v11321_v60 = vunpack.c.h.bf16 %v14032_v14  ;;  %vm14143_vm4 = vmpackc.low %vm4229_vm9, %vm15768_vm3  ;;  %v14150_v36 = vpop.f32.mrf.mxu0 }
 0x11d   : > { %15786 = vst [vmem:[#allocation138_spill] sm:$0xff] %v14117_v27  ;;  %15787 = vst [vmem:[#allocation139_spill] sm:$0xff] %v14124_v57  ;;  %v11324_v55 = vunpack.c.l.bf16 %v11732_v28  ;;  %v1031_v52 = vadd.s32 872, %v12785_v4  ;;  %v11325_v62 = vunpack.c.h.bf16 %v11732_v28  ;;  %v14134_v27 = vpop.f32.mrf.mxu1  ;;  %12212 = vmatprep.mubr.msk.bf16.mxu0 %vm14111_vm13, %v14124_v57  ;;  %v15789_v12 = vmov 0 }
 0x11e   : > { %15788 = vst [vmem:[#allocation140_spill] sm:$0xff] %v14128_v2  ;;  %v4978_v59 = vsel %vm15504_vm1, %v4975_v8, %v4977_v43  ;;  %v4980_v37 = vsel %vm15504_vm1, %v4977_v43, %v4979_v31  ;;  %v15790_v12 = vsel %vm14143_vm4, 4294967295, %v15789_v12  ;;  %12357 = vmatmul.mubr.bf16.gmra.mxu1 %v14128_v2  ;;  %v11328_v14 = vunpack.c.l.bf16 %v14120_v49  ;;  %v14164_v19 = vpop.f32.mrf.mxu0 }
 0x11f   : > { %15791 = vst [vmem:[#allocation141_spill] sm:$0xff] %v15790_v12  ;;  %v1033_v28 = vadd.s32 888, %v12785_v4  ;;  %v14152_v34 = vpack.c.bf16 %v4980_v37, %v4978_v59  ;;  %v639_v8 = vmul.f32 %v13808_v56, %v11321_v60  ;;  %v640_v43 = vmul.f32 %v13808_v56, %v11324_v55  ;;  %v14156_v44 = vpop.f32.mrf.mxu1 }
 0x120   : > { %v1817_v16 = vand.u32 255, %v1031_v52  ;;  %v641_v26 = vmul.f32 %v13808_v56, %v11325_v62  ;;  %v642_v2 = vmul.f32 %v13808_v56, %v11328_v14  ;;  %v14162_v35 = vadd.f32 %v14051_v50, %v14045_v46 }
 0x121   : > { %15792 = vst [vmem:[#allocation142_spill] sm:$0xff] %v14152_v34  ;;  %v1831_v57 = vand.u32 255, %v1033_v28  ;;  %12213 = vmatmul.mubr.msk.bf16.gmra.mxu0 %vm14143_vm4, %v14152_v34  ;;  %v774_v55 = vadd.f32 %v13821_v51, %v639_v8  ;;  %v775_v60 = vadd.f32 %v13821_v51, %v640_v43  ;;  %v14173_v62 = vadd.f32 %v14072_v9, %v14057_v32  ;;  %v14175_v59 = vpop.f32.mrf.mxu1  ;;  %v11734_v28 = vld [vmem:[%s12821_s26 + $0x1c8] sm:$0xff]   ;;  %v14186_v8 = vpop.f32.mrf.mxu0 }
 0x122   : > { %15793 = vst [vmem:[#allocation143_spill] sm:$0xff] %v14162_v35  ;;  %v3353_v52 = vand.u32 15, %v1817_v16  ;;  %v776_v46 = vadd.f32 %v13821_v51, %v641_v26  ;;  %v14179_v50 = vadd.f32 %v13821_v51, %v642_v2  ;;  %v14183_v14 = vadd.f32 %v14084_v3, %v14078_v38 }
 0x123   : > { %15794 = vst [vmem:[#allocation144_spill] sm:$0xff] %v14173_v62  ;;  %v3367_v37 = vand.u32 15, %v1831_v57  ;;  %v902_v16 = vmax.f32 %v774_v55, 0.0  ;;  %v903_v43 = vmax.f32 %v775_v60, 0.0  ;;  %v14189_v32 = vadd.f32 %v7056_v24, %v14097_v0  ;;  %v14191_v9 = vpop.f32.mrf.mxu1  ;;  %v14195_v38 = vpop.f32.mrf.mxu0 }
 0x124   : > { %15795 = vst [vmem:[#allocation145_spill] sm:$0xff] %v14183_v14  ;;  %v904_v26 = vmax.f32 %v776_v46, 0.0  ;;  %v905_v2 = vmax.f32 %v14179_v50, 0.0  ;;  %v11329_v57 = vunpack.c.h.bf16 %v14120_v49  ;;  %v15797_v55 = vmax.f32 %v14091_v30, 0.0  ;;  %v14206_v50 = vld [vmem:[%s12821_s26 + $0x1d0] sm:$0xff]  }
 0x125   : > { %15796 = vst [vmem:[#allocation146_spill] sm:$0xff] %v14189_v32  ;;  %v4981_v3 = vrot.slane %v902_v16, 1  ;;  %v4983_v14 = vrot.slane %v903_v43, 1  ;;  %v11332_v62 = vunpack.c.l.bf16 %v11734_v28  ;;  %v14201_v0 = vpop.f32.mrf.mxu1  ;;  %v11333_v46 = vunpack.c.h.bf16 %v11734_v28  ;;  %v14208_v12 = vpop.f32.mrf.mxu0 }
 0x126   : > { %v14199_v60 = vpack.c.bf16 %v902_v16, %v15797_v55  ;;  %v4985_v24 = vrot.slane %v904_v26, 1  ;;  %v4987_v32 = vrot.slane %v905_v2, 1  ;;  %v14203_v35 = vpack.c.bf16 %v904_v26, %v903_v43 }
 0x127   : > { %vm15800_vm1 = vcmask 1046528   ;;  %vm15802_vm4 = vcmp.lt.s32.totalorder %v3353_v52, 15  ;;  %v15803_v30 = vmov 0  ;;  %v643_v16 = vmul.f32 %v13808_v56, %v11329_v57  ;;  %v14221_v43 = vpop.f32.mrf.mxu1  ;;  %v14235_v55 = vpop.f32.mrf.mxu0 }
 0x128   : > { %15798 = vst [vmem:[#allocation147_spill] sm:$0xff] %v14199_v60  ;;  %15799 = vst [vmem:[#allocation148_spill] sm:$0xff] %v14203_v35  ;;  %v4982_v49 = vsel %vm15800_vm1, %v4979_v31, %v4981_v3  ;;  %12360 = vmatprep.mubr.bf16.mxu1 %v14199_v60  ;;  %v644_v28 = vmul.f32 %v13808_v56, %v11332_v62  ;;  %v15810_v52 = vmov 0  ;;  %v1035_v57 = vadd.s32 904, %v12785_v4 }
 0x129   : > { %vm15801_vm9 = vmmov %vm15800_vm1  ;;  %12361 = vmatmul.mubr.bf16.gmra.mxu1 %v14203_v35  ;;  %v645_v35 = vmul.f32 %v13808_v56, %v11333_v46  ;;  %v1037_v60 = vadd.s32 920, %v12785_v4 }
 0x12a   : > { %v4984_v34 = vsel %vm15801_vm9, %v4981_v3, %v4983_v14  ;;  %vm14214_vm13 = vmpackc.low %vm15802_vm4, %vm15768_vm3  ;;  %vm15809_vm9 = vcmp.lt.s32.totalorder %v3367_v37, 15  ;;  %v1845_v37 = vand.u32 255, %v1035_v57 }
 0x12b   : > { %v15804_v30 = vsel %vm14214_vm13, 4294967295, %v15803_v30  ;;  %v14223_v26 = vpack.c.bf16 %v4984_v34, %v4982_v49  ;;  %vm15807_vm0 = vmmov %vm15800_vm1  ;;  %v778_v34 = vadd.f32 %v13821_v51, %v643_v16  ;;  %v14242_v49 = vpop.f32.mrf.mxu1 }
 0x12c   : > { %15805 = vst [vmem:[#allocation149_spill] sm:$0xff] %v15804_v30  ;;  %v4986_v31 = vsel %vm15807_vm0, %v4983_v14, %v4985_v24  ;;  %vm15808_vm1 = vmmov %vm15807_vm0  ;;  %v779_v14 = vadd.f32 %v13821_v51, %v644_v28  ;;  %v14259_v30 = vadd.f32 %v14134_v27, %v14130_v45  ;;  %v3381_v57 = vand.u32 15, %v1845_v37 }
 0x12d   : > { %15806 = vst [vmem:[#allocation150_spill] sm:$0xff] %v14223_v26  ;;  %v4988_v3 = vsel %vm15808_vm1, %v4985_v24, %v4987_v32  ;;  %vm14229_vm4 = vmpackc.low %vm15809_vm9, %vm15768_vm3  ;;  %v11336_v24 = vunpack.c.l.bf16 %v14206_v50  ;;  %12216 = vmatprep.mubr.msk.bf16.mxu0 %vm14214_vm13, %v14223_v26  ;;  %v906_v16 = vmax.f32 %v778_v34, 0.0  ;;  %v14261_v46 = vpop.f32.mrf.mxu1  ;;  %v780_v26 = vadd.f32 %v13821_v51, %v645_v35 }
 0x12e   : > { %v15811_v52 = vsel %vm14229_vm4, 4294967295, %v15810_v52  ;;  %v14237_v62 = vpack.c.bf16 %v4988_v3, %v4986_v31  ;;  %v14251_v31 = vadd.f32 %v14122_v15, %v14106_v23  ;;  %v907_v28 = vmax.f32 %v779_v14, 0.0  ;;  %15815 = vst [vmem:[#allocation154_spill] sm:$0xff] %v14259_v30  ;;  %vm15819_vm9 = vmmov %vm15808_vm1 }
 0x12f   : > { %15812 = vst [vmem:[#allocation151_spill] sm:$0xff] %v15811_v52  ;;  %v646_v3 = vmul.f32 %v13808_v56, %v11336_v24  ;;  %v1859_v23 = vand.u32 255, %v1037_v60  ;;  %v14266_v15 = vadd.f32 %v14156_v44, %v14150_v36  ;;  %v4989_v34 = vrot.slane %v906_v16, 1  ;;  %v14273_v45 = vpop.f32.mrf.mxu1  ;;  %v11736_v36 = vld [vmem:[%s12821_s26 + $0x1d8] sm:$0xff]  }
 0x130   : > { %15813 = vst [vmem:[#allocation152_spill] sm:$0xff] %v14237_v62  ;;  %15814 = vst [vmem:[#allocation153_spill] sm:$0xff] %v14251_v31  ;;  %12217 = vmatmul.mubr.msk.bf16.gmra.mxu0 %vm14229_vm4, %v14237_v62  ;;  %v14268_v31 = vpop.f32.mrf.mxu0  ;;  %v4991_v14 = vrot.slane %v907_v28, 1  ;;  %v14270_v24 = vpack.c.bf16 %v906_v16, %v905_v2  ;;  %vm4235_vm0 = vcmp.lt.s32.totalorder %v3381_v57, 15  ;;  %v908_v37 = vmax.f32 %v780_v26, 0.0 }
 0x131   : > { %15816 = vst [vmem:[#allocation155_spill] sm:$0xff] %v14266_v15  ;;  %v781_v27 = vadd.f32 %v13821_v51, %v646_v3  ;;  %v3395_v30 = vand.u32 15, %v1859_v23  ;;  %v14277_v35 = vadd.f32 %v14175_v59, %v14164_v19  ;;  %v4990_v60 = vsel %vm15808_vm1, %v4987_v32, %v4989_v34  ;;  %vm14285_vm4 = vmpackc.low %vm4235_vm0, %vm15768_vm3  ;;  %v14292_v3 = vld [vmem:[%s12821_s26 + $0x1e0] sm:$0xff]   ;;  %v14294_v19 = vpop.f32.mrf.mxu1 }
 0x132   : > { %15817 = vst [vmem:[#allocation156_spill] sm:$0xff] %v14270_v24  ;;  %v14280_v44 = vpop.f32.mrf.mxu0  ;;  %v4992_v15 = vsel %vm15819_vm9, %v4989_v34, %v4991_v14  ;;  %v15820_v2 = vmov 0  ;;  %12364 = vmatprep.mubr.bf16.mxu1 %v14270_v24  ;;  %v11337_v16 = vunpack.c.h.bf16 %v14206_v50  ;;  %v4993_v32 = vrot.slane %v908_v37, 1  ;;  %vm15825_vm0 = vmmov %vm15808_vm1 }
 0x133   : > { %15818 = vst [vmem:[#allocation157_spill] sm:$0xff] %v14277_v35  ;;  %v15821_v2 = vsel %vm14285_vm4, 4294967295, %v15820_v2  ;;  %v909_v26 = vmax.f32 %v781_v27, 0.0  ;;  %v14296_v59 = vpack.c.bf16 %v4992_v15, %v4990_v60  ;;  %vm4237_vm13 = vcmp.lt.s32.totalorder %v3395_v30, 15  ;;  %v14303_v27 = vpop.f32.mrf.mxu1  ;;  %vm15826_vm1 = vmmov %vm15825_vm0 }
 0x134   : > { %15822 = vst [vmem:[#allocation158_spill] sm:$0xff] %v15821_v2  ;;  %v14298_v57 = vpack.c.bf16 %v908_v37, %v907_v28  ;;  %v14300_v23 = vpop.f32.mrf.mxu0  ;;  %v11340_v35 = vunpack.c.l.bf16 %v11736_v36  ;;  %v11341_v52 = vunpack.c.h.bf16 %v11736_v36  ;;  %v647_v24 = vmul.f32 %v13808_v56, %v11337_v16  ;;  %vm14318_vm9 = vmpackc.low %vm4237_vm13, %vm15768_vm3 }
 0x135   : > { %15823 = vst [vmem:[#allocation159_spill] sm:$0xff] %v14296_v59  ;;  %v4995_v34 = vrot.slane %v909_v26, 1  ;;  %12220 = vmatprep.mubr.msk.bf16.mxu0 %vm14285_vm4, %v14296_v59  ;;  %v4994_v50 = vsel %vm15825_vm0, %v4991_v14, %v4993_v32  ;;  %v1039_v28 = vadd.s32 936, %v12785_v4  ;;  %v11344_v15 = vunpack.c.l.bf16 %v14292_v3  ;;  %v14325_v59 = vpop.f32.mrf.mxu1 }
 0x136   : > { %15824 = vst [vmem:[#allocation160_spill] sm:$0xff] %v14298_v57  ;;  %12365 = vmatmul.mubr.bf16.gmra.mxu1 %v14298_v57  ;;  %v1041_v37 = vadd.s32 952, %v12785_v4  ;;  %v14313_v60 = vpop.f32.mrf.mxu0  ;;  %v15827_v16 = vmov 0  ;;  %v648_v14 = vmul.f32 %v13808_v56, %v11340_v35  ;;  %v782_v57 = vadd.f32 %v13821_v51, %v647_v24 }
 0x137   : > { %v4996_v36 = vsel %vm15826_vm1, %v4993_v32, %v4995_v34  ;;  %v15828_v16 = vsel %vm14318_vm9, 4294967295, %v15827_v16  ;;  %v649_v2 = vmul.f32 %v13808_v56, %v11341_v52  ;;  %v1873_v39 = vand.u32 255, %v1039_v28  ;;  %v14336_v24 = vpop.f32.mrf.mxu1  ;;  %vm15835_vm1 = vmmov %vm15825_vm0 }
 0x138   : > { %15829 = vst [vmem:[#allocation161_spill] sm:$0xff] %v15828_v16  ;;  %v14327_v62 = vpack.c.bf16 %v4996_v36, %v4994_v50  ;;  %v650_v58 = vmul.f32 %v13808_v56, %v11344_v15  ;;  %v1887_v32 = vand.u32 255, %v1041_v37  ;;  %v783_v30 = vadd.f32 %v13821_v51, %v648_v14  ;;  %v11738_v36 = vld [vmem:[%s12821_s26 + $0x1e8] sm:$0xff]  }
 0x139   : > { %v910_v20 = vmax.f32 %v782_v57, 0.0  ;;  %v784_v40 = vadd.f32 %v13821_v51, %v649_v2  ;;  %v14334_v35 = vadd.f32 %v14191_v9, %v14186_v8  ;;  %v3409_v52 = vand.u32 15, %v1873_v39  ;;  %v14348_v2 = vpop.f32.mrf.mxu0  ;;  %v14353_v14 = vpop.f32.mrf.mxu1 }
 0x13a   : > { %15830 = vst [vmem:[#allocation162_spill] sm:$0xff] %v14327_v62  ;;  %12221 = vmatmul.mubr.msk.bf16.gmra.mxu0 %vm14318_vm9, %v14327_v62  ;;  %v14342_v50 = vadd.f32 %v13821_v51, %v650_v58  ;;  %v3423_v28 = vand.u32 15, %v1887_v32  ;;  %v14346_v57 = vadd.f32 %v14201_v0, %v14195_v38  ;;  %v911_v15 = vmax.f32 %v783_v30, 0.0 }
 0x13b   : > { %15831 = vst [vmem:[#allocation163_spill] sm:$0xff] %v14334_v35  ;;  %v4997_v8 = vrot.slane %v910_v20, 1  ;;  %v14350_v9 = vpack.c.bf16 %v910_v20, %v909_v26  ;;  %v912_v37 = vmax.f32 %v784_v40, 0.0  ;;  %vm4239_vm13 = vcmp.lt.s32.totalorder %v3409_v52, 15  ;;  %v14360_v38 = vpop.f32.mrf.mxu0  ;;  %v14366_v26 = vpop.f32.mrf.mxu1 }
 0x13c   : > { %15832 = vst [vmem:[#allocation164_spill] sm:$0xff] %v14346_v57  ;;  %v913_v39 = vmax.f32 %v14342_v50, 0.0  ;;  %v14358_v58 = vadd.f32 %v14221_v43, %v14208_v12  ;;  %v4999_v32 = vrot.slane %v911_v15, 1  ;;  %v14370_v50 = vadd.f32 %v14242_v49, %v14235_v55 }
 0x13d   : > { %15833 = vst [vmem:[#allocation165_spill] sm:$0xff] %v14350_v9  ;;  %v4998_v0 = vsel %vm15835_vm1, %v4995_v34, %v4997_v8  ;;  %12368 = vmatprep.mubr.bf16.mxu1 %v14350_v9  ;;  %v5001_v40 = vrot.slane %v912_v37, 1  ;;  %v14364_v20 = vpack.c.bf16 %v912_v37, %v911_v15  ;;  %v11345_v12 = vunpack.c.h.bf16 %v14292_v3  ;;  %v14376_v57 = vpop.f32.mrf.mxu0  ;;  %vm15838_vm1 = vmmov %vm15825_vm0  ;;  %v14388_v3 = vpop.f32.mrf.mxu1 }
 0x13e   : > { %15834 = vst [vmem:[#allocation166_spill] sm:$0xff] %v14358_v58  ;;  %v5003_v30 = vrot.slane %v913_v39, 1  ;;  %15837 = vst [vmem:[#allocation168_spill] sm:$0xff] %v14370_v50  ;;  %v11348_v43 = vunpack.c.l.bf16 %v11738_v36  ;;  %v14374_v58 = vld [vmem:[%s12821_s26 + $0x1f0] sm:$0xff]   ;;  %v5000_v34 = vsel %vm15838_vm1, %v4997_v8, %v4999_v32  ;;  %v15839_v15 = vmov 0 }
 0x13f   : > { %15836 = vst [vmem:[#allocation167_spill] sm:$0xff] %v14364_v20  ;;  %vm14381_vm0 = vmpackc.low %vm4239_vm13, %vm15768_vm3  ;;  %12369 = vmatmul.mubr.bf16.gmra.mxu1 %v14364_v20  ;;  %v11349_v55 = vunpack.c.h.bf16 %v11738_v36  ;;  %v1043_v49 = vadd.s32 968, %v12785_v4  ;;  %v14390_v50 = vpack.c.bf16 %v5000_v34, %v4998_v0  ;;  %v15846_v52 = vmov 0  ;;  %v14401_v20 = vpop.f32.mrf.mxu0 }
 0x140   : > { %v15840_v15 = vsel %vm14381_vm0, 4294967295, %v15839_v15  ;;  %vm15842_vm9 = vmmov %vm15838_vm1  ;;  %v651_v8 = vmul.f32 %v13808_v56, %v11345_v12  ;;  %v11352_v0 = vunpack.c.l.bf16 %v14374_v58  ;;  %v14434_v16 = vadd.f32 %v14294_v19, %v14300_v23 }
 0x141   : > { %15841 = vst [vmem:[#allocation169_spill] sm:$0xff] %v15840_v15  ;;  %v5002_v37 = vsel %vm15842_vm9, %v4999_v32, %v5001_v40  ;;  %15843 = vst [vmem:[#allocation170_spill] sm:$0xff] %v14390_v50  ;;  %v652_v32 = vmul.f32 %v13808_v56, %v11348_v43  ;;  %v1901_v9 = vand.u32 255, %v1043_v49  ;;  %v653_v34 = vmul.f32 %v13808_v56, %v11349_v55 }
 0x142   : > { %vm15844_vm4 = vmmov %vm15838_vm1  ;;  %vm15845_vm1 = vcmp.lt.s32.totalorder %v3423_v28, 15  ;;  %12224 = vmatprep.mubr.msk.bf16.mxu0 %vm14381_vm0, %v14390_v50  ;;  %v786_v28 = vadd.f32 %v13821_v51, %v651_v8  ;;  %v1045_v43 = vadd.s32 984, %v12785_v4  ;;  %v654_v49 = vmul.f32 %v13808_v56, %v11352_v0  ;;  %15852 = vst [vmem:[#allocation175_spill] sm:$0xff] %v14434_v16 }
 0x143   : > { %v5004_v35 = vsel %vm15844_vm4, %v5001_v40, %v5003_v30  ;;  %vm14395_vm12 = vmpackc.low %vm15845_vm1, %vm15768_vm3  ;;  %v14407_v40 = vpop.f32.mrf.mxu1  ;;  %v787_v12 = vadd.f32 %v13821_v51, %v652_v32  ;;  %v3437_v55 = vand.u32 15, %v1901_v9  ;;  %v788_v8 = vadd.f32 %v13821_v51, %v653_v34 }
 0x144   : > { %v15847_v52 = vsel %vm14395_vm12, 4294967295, %v15846_v52  ;;  %v14403_v36 = vpack.c.bf16 %v5004_v35, %v5002_v37  ;;  %v14417_v35 = vadd.f32 %v14261_v46, %v14268_v31  ;;  %v14419_v37 = vpop.f32.mrf.mxu0  ;;  %v14428_v32 = vadd.f32 %v14273_v45, %v14280_v44  ;;  %v11740_v44 = vld [vmem:[%s12821_s26 + $0x1f8] sm:$0xff]   ;;  %vm15856_vm13 = vmmov %vm15842_vm9 }
 0x145   : > { %15848 = vst [vmem:[#allocation171_spill] sm:$0xff] %v15847_v52  ;;  %v14430_v15 = vpop.f32.mrf.mxu1  ;;  %v914_v31 = vmax.f32 %v786_v28, 0.0  ;;  %v915_v46 = vmax.f32 %v787_v12, 0.0  ;;  %vm4243_vm4 = vcmp.lt.s32.totalorder %v3437_v55, 15  ;;  %v14439_v56 = vadd.f32 %v13821_v51, %v654_v49  ;;  %vm15861_vm0 = vmmov %vm15842_vm9  ;;  %v12715_v55 = vld [vmem:[%s15334_s1] ss:$0 sm:$0xff] }
 0x146   : > { %15849 = vst [vmem:[#allocation172_spill] sm:$0xff] %v14403_v36  ;;  %15850 = vst [vmem:[#allocation173_spill] sm:$0xff] %v14417_v35  ;;  %12225 = vmatmul.mubr.msk.bf16.gmra.mxu0 %vm14395_vm12, %v14403_v36  ;;  %v1915_v35 = vand.u32 255, %v1045_v43  ;;  %v14436_v52 = vpop.f32.mrf.mxu0  ;;  %v916_v9 = vmax.f32 %v788_v8, 0.0  ;;  %v14443_v45 = vadd.f32 %v14303_v27, %v14313_v60  ;;  %v11353_v49 = vunpack.c.h.bf16 %v14374_v58 }
 0x147   : > { %15851 = vst [vmem:[#allocation174_spill] sm:$0xff] %v14428_v32  ;;  %v14446_v0 = vpop.f32.mrf.mxu1  ;;  %v5005_v34 = vrot.slane %v914_v31, 1  ;;  %v5007_v28 = vrot.slane %v915_v46, 1  ;;  %v14448_v12 = vpack.c.bf16 %v914_v31, %v913_v39  ;;  %v917_v43 = vmax.f32 %v14439_v56, 0.0  ;;  %vm14460_vm1 = vmpackc.low %vm4243_vm4, %vm15768_vm3 }
 0x148   : > { %15853 = vst [vmem:[#allocation176_spill] sm:$0xff] %v14443_v45  ;;  %v3451_v19 = vand.u32 15, %v1915_v35  ;;  %v14450_v23 = vpop.f32.mrf.mxu0  ;;  %v5009_v16 = vrot.slane %v916_v9, 1  ;;  %v14453_v51 = vpack.c.bf16 %v916_v9, %v915_v46  ;;  %v15857_v8 = vmov 0 }
 0x149   : > { %15854 = vst [vmem:[#allocation177_spill] sm:$0xff] %v14448_v12  ;;  %v5006_v27 = vsel %vm15842_vm9, %v5003_v30, %v5005_v34  ;;  %v5008_v60 = vsel %vm15856_vm13, %v5005_v34, %v5007_v28  ;;  %v15858_v8 = vsel %vm14460_vm1, 4294967295, %v15857_v8  ;;  %12372 = vmatprep.mubr.bf16.mxu1 %v14448_v12  ;;  %v11356_v39 = vunpack.c.l.bf16 %v11740_v44  ;;  %v14465_v31 = vpop.f32.mrf.mxu1  ;;  %vm15864_vm13 = vmmov %vm15861_vm0 }
 0x14a   : > { %15855 = vst [vmem:[#allocation178_spill] sm:$0xff] %v14453_v51  ;;  %15859 = vst [vmem:[#allocation179_spill] sm:$0xff] %v15858_v8  ;;  %vm4245_vm12 = vcmp.lt.s32.totalorder %v3451_v19, 15  ;;  %v6543_v35 = vpop.f32.mrf.mxu0  ;;  %v14467_v46 = vpack.c.bf16 %v5008_v60, %v5006_v27  ;;  %v5010_v58 = vsel %vm15861_vm0, %v5007_v28, %v5009_v16  ;;  %v5011_v30 = vrot.slane %v917_v43, 1  ;;  %12373 = vmatmul.mubr.bf16.gmra.mxu1 %v14453_v51 }
 0x14b   : > { %v11357_v56 = vunpack.c.h.bf16 %v11740_v44  ;;  %v655_v9 = vmul.f32 %v12715_v55, %v11353_v49  ;;  %v656_v34 = vmul.f32 %v12715_v55, %v11356_v39  ;;  %v1047_v45 = vadd.s32 1000, %v12785_v4  ;;  %v7149_v12 = vpop.f32.mrf.mxu1  ;;  %vm14482_vm4 = vmpackc.low %vm4245_vm12, %vm15768_vm3 }
 0x14c   : > { %15860 = vst [vmem:[#allocation180_spill] sm:$0xff] %v14467_v46  ;;  %v1049_v32 = vadd.s32 1016, %v12785_v4  ;;  %12228 = vmatprep.mubr.msk.bf16.mxu0 %vm14460_vm1, %v14467_v46  ;;  %v5012_v28 = vsel %vm15861_vm0, %v5009_v16, %v5011_v30  ;;  %v15862_v44 = vmov 0  ;;  %v14488_v49 = vadd.f32 %v14325_v59, %v14348_v2  ;;  %v12716_v4 = vld [vmem:[%s15335_s2] ss:$0 sm:$0xff]  ;;  %v12146_v8 = vpop.f32.mrf.mxu0 }
 0x14d   : > { %v15863_v44 = vsel %vm14482_vm4, 4294967295, %v15862_v44  ;;  %v657_v27 = vmul.f32 %v12715_v55, %v11357_v56  ;;  %v14490_v60 = vpack.c.bf16 %v5012_v28, %v5010_v58  ;;  %v790_v39 = vadd.f32 %v12716_v4, %v655_v9  ;;  %v12291_v19 = vpop.f32.mrf.mxu1 }
 0x14e   : > { %v791_v51 = vadd.f32 %v12716_v4, %v656_v34  ;;  %v1929_v16 = vand.u32 255, %v1047_v45  ;;  %v1943_v36 = vand.u32 255, %v1049_v32  ;;  %v12728_v50 = vmov 0.0   ;;  %v6556_v55 = vpop.f32.mrf.mxu0 }
 0x14f   : > { %v792_v46 = vadd.f32 %v12716_v4, %v657_v27  ;;  %v5019_v62 = vrot.slane %v12728_v50, 1  ;;  %v14497_v56 = vadd.f32 %v14336_v24, %v14360_v38  ;;  %12229 = vmatmul.mubr.msk.bf16.gmra.mxu0 %vm14482_vm4, %v14490_v60  ;;  %v918_v59 = vmax.f32 %v790_v39, 0.0  ;;  %v7152_v9 = vpop.f32.mrf.mxu1 }
 0x150   : > { %v919_v2 = vmax.f32 %v791_v51, 0.0  ;;  %v3465_v58 = vand.u32 15, %v1929_v16  ;;  %v14504_v45 = vadd.f32 %v14353_v14, %v14376_v57  ;;  %v3479_v34 = vand.u32 15, %v1943_v36  ;;  %v12147_v27 = vpop.f32.mrf.mxu0 }
 0x151   : > { %v920_v32 = vmax.f32 %v792_v46, 0.0  ;;  %v14508_v50 = vadd.f32 %v14366_v26, %v14401_v20  ;;  %v14512_v24 = vadd.f32 %v14388_v3, %v14419_v37  ;;  %v5013_v38 = vrot.slane %v918_v59, 1  ;;  %v12294_v57 = vpop.f32.mrf.mxu1 }
 0x152   : > { %vm4247_vm12 = vcmp.lt.s32.totalorder %v3465_v58, 15  ;;  %v5015_v51 = vrot.slane %v919_v2, 1  ;;  %v14514_v28 = vpack.c.bf16 %v918_v59, %v917_v43  ;;  %vm4249_vm9 = vcmp.lt.s32.totalorder %v3479_v34, 15 }
 0x153   : > { %v5017_v14 = vrot.slane %v920_v32, 1  ;;  %v14516_v4 = vpack.c.bf16 %v920_v32, %v919_v2  ;;  %v14520_v36 = vadd.f32 %v14407_v40, %v14436_v52  ;;  %v5014_v20 = vsel %vm15864_vm13, %v5011_v30, %v5013_v38  ;;  %vm14525_vm4 = vmpackc.low %vm4247_vm12, %vm15768_vm3  ;;  %v6559_v52 = vpop.f32.mrf.mxu0  ;;  %v7165_v40 = vpop.f32.mrf.mxu1 }
 0x154   : > { %v5016_v26 = vsel %vm15861_vm0, %v5013_v38, %v5015_v51  ;;  %12376 = vmatprep.mubr.bf16.mxu1 %v14514_v28  ;;  %v14532_v37 = vadd.f32 %v14430_v15, %v14450_v23  ;;  %v14535_v43 = vadd.f32 %v14446_v0, %v6543_v35  ;;  %vm15867_vm13 = vmmov %vm15861_vm0  ;;  %v14545_v16 = vadd.f32 %v14465_v31, %v12146_v8 }
 0x155   : > { %v14537_v46 = vpack.c.bf16 %v5016_v26, %v5014_v20  ;;  %v5018_v30 = vsel %vm15867_vm13, %v5015_v51, %v5017_v14  ;;  %v5020_v39 = vsel %vm15861_vm0, %v5017_v14, %v5019_v62  ;;  %vm10604_vm12 = vmpackc.low %vm4249_vm9, %vm15768_vm3  ;;  %12377 = vmatmul.mubr.bf16.gmra.mxu1 %v14516_v4  ;;  %v14552_v0 = vadd.f32 %v7149_v12, %v6556_v55  ;;  %v12150_v62 = vpop.f32.mrf.mxu0  ;;  %v12295_v59 = vpop.f32.mrf.mxu1 }
 0x156   : > { %v14547_v15 = vpack.c.bf16 %v5020_v39, %v5018_v30  ;;  %12540 = vmatprep.mubr.msk.bf16.mxu1 %vm12891_vm5, %v12903_v21  ;;  %v14554_v23 = vadd.f32 %v12291_v19, %v12147_v27  ;;  %v14556_v35 = vadd.f32 %v7152_v9, %v6559_v52  ;;  %v14561_v8 = vadd.f32 %v12294_v57, %v12150_v62 }
 0x157   : > { %12232 = vmatprep.mubr.msk.bf16.mxu0 %vm14525_vm4, %v14537_v46  ;;  %v6572_v31 = vpop.f32.mrf.mxu0  ;;  %v7168_v2 = vpop.f32.mrf.mxu1 }
 0x158   : > { %12233 = vmatmul.mubr.msk.bf16.gmra.mxu0 %vm10604_vm12, %v14547_v15  ;;  %v14565_v11 = vadd.f32 %v7165_v40, %v6572_v31 }
 0x159   : > { %12396 = vmatprep.mubr.bf16.mxu0 %v12883_v7  ;;  %v12151_v21 = vpop.f32.mrf.mxu0  ;;  %v12298_v58 = vpop.f32.mrf.mxu1 }
 0x15a   : > { %v14567_v12 = vadd.f32 %v12295_v59, %v12151_v21  ;;  %v15889_v59 = vld [vmem:[#allocation16_spill] sm:$0xff] }
 0x15b   : > { %v6575_v19 = vpop.f32.mrf.mxu0  ;;  %v7181_v9 = vpop.f32.mrf.mxu1 }
 0x15c   : > { %v14572_v55 = vadd.f32 %v7168_v2, %v6575_v19 }
 0x15d   : > { %12541 = vmatmul.mubr.msk.bf16.vlgmr.msra.gmra.mxu1 %vm12917_vm6, %v12937_v42  ;;  %v12154_v7 = vpop.f32.mrf.mxu0  ;;  %v12299_v32 = vpop.f32.mrf.mxu1 }
 0x15e   : > { %12544 = vmatprep.mubr.msk.bf16.mxu1 %vm12933_vm8, %v12971_v1  ;;  %v14579_v34 = vadd.f32 %v12298_v58, %v12154_v7 }
 0x15f   : > { %v6588_v38 = vpop.f32.mrf.mxu0  ;;  %v7184_v51 = vpop.f32.mrf.mxu1 }
 0x160   : > { %12397 = vmatmul.mubr.bf16.vlgmr.msra.gmra.mxu0 %v12895_v13  ;;  %v14581_v27 = vadd.f32 %v7181_v9, %v6588_v38  ;;  %v15875_v9 = vld [vmem:[#allocation5_spill] sm:$0xff] }
 0x161   : > { %12400 = vmatprep.mubr.bf16.mxu0 %v12953_v53  ;;  %v12155_v33 = vpop.f32.mrf.mxu0  ;;  %v12302_v42 = vpop.f32.mrf.mxu1 }
 0x162   : > { %v14586_v41 = vadd.f32 %v12299_v32, %v12155_v33 }
 0x163   : > { %v6591_v13 = vpop.f32.mrf.mxu0  ;;  %v7197_v53 = vpop.f32.mrf.mxu1 }
 0x164   : > { %v14591_v1 = vadd.f32 %v7184_v51, %v6591_v13  ;;  %v15879_v13 = vld [vmem:[#allocation6_spill] sm:$0xff] }
 0x165   : > { %12545 = vmatmul.mubr.msk.bf16.gmra.mxu1 %vm12977_vm10, %v12993_v22  ;;  %v12158_v57 = vpop.f32.mrf.mxu0  ;;  %v12303_v14 = vpop.f32.mrf.mxu1  ;;  %vm15880_vm5 = vnez %v15879_v13 }
 0x166   : > { %12548 = vmatprep.mubr.msk.bf16.mxu1 %vm12988_vm11, %v13022_v48  ;;  %v14595_v20 = vadd.f32 %v12302_v42, %v12158_v57  ;;  %v15878_v42 = vld [vmem:[#allocation10_spill] sm:$0xff]  ;;  %v15882_v57 = vld [vmem:[#allocation13_spill] sm:$0xff] }
 0x167   : > { %v6604_v6 = vpop.f32.mrf.mxu0  ;;  %v7200_v22 = vpop.f32.mrf.mxu1 }
 0x168   : > { %12401 = vmatmul.mubr.bf16.gmra.mxu0 %v12973_v5  ;;  %v14597_v26 = vadd.f32 %v7197_v53, %v6604_v6 }
 0x169   : > { %12404 = vmatprep.mubr.bf16.mxu0 %v13001_v29  ;;  %v12159_v52 = vpop.f32.mrf.mxu0  ;;  %v12306_v48 = vpop.f32.mrf.mxu1 }
 0x16a   : > { %v14602_v18 = vadd.f32 %v12303_v14, %v12159_v52  ;;  %v15883_v14 = vld [vmem:[#allocation9_spill] sm:$0xff]  ;;  %v15886_v52 = vld [vmem:[#allocation8_spill] sm:$0xff] }
 0x16b   : > { %v6607_v5 = vpop.f32.mrf.mxu0  ;;  %v7213_v40 = vpop.f32.mrf.mxu1  ;;  %vm15884_vm6 = vnez %v15883_v14 }
 0x16c   : > { %v14607_v29 = vadd.f32 %v7200_v22, %v6607_v5 }
 0x16d   : > { %12549 = vmatmul.mubr.msk.bf16.gmra.mxu1 %vm13032_vm14, %v13059_v17  ;;  %v12162_v30 = vpop.f32.mrf.mxu0  ;;  %v12307_v39 = vpop.f32.mrf.mxu1 }
 0x16e   : > { %12552 = vmatprep.mubr.msk.bf16.mxu1 %vm13051_vm15, %v13083_v47  ;;  %v14611_v62 = vadd.f32 %v12306_v48, %v12162_v30  ;;  %v15871_v47 = vld [vmem:[#allocation7_spill] sm:$0xff] }
 0x16f   : > { %v6620_v54 = vpop.f32.mrf.mxu0  ;;  %v7216_v17 = vpop.f32.mrf.mxu1 }
 0x170   : > { %12405 = vmatmul.mubr.bf16.gmra.mxu0 %v13039_v61  ;;  %15868 = vst [vmem:[#allocation181_spill] sm:$0xff] %v14611_v62  ;;  %v14616_v10 = vadd.f32 %v7213_v40, %v6620_v54  ;;  %v15887_v40 = vld [vmem:[#allocation11_spill] sm:$0xff]  ;;  %v16137_v62 = vld [vmem:[#allocation158_spill] sm:$0xff] }
 0x171   : > { %12408 = vmatprep.mubr.bf16.mxu0 %v13062_v25  ;;  %v12163_v61 = vpop.f32.mrf.mxu0  ;;  %v12310_v2 = vpop.f32.mrf.mxu1  ;;  %v15874_v25 = vld [vmem:[#allocation2_spill] sm:$0xff] }
 0x172   : > { %15870 = vst [vmem:[#allocation3_spill] sm:$0xff] %v14616_v10  ;;  %v14621_v21 = vadd.f32 %v12307_v39, %v12163_v61  ;;  %v15893_v61 = vld [vmem:[#allocation19_spill] sm:$0xff] }
 0x173   : > { %v6623_v19 = vpop.f32.mrf.mxu0  ;;  %v7229_v58 = vpop.f32.mrf.mxu1 }
 0x174   : > { %15873 = vst [vmem:[#allocation7_spill] sm:$0xff] %v14621_v21  ;;  %v14625_v7 = vadd.f32 %v7216_v17, %v6623_v19  ;;  %v16127_v21 = vld [vmem:[#allocation126_spill] sm:$0xff] }
 0x175   : > { %12553 = vmatmul.mubr.msk.bf16.gmra.mxu1 %vm13075_vm2, %v13100_v63  ;;  %v12166_v32 = vpop.f32.mrf.mxu0  ;;  %v12311_v63 = vpop.f32.mrf.mxu1 }
 0x176   : > { %12556 = vmatprep.mubr.msk.bf16.mxu1 %vm13094_vm7, %v15871_v47  ;;  %15876 = vst [vmem:[#allocation4_spill] sm:$0xff] %v14625_v7  ;;  %v14627_v38 = vadd.f32 %v12310_v2, %v12166_v32  ;;  %v15890_v47 = vld [vmem:[#allocation12_spill] sm:$0xff]  ;;  %v15894_v2 = vld [vmem:[#allocation15_spill] sm:$0xff]  ;;  %v16125_v7 = vld [vmem:[#allocation149_spill] sm:$0xff] }
 0x177   : > { %v6636_v51 = vpop.f32.mrf.mxu0  ;;  %v7232_v33 = vpop.f32.mrf.mxu1  ;;  %vm15891_vm8 = vnez %v15890_v47  ;;  %vm15895_vm10 = vnez %v15894_v2  ;;  %v15909_v47 = vld [vmem:[#allocation20_spill] sm:$0xff]  ;;  %v15910_v2 = vld [vmem:[#allocation23_spill] sm:$0xff] }
 0x178   : > { %12409 = vmatmul.mubr.bf16.gmra.mxu0 %v15874_v25  ;;  %15877 = vst [vmem:[#allocation2_spill] sm:$0xff] %v14627_v38  ;;  %v14632_v53 = vadd.f32 %v7229_v58, %v6636_v51  ;;  %v15898_v51 = vld [vmem:[#allocation17_spill] sm:$0xff]  ;;  %v16124_v38 = vld [vmem:[#allocation152_spill] sm:$0xff] }
 0x179   : > { %12412 = vmatprep.mubr.bf16.mxu0 %v15875_v9  ;;  %v12167_v6 = vpop.f32.mrf.mxu0  ;;  %v12314_v48 = vpop.f32.mrf.mxu1  ;;  %v15897_v9 = vld [vmem:[#allocation14_spill] sm:$0xff] }
 0x17a   : > { %15881 = vst [vmem:[#allocation5_spill] sm:$0xff] %v14632_v53  ;;  %v14637_v22 = vadd.f32 %v12311_v63, %v12167_v6 }
 0x17b   : > { %v6639_v5 = vpop.f32.mrf.mxu0  ;;  %v7245_v39 = vpop.f32.mrf.mxu1 }
 0x17c   : > { %15885 = vst [vmem:[#allocation10_spill] sm:$0xff] %v14637_v22  ;;  %v14641_v30 = vadd.f32 %v7232_v33, %v6639_v5  ;;  %v15902_v5 = vld [vmem:[#allocation18_spill] sm:$0xff]  ;;  %v16123_v22 = vld [vmem:[#allocation125_spill] sm:$0xff] }
 0x17d   : > { %12557 = vmatmul.mubr.msk.bf16.gmra.mxu1 %vm15880_vm5, %v15878_v42  ;;  %v12170_v54 = vpop.f32.mrf.mxu0  ;;  %v12315_v17 = vpop.f32.mrf.mxu1  ;;  %vm15903_vm11 = vnez %v15902_v5 }
 0x17e   : > { %12560 = vmatprep.mubr.msk.bf16.mxu1 %vm15884_vm6, %v15882_v57  ;;  %15888 = vst [vmem:[#allocation6_spill] sm:$0xff] %v14641_v30  ;;  %v14646_v31 = vadd.f32 %v12314_v48, %v12170_v54  ;;  %v16121_v30 = vld [vmem:[#allocation141_spill] sm:$0xff] }
 0x17f   : > { %v6652_v25 = vpop.f32.mrf.mxu0  ;;  %v7248_v19 = vpop.f32.mrf.mxu1 }
 0x180   : > { %12413 = vmatmul.mubr.bf16.gmra.mxu0 %v15886_v52  ;;  %15892 = vst [vmem:[#allocation13_spill] sm:$0xff] %v14646_v31  ;;  %v14651_v58 = vadd.f32 %v7245_v39, %v6652_v25  ;;  %v15901_v52 = vld [vmem:[#allocation22_spill] sm:$0xff]  ;;  %v15906_v39 = vld [vmem:[#allocation21_spill] sm:$0xff] }
 0x181   : > { %12416 = vmatprep.mubr.bf16.mxu0 %v15887_v40  ;;  %v12171_v32 = vpop.f32.mrf.mxu0  ;;  %v12318_v63 = vpop.f32.mrf.mxu1  ;;  %v15905_v40 = vld [vmem:[#allocation24_spill] sm:$0xff]  ;;  %vm15907_vm14 = vnez %v15906_v39  ;;  %v15917_v39 = vld [vmem:[#allocation26_spill] sm:$0xff] }
 0x182   : > { %15896 = vst [vmem:[#allocation9_spill] sm:$0xff] %v14651_v58  ;;  %v14655_v33 = vadd.f32 %v12315_v17, %v12171_v32  ;;  %v16120_v31 = vld [vmem:[#allocation150_spill] sm:$0xff] }
 0x183   : > { %v6655_v42 = vpop.f32.mrf.mxu0  ;;  %v7261_v13 = vpop.f32.mrf.mxu1 }
 0x184   : > { %15899 = vst [vmem:[#allocation8_spill] sm:$0xff] %v14655_v33  ;;  %v14657_v57 = vadd.f32 %v7248_v19, %v6655_v42  ;;  %v15913_v42 = vld [vmem:[#allocation28_spill] sm:$0xff] }
 0x185   : > { %12561 = vmatmul.mubr.msk.bf16.gmra.mxu1 %vm15891_vm8, %v15889_v59  ;;  %v12174_v14 = vpop.f32.mrf.mxu0  ;;  %v12319_v6 = vpop.f32.mrf.mxu1  ;;  %v16117_v33 = vld [vmem:[#allocation140_spill] sm:$0xff] }
 0x186   : > { %12564 = vmatprep.mubr.msk.bf16.mxu1 %vm15895_vm10, %v15893_v61  ;;  %15900 = vst [vmem:[#allocation11_spill] sm:$0xff] %v14657_v57  ;;  %v14662_v48 = vadd.f32 %v12318_v63, %v12174_v14  ;;  %v15914_v14 = vld [vmem:[#allocation25_spill] sm:$0xff] }
 0x187   : > { %v6668_v54 = vpop.f32.mrf.mxu0  ;;  %v7264_v59 = vpop.f32.mrf.mxu1  ;;  %vm15915_vm15 = vnez %v15914_v14  ;;  %v15920_v14 = vld [vmem:[#allocation31_spill] sm:$0xff] }
 0x188   : > { %12417 = vmatmul.mubr.bf16.gmra.mxu0 %v15897_v9  ;;  %15904 = vst [vmem:[#allocation16_spill] sm:$0xff] %v14662_v48  ;;  %v14667_v17 = vadd.f32 %v7261_v13, %v6668_v54 }
 0x189   : > { %12420 = vmatprep.mubr.bf16.mxu0 %v15898_v51  ;;  %v12175_v61 = vpop.f32.mrf.mxu0  ;;  %v12322_v9 = vpop.f32.mrf.mxu1  ;;  %v15544_v51 = vmov 0.0|0.0  }
 0x18a   : > { %15908 = vst [vmem:[#allocation12_spill] sm:$0xff] %v14667_v17  ;;  %v14671_v25 = vadd.f32 %v12319_v6, %v12175_v61 }
 0x18b   : > { %v6671_v19 = vpop.f32.mrf.mxu0  ;;  %v7277_v63 = vpop.f32.mrf.mxu1 }
 0x18c   : > { %15911 = vst [vmem:[#allocation19_spill] sm:$0xff] %v14671_v25  ;;  %v14673_v32 = vadd.f32 %v7264_v59, %v6671_v19  ;;  %v16067_v25 = vld [vmem:[#allocation102_spill] sm:$0xff] }
 0x18d   : > { %12565 = vmatmul.mubr.msk.bf16.gmra.mxu1 %vm15903_vm11, %v15901_v52  ;;  %v12178_v13 = vpop.f32.mrf.mxu0  ;;  %v12323_v52 = vpop.f32.mrf.mxu1 }
 0x18e   : > { %12568 = vmatprep.mubr.msk.bf16.mxu1 %vm15907_vm14, %v15905_v40  ;;  %15912 = vst [vmem:[#allocation15_spill] sm:$0xff] %v14673_v32  ;;  %v14679_v5 = vadd.f32 %v12322_v9, %v12178_v13  ;;  %v15924_v13 = vld [vmem:[#allocation34_spill] sm:$0xff] }
 0x18f   : > { %v6684_v6 = vpop.f32.mrf.mxu0  ;;  %v7280_v40 = vpop.f32.mrf.mxu1 }
 0x190   : > { %12421 = vmatmul.mubr.bf16.gmra.mxu0 %v15909_v47  ;;  %15916 = vst [vmem:[#allocation14_spill] sm:$0xff] %v14679_v5  ;;  %v14683_v54 = vadd.f32 %v7277_v63, %v6684_v6  ;;  %v15928_v6 = vld [vmem:[#allocation29_spill] sm:$0xff] }
 0x191   : > { %12424 = vmatprep.mubr.bf16.mxu0 %v15910_v2  ;;  %v12179_v59 = vpop.f32.mrf.mxu0  ;;  %v12326_v47 = vpop.f32.mrf.mxu1 }
 0x192   : > { %15918 = vst [vmem:[#allocation17_spill] sm:$0xff] %v14683_v54  ;;  %v14685_v61 = vadd.f32 %v12323_v52, %v12179_v59 }
 0x193   : > { %v6687_v2 = vpop.f32.mrf.mxu0  ;;  %v7293_v19 = vpop.f32.mrf.mxu1 }
 0x194   : > { %15919 = vst [vmem:[#allocation22_spill] sm:$0xff] %v14685_v61  ;;  %v14690_v9 = vadd.f32 %v7280_v40, %v6687_v2  ;;  %v15929_v61 = vld [vmem:[#allocation32_spill] sm:$0xff] }
 0x195   : > { %12569 = vmatmul.mubr.bf16.gmra.mxu1 %v15544_v51  ;;  %v12182_v5 = vpop.f32.mrf.mxu0 }
 0x196   : > { %12572 = vmatprep.mubr.msk.bf16.mxu1 %vm15915_vm15, %v15913_v42  ;;  %v15921_v42 = vld [vmem:[#allocation27_spill] sm:$0xff]  ;;  %15923 = vst [vmem:[#allocation18_spill] sm:$0xff] %v14690_v9  ;;  %v14695_v63 = vadd.f32 %v12326_v47, %v12182_v5  ;;  %v15932_v9 = vld [vmem:[#allocation37_spill] sm:$0xff]  ;;  %v15936_v5 = vld [vmem:[#allocation40_spill] sm:$0xff] }
 0x197   : > { %vm15922_vm2 = vnez %v15921_v42  ;;  %v6700_v52 = vpop.f32.mrf.mxu0  ;;  %v15937_v47 = vld [vmem:[#allocation36_spill] sm:$0xff] }
 0x198   : > { %12425 = vmatmul.mubr.bf16.gmra.mxu0 %v15544_v51  ;;  %v15925_v51 = vld [vmem:[#allocation30_spill] sm:$0xff]  ;;  %15927 = vst [vmem:[#allocation24_spill] sm:$0xff] %v14695_v63  ;;  %v14699_v54 = vadd.f32 %v7293_v19, %v6700_v52  ;;  %vm15938_vm9 = vnez %v15937_v47  ;;  %v15939_v63 = vld [vmem:[#allocation35_spill] sm:$0xff] }
 0x199   : > { %12428 = vmatprep.mubr.bf16.mxu0 %v15917_v39  ;;  %vm15926_vm7 = vnez %v15925_v51  ;;  %v12327_v39 = vpop.f32.mrf.mxu1  ;;  %v12183_v42 = vpop.f32.mrf.mxu0  ;;  %v15933_v51 = vld [vmem:[#allocation33_spill] sm:$0xff]  ;;  %v15940_v52 = vld [vmem:[#allocation38_spill] sm:$0xff] }
 0x19a   : > { %15930 = vst [vmem:[#allocation21_spill] sm:$0xff] %v14699_v54  ;;  %vm15934_vm3 = vnez %v15933_v51  ;;  %v15944_v51 = vld [vmem:[#allocation39_spill] sm:$0xff]  ;;  %v15947_v47 = vld [vmem:[#allocation46_spill] sm:$0xff] }
 0x19b   : > { %v7296_v59 = vpop.f32.mrf.mxu1  ;;  %v6703_v40 = vpop.f32.mrf.mxu0  ;;  %vm15945_vm13 = vnez %v15944_v51 }
 0x19d   : > { %12573 = vmatmul.mubr.msk.bf16.gmra.mxu1 %vm15922_vm2, %v15920_v14  ;;  %v14701_v14 = vadd.f32 %v12327_v39, %v12183_v42  ;;  %v12330_v2 = vpop.f32.mrf.mxu1 }
 0x19e   : > { %12576 = vmatprep.mubr.msk.bf16.mxu1 %vm15926_vm7, %v15924_v13  ;;  %v14706_v13 = vadd.f32 %v7296_v59, %v6703_v40  ;;  %v15943_v40 = vld [vmem:[#allocation43_spill] sm:$0xff] }
 0x19f   : > { %15931 = vst [vmem:[#allocation20_spill] sm:$0xff] %v14701_v14 }
 0x1a0   : > { %12429 = vmatmul.mubr.bf16.gmra.mxu0 %v15928_v6  ;;  %15935 = vst [vmem:[#allocation23_spill] sm:$0xff] %v14706_v13  ;;  %v7309_v6 = vpop.f32.mrf.mxu1 }
 0x1a1   : > { %12432 = vmatprep.mubr.bf16.mxu0 %v15929_v61  ;;  %v12186_v61 = vpop.f32.mrf.mxu0 }
 0x1a2   : > { %v12331_v19 = vpop.f32.mrf.mxu1  ;;  %v14713_v39 = vadd.f32 %v12330_v2, %v12186_v61  ;;  %v15951_v61 = vld [vmem:[#allocation41_spill] sm:$0xff] }
 0x1a3   : > { %v6716_v42 = vpop.f32.mrf.mxu0 }
 0x1a4   : > { %15941 = vst [vmem:[#allocation28_spill] sm:$0xff] %v14713_v39  ;;  %v7312_v14 = vpop.f32.mrf.mxu1  ;;  %v14715_v54 = vadd.f32 %v7309_v6, %v6716_v42 }
 0x1a5   : > { %12577 = vmatmul.mubr.msk.bf16.gmra.mxu1 %vm15934_vm3, %v15932_v9  ;;  %v12187_v9 = vpop.f32.mrf.mxu0 }
 0x1a6   : > { %12580 = vmatprep.mubr.msk.bf16.mxu1 %vm15938_vm9, %v15936_v5  ;;  %15942 = vst [vmem:[#allocation25_spill] sm:$0xff] %v14715_v54  ;;  %v12334_v59 = vpop.f32.mrf.mxu1  ;;  %v14720_v5 = vadd.f32 %v12331_v19, %v12187_v9  ;;  %v15952_v54 = vld [vmem:[#allocation44_spill] sm:$0xff] }
 0x1a7   : > { %v6719_v13 = vpop.f32.mrf.mxu0 }
 0x1a8   : > { %12433 = vmatmul.mubr.bf16.gmra.mxu0 %v15939_v63  ;;  %15946 = vst [vmem:[#allocation26_spill] sm:$0xff] %v14720_v5  ;;  %v15948_v63 = vld [vmem:[#allocation42_spill] sm:$0xff]  ;;  %v14725_v2 = vadd.f32 %v7312_v14, %v6719_v13  ;;  %v15955_v5 = vld [vmem:[#allocation49_spill] sm:$0xff]  ;;  %v15959_v14 = vld [vmem:[#allocation52_spill] sm:$0xff] }
 0x1a9   : > { %12436 = vmatprep.mubr.bf16.mxu0 %v15940_v52  ;;  %vm15949_vm0 = vnez %v15948_v63  ;;  %v7325_v52 = vpop.f32.mrf.mxu1  ;;  %v12190_v6 = vpop.f32.mrf.mxu0  ;;  %v15956_v63 = vld [vmem:[#allocation45_spill] sm:$0xff]  ;;  %v15960_v13 = vld [vmem:[#allocation48_spill] sm:$0xff] }
 0x1aa   : > { %15950 = vst [vmem:[#allocation31_spill] sm:$0xff] %v14725_v2  ;;  %v14729_v39 = vadd.f32 %v12334_v59, %v12190_v6  ;;  %vm15957_vm12 = vnez %v15956_v63  ;;  %vm15961_vm5 = vnez %v15960_v13  ;;  %v15963_v59 = vld [vmem:[#allocation47_spill] sm:$0xff]  ;;  %v15970_v13 = vld [vmem:[#allocation58_spill] sm:$0xff] }
 0x1ab   : > { %v12335_v42 = vpop.f32.mrf.mxu1  ;;  %v6732_v51 = vpop.f32.mrf.mxu0  ;;  %v15967_v63 = vld [vmem:[#allocation51_spill] sm:$0xff] }
 0x1ac   : > { %15953 = vst [vmem:[#allocation27_spill] sm:$0xff] %v14729_v39  ;;  %v14731_v19 = vadd.f32 %v7325_v52, %v6732_v51  ;;  %v15964_v52 = vld [vmem:[#allocation50_spill] sm:$0xff]  ;;  %vm15968_vm6 = vnez %v15967_v63 }
 0x1ad   : > { %12581 = vmatmul.mubr.msk.bf16.gmra.mxu1 %vm15945_vm13, %v15943_v40  ;;  %v7328_v40 = vpop.f32.mrf.mxu1  ;;  %v12191_v9 = vpop.f32.mrf.mxu0 }
 0x1ae   : > { %12584 = vmatprep.mubr.msk.bf16.mxu1 %vm15949_vm0, %v15947_v47  ;;  %15954 = vst [vmem:[#allocation34_spill] sm:$0xff] %v14731_v19  ;;  %v14736_v47 = vadd.f32 %v12335_v42, %v12191_v9  ;;  %v15966_v9 = vld [vmem:[#allocation55_spill] sm:$0xff] }
 0x1af   : > { %v12338_v2 = vpop.f32.mrf.mxu1 }
 0x1b0   : > { %12437 = vmatmul.mubr.bf16.gmra.mxu0 %v15951_v61  ;;  %15958 = vst [vmem:[#allocation30_spill] sm:$0xff] %v14736_v47  ;;  %v6735_v61 = vpop.f32.mrf.mxu0 }
 0x1b1   : > { %12440 = vmatprep.mubr.bf16.mxu0 %v15952_v54  ;;  %v14741_v54 = vadd.f32 %v7328_v40, %v6735_v61  ;;  %v7341_v6 = vpop.f32.mrf.mxu1  ;;  %v15971_v40 = vld [vmem:[#allocation54_spill] sm:$0xff] }
 0x1b2   : > { %v12194_v51 = vpop.f32.mrf.mxu0  ;;  %vm15972_vm8 = vnez %v15971_v40  ;;  %v15978_v40 = vld [vmem:[#allocation61_spill] sm:$0xff] }
 0x1b3   : > { %15962 = vst [vmem:[#allocation29_spill] sm:$0xff] %v14741_v54  ;;  %v12339_v19 = vpop.f32.mrf.mxu1  ;;  %v14745_v39 = vadd.f32 %v12338_v2, %v12194_v51 }
 0x1b5   : > { %12585 = vmatmul.mubr.msk.bf16.gmra.mxu1 %vm15957_vm12, %v15955_v5  ;;  %15965 = vst [vmem:[#allocation32_spill] sm:$0xff] %v14745_v39  ;;  %v6748_v5 = vpop.f32.mrf.mxu0  ;;  %v7344_v42 = vpop.f32.mrf.mxu1  ;;  %v15975_v39 = vld [vmem:[#allocation56_spill] sm:$0xff] }
 0x1b6   : > { %12588 = vmatprep.mubr.msk.bf16.mxu1 %vm15961_vm5, %v15959_v14  ;;  %v14750_v14 = vadd.f32 %v7341_v6, %v6748_v5 }
 0x1b7   : > { %v12195_v61 = vpop.f32.mrf.mxu0 }
 0x1b8   : > { %12441 = vmatmul.mubr.bf16.gmra.mxu0 %v15963_v59  ;;  %15969 = vst [vmem:[#allocation37_spill] sm:$0xff] %v14750_v14  ;;  %v12342_v59 = vpop.f32.mrf.mxu1  ;;  %v14755_v54 = vadd.f32 %v12339_v19, %v12195_v61  ;;  %v15982_v61 = vld [vmem:[#allocation64_spill] sm:$0xff] }
 0x1b9   : > { %12444 = vmatprep.mubr.bf16.mxu0 %v15964_v52  ;;  %v15974_v52 = vld [vmem:[#allocation53_spill] sm:$0xff]  ;;  %v6751_v2 = vpop.f32.mrf.mxu0 }
 0x1ba   : > { %15973 = vst [vmem:[#allocation33_spill] sm:$0xff] %v14755_v54  ;;  %v7357_v51 = vpop.f32.mrf.mxu1  ;;  %v14759_v47 = vadd.f32 %v7344_v42, %v6751_v2  ;;  %v15986_v42 = vld [vmem:[#allocation59_spill] sm:$0xff] }
 0x1bb   : > { %v12198_v63 = vpop.f32.mrf.mxu0 }
 0x1bc   : > { %15976 = vst [vmem:[#allocation40_spill] sm:$0xff] %v14759_v47  ;;  %v14761_v6 = vadd.f32 %v12342_v59, %v12198_v63  ;;  %v15987_v63 = vld [vmem:[#allocation62_spill] sm:$0xff] }
 0x1bd   : > { %12589 = vmatmul.mubr.msk.bf16.gmra.mxu1 %vm15968_vm6, %v15966_v9  ;;  %v12343_v9 = vpop.f32.mrf.mxu1  ;;  %v6764_v5 = vpop.f32.mrf.mxu0 }
 0x1be   : > { %12592 = vmatprep.mubr.msk.bf16.mxu1 %vm15972_vm8, %v15970_v13  ;;  %15977 = vst [vmem:[#allocation36_spill] sm:$0xff] %v14761_v6  ;;  %v15979_v13 = vld [vmem:[#allocation57_spill] sm:$0xff]  ;;  %v14766_v19 = vadd.f32 %v7357_v51, %v6764_v5  ;;  %v15989_v51 = vld [vmem:[#allocation67_spill] sm:$0xff] }
 0x1bf   : > { %v7360_v14 = vpop.f32.mrf.mxu1  ;;  %vm15980_vm10 = vnez %v15979_v13  ;;  %v12199_v54 = vpop.f32.mrf.mxu0  ;;  %v15990_v5 = vld [vmem:[#allocation63_spill] sm:$0xff] }
 0x1c0   : > { %12445 = vmatmul.mubr.bf16.gmra.mxu0 %v15974_v52  ;;  %15981 = vst [vmem:[#allocation35_spill] sm:$0xff] %v14766_v19  ;;  %v15983_v52 = vld [vmem:[#allocation60_spill] sm:$0xff]  ;;  %vm15991_vm14 = vnez %v15990_v5 }
 0x1c1   : > { %12448 = vmatprep.mubr.bf16.mxu0 %v15975_v39  ;;  %vm15984_vm11 = vnez %v15983_v52  ;;  %v14771_v39 = vadd.f32 %v12343_v9, %v12199_v54  ;;  %v6767_v2 = vpop.f32.mrf.mxu0  ;;  %v12346_v59 = vpop.f32.mrf.mxu1  ;;  %v15994_v54 = vld [vmem:[#allocation66_spill] sm:$0xff] }
 0x1c2   : > { %v14775_v6 = vadd.f32 %v7360_v14, %v6767_v2  ;;  %vm15995_vm15 = vnez %v15994_v54  ;;  %v16001_v54 = vmov 0.0|0.0  }
 0x1c3   : > { %15985 = vst [vmem:[#allocation38_spill] sm:$0xff] %v14771_v39  ;;  %v7373_v47 = vpop.f32.mrf.mxu1  ;;  %v12202_v13 = vpop.f32.mrf.mxu0 }
 0x1c4   : > { %15988 = vst [vmem:[#allocation43_spill] sm:$0xff] %v14775_v6  ;;  %v14780_v52 = vadd.f32 %v12346_v59, %v12202_v13  ;;  %v15998_v6 = vld [vmem:[#allocation68_spill] sm:$0xff] }
 0x1c5   : > { %12593 = vmatmul.mubr.msk.bf16.gmra.mxu1 %vm15980_vm10, %v15978_v40  ;;  %v12347_v40 = vpop.f32.mrf.mxu1  ;;  %v6780_v9 = vpop.f32.mrf.mxu0 }
 0x1c6   : > { %12596 = vmatprep.mubr.msk.bf16.mxu1 %vm15984_vm11, %v15982_v61  ;;  %15992 = vst [vmem:[#allocation39_spill] sm:$0xff] %v14780_v52  ;;  %v15993_v61 = vld [vmem:[#allocation69_spill] sm:$0xff]  ;;  %v14785_v39 = vadd.f32 %v7373_v47, %v6780_v9  ;;  %v16004_v9 = vld [vmem:[#allocation70_spill] sm:$0xff]  ;;  %vm16068_vm11 = vnez %v16067_v25 }
 0x1c7   : > { %v12203_v14 = vpop.f32.mrf.mxu0  ;;  %v16003_v47 = vld [vmem:[#allocation73_spill] sm:$0xff]  ;;  %vm16005_vm2 = vnez %v16004_v9  ;;  %v16014_v9 = vld [vmem:[#allocation75_spill] sm:$0xff] }
 0x1c8   : > { %12449 = vmatmul.mubr.bf16.gmra.mxu0 %v15986_v42  ;;  %v7376_v42 = vpop.f32.mrf.mxu1  ;;  %15996 = vst [vmem:[#allocation46_spill] sm:$0xff] %v14785_v39  ;;  %v14789_v19 = vadd.f32 %v12347_v40, %v12203_v14  ;;  %v16007_v40 = vld [vmem:[#allocation71_spill] sm:$0xff]  ;;  %vm16015_vm3 = vnez %v16014_v9  ;;  %v16022_v9 = vld [vmem:[#allocation78_spill] sm:$0xff] }
 0x1c9   : > { %12452 = vmatprep.mubr.bf16.mxu0 %v15987_v63  ;;  %v15997_v63 = vld [vmem:[#allocation65_spill] sm:$0xff]  ;;  %v6783_v5 = vpop.f32.mrf.mxu0  ;;  %vm16023_vm9 = vnez %v16022_v9 }
 0x1ca   : > { %v12350_v2 = vpop.f32.mrf.mxu1  ;;  %15999 = vst [vmem:[#allocation42_spill] sm:$0xff] %v14789_v19  ;;  %v14791_v59 = vadd.f32 %v7376_v42, %v6783_v5  ;;  %v16021_v19 = vld [vmem:[#allocation82_spill] sm:$0xff] }
 0x1cc   : > { %16000 = vst [vmem:[#allocation41_spill] sm:$0xff] %v14791_v59  ;;  %v12206_v13 = vpop.f32.mrf.mxu0 }
 0x1cd   : > { %12597 = vmatmul.mubr.msk.bf16.gmra.mxu1 %vm15991_vm14, %v15989_v51  ;;  %v7389_v51 = vpop.f32.mrf.mxu1 }
 0x1ce   : > { %12600 = vmatprep.mubr.msk.bf16.mxu1 %vm15995_vm15, %v15993_v61  ;;  %v14794_v61 = vadd.f32 %v12350_v2, %v12206_v13  ;;  %v16010_v13 = vld [vmem:[#allocation76_spill] sm:$0xff] }
 0x1cf   : > { %v12351_v52 = vpop.f32.mrf.mxu1 }
 0x1d0   : > { %12453 = vmatmul.mubr.bf16.gmra.mxu0 %v15997_v63  ;;  %16002 = vst [vmem:[#allocation44_spill] sm:$0xff] %v14794_v61  ;;  %v6796_v63 = vpop.f32.mrf.mxu0  ;;  %v16011_v61 = vld [vmem:[#allocation72_spill] sm:$0xff] }
 0x1d1   : > { %12456 = vmatprep.mubr.bf16.mxu0 %v15998_v6  ;;  %v7392_v39 = vpop.f32.mrf.mxu1  ;;  %v14799_v32 = vadd.f32 %v7389_v51, %v6796_v63  ;;  %vm16012_vm7 = vnez %v16011_v61 }
 0x1d2   : > { %v12207_v6 = vpop.f32.mrf.mxu0 }
 0x1d3   : > { %16006 = vst [vmem:[#allocation49_spill] sm:$0xff] %v14799_v32  ;;  %v14803_v42 = vadd.f32 %v12351_v52, %v12207_v6  ;;  %v12354_v5 = vpop.f32.mrf.mxu1 }
 0x1d4   : > { %v6799_v14 = vpop.f32.mrf.mxu0 }
 0x1d5   : > { %12601 = vmatmul.mubr.bf16.gmra.mxu1 %v16001_v54  ;;  %16008 = vst [vmem:[#allocation45_spill] sm:$0xff] %v14803_v42  ;;  %v14805_v59 = vadd.f32 %v7392_v39, %v6799_v14  ;;  %v7405_v2 = vpop.f32.mrf.mxu1  ;;  %v16018_v42 = vld [vmem:[#allocation77_spill] sm:$0xff] }
 0x1d6   : > { %12604 = vmatprep.mubr.msk.bf16.mxu1 %vm16005_vm2, %v16003_v47  ;;  %v16013_v47 = vld [vmem:[#allocation79_spill] sm:$0xff] }
 0x1d7   : > { %16009 = vst [vmem:[#allocation52_spill] sm:$0xff] %v14805_v59  ;;  %v12210_v51 = vpop.f32.mrf.mxu0  ;;  %v12355_v63 = vpop.f32.mrf.mxu1 }
 0x1d8   : > { %12457 = vmatmul.mubr.bf16.gmra.mxu0 %v16001_v54  ;;  %v14813_v32 = vadd.f32 %v12354_v5, %v12210_v51  ;;  %v16025_v5 = vld [vmem:[#allocation85_spill] sm:$0xff] }
 0x1d9   : > { %12460 = vmatprep.mubr.bf16.mxu0 %v16007_v40  ;;  %v16017_v40 = vld [vmem:[#allocation74_spill] sm:$0xff]  ;;  %v6812_v52 = vpop.f32.mrf.mxu0  ;;  %v7408_v6 = vpop.f32.mrf.mxu1  ;;  %v16026_v51 = vld [vmem:[#allocation81_spill] sm:$0xff] }
 0x1da   : > { %16016 = vst [vmem:[#allocation48_spill] sm:$0xff] %v14813_v32  ;;  %v14817_v39 = vadd.f32 %v7405_v2, %v6812_v52  ;;  %vm16027_vm13 = vnez %v16026_v51  ;;  %v16030_v52 = vld [vmem:[#allocation83_spill] sm:$0xff] }
 0x1db   : > { %v12211_v14 = vpop.f32.mrf.mxu0 }
 0x1dc   : > { %16019 = vst [vmem:[#allocation47_spill] sm:$0xff] %v14817_v39  ;;  %v14819_v59 = vadd.f32 %v12355_v63, %v12211_v14  ;;  %v16066_v39 = vld [vmem:[#allocation106_spill] sm:$0xff] }
 0x1dd   : > { %12605 = vmatmul.mubr.msk.bf16.gmra.mxu1 %vm16012_vm7, %v16010_v13  ;;  %v6815_v61 = vpop.f32.mrf.mxu0 }
 0x1de   : > { %12608 = vmatprep.mubr.msk.bf16.mxu1 %vm16015_vm3, %v16013_v47  ;;  %16020 = vst [vmem:[#allocation50_spill] sm:$0xff] %v14819_v59  ;;  %v12358_v13 = vpop.f32.mrf.mxu1  ;;  %v14824_v47 = vadd.f32 %v7408_v6, %v6815_v61  ;;  %v16033_v61 = vld [vmem:[#allocation88_spill] sm:$0xff] }
 0x1e0   : > { %12461 = vmatmul.mubr.bf16.gmra.mxu0 %v16017_v40  ;;  %16024 = vst [vmem:[#allocation55_spill] sm:$0xff] %v14824_v47  ;;  %v7421_v40 = vpop.f32.mrf.mxu1  ;;  %v16034_v47 = vld [vmem:[#allocation84_spill] sm:$0xff] }
 0x1e1   : > { %12464 = vmatprep.mubr.bf16.mxu0 %v16018_v42  ;;  %v12214_v32 = vpop.f32.mrf.mxu0  ;;  %v16028_v42 = vld [vmem:[#allocation80_spill] sm:$0xff]  ;;  %vm16035_vm0 = vnez %v16034_v47 }
 0x1e2   : > { %v14830_v2 = vadd.f32 %v12358_v13, %v12214_v32  ;;  %v12359_v63 = vpop.f32.mrf.mxu1  ;;  %v16038_v32 = vld [vmem:[#allocation87_spill] sm:$0xff] }
 0x1e3   : > { %v6828_v14 = vpop.f32.mrf.mxu0  ;;  %vm16039_vm12 = vnez %v16038_v32 }
 0x1e4   : > { %16029 = vst [vmem:[#allocation51_spill] sm:$0xff] %v14830_v2  ;;  %v14833_v59 = vadd.f32 %v7421_v40, %v6828_v14  ;;  %v7424_v9 = vpop.f32.mrf.mxu1  ;;  %v16041_v14 = vld [vmem:[#allocation89_spill] sm:$0xff]  ;;  %v16051_v2 = vld [vmem:[#allocation92_spill] sm:$0xff] }
 0x1e5   : > { %12609 = vmatmul.mubr.msk.bf16.gmra.mxu1 %vm16023_vm9, %v16021_v19  ;;  %v12215_v19 = vpop.f32.mrf.mxu0 }
 0x1e6   : > { %12612 = vmatprep.mubr.msk.bf16.mxu1 %vm16027_vm13, %v16025_v5  ;;  %16031 = vst [vmem:[#allocation58_spill] sm:$0xff] %v14833_v59  ;;  %v14835_v6 = vadd.f32 %v12359_v63, %v12215_v19 }
 0x1e7   : > { %v6831_v5 = vpop.f32.mrf.mxu0 }
 0x1e8   : > { %12465 = vmatmul.mubr.bf16.gmra.mxu0 %v16028_v42  ;;  %16032 = vst [vmem:[#allocation54_spill] sm:$0xff] %v14835_v6  ;;  %v14840_v51 = vadd.f32 %v7424_v9, %v6831_v5  ;;  %v16037_v42 = vld [vmem:[#allocation91_spill] sm:$0xff]  ;;  %v16044_v9 = vld [vmem:[#allocation94_spill] sm:$0xff] }
 0x1e9   : > { %12468 = vmatprep.mubr.bf16.mxu0 %v16030_v52  ;;  %v12362_v13 = vpop.f32.mrf.mxu1  ;;  %v16040_v52 = vld [vmem:[#allocation86_spill] sm:$0xff] }
 0x1ea   : > { %16036 = vst [vmem:[#allocation53_spill] sm:$0xff] %v14840_v51  ;;  %v16045_v5 = vld [vmem:[#allocation90_spill] sm:$0xff]  ;;  %v16048_v51 = vld [vmem:[#allocation97_spill] sm:$0xff] }
 0x1eb   : > { %v7437_v40 = vpop.f32.mrf.mxu1  ;;  %vm16046_vm5 = vnez %v16045_v5 }
 0x1ed   : > { %12613 = vmatmul.mubr.msk.bf16.gmra.mxu1 %vm16035_vm0, %v16033_v61  ;;  %v12363_v19 = vpop.f32.mrf.mxu1 }
 0x1ee   : > { %12616 = vmatprep.mubr.msk.bf16.mxu1 %vm16039_vm12, %v16037_v42  ;;  %vm16122_vm12 = vnez %v16121_v30 }
 0x1ef   : > { %v7440_v61 = vpop.f32.mrf.mxu1 }
 0x1f0   : > { %12469 = vmatmul.mubr.bf16.gmra.mxu0 %v16040_v52  ;;  %v12218_v59 = vpop.f32.mrf.mxu0  ;;  %v16049_v52 = vld [vmem:[#allocation93_spill] sm:$0xff] }
 0x1f1   : > { %12472 = vmatprep.mubr.bf16.mxu0 %v16041_v14  ;;  %v14847_v63 = vadd.f32 %v12362_v13, %v12218_v59  ;;  %vm16050_vm6 = vnez %v16049_v52 }
 0x1f2   : > { %v6844_v6 = vpop.f32.mrf.mxu0 }
 0x1f3   : > { %16042 = vst [vmem:[#allocation56_spill] sm:$0xff] %v14847_v63  ;;  %v14849_v47 = vadd.f32 %v7437_v40, %v6844_v6  ;;  %v16053_v6 = vld [vmem:[#allocation95_spill] sm:$0xff] }
 0x1f4   : > { %v12219_v32 = vpop.f32.mrf.mxu0 }
 0x1f5   : > { %16043 = vst [vmem:[#allocation61_spill] sm:$0xff] %v14849_v47  ;;  %12617 = vmatmul.mubr.msk.bf16.gmra.mxu1 %vm16046_vm5, %v16044_v9  ;;  %v14854_v42 = vadd.f32 %v12363_v19, %v12219_v32  ;;  %v16055_v9 = vld [vmem:[#allocation100_spill] sm:$0xff]  ;;  %vm16126_vm5 = vnez %v16125_v7 }
 0x1f6   : > { %12620 = vmatprep.mubr.msk.bf16.mxu1 %vm16050_vm6, %v16048_v51  ;;  %v6847_v14 = vpop.f32.mrf.mxu0  ;;  %v12366_v13 = vpop.f32.mrf.mxu1  ;;  %v16056_v19 = vld [vmem:[#allocation96_spill] sm:$0xff]  ;;  %v16058_v51 = vld [vmem:[#allocation103_spill] sm:$0xff] }
 0x1f7   : > { %16047 = vst [vmem:[#allocation57_spill] sm:$0xff] %v14854_v42  ;;  %v14860_v59 = vadd.f32 %v7440_v61, %v6847_v14  ;;  %vm16057_vm8 = vnez %v16056_v19  ;;  %v16059_v42 = vld [vmem:[#allocation99_spill] sm:$0xff]  ;;  %v16062_v61 = vld [vmem:[#allocation98_spill] sm:$0xff]  ;;  %v16129_v7 = vld [vmem:[#allocation148_spill] sm:$0xff] }
 0x1f8   : > { %12473 = vmatmul.mubr.bf16.gmra.mxu0 %v16051_v2  ;;  %v7453_v40 = vpop.f32.mrf.mxu1  ;;  %vm16060_vm10 = vnez %v16059_v42 }
 0x1f9   : > { %16052 = vst [vmem:[#allocation64_spill] sm:$0xff] %v14860_v59  ;;  %12476 = vmatprep.mubr.bf16.mxu0 %v16053_v6  ;;  %v16064_v59 = vld [vmem:[#allocation101_spill] sm:$0xff] }
 0x1fa   : > { %v12222_v47 = vpop.f32.mrf.mxu0  ;;  %v12367_v63 = vpop.f32.mrf.mxu1 }
 0x1fb   : > { %v14863_v5 = vadd.f32 %v12366_v13, %v12222_v47 }
 0x1fc   : > { %v6860_v32 = vpop.f32.mrf.mxu0  ;;  %v7456_v52 = vpop.f32.mrf.mxu1 }
 0x1fd   : > { %16054 = vst [vmem:[#allocation60_spill] sm:$0xff] %v14863_v5  ;;  %12621 = vmatmul.mubr.msk.bf16.gmra.mxu1 %vm16057_vm8, %v16055_v9  ;;  %v14871_v2 = vadd.f32 %v7453_v40, %v6860_v32  ;;  %v16070_v32 = vld [vmem:[#allocation109_spill] sm:$0xff]  ;;  %vm16138_vm8 = vnez %v16137_v62  ;;  %v16141_v62 = vld [vmem:[#allocation160_spill] sm:$0xff] }
 0x1fe   : > { %12624 = vmatprep.mubr.msk.bf16.mxu1 %vm16060_vm10, %v16058_v51  ;;  %v12223_v14 = vpop.f32.mrf.mxu0  ;;  %v16071_v51 = vld [vmem:[#allocation105_spill] sm:$0xff] }
 0x1ff   : > { %16061 = vst [vmem:[#allocation59_spill] sm:$0xff] %v14871_v2  ;;  %v14874_v6 = vadd.f32 %v12367_v63, %v12223_v14  ;;  %v12370_v47 = vpop.f32.mrf.mxu1  ;;  %vm16072_vm14 = vnez %v16071_v51  ;;  %v16081_v51 = vld [vmem:[#allocation115_spill] sm:$0xff] }
 0x200   : > { %12477 = vmatmul.mubr.bf16.gmra.mxu0 %v16062_v61  ;;  %v6863_v13 = vpop.f32.mrf.mxu0 }
 0x201   : > { %16063 = vst [vmem:[#allocation62_spill] sm:$0xff] %v14874_v6  ;;  %12480 = vmatprep.mubr.bf16.mxu0 %v16064_v59  ;;  %v14877_v5 = vadd.f32 %v7456_v52, %v6863_v13  ;;  %v7469_v9 = vpop.f32.mrf.mxu1  ;;  %v16073_v59 = vld [vmem:[#allocation104_spill] sm:$0xff]  ;;  %v16075_v13 = vld [vmem:[#allocation107_spill] sm:$0xff] }
 0x203   : > { %16065 = vst [vmem:[#allocation67_spill] sm:$0xff] %v14877_v5  ;;  %v12371_v42 = vpop.f32.mrf.mxu1 }
 0x205   : > { %12625 = vmatmul.mubr.msk.bf16.gmra.mxu1 %vm16068_vm11, %v16066_v39  ;;  %v7472_v61 = vpop.f32.mrf.mxu1 }
 0x206   : > { %v12226_v19 = vpop.f32.mrf.mxu0  ;;  %12628 = vmatprep.mubr.msk.bf16.mxu1 %vm16072_vm14, %v16070_v32 }
 0x207   : > { %v14882_v40 = vadd.f32 %v12370_v47, %v12226_v19  ;;  %v16078_v47 = vld [vmem:[#allocation112_spill] sm:$0xff] }
 0x208   : > { %v6876_v63 = vpop.f32.mrf.mxu0  ;;  %12481 = vmatmul.mubr.bf16.gmra.mxu0 %v16073_v59  ;;  %v16079_v19 = vld [vmem:[#allocation108_spill] sm:$0xff]  ;;  %v16084_v59 = vld [vmem:[#allocation110_spill] sm:$0xff] }
 0x209   : > { %16069 = vst [vmem:[#allocation63_spill] sm:$0xff] %v14882_v40  ;;  %v14888_v14 = vadd.f32 %v7469_v9, %v6876_v63  ;;  %12484 = vmatprep.mubr.bf16.mxu0 %v16075_v13  ;;  %vm16080_vm15 = vnez %v16079_v19  ;;  %v16082_v40 = vld [vmem:[#allocation111_spill] sm:$0xff] }
 0x20a   : > { %v12227_v52 = vpop.f32.mrf.mxu0  ;;  %v12374_v39 = vpop.f32.mrf.mxu1  ;;  %vm16083_vm2 = vnez %v16082_v40 }
 0x20b   : > { %16074 = vst [vmem:[#allocation69_spill] sm:$0xff] %v14888_v14  ;;  %v14891_v5 = vadd.f32 %v12371_v42, %v12227_v52  ;;  %v16086_v52 = vld [vmem:[#allocation113_spill] sm:$0xff]  ;;  %v16101_v14 = vld [vmem:[#allocation128_spill] sm:$0xff] }
 0x20c   : > { %v6879_v25 = vpop.f32.mrf.mxu0  ;;  %v7485_v32 = vpop.f32.mrf.mxu1  ;;  %vm16102_vm9 = vnez %v16101_v14  ;;  %v16108_v14 = vld [vmem:[#allocation118_spill] sm:$0xff] }
 0x20d   : > { %16076 = vst [vmem:[#allocation66_spill] sm:$0xff] %v14891_v5  ;;  %v14893_v6 = vadd.f32 %v7472_v61, %v6879_v25  ;;  %12629 = vmatmul.mubr.msk.bf16.gmra.mxu1 %vm16080_vm15, %v16078_v47  ;;  %v16090_v5 = vld [vmem:[#allocation116_spill] sm:$0xff] }
 0x20e   : > { %12632 = vmatprep.mubr.msk.bf16.mxu1 %vm16083_vm2, %v16081_v51  ;;  %v12375_v9 = vpop.f32.mrf.mxu1  ;;  %v16089_v51 = vld [vmem:[#allocation123_spill] sm:$0xff]  ;;  %vm16091_vm7 = vnez %v16090_v5 }
 0x20f   : > { %16077 = vst [vmem:[#allocation65_spill] sm:$0xff] %v14893_v6  ;;  %v12230_v63 = vpop.f32.mrf.mxu0 }
 0x210   : > { %12485 = vmatmul.mubr.bf16.gmra.mxu0 %v16084_v59  ;;  %v14902_v13 = vadd.f32 %v12374_v39, %v12230_v63  ;;  %v7488_v42 = vpop.f32.mrf.mxu1 }
 0x211   : > { %12488 = vmatprep.mubr.bf16.mxu0 %v16086_v52  ;;  %v6892_v61 = vpop.f32.mrf.mxu0 }
 0x212   : > { %16085 = vst [vmem:[#allocation68_spill] sm:$0xff] %v14902_v13  ;;  %v14905_v25 = vadd.f32 %v7485_v32, %v6892_v61  ;;  %v16094_v61 = vld [vmem:[#allocation119_spill] sm:$0xff] }
 0x213   : > { %v12231_v6 = vpop.f32.mrf.mxu0 }
 0x214   : > { %16087 = vst [vmem:[#allocation73_spill] sm:$0xff] %v14905_v25  ;;  %v14907_v19 = vadd.f32 %v12375_v9, %v12231_v6 }
 0x215   : > { %v12378_v47 = vpop.f32.mrf.mxu1  ;;  %12633 = vmatmul.mubr.bf16.gmra.mxu1 %v16001_v54  ;;  %v6895_v40 = vpop.f32.mrf.mxu0 }
 0x216   : > { %16088 = vst [vmem:[#allocation70_spill] sm:$0xff] %v14907_v19  ;;  %12636 = vmatprep.mubr.msk.bf16.mxu1 %vm16091_vm7, %v16089_v51  ;;  %v14913_v59 = vadd.f32 %v7488_v42, %v6895_v40  ;;  %v16097_v51 = vld [vmem:[#allocation130_spill] sm:$0xff]  ;;  %v16098_v42 = vld [vmem:[#allocation121_spill] sm:$0xff] }
 0x217   : > { %v7501_v39 = vpop.f32.mrf.mxu1  ;;  %vm16099_vm3 = vnez %v16098_v42 }
 0x218   : > { %16092 = vst [vmem:[#allocation71_spill] sm:$0xff] %v14913_v59  ;;  %v12234_v63 = vpop.f32.mrf.mxu0  ;;  %12489 = vmatmul.mubr.bf16.gmra.mxu0 %v16001_v54  ;;  %v16100_v59 = vld [vmem:[#allocation132_spill] sm:$0xff] }
 0x219   : > { %v14916_v52 = vadd.f32 %v12378_v47, %v12234_v63  ;;  %v12379_v32 = vpop.f32.mrf.mxu1  ;;  %12492 = vmatprep.mubr.bf16.mxu0 %v16094_v61 }
 0x21a   : > { %v6908_v6 = vpop.f32.mrf.mxu0 }
 0x21b   : > { %16093 = vst [vmem:[#allocation76_spill] sm:$0xff] %v14916_v52  ;;  %v14919_v9 = vadd.f32 %v7501_v39, %v6908_v6  ;;  %v7504_v19 = vpop.f32.mrf.mxu1  ;;  %v16104_v39 = vld [vmem:[#allocation127_spill] sm:$0xff]  ;;  %v16105_v6 = vld [vmem:[#allocation114_spill] sm:$0xff]  ;;  %v16107_v52 = vld [vmem:[#allocation117_spill] sm:$0xff] }
 0x21c   : > { %v12235_v25 = vpop.f32.mrf.mxu0 }
 0x21d   : > { %16095 = vst [vmem:[#allocation72_spill] sm:$0xff] %v14919_v9  ;;  %v14921_v13 = vadd.f32 %v12379_v32, %v12235_v25  ;;  %v12542_v5 = vpop.f32.mrf.mxu1  ;;  %12637 = vmatmul.mubr.msk.bf16.gmra.mxu1 %vm16099_vm3, %v16097_v51  ;;  %v16106_v32 = vld [vmem:[#allocation129_spill] sm:$0xff] }
 0x21e   : > { %v6911_v40 = vpop.f32.mrf.mxu0  ;;  %12640 = vmatprep.mubr.msk.bf16.mxu1 %vm16102_vm9, %v16100_v59 }
 0x21f   : > { %16096 = vst [vmem:[#allocation79_spill] sm:$0xff] %v14921_v13  ;;  %v14929_v47 = vadd.f32 %v7504_v19, %v6911_v40  ;;  %v8481_v63 = vpop.f32.mrf.mxu1  ;;  %v16109_v40 = vld [vmem:[#allocation139_spill] sm:$0xff] }
 0x220   : > { %v12398_v61 = vpop.f32.mrf.mxu0  ;;  %12493 = vmatmul.mubr.bf16.gmra.mxu0 %v16104_v39 }
 0x221   : > { %16103 = vst [vmem:[#allocation75_spill] sm:$0xff] %v14929_v47  ;;  %v8192_v9 = vadd.f32 %v12398_v61, %v16105_v6  ;;  %v12543_v25 = vpop.f32.mrf.mxu1  ;;  %12496 = vmatprep.mubr.bf16.mxu0 %v16106_v32  ;;  %v16110_v47 = vld [vmem:[#allocation131_spill] sm:$0xff]  ;;  %v14942_v61 = vld [vmem:[%s15337_s4] ss:$0 sm:$0xff] }
 0x222   : > { %v7679_v13 = vpop.f32.mrf.mxu0  ;;  %vm16111_vm13 = vnez %v16110_v47  ;;  %v16112_v6 = vld [vmem:[#allocation142_spill] sm:$0xff]  ;;  %v16116_v32 = vld [vmem:[#allocation135_spill] sm:$0xff] }
 0x223   : > { %v8190_v42 = vadd.f32 %v7679_v13, %v16107_v52  ;;  %v8484_v51 = vpop.f32.mrf.mxu1  ;;  %v8994_v17 = vadd.f32 %v12542_v5, %v8192_v9  ;;  %v16113_v13 = vld [vmem:[#allocation137_spill] sm:$0xff]  ;;  %v16115_v9 = vld [vmem:[#allocation120_spill] sm:$0xff] }
 0x224   : > { %v12399_v2 = vpop.f32.mrf.mxu0  ;;  %vm16114_vm0 = vnez %v16113_v13  ;;  %v16119_v13 = vld [vmem:[#allocation124_spill] sm:$0xff] }
 0x225   : > { %v8992_v48 = vadd.f32 %v8481_v63, %v8190_v42  ;;  %v8193_v59 = vadd.f32 %v12399_v2, %v16108_v14  ;;  %v12546_v19 = vpop.f32.mrf.mxu1  ;;  %12641 = vmatmul.mubr.msk.bf16.gmra.mxu1 %vm16111_vm13, %v16109_v40  ;;  %v9129_v47 = vadd.f32 %v14942_v61, %v8994_v17 }
 0x226   : > { %v7682_v39 = vpop.f32.mrf.mxu0  ;;  %12644 = vmatprep.mubr.msk.bf16.mxu1 %vm16114_vm0, %v16112_v6 }
 0x227   : > { %v8995_v52 = vadd.f32 %v12543_v25, %v8193_v59  ;;  %v8191_v5 = vadd.f32 %v7682_v39, %v16115_v9  ;;  %v8497_v2 = vpop.f32.mrf.mxu1  ;;  %v9127_v42 = vadd.f32 %v14942_v61, %v8992_v48  ;;  %v16118_v25 = vld [vmem:[#allocation122_spill] sm:$0xff] }
 0x228   : > { %v12402_v63 = vpop.f32.mrf.mxu0  ;;  %12497 = vmatmul.mubr.bf16.gmra.mxu0 %v16116_v32 }
 0x229   : > { %v9130_v14 = vadd.f32 %v14942_v61, %v8995_v52  ;;  %v8993_v40 = vadd.f32 %v8484_v51, %v8191_v5  ;;  %v12547_v57 = vpop.f32.mrf.mxu1  ;;  %12500 = vmatprep.mubr.bf16.mxu0 %v16117_v33  ;;  %v8196_v59 = vadd.f32 %v12402_v63, %v16118_v25  ;;  %v9388_v9 = vmul.f32 %v9127_v42, %v9127_v42 }
 0x22a   : > { %v7695_v39 = vpop.f32.mrf.mxu0 }
 0x22b   : > { %v11366_v6 = vpack.c.bf16 %v9130_v14, %v9129_v47  ;;  %v9128_v17 = vadd.f32 %v14942_v61, %v8993_v40  ;;  %v8500_v48 = vpop.f32.mrf.mxu1  ;;  %v8194_v52 = vadd.f32 %v7695_v39, %v16119_v13  ;;  %v8998_v63 = vadd.f32 %v12546_v19, %v8196_v59  ;;  %v16128_v19 = vld [vmem:[#allocation147_spill] sm:$0xff] }
 0x22c   : > { %v12403_v51 = vpop.f32.mrf.mxu0  ;;  %v9390_v39 = vmul.f32 %v9129_v47, %v9129_v47 }
 0x22d   : > { %11741 = vst [vmem:[%s14958_s9 + $0x8] sm:$0xff] %v11366_v6   ;;  %v9255_v33 = vadd.f32 %v9128_v17, %v9127_v42  ;;  %v9389_v5 = vmul.f32 %v9128_v17, %v9128_v17  ;;  %v11361_v32 = vpack.c.bf16 %v9128_v17, %v9127_v42  ;;  %v12550_v58 = vpop.f32.mrf.mxu1  ;;  %12645 = vmatmul.mubr.msk.bf16.gmra.mxu1 %vm16122_vm12, %v16120_v31 }
 0x22e   : > { %v8996_v25 = vadd.f32 %v8497_v2, %v8194_v52  ;;  %v8197_v53 = vadd.f32 %v12403_v51, %v16123_v22  ;;  %v7698_v40 = vpop.f32.mrf.mxu0  ;;  %12648 = vmatprep.mubr.msk.bf16.mxu1 %vm16126_vm5, %v16124_v38  ;;  %v9391_v2 = vmul.f32 %v9130_v14, %v9130_v14  ;;  %v9133_v38 = vadd.f32 %v14942_v61, %v8998_v63 }
 0x22f   : > { %v9256_v13 = vadd.f32 %v9255_v33, %v9129_v47  ;;  %v9516_v6 = vadd.f32 %v9389_v5, %v9388_v9  ;;  %11362 = vst [vmem:[%s14958_s9] sm:$0xff] %v11361_v32   ;;  %v8195_v42 = vadd.f32 %v7698_v40, %v16127_v21  ;;  %v8513_v17 = vpop.f32.mrf.mxu1  ;;  %v16130_v9 = vld [vmem:[#allocation133_spill] sm:$0xff]  ;;  %v16131_v40 = vld [vmem:[#allocation134_spill] sm:$0xff] }
 0x230   : > { %v9131_v10 = vadd.f32 %v14942_v61, %v8996_v25  ;;  %v8999_v30 = vadd.f32 %v12547_v57, %v8197_v53  ;;  %v12406_v31 = vpop.f32.mrf.mxu0  ;;  %12501 = vmatmul.mubr.bf16.gmra.mxu0 %v16128_v19  ;;  %v16132_v19 = vld [vmem:[#allocation159_spill] sm:$0xff] }
 0x231   : > { %v9257_v22 = vadd.f32 %v9256_v13, %v9130_v14  ;;  %v9517_v59 = vadd.f32 %v9516_v6, %v9390_v39  ;;  %v8997_v52 = vadd.f32 %v8500_v48, %v8195_v42  ;;  %v12551_v51 = vpop.f32.mrf.mxu1  ;;  %12504 = vmatprep.mubr.bf16.mxu0 %v16129_v7  ;;  %v8200_v21 = vadd.f32 %v12406_v31, %v16130_v9  ;;  %v16133_v31 = vld [vmem:[#allocation151_spill] sm:$0xff]  ;;  %v16136_v9 = vld [vmem:[#allocation162_spill] sm:$0xff] }
 0x232   : > { %v9134_v47 = vadd.f32 %v14942_v61, %v8999_v30  ;;  %v7711_v33 = vpop.f32.mrf.mxu0  ;;  %v9392_v57 = vmul.f32 %v9131_v10, %v9131_v10  ;;  %vm16134_vm6 = vnez %v16133_v31 }
 0x233   : > { %v9518_v5 = vadd.f32 %v9517_v59, %v9391_v2  ;;  %v9258_v53 = vadd.f32 %v9257_v22, %v9131_v10  ;;  %v9132_v32 = vadd.f32 %v14942_v61, %v8997_v52  ;;  %v8516_v25 = vpop.f32.mrf.mxu1  ;;  %v8198_v48 = vadd.f32 %v7711_v33, %v16131_v40  ;;  %v16135_v59 = vld [vmem:[#allocation136_spill] sm:$0xff] }
 0x234   : > { %v11376_v14 = vpack.c.bf16 %v9134_v47, %v9133_v38  ;;  %v12407_v39 = vpop.f32.mrf.mxu0  ;;  %v9002_v2 = vadd.f32 %v12550_v58, %v8200_v21  ;;  %v9394_v33 = vmul.f32 %v9133_v38, %v9133_v38  ;;  %v16140_v58 = vld [vmem:[#allocation156_spill] sm:$0xff] }
 0x235   : > { %v9519_v13 = vadd.f32 %v9518_v5, %v9392_v57  ;;  %v9259_v6 = vadd.f32 %v9258_v53, %v9132_v32  ;;  %v9393_v63 = vmul.f32 %v9132_v32, %v9132_v32  ;;  %v11371_v42 = vpack.c.bf16 %v9132_v32, %v9131_v10  ;;  %v12554_v30 = vpop.f32.mrf.mxu1  ;;  %12649 = vmatmul.mubr.msk.bf16.gmra.mxu1 %vm16134_vm6, %v16132_v19  ;;  %v16139_v10 = vld [vmem:[#allocation138_spill] sm:$0xff] }
 0x236   : > { %11743 = vst [vmem:[%s14958_s9 + $0x18] sm:$0xff] %v11376_v14   ;;  %v9000_v22 = vadd.f32 %v8513_v17, %v8198_v48  ;;  %v8201_v52 = vadd.f32 %v12407_v39, %v16135_v59  ;;  %v7714_v7 = vpop.f32.mrf.mxu0  ;;  %12652 = vmatprep.mubr.msk.bf16.mxu1 %vm16138_vm8, %v16136_v9  ;;  %v9395_v17 = vmul.f32 %v9134_v47, %v9134_v47  ;;  %v16143_v9 = vld [vmem:[#allocation144_spill] sm:$0xff] }
 0x237   : > { %v9260_v5 = vadd.f32 %v9259_v6, %v9133_v38  ;;  %v9520_v53 = vadd.f32 %v9519_v13, %v9393_v63  ;;  %11742 = vst [vmem:[%s14958_s9 + $0x10] sm:$0xff] %v11371_v42   ;;  %v8199_v57 = vadd.f32 %v7714_v7, %v16139_v10  ;;  %v8529_v32 = vpop.f32.mrf.mxu1  ;;  %v9137_v38 = vadd.f32 %v14942_v61, %v9002_v2  ;;  %v16142_v6 = vld [vmem:[#allocation143_spill] sm:$0xff] }
 0x238   : > { %v9135_v40 = vadd.f32 %v14942_v61, %v9000_v22  ;;  %v9003_v19 = vadd.f32 %v12551_v51, %v8201_v52  ;;  %v12410_v14 = vpop.f32.mrf.mxu0  ;;  %12505 = vmatmul.mubr.bf16.gmra.mxu0 %v16140_v58 }
 0x239   : > { %v9261_v21 = vadd.f32 %v9260_v5, %v9134_v47  ;;  %v9521_v48 = vadd.f32 %v9520_v53, %v9394_v33  ;;  %v9001_v39 = vadd.f32 %v8516_v25, %v8199_v57  ;;  %v12555_v31 = vpop.f32.mrf.mxu1  ;;  %12508 = vmatprep.mubr.bf16.mxu0 %v16141_v62  ;;  %v8204_v63 = vadd.f32 %v12410_v14, %v16142_v6  ;;  %v16145_v14 = vld [vmem:[#allocation161_spill] sm:$0xff]  ;;  %v16148_v62 = vld [vmem:[#allocation172_spill] sm:$0xff] }
 0x23a   : > { %v9138_v13 = vadd.f32 %v14942_v61, %v9003_v19  ;;  %v7727_v42 = vpop.f32.mrf.mxu0  ;;  %v9396_v59 = vmul.f32 %v9135_v40, %v9135_v40  ;;  %v16144_v19 = vld [vmem:[#allocation170_spill] sm:$0xff]  ;;  %vm16146_vm10 = vnez %v16145_v14  ;;  %v16149_v6 = vld [vmem:[#allocation169_spill] sm:$0xff] }
 0x23b   : > { %v9522_v22 = vadd.f32 %v9521_v48, %v9395_v17  ;;  %v9262_v51 = vadd.f32 %v9261_v21, %v9135_v40  ;;  %v9136_v52 = vadd.f32 %v14942_v61, %v9001_v39  ;;  %v8532_v7 = vpop.f32.mrf.mxu1  ;;  %v8202_v25 = vadd.f32 %v7727_v42, %v16143_v9  ;;  %v16147_v21 = vld [vmem:[#allocation145_spill] sm:$0xff] }
 0x23c   : > { %v11386_v47 = vpack.c.bf16 %v9138_v13, %v9137_v38  ;;  %v12411_v33 = vpop.f32.mrf.mxu0  ;;  %v9006_v58 = vadd.f32 %v12554_v30, %v8204_v63  ;;  %vm16150_vm11 = vnez %v16149_v6  ;;  %v9398_v42 = vmul.f32 %v9137_v38, %v9137_v38  ;;  %v16152_v30 = vld [vmem:[#allocation165_spill] sm:$0xff]  ;;  %v16155_v6 = vld [vmem:[#allocation154_spill] sm:$0xff] }
 0x23d   : > { %v9523_v5 = vadd.f32 %v9522_v22, %v9396_v59  ;;  %v9263_v53 = vadd.f32 %v9262_v51, %v9136_v52  ;;  %v9397_v2 = vmul.f32 %v9136_v52, %v9136_v52  ;;  %v11381_v10 = vpack.c.bf16 %v9136_v52, %v9135_v40  ;;  %v12558_v57 = vpop.f32.mrf.mxu1  ;;  %12653 = vmatmul.mubr.msk.bf16.gmra.mxu1 %vm16146_vm10, %v16144_v19  ;;  %v16151_v40 = vld [vmem:[#allocation146_spill] sm:$0xff] }
 0x23e   : > { %11745 = vst [vmem:[%s14958_s9 + $0x28] sm:$0xff] %v11386_v47   ;;  %v9004_v17 = vadd.f32 %v8529_v32, %v8202_v25  ;;  %v8205_v48 = vadd.f32 %v12411_v33, %v16147_v21  ;;  %v7730_v39 = vpop.f32.mrf.mxu0  ;;  %12656 = vmatprep.mubr.msk.bf16.mxu1 %vm16150_vm11, %v16148_v62  ;;  %v9399_v32 = vmul.f32 %v9138_v13, %v9138_v13  ;;  %v16153_v21 = vld [vmem:[#allocation167_spill] sm:$0xff] }
 0x23f   : > { %v9264_v22 = vadd.f32 %v9263_v53, %v9137_v38  ;;  %v9524_v51 = vadd.f32 %v9523_v5, %v9397_v2  ;;  %11744 = vst [vmem:[%s14958_s9 + $0x20] sm:$0xff] %v11381_v10   ;;  %v8203_v59 = vadd.f32 %v7730_v39, %v16151_v40  ;;  %v8545_v52 = vpop.f32.mrf.mxu1  ;;  %v9141_v38 = vadd.f32 %v14942_v61, %v9006_v58  ;;  %v16154_v53 = vld [vmem:[#allocation153_spill] sm:$0xff] }
 0x240   : > { %v9139_v9 = vadd.f32 %v14942_v61, %v9004_v17  ;;  %v9007_v19 = vadd.f32 %v12555_v31, %v8205_v48  ;;  %v12414_v47 = vpop.f32.mrf.mxu0  ;;  %12509 = vmatmul.mubr.bf16.gmra.mxu0 %v16152_v30 }
 0x241   : > { %v9265_v63 = vadd.f32 %v9264_v22, %v9138_v13  ;;  %v9525_v25 = vadd.f32 %v9524_v51, %v9398_v42  ;;  %v9005_v33 = vadd.f32 %v8532_v7, %v8203_v59  ;;  %v12559_v14 = vpop.f32.mrf.mxu1  ;;  %12512 = vmatprep.mubr.bf16.mxu0 %v16153_v21  ;;  %v8208_v2 = vadd.f32 %v12414_v47, %v16154_v53  ;;  %v16157_v47 = vld [vmem:[#allocation171_spill] sm:$0xff] }
 0x242   : > { %v9142_v5 = vadd.f32 %v14942_v61, %v9007_v19  ;;  %v7743_v10 = vpop.f32.mrf.mxu0  ;;  %v9400_v48 = vmul.f32 %v9139_v9, %v9139_v9  ;;  %v16156_v19 = vld [vmem:[#allocation180_spill] sm:$0xff]  ;;  %vm16158_vm14 = vnez %v16157_v47  ;;  %v9402_v53 = vmul.f32 %v9141_v38, %v9141_v38  ;;  %v16163_v47 = vld [vmem:[#allocation178_spill] sm:$0xff] }
 0x243   : > { %v9526_v17 = vadd.f32 %v9525_v25, %v9399_v32  ;;  %v9266_v31 = vadd.f32 %v9265_v63, %v9139_v9  ;;  %v9140_v39 = vadd.f32 %v14942_v61, %v9005_v33  ;;  %v8548_v62 = vpop.f32.mrf.mxu1  ;;  %v8206_v7 = vadd.f32 %v7743_v10, %v16155_v6  ;;  %v16159_v63 = vld [vmem:[#allocation155_spill] sm:$0xff] }
 0x244   : > { %v11396_v13 = vpack.c.bf16 %v9142_v5, %v9141_v38  ;;  %v12415_v42 = vpop.f32.mrf.mxu0  ;;  %v9010_v30 = vadd.f32 %v12558_v57, %v8208_v2  ;;  %v16162_v57 = vld [vmem:[#allocation177_spill] sm:$0xff] }
 0x245   : > { %v9527_v22 = vadd.f32 %v9526_v17, %v9400_v48  ;;  %v9267_v51 = vadd.f32 %v9266_v31, %v9140_v39  ;;  %v9401_v58 = vmul.f32 %v9140_v39, %v9140_v39  ;;  %v11391_v40 = vpack.c.bf16 %v9140_v39, %v9139_v9  ;;  %v12562_v59 = vpop.f32.mrf.mxu1  ;;  %12657 = vmatmul.mubr.msk.bf16.gmra.mxu1 %vm16158_vm14, %v16156_v19  ;;  %v16161_v9 = vld [vmem:[#allocation157_spill] sm:$0xff] }
 0x246   : > { %11747 = vst [vmem:[%s14958_s9 + $0x38] sm:$0xff] %v11396_v13   ;;  %v9008_v32 = vadd.f32 %v8545_v52, %v8206_v7  ;;  %v8209_v25 = vadd.f32 %v12415_v42, %v16159_v63  ;;  %v7746_v33 = vpop.f32.mrf.mxu0  ;;  %12660 = vmatprep.mubr.msk.bf16.mxu1 %vm14460_vm1, %v14490_v60  ;;  %v9403_v52 = vmul.f32 %v9142_v5, %v9142_v5 }
 0x247   : > { %v9268_v10 = vadd.f32 %v9267_v51, %v9141_v38  ;;  %v9528_v17 = vadd.f32 %v9527_v22, %v9401_v58  ;;  %11746 = vst [vmem:[%s14958_s9 + $0x30] sm:$0xff] %v11391_v40   ;;  %v8207_v31 = vadd.f32 %v7746_v33, %v16161_v9  ;;  %v8561_v48 = vpop.f32.mrf.mxu1  ;;  %v9145_v60 = vadd.f32 %v14942_v61, %v9010_v30  ;;  %v16164_v22 = vld [vmem:[#allocation163_spill] sm:$0xff]  ;;  %v16165_v33 = vld [vmem:[#allocation164_spill] sm:$0xff] }
 0x248   : > { %v9143_v39 = vadd.f32 %v14942_v61, %v9008_v32  ;;  %v9011_v6 = vadd.f32 %v12559_v14, %v8209_v25  ;;  %v12418_v13 = vpop.f32.mrf.mxu0  ;;  %12513 = vmatmul.mubr.bf16.gmra.mxu0 %v16162_v57  ;;  %vm16166_vm1 = vnez %v15863_v44 }
 0x249   : > { %v9269_v2 = vadd.f32 %v9268_v10, %v9142_v5  ;;  %v9529_v7 = vadd.f32 %v9528_v17, %v9402_v53  ;;  %v9009_v42 = vadd.f32 %v8548_v62, %v8207_v31  ;;  %v12563_v19 = vpop.f32.mrf.mxu1  ;;  %12516 = vmatprep.mubr.bf16.mxu0 %v16163_v47  ;;  %v8212_v51 = vadd.f32 %v12418_v13, %v16164_v22  ;;  %v16167_v13 = vld [vmem:[#allocation166_spill] sm:$0xff] }
 0x24a   : > { %v9146_v38 = vadd.f32 %v14942_v61, %v9011_v6  ;;  %v7759_v58 = vpop.f32.mrf.mxu0  ;;  %v9404_v32 = vmul.f32 %v9143_v39, %v9143_v39 }
 0x24b   : > { %v9530_v40 = vadd.f32 %v9529_v7, %v9403_v52  ;;  %v9270_v14 = vadd.f32 %v9269_v2, %v9143_v39  ;;  %v9144_v63 = vadd.f32 %v14942_v61, %v9009_v42  ;;  %v8564_v25 = vpop.f32.mrf.mxu1  ;;  %v8210_v62 = vadd.f32 %v7759_v58, %v16165_v33 }
 0x24c   : > { %v11406_v5 = vpack.c.bf16 %v9146_v38, %v9145_v60  ;;  %v12419_v21 = vpop.f32.mrf.mxu0  ;;  %v9014_v31 = vadd.f32 %v12562_v59, %v8212_v51  ;;  %v9406_v2 = vmul.f32 %v9145_v60, %v9145_v60  ;;  %v9407_v59 = vmul.f32 %v9146_v38, %v9146_v38 }
 0x24d   : > { %v9531_v53 = vadd.f32 %v9530_v40, %v9404_v32  ;;  %v9271_v10 = vadd.f32 %v9270_v14, %v9144_v63  ;;  %v9405_v30 = vmul.f32 %v9144_v63, %v9144_v63  ;;  %v11401_v17 = vpack.c.bf16 %v9144_v63, %v9143_v39  ;;  %v12566_v9 = vpop.f32.mrf.mxu1  ;;  %12661 = vmatmul.mubr.msk.bf16.gmra.mxu1 %vm16166_vm1, %v14537_v46  ;;  %v16168_v39 = vld [vmem:[#allocation168_spill] sm:$0xff] }
 0x24e   : > { %11749 = vst [vmem:[%s14958_s9 + $0x48] sm:$0xff] %v11406_v5   ;;  %v9012_v6 = vadd.f32 %v8561_v48, %v8210_v62  ;;  %v8213_v57 = vadd.f32 %v12419_v21, %v16167_v13  ;;  %v7762_v52 = vpop.f32.mrf.mxu0  ;;  %12664 = vmatprep.mubr.msk.bf16.mxu1 %vm14525_vm4, %v14547_v15  ;;  %v9149_v3 = vadd.f32 %v14942_v61, %v9014_v31  ;;  %v16170_v21 = vld [vmem:[#allocation174_spill] sm:$0xff]  ;;  %vm9649_vm4 = vcmask 1040384  }
 0x24f   : > { %v9272_v7 = vadd.f32 %v9271_v10, %v9145_v60  ;;  %v9532_v42 = vadd.f32 %v9531_v53, %v9405_v30  ;;  %11748 = vst [vmem:[%s14958_s9 + $0x40] sm:$0xff] %v11401_v17   ;;  %v8211_v47 = vadd.f32 %v7762_v52, %v16168_v39  ;;  %v8577_v22 = vpop.f32.mrf.mxu1  ;;  %v16169_v60 = vld [vmem:[#allocation173_spill] sm:$0xff] }
 0x250   : > { %v9147_v44 = vadd.f32 %v14942_v61, %v9012_v6  ;;  %v9015_v46 = vadd.f32 %v12563_v19, %v8213_v57  ;;  %v12422_v58 = vpop.f32.mrf.mxu0  ;;  %12517 = vmatmul.mubr.bf16.gmra.mxu0 %v14514_v28  ;;  %v16171_v57 = vld [vmem:[#allocation175_spill] sm:$0xff] }
 0x251   : > { %v9273_v48 = vadd.f32 %v9272_v7, %v9146_v38  ;;  %v9533_v51 = vadd.f32 %v9532_v42, %v9406_v2  ;;  %v9013_v40 = vadd.f32 %v8564_v25, %v8211_v47  ;;  %v12567_v14 = vpop.f32.mrf.mxu1  ;;  %12520 = vmatprep.mubr.bf16.mxu0 %v14516_v4  ;;  %v8216_v32 = vadd.f32 %v12422_v58, %v16169_v60  ;;  %v16172_v47 = vld [vmem:[#allocation176_spill] sm:$0xff] }
 0x252   : > { %v9150_v15 = vadd.f32 %v14942_v61, %v9015_v46  ;;  %v7775_v63 = vpop.f32.mrf.mxu0  ;;  %v9408_v33 = vmul.f32 %v9147_v44, %v9147_v44  ;;  %v9410_v7 = vmul.f32 %v9149_v3, %v9149_v3 }
 0x253   : > { %v9534_v5 = vadd.f32 %v9533_v51, %v9407_v59  ;;  %v9274_v19 = vadd.f32 %v9273_v48, %v9147_v44  ;;  %v9148_v28 = vadd.f32 %v14942_v61, %v9013_v40  ;;  %v8580_v62 = vpop.f32.mrf.mxu1  ;;  %v8214_v25 = vadd.f32 %v7775_v63, %v16170_v21 }
 0x254   : > { %v11416_v38 = vpack.c.bf16 %v9150_v15, %v9149_v3  ;;  %v12423_v53 = vpop.f32.mrf.mxu0  ;;  %v9018_v6 = vadd.f32 %v12566_v9, %v8216_v32  ;;  %v9411_v51 = vmul.f32 %v9150_v15, %v9150_v15 }
 0x255   : > { %v9535_v4 = vadd.f32 %v9534_v5, %v9408_v33  ;;  %v9275_v10 = vadd.f32 %v9274_v19, %v9148_v28  ;;  %v9409_v30 = vmul.f32 %v9148_v28, %v9148_v28  ;;  %v11411_v17 = vpack.c.bf16 %v9148_v28, %v9147_v44  ;;  %v12570_v31 = vpop.f32.mrf.mxu1  ;;  %12665 = vmatmul.mubr.bf16.gmra.mxu1 %v16001_v54 }
 0x256   : > { %11751 = vst [vmem:[%s14958_s9 + $0x58] sm:$0xff] %v11416_v38   ;;  %v9016_v13 = vadd.f32 %v8577_v22, %v8214_v25  ;;  %v8217_v52 = vadd.f32 %v12423_v53, %v16171_v57  ;;  %v7778_v2 = vpop.f32.mrf.mxu0  ;;  %v9153_v32 = vadd.f32 %v14942_v61, %v9018_v6 }
 0x257   : > { %v9276_v42 = vadd.f32 %v9275_v10, %v9149_v3  ;;  %v9536_v39 = vadd.f32 %v9535_v4, %v9409_v30  ;;  %11750 = vst [vmem:[%s14958_s9 + $0x50] sm:$0xff] %v11411_v17   ;;  %v8215_v46 = vadd.f32 %v7778_v2, %v16172_v47  ;;  %v8593_v58 = vpop.f32.mrf.mxu1 }
 0x258   : > { %v9151_v59 = vadd.f32 %v14942_v61, %v9016_v13  ;;  %v9019_v48 = vadd.f32 %v12567_v14, %v8217_v52  ;;  %v12426_v44 = vpop.f32.mrf.mxu0  ;;  %12521 = vmatmul.mubr.bf16.gmra.mxu0 %v16001_v54  ;;  %v9414_v13 = vmul.f32 %v9153_v32, %v9153_v32 }
 0x259   : > { %v9277_v40 = vadd.f32 %v9276_v42, %v9150_v15  ;;  %v9537_v9 = vadd.f32 %v9536_v39, %v9410_v7  ;;  %v9017_v22 = vadd.f32 %v8580_v62, %v8215_v46  ;;  %v12571_v60 = vpop.f32.mrf.mxu1  ;;  %v8220_v63 = vadd.f32 %v12426_v44, %v14488_v49 }
 0x25a   : > { %v9154_v3 = vadd.f32 %v14942_v61, %v9019_v48  ;;  %v7791_v5 = vpop.f32.mrf.mxu0  ;;  %v9412_v28 = vmul.f32 %v9151_v59, %v9151_v59 }
 0x25b   : > { %v9538_v19 = vadd.f32 %v9537_v9, %v9411_v51  ;;  %v9278_v33 = vadd.f32 %v9277_v40, %v9151_v59  ;;  %v9152_v14 = vadd.f32 %v14942_v61, %v9017_v22  ;;  %v8596_v38 = vpop.f32.mrf.mxu1  ;;  %v8218_v15 = vadd.f32 %v7791_v5, %v14497_v56 }
 0x25c   : > { %v11426_v54 = vpack.c.bf16 %v9154_v3, %v9153_v32  ;;  %v12427_v62 = vpop.f32.mrf.mxu0  ;;  %v9022_v30 = vadd.f32 %v12570_v31, %v8220_v63  ;;  %v9415_v47 = vmul.f32 %v9154_v3, %v9154_v3 }
 0x25d   : > { %v9539_v21 = vadd.f32 %v9538_v19, %v9412_v28  ;;  %v9279_v25 = vadd.f32 %v9278_v33, %v9152_v14  ;;  %v9413_v53 = vmul.f32 %v9152_v14, %v9152_v14  ;;  %v11421_v4 = vpack.c.bf16 %v9152_v14, %v9151_v59  ;;  %v12574_v10 = vpop.f32.mrf.mxu1 }
 0x25e   : > { %11753 = vst [vmem:[%s14958_s9 + $0x68] sm:$0xff] %v11426_v54   ;;  %v9020_v49 = vadd.f32 %v8593_v58, %v8218_v15  ;;  %v8221_v17 = vadd.f32 %v12427_v62, %v14504_v45  ;;  %v7794_v6 = vpop.f32.mrf.mxu0  ;;  %v9157_v58 = vadd.f32 %v14942_v61, %v9022_v30 }
 0x25f   : > { %v9280_v57 = vadd.f32 %v9279_v25, %v9153_v32  ;;  %v9540_v52 = vadd.f32 %v9539_v21, %v9413_v53  ;;  %11752 = vst [vmem:[%s14958_s9 + $0x60] sm:$0xff] %v11421_v4   ;;  %v8219_v2 = vadd.f32 %v7794_v6, %v14508_v50  ;;  %v8609_v7 = vpop.f32.mrf.mxu1 }
 0x260   : > { %v9155_v56 = vadd.f32 %v14942_v61, %v9020_v49  ;;  %v9023_v42 = vadd.f32 %v12571_v60, %v8221_v17  ;;  %v12430_v39 = vpop.f32.mrf.mxu0  ;;  %v9418_v62 = vmul.f32 %v9157_v58, %v9157_v58 }
 0x261   : > { %v9281_v46 = vadd.f32 %v9280_v57, %v9154_v3  ;;  %v9541_v59 = vadd.f32 %v9540_v52, %v9414_v13  ;;  %v9021_v48 = vadd.f32 %v8596_v38, %v8219_v2  ;;  %v12575_v31 = vpop.f32.mrf.mxu1  ;;  %v8224_v44 = vadd.f32 %v12430_v39, %v14512_v24 }
 0x262   : > { %v9158_v45 = vadd.f32 %v14942_v61, %v9023_v42  ;;  %v7807_v51 = vpop.f32.mrf.mxu0  ;;  %v9416_v9 = vmul.f32 %v9155_v56, %v9155_v56 }
 0x263   : > { %v9542_v40 = vadd.f32 %v9541_v59, %v9415_v47  ;;  %v9282_v50 = vadd.f32 %v9281_v46, %v9155_v56  ;;  %v9156_v22 = vadd.f32 %v14942_v61, %v9021_v48  ;;  %v8612_v60 = vpop.f32.mrf.mxu1  ;;  %v8222_v3 = vadd.f32 %v7807_v51, %v14520_v36 }
 0x264   : > { %v11436_v32 = vpack.c.bf16 %v9158_v45, %v9157_v58  ;;  %v12431_v63 = vpop.f32.mrf.mxu0  ;;  %v9026_v38 = vadd.f32 %v12574_v10, %v8224_v44  ;;  %v9419_v17 = vmul.f32 %v9158_v45, %v9158_v45 }
 0x265   : > { %v9543_v5 = vadd.f32 %v9542_v40, %v9416_v9  ;;  %v9283_v19 = vadd.f32 %v9282_v50, %v9156_v22  ;;  %v9417_v33 = vmul.f32 %v9156_v22, %v9156_v22  ;;  %v11431_v28 = vpack.c.bf16 %v9156_v22, %v9155_v56  ;;  %v12578_v14 = vpop.f32.mrf.mxu1 }
 0x266   : > { %11755 = vst [vmem:[%s14958_s9 + $0x78] sm:$0xff] %v11436_v32   ;;  %v9024_v24 = vadd.f32 %v8609_v7, %v8222_v3  ;;  %v8225_v54 = vadd.f32 %v12431_v63, %v14532_v37  ;;  %v7810_v15 = vpop.f32.mrf.mxu0  ;;  %v9161_v52 = vadd.f32 %v14942_v61, %v9026_v38 }
 0x267   : > { %v9284_v21 = vadd.f32 %v9283_v19, %v9157_v58  ;;  %v9544_v25 = vadd.f32 %v9543_v5, %v9417_v33  ;;  %11754 = vst [vmem:[%s14958_s9 + $0x70] sm:$0xff] %v11431_v28   ;;  %v8223_v53 = vadd.f32 %v7810_v15, %v14535_v43  ;;  %v8625_v4 = vpop.f32.mrf.mxu1 }
 0x268   : > { %v9159_v36 = vadd.f32 %v14942_v61, %v9024_v24  ;;  %v9027_v30 = vadd.f32 %v12575_v31, %v8225_v54  ;;  %v12434_v49 = vpop.f32.mrf.mxu0  ;;  %v9422_v22 = vmul.f32 %v9161_v52, %v9161_v52 }
 0x269   : > { %v9285_v6 = vadd.f32 %v9284_v21, %v9158_v45  ;;  %v9545_v13 = vadd.f32 %v9544_v25, %v9418_v62  ;;  %v9025_v57 = vadd.f32 %v8612_v60, %v8223_v53  ;;  %v12579_v10 = vpop.f32.mrf.mxu1  ;;  %v8228_v2 = vadd.f32 %v12434_v49, %v14545_v16 }
 0x26a   : > { %v9162_v37 = vadd.f32 %v14942_v61, %v9027_v30  ;;  %v7823_v7 = vpop.f32.mrf.mxu0  ;;  %v9420_v42 = vmul.f32 %v9159_v36, %v9159_v36 }
 0x26b   : > { %v9546_v56 = vadd.f32 %v9545_v13, %v9419_v17  ;;  %v9286_v43 = vadd.f32 %v9285_v6, %v9159_v36  ;;  %v9160_v39 = vadd.f32 %v14942_v61, %v9025_v57  ;;  %v8628_v47 = vpop.f32.mrf.mxu1  ;;  %v8226_v59 = vadd.f32 %v7823_v7, %v14552_v0 }
 0x26c   : > { %v11446_v46 = vpack.c.bf16 %v9162_v37, %v9161_v52  ;;  %v12435_v48 = vpop.f32.mrf.mxu0  ;;  %v9030_v40 = vadd.f32 %v12578_v14, %v8228_v2  ;;  %v9423_v33 = vmul.f32 %v9162_v37, %v9162_v37 }
 0x26d   : > { %v9547_v31 = vadd.f32 %v9546_v56, %v9420_v42  ;;  %v9287_v58 = vadd.f32 %v9286_v43, %v9160_v39  ;;  %v9421_v45 = vmul.f32 %v9160_v39, %v9160_v39  ;;  %v11441_v44 = vpack.c.bf16 %v9160_v39, %v9159_v36  ;;  %v12582_v51 = vpop.f32.mrf.mxu1 }
 0x26e   : > { %11757 = vst [vmem:[%s14958_s9 + $0x88] sm:$0xff] %v11446_v46   ;;  %v9028_v16 = vadd.f32 %v8625_v4, %v8226_v59  ;;  %v8229_v50 = vadd.f32 %v12435_v48, %v14554_v23  ;;  %v7826_v9 = vpop.f32.mrf.mxu0  ;;  %v9165_v54 = vadd.f32 %v14942_v61, %v9030_v40 }
 0x26f   : > { %v9288_v60 = vadd.f32 %v9287_v58, %v9161_v52  ;;  %v9548_v32 = vadd.f32 %v9547_v31, %v9421_v45  ;;  %11756 = vst [vmem:[%s14958_s9 + $0x80] sm:$0xff] %v11441_v44   ;;  %v8227_v3 = vadd.f32 %v7826_v9, %v14556_v35  ;;  %v8641_v63 = vpop.f32.mrf.mxu1 }
 0x270   : > { %v9163_v0 = vadd.f32 %v14942_v61, %v9028_v16  ;;  %v9031_v5 = vadd.f32 %v12579_v10, %v8229_v50  ;;  %v12438_v19 = vpop.f32.mrf.mxu0  ;;  %v9426_v7 = vmul.f32 %v9165_v54, %v9165_v54 }
 0x271   : > { %v9289_v28 = vadd.f32 %v9288_v60, %v9162_v37  ;;  %v9549_v38 = vadd.f32 %v9548_v32, %v9422_v22  ;;  %v9029_v24 = vadd.f32 %v8628_v47, %v8227_v3  ;;  %v12583_v14 = vpop.f32.mrf.mxu1  ;;  %v8232_v15 = vadd.f32 %v12438_v19, %v14561_v8 }
 0x272   : > { %v9166_v23 = vadd.f32 %v14942_v61, %v9031_v5  ;;  %v7839_v62 = vpop.f32.mrf.mxu0  ;;  %v9424_v25 = vmul.f32 %v9163_v0, %v9163_v0 }
 0x273   : > { %v9550_v21 = vadd.f32 %v9549_v38, %v9423_v33  ;;  %v9290_v35 = vadd.f32 %v9289_v28, %v9163_v0  ;;  %v9164_v53 = vadd.f32 %v14942_v61, %v9029_v24  ;;  %v8644_v4 = vpop.f32.mrf.mxu1  ;;  %v8230_v30 = vadd.f32 %v7839_v62, %v14565_v11 }
 0x274   : > { %v11456_v36 = vpack.c.bf16 %v9166_v23, %v9165_v54  ;;  %v12439_v49 = vpop.f32.mrf.mxu0  ;;  %v9034_v52 = vadd.f32 %v12582_v51, %v8232_v15  ;;  %v9427_v59 = vmul.f32 %v9166_v23, %v9166_v23 }
 0x275   : > { %v9551_v17 = vadd.f32 %v9550_v21, %v9424_v25  ;;  %v9291_v6 = vadd.f32 %v9290_v35, %v9164_v53  ;;  %v9425_v13 = vmul.f32 %v9164_v53, %v9164_v53  ;;  %v11451_v57 = vpack.c.bf16 %v9164_v53, %v9163_v0  ;;  %v12586_v10 = vpop.f32.mrf.mxu1 }
 0x276   : > { %11759 = vst [vmem:[%s14958_s9 + $0x98] sm:$0xff] %v11456_v36   ;;  %v9032_v8 = vadd.f32 %v8641_v63, %v8230_v30  ;;  %v8233_v37 = vadd.f32 %v12439_v49, %v14567_v12  ;;  %v7842_v2 = vpop.f32.mrf.mxu0  ;;  %v9169_v44 = vadd.f32 %v14942_v61, %v9034_v52 }
 0x277   : > { %v9292_v56 = vadd.f32 %v9291_v6, %v9165_v54  ;;  %v9552_v43 = vadd.f32 %v9551_v17, %v9425_v13  ;;  %11758 = vst [vmem:[%s14958_s9 + $0x90] sm:$0xff] %v11451_v57   ;;  %v8231_v42 = vadd.f32 %v7842_v2, %v14572_v55  ;;  %v8657_v39 = vpop.f32.mrf.mxu1 }
 0x278   : > { %v9167_v11 = vadd.f32 %v14942_v61, %v9032_v8  ;;  %v9035_v47 = vadd.f32 %v12583_v14, %v8233_v37  ;;  %v12442_v46 = vpop.f32.mrf.mxu0  ;;  %v9430_v14 = vmul.f32 %v9169_v44, %v9169_v44 }
 0x279   : > { %v9293_v48 = vadd.f32 %v9292_v56, %v9166_v23  ;;  %v9553_v31 = vadd.f32 %v9552_v43, %v9426_v7  ;;  %v9033_v58 = vadd.f32 %v8644_v4, %v8231_v42  ;;  %v12587_v45 = vpop.f32.mrf.mxu1  ;;  %v8236_v51 = vadd.f32 %v12442_v46, %v14579_v34 }
 0x27a   : > { %v9170_v12 = vadd.f32 %v14942_v61, %v9035_v47  ;;  %v7855_v40 = vpop.f32.mrf.mxu0  ;;  %v9428_v50 = vmul.f32 %v9167_v11, %v9167_v11 }
 0x27b   : > { %v9554_v16 = vadd.f32 %v9553_v31, %v9427_v59  ;;  %v9294_v55 = vadd.f32 %v9293_v48, %v9167_v11  ;;  %v9168_v9 = vadd.f32 %v14942_v61, %v9033_v58  ;;  %v8660_v22 = vpop.f32.mrf.mxu1  ;;  %v8234_v32 = vadd.f32 %v7855_v40, %v14581_v27 }
 0x27c   : > { %v11466_v60 = vpack.c.bf16 %v9170_v12, %v9169_v44  ;;  %v12443_v3 = vpop.f32.mrf.mxu0  ;;  %v9038_v28 = vadd.f32 %v12586_v10, %v8236_v51  ;;  %v9431_v25 = vmul.f32 %v9170_v12, %v9170_v12 }
 0x27d   : > { %v9555_v63 = vadd.f32 %v9554_v16, %v9428_v50  ;;  %v9295_v0 = vadd.f32 %v9294_v55, %v9168_v9  ;;  %v9429_v5 = vmul.f32 %v9168_v9, %v9168_v9  ;;  %v11461_v19 = vpack.c.bf16 %v9168_v9, %v9167_v11  ;;  %v12590_v33 = vpop.f32.mrf.mxu1 }
 0x27e   : > { %11761 = vst [vmem:[%s14958_s9 + $0xa8] sm:$0xff] %v11466_v60   ;;  %v9036_v34 = vadd.f32 %v8657_v39, %v8234_v32  ;;  %v8237_v38 = vadd.f32 %v12443_v3, %v14586_v41  ;;  %v7858_v24 = vpop.f32.mrf.mxu0  ;;  %v9173_v49 = vadd.f32 %v14942_v61, %v9038_v28 }
 0x27f   : > { %v9296_v54 = vadd.f32 %v9295_v0, %v9169_v44  ;;  %v9556_v23 = vadd.f32 %v9555_v63, %v9429_v5  ;;  %11760 = vst [vmem:[%s14958_s9 + $0xa0] sm:$0xff] %v11461_v19   ;;  %v8235_v15 = vadd.f32 %v7858_v24, %v14591_v1  ;;  %v8673_v62 = vpop.f32.mrf.mxu1 }
 0x280   : > { %v9171_v27 = vadd.f32 %v14942_v61, %v9036_v34  ;;  %v9039_v21 = vadd.f32 %v12587_v45, %v8237_v38  ;;  %v12446_v35 = vpop.f32.mrf.mxu0  ;;  %v9434_v59 = vmul.f32 %v9173_v49, %v9173_v49 }
 0x281   : > { %v9297_v53 = vadd.f32 %v9296_v54, %v9170_v12  ;;  %v9557_v4 = vadd.f32 %v9556_v23, %v9430_v14  ;;  %v9037_v36 = vadd.f32 %v8660_v22, %v8235_v15  ;;  %v12591_v30 = vpop.f32.mrf.mxu1  ;;  %v8240_v17 = vadd.f32 %v12446_v35, %v14595_v20  ;;  %v16173_v22 = vld [vmem:[#allocation181_spill] sm:$0xff] }
 0x282   : > { %v9174_v41 = vadd.f32 %v14942_v61, %v9039_v21  ;;  %v7871_v6 = vpop.f32.mrf.mxu0  ;;  %v9432_v57 = vmul.f32 %v9171_v27, %v9171_v27 }
 0x283   : > { %v9558_v13 = vadd.f32 %v9557_v4, %v9431_v25  ;;  %v9298_v1 = vadd.f32 %v9297_v53, %v9171_v27  ;;  %v9172_v10 = vadd.f32 %v14942_v61, %v9037_v36  ;;  %v8676_v52 = vpop.f32.mrf.mxu1  ;;  %v8238_v37 = vadd.f32 %v7871_v6, %v14597_v26  ;;  %v16176_v36 = vld [vmem:[#allocation4_spill] sm:$0xff] }
 0x284   : > { %v11476_v8 = vpack.c.bf16 %v9174_v41, %v9173_v49  ;;  %v12447_v2 = vpop.f32.mrf.mxu0  ;;  %v9042_v11 = vadd.f32 %v12590_v33, %v8240_v17  ;;  %v9435_v51 = vmul.f32 %v9174_v41, %v9174_v41  ;;  %v16174_v33 = vld [vmem:[#allocation3_spill] sm:$0xff] }
 0x285   : > { %v9559_v7 = vadd.f32 %v9558_v13, %v9432_v57  ;;  %v9299_v56 = vadd.f32 %v9298_v1, %v9172_v10  ;;  %v9433_v43 = vmul.f32 %v9172_v10, %v9172_v10  ;;  %v11471_v42 = vpack.c.bf16 %v9172_v10, %v9171_v27  ;;  %v12594_v39 = vpop.f32.mrf.mxu1  ;;  %v16175_v27 = vld [vmem:[#allocation7_spill] sm:$0xff] }
 0x286   : > { %11763 = vst [vmem:[%s14958_s9 + $0xb8] sm:$0xff] %v11476_v8   ;;  %v9040_v20 = vadd.f32 %v8673_v62, %v8238_v37  ;;  %v8241_v47 = vadd.f32 %v12447_v2, %v14602_v18  ;;  %v7874_v46 = vpop.f32.mrf.mxu0  ;;  %v9177_v9 = vadd.f32 %v14942_v61, %v9042_v11  ;;  %v16177_v2 = vld [vmem:[#allocation2_spill] sm:$0xff] }
 0x287   : > { %v9300_v48 = vadd.f32 %v9299_v56, %v9173_v49  ;;  %v9560_v31 = vadd.f32 %v9559_v7, %v9433_v43  ;;  %11762 = vst [vmem:[%s14958_s9 + $0xb0] sm:$0xff] %v11471_v42   ;;  %v8239_v58 = vadd.f32 %v7874_v46, %v14607_v29  ;;  %v8689_v45 = vpop.f32.mrf.mxu1  ;;  %v16178_v46 = vld [vmem:[#allocation5_spill] sm:$0xff] }
 0x288   : > { %v9175_v26 = vadd.f32 %v14942_v61, %v9040_v20  ;;  %v9043_v44 = vadd.f32 %v12591_v30, %v8241_v47  ;;  %v12450_v12 = vpop.f32.mrf.mxu0  ;;  %v9438_v25 = vmul.f32 %v9177_v9, %v9177_v9 }
 0x289   : > { %v9301_v40 = vadd.f32 %v9300_v48, %v9174_v41  ;;  %v9561_v16 = vadd.f32 %v9560_v31, %v9434_v59  ;;  %v9041_v55 = vadd.f32 %v8676_v52, %v8239_v58  ;;  %v12595_v50 = vpop.f32.mrf.mxu1  ;;  %v8244_v60 = vadd.f32 %v12450_v12, %v16173_v22 }
 0x28a   : > { %v9178_v18 = vadd.f32 %v14942_v61, %v9043_v44  ;;  %v7887_v32 = vpop.f32.mrf.mxu0  ;;  %v9436_v63 = vmul.f32 %v9175_v26, %v9175_v26 }
 0x28b   : > { %v9562_v3 = vadd.f32 %v9561_v16, %v9435_v51  ;;  %v9302_v29 = vadd.f32 %v9301_v40, %v9175_v26  ;;  %v9176_v0 = vadd.f32 %v14942_v61, %v9041_v55  ;;  %v8692_v5 = vpop.f32.mrf.mxu1  ;;  %v8242_v28 = vadd.f32 %v7887_v32, %v16174_v33  ;;  %v16179_v40 = vld [vmem:[#allocation10_spill] sm:$0xff] }
 0x28c   : > { %v11486_v19 = vpack.c.bf16 %v9178_v18, %v9177_v9  ;;  %v12451_v34 = vpop.f32.mrf.mxu0  ;;  %v9046_v15 = vadd.f32 %v12594_v39, %v8244_v60  ;;  %v9439_v13 = vmul.f32 %v9178_v18, %v9178_v18  ;;  %v15142_v32 = vld [vmem:[%s15337_s4] ss:$0 sm:$0xff] }
 0x28d   : > { %v9563_v38 = vadd.f32 %v9562_v3, %v9436_v63  ;;  %v9303_v24 = vadd.f32 %v9302_v29, %v9176_v0  ;;  %v9437_v14 = vmul.f32 %v9176_v0, %v9176_v0  ;;  %v11481_v54 = vpack.c.bf16 %v9176_v0, %v9175_v26  ;;  %v12598_v23 = vpop.f32.mrf.mxu1 }
 0x28e   : > { %11765 = vst [vmem:[%s14958_s9 + $0xc8] sm:$0xff] %v11486_v19   ;;  %v9044_v62 = vadd.f32 %v8689_v45, %v8242_v28  ;;  %v8245_v21 = vadd.f32 %v12451_v34, %v16175_v27  ;;  %v7890_v35 = vpop.f32.mrf.mxu0  ;;  %v9181_v8 = vadd.f32 %v14942_v61, %v9046_v15 }
 0x28f   : > { %v9304_v53 = vadd.f32 %v9303_v24, %v9177_v9  ;;  %v9564_v4 = vadd.f32 %v9563_v38, %v9437_v14  ;;  %11764 = vst [vmem:[%s14958_s9 + $0xc0] sm:$0xff] %v11481_v54   ;;  %v8243_v30 = vadd.f32 %v7890_v35, %v16176_v36  ;;  %v8705_v49 = vpop.f32.mrf.mxu1  ;;  %v16181_v24 = vld [vmem:[#allocation13_spill] sm:$0xff] }
 0x290   : > { %v9179_v41 = vadd.f32 %v14942_v61, %v9044_v62  ;;  %v9047_v17 = vadd.f32 %v12595_v50, %v8245_v21  ;;  %v12454_v6 = vpop.f32.mrf.mxu0  ;;  %v9442_v50 = vmul.f32 %v9181_v8, %v9181_v8 }
 0x291   : > { %v9305_v1 = vadd.f32 %v9304_v53, %v9178_v18  ;;  %v9565_v57 = vadd.f32 %v9564_v4, %v9438_v25  ;;  %v9045_v10 = vadd.f32 %v8692_v5, %v8243_v30  ;;  %v12599_v52 = vpop.f32.mrf.mxu1  ;;  %v8248_v7 = vadd.f32 %v12454_v6, %v16177_v2  ;;  %v16180_v18 = vld [vmem:[#allocation6_spill] sm:$0xff]  ;;  %v16182_v25 = vld [vmem:[#allocation9_spill] sm:$0xff]  ;;  %v16184_v2 = vld [vmem:[#allocation11_spill] sm:$0xff] }
 0x292   : > { %v9182_v37 = vadd.f32 %v14942_v61, %v9047_v17  ;;  %v7903_v56 = vpop.f32.mrf.mxu0  ;;  %v9440_v39 = vmul.f32 %v9179_v41, %v9179_v41 }
 0x293   : > { %v9566_v43 = vadd.f32 %v9565_v57, %v9439_v13  ;;  %v9306_v42 = vadd.f32 %v9305_v1, %v9179_v41  ;;  %v9180_v11 = vadd.f32 %v14942_v61, %v9045_v10  ;;  %v8708_v20 = vpop.f32.mrf.mxu1  ;;  %v8246_v59 = vadd.f32 %v7903_v56, %v16178_v46  ;;  %v16183_v1 = vld [vmem:[#allocation8_spill] sm:$0xff] }
 0x294   : > { %v11496_v47 = vpack.c.bf16 %v9182_v37, %v9181_v8  ;;  %v12455_v48 = vpop.f32.mrf.mxu0  ;;  %v9050_v12 = vadd.f32 %v12598_v23, %v8248_v7  ;;  %v9443_v0 = vmul.f32 %v9182_v37, %v9182_v37 }
 0x295   : > { %v9567_v31 = vadd.f32 %v9566_v43, %v9440_v39  ;;  %v9307_v58 = vadd.f32 %v9306_v42, %v9180_v11  ;;  %v9441_v45 = vmul.f32 %v9180_v11, %v9180_v11  ;;  %v11491_v26 = vpack.c.bf16 %v9180_v11, %v9179_v41  ;;  %v12602_v44 = vpop.f32.mrf.mxu1 }
 0x296   : > { %11767 = vst [vmem:[%s14958_s9 + $0xd8] sm:$0xff] %v11496_v47   ;;  %v9048_v51 = vadd.f32 %v8705_v49, %v8246_v59  ;;  %v8249_v16 = vadd.f32 %v12455_v48, %v16179_v40  ;;  %v7906_v55 = vpop.f32.mrf.mxu0  ;;  %v9185_v34 = vadd.f32 %v15142_v32, %v9050_v12 }
 0x297   : > { %v9308_v9 = vadd.f32 %v9307_v58, %v9181_v8  ;;  %v9568_v61 = vadd.f32 %v9567_v31, %v9441_v45  ;;  %11766 = vst [vmem:[%s14958_s9 + $0xd0] sm:$0xff] %v11491_v26   ;;  %v8247_v22 = vadd.f32 %v7906_v55, %v16180_v18  ;;  %v8721_v60 = vpop.f32.mrf.mxu1  ;;  %v16185_v58 = vld [vmem:[#allocation16_spill] sm:$0xff] }
 0x298   : > { %v9183_v3 = vadd.f32 %v15142_v32, %v9048_v51  ;;  %v9051_v29 = vadd.f32 %v12599_v52, %v8249_v16  ;;  %v12458_v63 = vpop.f32.mrf.mxu0  ;;  %v9446_v52 = vmul.f32 %v9185_v34, %v9185_v34 }
 0x299   : > { %v9309_v5 = vadd.f32 %v9308_v9, %v9182_v37  ;;  %v9569_v19 = vadd.f32 %v9568_v61, %v9442_v50  ;;  %v9049_v33 = vadd.f32 %v8708_v20, %v8247_v22  ;;  %v12603_v28 = vpop.f32.mrf.mxu1  ;;  %v8252_v14 = vadd.f32 %v12458_v63, %v16181_v24  ;;  %v16186_v50 = vld [vmem:[#allocation12_spill] sm:$0xff]  ;;  %v16188_v24 = vld [vmem:[#allocation15_spill] sm:$0xff] }
 0x29a   : > { %v9186_v38 = vadd.f32 %v15142_v32, %v9051_v29  ;;  %v7919_v54 = vpop.f32.mrf.mxu0  ;;  %v9444_v62 = vmul.f32 %v9183_v3, %v9183_v3 }
 0x29b   : > { %v9570_v23 = vadd.f32 %v9569_v19, %v9443_v0  ;;  %v9310_v15 = vadd.f32 %v9309_v5, %v9183_v3  ;;  %v9184_v27 = vadd.f32 %v15142_v32, %v9049_v33  ;;  %v8724_v21 = vpop.f32.mrf.mxu1  ;;  %v8250_v53 = vadd.f32 %v7919_v54, %v16182_v25  ;;  %v16187_v5 = vld [vmem:[#allocation19_spill] sm:$0xff] }
 0x29c   : > { %v11506_v35 = vpack.c.bf16 %v9186_v38, %v9185_v34  ;;  %v12459_v4 = vpop.f32.mrf.mxu0  ;;  %v9054_v6 = vadd.f32 %v12602_v44, %v8252_v14  ;;  %v9447_v11 = vmul.f32 %v9186_v38, %v9186_v38 }
 0x29d   : > { %v9571_v36 = vadd.f32 %v9570_v23, %v9444_v62  ;;  %v9311_v30 = vadd.f32 %v9310_v15, %v9184_v27  ;;  %v9445_v49 = vmul.f32 %v9184_v27, %v9184_v27  ;;  %v11501_v41 = vpack.c.bf16 %v9184_v27, %v9183_v3  ;;  %v12606_v17 = vpop.f32.mrf.mxu1 }
 0x29e   : > { %11769 = vst [vmem:[%s14958_s9 + $0xe8] sm:$0xff] %v11506_v35   ;;  %v9052_v13 = vadd.f32 %v8721_v60, %v8250_v53  ;;  %v8253_v57 = vadd.f32 %v12459_v4, %v16183_v1  ;;  %v7922_v10 = vpop.f32.mrf.mxu0  ;;  %v9189_v48 = vadd.f32 %v15142_v32, %v9054_v6 }
 0x29f   : > { %v9312_v8 = vadd.f32 %v9311_v30, %v9185_v34  ;;  %v9572_v37 = vadd.f32 %v9571_v36, %v9445_v49  ;;  %11768 = vst [vmem:[%s14958_s9 + $0xe0] sm:$0xff] %v11501_v41   ;;  %v8251_v7 = vadd.f32 %v7922_v10, %v16184_v2  ;;  %v8737_v56 = vpop.f32.mrf.mxu1  ;;  %v16189_v30 = vld [vmem:[#allocation14_spill] sm:$0xff] }
 0x2a0   : > { %v9187_v43 = vadd.f32 %v15142_v32, %v9052_v13  ;;  %v9055_v42 = vadd.f32 %v12603_v28, %v8253_v57  ;;  %v12462_v39 = vpop.f32.mrf.mxu0  ;;  %v9450_v28 = vmul.f32 %v9189_v48, %v9189_v48 }
 0x2a1   : > { %v9313_v20 = vadd.f32 %v9312_v8, %v9186_v38  ;;  %v9573_v47 = vadd.f32 %v9572_v37, %v9446_v52  ;;  %v9053_v46 = vadd.f32 %v8724_v21, %v8251_v7  ;;  %v12607_v59 = vpop.f32.mrf.mxu1  ;;  %v8256_v45 = vadd.f32 %v12462_v39, %v16185_v58  ;;  %v16190_v52 = vld [vmem:[#allocation17_spill] sm:$0xff]  ;;  %v16192_v58 = vld [vmem:[#allocation18_spill] sm:$0xff] }
 0x2a2   : > { %v9190_v31 = vadd.f32 %v15142_v32, %v9055_v42  ;;  %v7935_v26 = vpop.f32.mrf.mxu0  ;;  %v9448_v51 = vmul.f32 %v9187_v43, %v9187_v43 }
 0x2a3   : > { %v9574_v44 = vadd.f32 %v9573_v47, %v9447_v11  ;;  %v9314_v12 = vadd.f32 %v9313_v20, %v9187_v43  ;;  %v9188_v40 = vadd.f32 %v15142_v32, %v9053_v46  ;;  %v8740_v16 = vpop.f32.mrf.mxu1  ;;  %v8254_v9 = vadd.f32 %v7935_v26, %v16186_v50  ;;  %v16191_v20 = vld [vmem:[#allocation22_spill] sm:$0xff] }
 0x2a4   : > { %v11516_v55 = vpack.c.bf16 %v9190_v31, %v9189_v48  ;;  %v12463_v61 = vpop.f32.mrf.mxu0  ;;  %v9058_v63 = vadd.f32 %v12606_v17, %v8256_v45  ;;  %v9451_v27 = vmul.f32 %v9190_v31, %v9190_v31 }
 0x2a5   : > { %v9575_v18 = vadd.f32 %v9574_v44, %v9448_v51  ;;  %v9315_v22 = vadd.f32 %v9314_v12, %v9188_v40  ;;  %v9449_v60 = vmul.f32 %v9188_v40, %v9188_v40  ;;  %v11511_v3 = vpack.c.bf16 %v9188_v40, %v9187_v43  ;;  %v12610_v29 = vpop.f32.mrf.mxu1 }
 0x2a6   : > { %11771 = vst [vmem:[%s14958_s9 + $0xf8] sm:$0xff] %v11516_v55   ;;  %v9056_v0 = vadd.f32 %v8737_v56, %v8254_v9  ;;  %v8257_v19 = vadd.f32 %v12463_v61, %v16187_v5  ;;  %v7938_v33 = vpop.f32.mrf.mxu0  ;;  %v9193_v4 = vadd.f32 %v15142_v32, %v9058_v63 }
 0x2a7   : > { %v9316_v34 = vadd.f32 %v9315_v22, %v9189_v48  ;;  %v9576_v38 = vadd.f32 %v9575_v18, %v9449_v60  ;;  %11770 = vst [vmem:[%s14958_s9 + $0xf0] sm:$0xff] %v11511_v3   ;;  %v8255_v14 = vadd.f32 %v7938_v33, %v16188_v24  ;;  %v8753_v54 = vpop.f32.mrf.mxu1  ;;  %v16193_v22 = vld [vmem:[#allocation24_spill] sm:$0xff] }
 0x2a8   : > { %v9191_v23 = vadd.f32 %v15142_v32, %v9056_v0  ;;  %v9059_v15 = vadd.f32 %v12607_v59, %v8257_v19  ;;  %v12466_v62 = vpop.f32.mrf.mxu0  ;;  %v9454_v59 = vmul.f32 %v9193_v4, %v9193_v4 }
 0x2a9   : > { %v9317_v21 = vadd.f32 %v9316_v34, %v9190_v31  ;;  %v9577_v35 = vadd.f32 %v9576_v38, %v9450_v28  ;;  %v9057_v25 = vadd.f32 %v8740_v16, %v8255_v14  ;;  %v12611_v53 = vpop.f32.mrf.mxu1  ;;  %v8260_v49 = vadd.f32 %v12466_v62, %v16189_v30  ;;  %v16194_v28 = vld [vmem:[#allocation21_spill] sm:$0xff]  ;;  %v16196_v30 = vld [vmem:[#allocation23_spill] sm:$0xff] }
 0x2aa   : > { %v9194_v36 = vadd.f32 %v15142_v32, %v9059_v15  ;;  %v7951_v41 = vpop.f32.mrf.mxu0  ;;  %v9452_v13 = vmul.f32 %v9191_v23, %v9191_v23 }
 0x2ab   : > { %v9578_v17 = vadd.f32 %v9577_v35, %v9451_v27  ;;  %v9318_v6 = vadd.f32 %v9317_v21, %v9191_v23  ;;  %v9192_v1 = vadd.f32 %v15142_v32, %v9057_v25  ;;  %v8756_v57 = vpop.f32.mrf.mxu1  ;;  %v8258_v8 = vadd.f32 %v7951_v41, %v16190_v52  ;;  %v16195_v21 = vld [vmem:[#allocation20_spill] sm:$0xff] }
 0x2ac   : > { %v11526_v10 = vpack.c.bf16 %v9194_v36, %v9193_v4  ;;  %v12467_v37 = vpop.f32.mrf.mxu0  ;;  %v9062_v39 = vadd.f32 %v12610_v29, %v8260_v49  ;;  %v9455_v40 = vmul.f32 %v9194_v36, %v9194_v36 }
 0x2ad   : > { %v9579_v2 = vadd.f32 %v9578_v17, %v9452_v13  ;;  %v9319_v7 = vadd.f32 %v9318_v6, %v9192_v1  ;;  %v9453_v56 = vmul.f32 %v9192_v1, %v9192_v1  ;;  %v11521_v43 = vpack.c.bf16 %v9192_v1, %v9191_v23  ;;  %v12614_v42 = vpop.f32.mrf.mxu1 }
 0x2ae   : > { %11773 = vst [vmem:[%s14958_s9 + $0x108] sm:$0xff] %v11526_v10   ;;  %v9060_v11 = vadd.f32 %v8753_v54, %v8258_v8  ;;  %v8261_v47 = vadd.f32 %v12467_v37, %v16191_v20  ;;  %v7954_v46 = vpop.f32.mrf.mxu0  ;;  %v9197_v61 = vadd.f32 %v15142_v32, %v9062_v39 }
 0x2af   : > { %v9320_v48 = vadd.f32 %v9319_v7, %v9193_v4  ;;  %v9580_v31 = vadd.f32 %v9579_v2, %v9453_v56  ;;  %11772 = vst [vmem:[%s14958_s9 + $0x100] sm:$0xff] %v11521_v43   ;;  %v8259_v45 = vadd.f32 %v7954_v46, %v16192_v58  ;;  %v8769_v26 = vpop.f32.mrf.mxu1  ;;  %v16197_v7 = vld [vmem:[#allocation28_spill] sm:$0xff] }
 0x2b0   : > { %v9195_v44 = vadd.f32 %v15142_v32, %v9060_v11  ;;  %v9063_v12 = vadd.f32 %v12611_v53, %v8261_v47  ;;  %v12470_v51 = vpop.f32.mrf.mxu0  ;;  %v9458_v53 = vmul.f32 %v9197_v61, %v9197_v61 }
 0x2b1   : > { %v9581_v16 = vadd.f32 %v9580_v31, %v9454_v59  ;;  %v9321_v55 = vadd.f32 %v9320_v48, %v9194_v36  ;;  %v9061_v50 = vadd.f32 %v8756_v57, %v8259_v45  ;;  %v12615_v9 = vpop.f32.mrf.mxu1  ;;  %v8264_v60 = vadd.f32 %v12470_v51, %v16193_v22  ;;  %v16198_v59 = vld [vmem:[#allocation25_spill] sm:$0xff]  ;;  %v16200_v22 = vld [vmem:[#allocation31_spill] sm:$0xff] }
 0x2b2   : > { %v9198_v18 = vadd.f32 %v15142_v32, %v9063_v12  ;;  %v7967_v3 = vpop.f32.mrf.mxu0  ;;  %v9456_v63 = vmul.f32 %v9195_v44, %v9195_v44 }
 0x2b3   : > { %v9322_v29 = vadd.f32 %v9321_v55, %v9195_v44  ;;  %v9582_v0 = vadd.f32 %v9581_v16, %v9455_v40  ;;  %v9196_v5 = vadd.f32 %v15142_v32, %v9061_v50  ;;  %v8772_v19 = vpop.f32.mrf.mxu1  ;;  %v8262_v34 = vadd.f32 %v7967_v3, %v16194_v28  ;;  %v16199_v16 = vld [vmem:[#allocation26_spill] sm:$0xff] }
 0x2b4   : > { %v11536_v33 = vpack.c.bf16 %v9198_v18, %v9197_v61  ;;  %v12471_v38 = vpop.f32.mrf.mxu0  ;;  %v9066_v62 = vadd.f32 %v12614_v42, %v8264_v60  ;;  %v9459_v1 = vmul.f32 %v9198_v18, %v9198_v18 }
 0x2b5   : > { %v9583_v24 = vadd.f32 %v9582_v0, %v9456_v63  ;;  %v9323_v14 = vadd.f32 %v9322_v29, %v9196_v5  ;;  %v9457_v54 = vmul.f32 %v9196_v5, %v9196_v5  ;;  %v11531_v23 = vpack.c.bf16 %v9196_v5, %v9195_v44  ;;  %v12618_v15 = vpop.f32.mrf.mxu1 }
 0x2b6   : > { %11775 = vst [vmem:[%s14958_s9 + $0x118] sm:$0xff] %v11536_v33   ;;  %v9064_v27 = vadd.f32 %v8769_v26, %v8262_v34  ;;  %v8265_v35 = vadd.f32 %v12471_v38, %v16195_v21  ;;  %v7970_v25 = vpop.f32.mrf.mxu0  ;;  %v9201_v37 = vadd.f32 %v15142_v32, %v9066_v62 }
 0x2b7   : > { %v9324_v4 = vadd.f32 %v9323_v14, %v9197_v61  ;;  %v9584_v36 = vadd.f32 %v9583_v24, %v9457_v54  ;;  %11774 = vst [vmem:[%s14958_s9 + $0x110] sm:$0xff] %v11531_v23   ;;  %v8263_v49 = vadd.f32 %v7970_v25, %v16196_v30  ;;  %v8785_v41 = vpop.f32.mrf.mxu1  ;;  %v16201_v14 = vld [vmem:[#allocation27_spill] sm:$0xff] }
 0x2b8   : > { %v9199_v17 = vadd.f32 %v15142_v32, %v9064_v27  ;;  %v9067_v6 = vadd.f32 %v12615_v9, %v8265_v35  ;;  %v12474_v13 = vpop.f32.mrf.mxu0  ;;  %v9462_v9 = vmul.f32 %v9201_v37, %v9201_v37 }
 0x2b9   : > { %v9585_v57 = vadd.f32 %v9584_v36, %v9458_v53  ;;  %v9325_v10 = vadd.f32 %v9324_v4, %v9198_v18  ;;  %v9065_v52 = vadd.f32 %v8772_v19, %v8263_v49  ;;  %v12619_v8 = vpop.f32.mrf.mxu1  ;;  %v8268_v56 = vadd.f32 %v12474_v13, %v16197_v7  ;;  %v16202_v53 = vld [vmem:[#allocation34_spill] sm:$0xff]  ;;  %v16204_v7 = vld [vmem:[#allocation29_spill] sm:$0xff] }
 0x2ba   : > { %v9202_v2 = vadd.f32 %v15142_v32, %v9067_v6  ;;  %v7983_v43 = vpop.f32.mrf.mxu0  ;;  %v9460_v39 = vmul.f32 %v9199_v17, %v9199_v17 }
 0x2bb   : > { %v9326_v42 = vadd.f32 %v9325_v10, %v9199_v17  ;;  %v9586_v11 = vadd.f32 %v9585_v57, %v9459_v1  ;;  %v9200_v20 = vadd.f32 %v15142_v32, %v9065_v52  ;;  %v8788_v47 = vpop.f32.mrf.mxu1  ;;  %v8266_v48 = vadd.f32 %v7983_v43, %v16198_v59  ;;  %v16203_v57 = vld [vmem:[#allocation30_spill] sm:$0xff] }
 0x2bc   : > { %v11546_v46 = vpack.c.bf16 %v9202_v2, %v9201_v37  ;;  %v12475_v31 = vpop.f32.mrf.mxu0  ;;  %v9070_v51 = vadd.f32 %v12618_v15, %v8268_v56  ;;  %v9463_v5 = vmul.f32 %v9202_v2, %v9202_v2 }
 0x2bd   : > { %v9587_v58 = vadd.f32 %v9586_v11, %v9460_v39  ;;  %v9327_v45 = vadd.f32 %v9326_v42, %v9200_v20  ;;  %v9461_v26 = vmul.f32 %v9200_v20, %v9200_v20  ;;  %v11541_v44 = vpack.c.bf16 %v9200_v20, %v9199_v17  ;;  %v12622_v12 = vpop.f32.mrf.mxu1 }
 0x2be   : > { %11777 = vst [vmem:[%s14958_s9 + $0x128] sm:$0xff] %v11546_v46   ;;  %v9068_v40 = vadd.f32 %v8785_v41, %v8266_v48  ;;  %v8269_v55 = vadd.f32 %v12475_v31, %v16199_v16  ;;  %v7986_v50 = vpop.f32.mrf.mxu0  ;;  %v9205_v38 = vadd.f32 %v15142_v32, %v9070_v51 }
 0x2bf   : > { %v9328_v61 = vadd.f32 %v9327_v45, %v9201_v37  ;;  %v9588_v18 = vadd.f32 %v9587_v58, %v9461_v26  ;;  %11776 = vst [vmem:[%s14958_s9 + $0x120] sm:$0xff] %v11541_v44   ;;  %v8267_v60 = vadd.f32 %v7986_v50, %v16200_v22  ;;  %v8801_v3 = vpop.f32.mrf.mxu1  ;;  %v16205_v45 = vld [vmem:[#allocation32_spill] sm:$0xff] }
 0x2c0   : > { %v9203_v29 = vadd.f32 %v15142_v32, %v9068_v40  ;;  %v9071_v63 = vadd.f32 %v12619_v8, %v8269_v55  ;;  %v12478_v0 = vpop.f32.mrf.mxu0  ;;  %v9466_v8 = vmul.f32 %v9205_v38, %v9205_v38 }
 0x2c1   : > { %v9589_v19 = vadd.f32 %v9588_v18, %v9462_v9  ;;  %v9329_v33 = vadd.f32 %v9328_v61, %v9202_v2  ;;  %v9069_v28 = vadd.f32 %v8788_v47, %v8267_v60  ;;  %v12623_v34 = vpop.f32.mrf.mxu1  ;;  %v8272_v54 = vadd.f32 %v12478_v0, %v16201_v14  ;;  %v16206_v9 = vld [vmem:[#allocation37_spill] sm:$0xff]  ;;  %v16208_v14 = vld [vmem:[#allocation40_spill] sm:$0xff] }
 0x2c2   : > { %v9206_v24 = vadd.f32 %v15142_v32, %v9071_v63  ;;  %v7999_v23 = vpop.f32.mrf.mxu0  ;;  %v9464_v62 = vmul.f32 %v9203_v29, %v9203_v29 }
 0x2c3   : > { %v9330_v15 = vadd.f32 %v9329_v33, %v9203_v29  ;;  %v9590_v27 = vadd.f32 %v9589_v19, %v9463_v5  ;;  %v9204_v21 = vadd.f32 %v15142_v32, %v9069_v28  ;;  %v8804_v35 = vpop.f32.mrf.mxu1  ;;  %v8270_v4 = vadd.f32 %v7999_v23, %v16202_v53  ;;  %v16207_v19 = vld [vmem:[#allocation33_spill] sm:$0xff] }
 0x2c4   : > { %v11556_v25 = vpack.c.bf16 %v9206_v24, %v9205_v38  ;;  %v12479_v36 = vpop.f32.mrf.mxu0  ;;  %v9074_v13 = vadd.f32 %v12622_v12, %v8272_v54  ;;  %v9467_v20 = vmul.f32 %v9206_v24, %v9206_v24 }
 0x2c5   : > { %v9591_v30 = vadd.f32 %v9590_v27, %v9464_v62  ;;  %v9331_v49 = vadd.f32 %v9330_v15, %v9204_v21  ;;  %v9465_v41 = vmul.f32 %v9204_v21, %v9204_v21  ;;  %v11551_v17 = vpack.c.bf16 %v9204_v21, %v9203_v29  ;;  %v12626_v6 = vpop.f32.mrf.mxu1 }
 0x2c6   : > { %11779 = vst [vmem:[%s14958_s9 + $0x138] sm:$0xff] %v11556_v25   ;;  %v9072_v1 = vadd.f32 %v8801_v3, %v8270_v4  ;;  %v8273_v10 = vadd.f32 %v12479_v36, %v16203_v57  ;;  %v8002_v52 = vpop.f32.mrf.mxu0  ;;  %v9209_v31 = vadd.f32 %v15142_v32, %v9074_v13 }
 0x2c7   : > { %v9332_v37 = vadd.f32 %v9331_v49, %v9205_v38  ;;  %v9592_v2 = vadd.f32 %v9591_v30, %v9465_v41  ;;  %11778 = vst [vmem:[%s14958_s9 + $0x130] sm:$0xff] %v11551_v17   ;;  %v8271_v56 = vadd.f32 %v8002_v52, %v16204_v7  ;;  %v8817_v43 = vpop.f32.mrf.mxu1  ;;  %v16209_v49 = vld [vmem:[#allocation36_spill] sm:$0xff] }
 0x2c8   : > { %v9207_v42 = vadd.f32 %v15142_v32, %v9072_v1  ;;  %v9075_v39 = vadd.f32 %v12623_v34, %v8273_v10  ;;  %v12482_v11 = vpop.f32.mrf.mxu0  ;;  %v9470_v34 = vmul.f32 %v9209_v31, %v9209_v31 }
 0x2c9   : > { %v9593_v47 = vadd.f32 %v9592_v2, %v9466_v8  ;;  %v9333_v46 = vadd.f32 %v9332_v37, %v9206_v24  ;;  %v9073_v59 = vadd.f32 %v8804_v35, %v8271_v56  ;;  %v12627_v48 = vpop.f32.mrf.mxu1  ;;  %v8276_v26 = vadd.f32 %v12482_v11, %v16205_v45  ;;  %v16210_v8 = vld [vmem:[#allocation35_spill] sm:$0xff] }
 0x2ca   : > { %v9210_v58 = vadd.f32 %v15142_v32, %v9075_v39  ;;  %v8015_v44 = vpop.f32.mrf.mxu0  ;;  %v9468_v51 = vmul.f32 %v9207_v42, %v9207_v42  ;;  %v16212_v45 = vld [vmem:[#allocation43_spill] sm:$0xff] }
 0x2cb   : > { %v9334_v12 = vadd.f32 %v9333_v46, %v9207_v42  ;;  %v9594_v40 = vadd.f32 %v9593_v47, %v9467_v20  ;;  %v9208_v16 = vadd.f32 %v15142_v32, %v9073_v59  ;;  %v8820_v55 = vpop.f32.mrf.mxu1  ;;  %v8274_v61 = vadd.f32 %v8015_v44, %v16206_v9  ;;  %v16211_v47 = vld [vmem:[#allocation38_spill] sm:$0xff] }
 0x2cc   : > { %v11566_v50 = vpack.c.bf16 %v9210_v58, %v9209_v31  ;;  %v12483_v18 = vpop.f32.mrf.mxu0  ;;  %v9078_v0 = vadd.f32 %v12626_v6, %v8276_v26  ;;  %v9471_v21 = vmul.f32 %v9210_v58, %v9210_v58 }
 0x2cd   : > { %v9595_v22 = vadd.f32 %v9594_v40, %v9468_v51  ;;  %v9335_v60 = vadd.f32 %v9334_v12, %v9208_v16  ;;  %v9469_v3 = vmul.f32 %v9208_v16, %v9208_v16  ;;  %v11561_v29 = vpack.c.bf16 %v9208_v16, %v9207_v42  ;;  %v12630_v63 = vpop.f32.mrf.mxu1 }
 0x2ce   : > { %11781 = vst [vmem:[%s14958_s9 + $0x148] sm:$0xff] %v11566_v50   ;;  %v9076_v5 = vadd.f32 %v8817_v43, %v8274_v61  ;;  %v8277_v33 = vadd.f32 %v12483_v18, %v16207_v19  ;;  %v8018_v28 = vpop.f32.mrf.mxu0  ;;  %v9213_v36 = vadd.f32 %v15142_v32, %v9078_v0 }
 0x2cf   : > { %v9336_v38 = vadd.f32 %v9335_v60, %v9209_v31  ;;  %v9596_v24 = vadd.f32 %v9595_v22, %v9469_v3  ;;  %11780 = vst [vmem:[%s14958_s9 + $0x140] sm:$0xff] %v11561_v29   ;;  %v8275_v54 = vadd.f32 %v8018_v28, %v16208_v14  ;;  %v8833_v23 = vpop.f32.mrf.mxu1  ;;  %v16213_v60 = vld [vmem:[#allocation39_spill] sm:$0xff] }
 0x2d0   : > { %v9211_v15 = vadd.f32 %v15142_v32, %v9076_v5  ;;  %v9079_v62 = vadd.f32 %v12627_v48, %v8277_v33  ;;  %v12486_v27 = vpop.f32.mrf.mxu0  ;;  %v9474_v48 = vmul.f32 %v9213_v36, %v9213_v36 }
 0x2d1   : > { %v9597_v35 = vadd.f32 %v9596_v24, %v9470_v34  ;;  %v9337_v25 = vadd.f32 %v9336_v38, %v9210_v58  ;;  %v9077_v53 = vadd.f32 %v8820_v55, %v8275_v54  ;;  %v12631_v4 = vpop.f32.mrf.mxu1  ;;  %v8280_v41 = vadd.f32 %v12486_v27, %v16209_v49  ;;  %v16214_v34 = vld [vmem:[#allocation46_spill] sm:$0xff]  ;;  %v16216_v49 = vld [vmem:[#allocation41_spill] sm:$0xff] }
 0x2d2   : > { %v9214_v30 = vadd.f32 %v15142_v32, %v9079_v62  ;;  %v8031_v17 = vpop.f32.mrf.mxu0  ;;  %v9472_v13 = vmul.f32 %v9211_v15, %v9211_v15 }
 0x2d3   : > { %v9338_v6 = vadd.f32 %v9337_v25, %v9211_v15  ;;  %v9598_v1 = vadd.f32 %v9597_v35, %v9471_v21  ;;  %v9212_v57 = vadd.f32 %v15142_v32, %v9077_v53  ;;  %v8836_v10 = vpop.f32.mrf.mxu1  ;;  %v8278_v37 = vadd.f32 %v8031_v17, %v16210_v8  ;;  %v16215_v35 = vld [vmem:[#allocation42_spill] sm:$0xff] }
 0x2d4   : > { %v11576_v52 = vpack.c.bf16 %v9214_v30, %v9213_v36  ;;  %v12487_v2 = vpop.f32.mrf.mxu0  ;;  %v9082_v11 = vadd.f32 %v12630_v63, %v8280_v41  ;;  %v9475_v16 = vmul.f32 %v9214_v30, %v9214_v30 }
 0x2d5   : > { %v9599_v7 = vadd.f32 %v9598_v1, %v9472_v13  ;;  %v9339_v56 = vadd.f32 %v9338_v6, %v9212_v57  ;;  %v9473_v43 = vmul.f32 %v9212_v57, %v9212_v57  ;;  %v11571_v42 = vpack.c.bf16 %v9212_v57, %v9211_v15  ;;  %v12634_v39 = vpop.f32.mrf.mxu1 }
 0x2d6   : > { %11783 = vst [vmem:[%s14958_s9 + $0x158] sm:$0xff] %v11576_v52   ;;  %v9080_v20 = vadd.f32 %v8833_v23, %v8278_v37  ;;  %v8281_v46 = vadd.f32 %v12487_v2, %v16211_v47  ;;  %v8034_v59 = vpop.f32.mrf.mxu0  ;;  %v9217_v18 = vadd.f32 %v15142_v32, %v9082_v11 }
 0x2d7   : > { %v9340_v31 = vadd.f32 %v9339_v56, %v9213_v36  ;;  %v9600_v58 = vadd.f32 %v9599_v7, %v9473_v43  ;;  %11782 = vst [vmem:[%s14958_s9 + $0x150] sm:$0xff] %v11571_v42   ;;  %v8279_v26 = vadd.f32 %v8034_v59, %v16212_v45  ;;  %v8849_v44 = vpop.f32.mrf.mxu1  ;;  %v16217_v56 = vld [vmem:[#allocation44_spill] sm:$0xff] }
 0x2d8   : > { %v9215_v12 = vadd.f32 %v15142_v32, %v9080_v20  ;;  %v9083_v51 = vadd.f32 %v12631_v4, %v8281_v46  ;;  %v12490_v40 = vpop.f32.mrf.mxu0  ;;  %v9478_v4 = vmul.f32 %v9217_v18, %v9217_v18 }
 0x2d9   : > { %v9601_v55 = vadd.f32 %v9600_v58, %v9474_v48  ;;  %v9341_v50 = vadd.f32 %v9340_v31, %v9214_v30  ;;  %v9081_v9 = vadd.f32 %v8836_v10, %v8279_v26  ;;  %v12635_v61 = vpop.f32.mrf.mxu1  ;;  %v8284_v3 = vadd.f32 %v12490_v40, %v16213_v60  ;;  %v16218_v48 = vld [vmem:[#allocation49_spill] sm:$0xff]  ;;  %v16220_v60 = vld [vmem:[#allocation52_spill] sm:$0xff] }
 0x2da   : > { %v9218_v22 = vadd.f32 %v15142_v32, %v9083_v51  ;;  %v8047_v29 = vpop.f32.mrf.mxu0  ;;  %v9476_v0 = vmul.f32 %v9215_v12, %v9215_v12 }
 0x2db   : > { %v9342_v63 = vadd.f32 %v9341_v50, %v9215_v12  ;;  %v9602_v5 = vadd.f32 %v9601_v55, %v9475_v16  ;;  %v9216_v19 = vadd.f32 %v15142_v32, %v9081_v9  ;;  %v8852_v33 = vpop.f32.mrf.mxu1  ;;  %v8282_v38 = vadd.f32 %v8047_v29, %v16214_v34  ;;  %v16219_v55 = vld [vmem:[#allocation45_spill] sm:$0xff] }
 0x2dc   : > { %v11586_v28 = vpack.c.bf16 %v9218_v22, %v9217_v18  ;;  %v12491_v24 = vpop.f32.mrf.mxu0  ;;  %v9086_v27 = vadd.f32 %v12634_v39, %v8284_v3  ;;  %v9479_v57 = vmul.f32 %v9218_v22, %v9218_v22 }
 0x2dd   : > { %v9603_v14 = vadd.f32 %v9602_v5, %v9476_v0  ;;  %v9343_v54 = vadd.f32 %v9342_v63, %v9216_v19  ;;  %v9477_v23 = vmul.f32 %v9216_v19, %v9216_v19  ;;  %v11581_v15 = vpack.c.bf16 %v9216_v19, %v9215_v12  ;;  %v12638_v62 = vpop.f32.mrf.mxu1 }
 0x2de   : > { %11785 = vst [vmem:[%s14958_s9 + $0x168] sm:$0xff] %v11586_v28   ;;  %v9084_v21 = vadd.f32 %v8849_v44, %v8282_v38  ;;  %v8285_v25 = vadd.f32 %v12491_v24, %v16215_v35  ;;  %v8050_v53 = vpop.f32.mrf.mxu0  ;;  %v9221_v2 = vadd.f32 %v15142_v32, %v9086_v27 }
 0x2df   : > { %v9344_v36 = vadd.f32 %v9343_v54, %v9217_v18  ;;  %v9604_v30 = vadd.f32 %v9603_v14, %v9477_v23  ;;  %11784 = vst [vmem:[%s14958_s9 + $0x160] sm:$0xff] %v11581_v15   ;;  %v8283_v41 = vadd.f32 %v8050_v53, %v16216_v49  ;;  %v8865_v17 = vpop.f32.mrf.mxu1  ;;  %v16221_v54 = vld [vmem:[#allocation48_spill] sm:$0xff] }
 0x2e0   : > { %v9219_v6 = vadd.f32 %v15142_v32, %v9084_v21  ;;  %v9087_v13 = vadd.f32 %v12635_v61, %v8285_v25  ;;  %v12494_v1 = vpop.f32.mrf.mxu0  ;;  %v9482_v61 = vmul.f32 %v9221_v2, %v9221_v2 }
 0x2e1   : > { %v9605_v10 = vadd.f32 %v9604_v30, %v9478_v4  ;;  %v9345_v52 = vadd.f32 %v9344_v36, %v9218_v22  ;;  %v9085_v8 = vadd.f32 %v8852_v33, %v8283_v41  ;;  %v12639_v37 = vpop.f32.mrf.mxu1  ;;  %v8288_v43 = vadd.f32 %v12494_v1, %v16217_v56  ;;  %v16222_v4 = vld [vmem:[#allocation47_spill] sm:$0xff] }
 0x2e2   : > { %v9222_v7 = vadd.f32 %v15142_v32, %v9087_v13  ;;  %v8063_v42 = vpop.f32.mrf.mxu0  ;;  %v9480_v11 = vmul.f32 %v9219_v6, %v9219_v6  ;;  %v16224_v56 = vld [vmem:[#allocation55_spill] sm:$0xff] }
 0x2e3   : > { %v9346_v39 = vadd.f32 %v9345_v52, %v9219_v6  ;;  %v9606_v20 = vadd.f32 %v9605_v10, %v9479_v57  ;;  %v9220_v47 = vadd.f32 %v15142_v32, %v9085_v8  ;;  %v8868_v46 = vpop.f32.mrf.mxu1  ;;  %v8286_v31 = vadd.f32 %v8063_v42, %v16218_v48  ;;  %v16223_v10 = vld [vmem:[#allocation50_spill] sm:$0xff] }
 0x2e4   : > { %v11596_v59 = vpack.c.bf16 %v9222_v7, %v9221_v2  ;;  %v12495_v58 = vpop.f32.mrf.mxu0  ;;  %v9090_v40 = vadd.f32 %v12638_v62, %v8288_v43  ;;  %v9483_v19 = vmul.f32 %v9222_v7, %v9222_v7 }
 0x2e5   : > { %v9607_v45 = vadd.f32 %v9606_v20, %v9480_v11  ;;  %v9347_v26 = vadd.f32 %v9346_v39, %v9220_v47  ;;  %v9481_v44 = vmul.f32 %v9220_v47, %v9220_v47  ;;  %v11591_v12 = vpack.c.bf16 %v9220_v47, %v9219_v6  ;;  %v12642_v51 = vpop.f32.mrf.mxu1 }
 0x2e6   : > { %11787 = vst [vmem:[%s14958_s9 + $0x178] sm:$0xff] %v11596_v59   ;;  %v9088_v16 = vadd.f32 %v8865_v17, %v8286_v31  ;;  %v8289_v50 = vadd.f32 %v12495_v58, %v16219_v55  ;;  %v8066_v9 = vpop.f32.mrf.mxu0  ;;  %v9225_v24 = vadd.f32 %v15142_v32, %v9090_v40 }
 0x2e7   : > { %v9348_v18 = vadd.f32 %v9347_v26, %v9221_v2  ;;  %v9608_v22 = vadd.f32 %v9607_v45, %v9481_v44  ;;  %11786 = vst [vmem:[%s14958_s9 + $0x170] sm:$0xff] %v11591_v12   ;;  %v8287_v3 = vadd.f32 %v8066_v9, %v16220_v60  ;;  %v8881_v29 = vpop.f32.mrf.mxu1  ;;  %v16225_v26 = vld [vmem:[#allocation51_spill] sm:$0xff] }
 0x2e8   : > { %v9223_v63 = vadd.f32 %v15142_v32, %v9088_v16  ;;  %v9091_v0 = vadd.f32 %v12639_v37, %v8289_v50  ;;  %v12498_v5 = vpop.f32.mrf.mxu0  ;;  %v9486_v37 = vmul.f32 %v9225_v24, %v9225_v24 }
 0x2e9   : > { %v9609_v33 = vadd.f32 %v9608_v22, %v9482_v61  ;;  %v9349_v28 = vadd.f32 %v9348_v18, %v9222_v7  ;;  %v9089_v34 = vadd.f32 %v8868_v46, %v8287_v3  ;;  %v12643_v38 = vpop.f32.mrf.mxu1  ;;  %v8292_v23 = vadd.f32 %v12498_v5, %v16221_v54  ;;  %v16226_v61 = vld [vmem:[#allocation58_spill] sm:$0xff]  ;;  %v16228_v54 = vld [vmem:[#allocation53_spill] sm:$0xff] }
 0x2ea   : > { %v9226_v14 = vadd.f32 %v15142_v32, %v9091_v0  ;;  %v8079_v15 = vpop.f32.mrf.mxu0  ;;  %v9484_v27 = vmul.f32 %v9223_v63, %v9223_v63 }
 0x2eb   : > { %v9350_v62 = vadd.f32 %v9349_v28, %v9223_v63  ;;  %v9610_v21 = vadd.f32 %v9609_v33, %v9483_v19  ;;  %v9224_v35 = vadd.f32 %v15142_v32, %v9089_v34  ;;  %v8884_v25 = vpop.f32.mrf.mxu1  ;;  %v8290_v36 = vadd.f32 %v8079_v15, %v16222_v4  ;;  %v16227_v33 = vld [vmem:[#allocation54_spill] sm:$0xff] }
 0x2ec   : > { %v11606_v53 = vpack.c.bf16 %v9226_v14, %v9225_v24  ;;  %v12499_v30 = vpop.f32.mrf.mxu0  ;;  %v9094_v1 = vadd.f32 %v12642_v51, %v8292_v23  ;;  %v9487_v47 = vmul.f32 %v9226_v14, %v9226_v14 }
 0x2ed   : > { %v9611_v49 = vadd.f32 %v9610_v21, %v9484_v27  ;;  %v9351_v41 = vadd.f32 %v9350_v62, %v9224_v35  ;;  %v9485_v17 = vmul.f32 %v9224_v35, %v9224_v35  ;;  %v11601_v6 = vpack.c.bf16 %v9224_v35, %v9223_v63  ;;  %v12646_v13 = vpop.f32.mrf.mxu1 }
 0x2ee   : > { %11789 = vst [vmem:[%s14958_s9 + $0x188] sm:$0xff] %v11606_v53   ;;  %v9092_v57 = vadd.f32 %v8881_v29, %v8290_v36  ;;  %v8293_v52 = vadd.f32 %v12499_v30, %v16223_v10  ;;  %v8082_v8 = vpop.f32.mrf.mxu0  ;;  %v9229_v58 = vadd.f32 %v15142_v32, %v9094_v1 }
 0x2ef   : > { %v9352_v2 = vadd.f32 %v9351_v41, %v9225_v24  ;;  %v9612_v7 = vadd.f32 %v9611_v49, %v9485_v17  ;;  %11788 = vst [vmem:[%s14958_s9 + $0x180] sm:$0xff] %v11601_v6   ;;  %v8291_v43 = vadd.f32 %v8082_v8, %v16224_v56  ;;  %v8897_v42 = vpop.f32.mrf.mxu1  ;;  %v16229_v41 = vld [vmem:[#allocation56_spill] sm:$0xff] }
 0x2f0   : > { %v9227_v39 = vadd.f32 %v15142_v32, %v9092_v57  ;;  %v9095_v11 = vadd.f32 %v12643_v38, %v8293_v52  ;;  %v12502_v20 = vpop.f32.mrf.mxu0  ;;  %v9490_v38 = vmul.f32 %v9229_v58, %v9229_v58 }
 0x2f1   : > { %v9613_v46 = vadd.f32 %v9612_v7, %v9486_v37  ;;  %v9353_v59 = vadd.f32 %v9352_v2, %v9226_v14  ;;  %v9093_v48 = vadd.f32 %v8884_v25, %v8291_v43  ;;  %v12647_v31 = vpop.f32.mrf.mxu1  ;;  %v8296_v44 = vadd.f32 %v12502_v20, %v16225_v26  ;;  %v16230_v37 = vld [vmem:[#allocation61_spill] sm:$0xff]  ;;  %v16232_v26 = vld [vmem:[#allocation64_spill] sm:$0xff] }
 0x2f2   : > { %v9230_v45 = vadd.f32 %v15142_v32, %v9095_v11  ;;  %v8095_v12 = vpop.f32.mrf.mxu0  ;;  %v9488_v40 = vmul.f32 %v9227_v39, %v9227_v39 }
 0x2f3   : > { %v9354_v51 = vadd.f32 %v9353_v59, %v9227_v39  ;;  %v9614_v16 = vadd.f32 %v9613_v46, %v9487_v47  ;;  %v9228_v55 = vadd.f32 %v15142_v32, %v9093_v48  ;;  %v8900_v50 = vpop.f32.mrf.mxu1  ;;  %v8294_v18 = vadd.f32 %v8095_v12, %v16226_v61  ;;  %v16231_v46 = vld [vmem:[#allocation57_spill] sm:$0xff] }
 0x2f4   : > { %v11616_v9 = vpack.c.bf16 %v9230_v45, %v9229_v58  ;;  %v12503_v22 = vpop.f32.mrf.mxu0  ;;  %v9098_v5 = vadd.f32 %v12646_v13, %v8296_v44  ;;  %v9491_v35 = vmul.f32 %v9230_v45, %v9230_v45 }
 0x2f5   : > { %v9615_v60 = vadd.f32 %v9614_v16, %v9488_v40  ;;  %v9355_v3 = vadd.f32 %v9354_v51, %v9228_v55  ;;  %v9489_v29 = vmul.f32 %v9228_v55, %v9228_v55  ;;  %v11611_v63 = vpack.c.bf16 %v9228_v55, %v9227_v39  ;;  %v12650_v0 = vpop.f32.mrf.mxu1 }
 0x2f6   : > { %11791 = vst [vmem:[%s14958_s9 + $0x198] sm:$0xff] %v11616_v9   ;;  %v9096_v19 = vadd.f32 %v8897_v42, %v8294_v18  ;;  %v8297_v28 = vadd.f32 %v12503_v22, %v16227_v33  ;;  %v8098_v34 = vpop.f32.mrf.mxu0  ;;  %v9233_v30 = vadd.f32 %v15142_v32, %v9098_v5 }
 0x2f7   : > { %v9356_v24 = vadd.f32 %v9355_v3, %v9229_v58  ;;  %v9616_v14 = vadd.f32 %v9615_v60, %v9489_v29  ;;  %11790 = vst [vmem:[%s14958_s9 + $0x190] sm:$0xff] %v11611_v63   ;;  %v8295_v23 = vadd.f32 %v8098_v34, %v16228_v54  ;;  %v8913_v15 = vpop.f32.mrf.mxu1  ;;  %v16233_v3 = vld [vmem:[#allocation60_spill] sm:$0xff] }
 0x2f8   : > { %v9231_v62 = vadd.f32 %v15142_v32, %v9096_v19  ;;  %v9099_v27 = vadd.f32 %v12647_v31, %v8297_v28  ;;  %v12506_v21 = vpop.f32.mrf.mxu0  ;;  %v9494_v31 = vmul.f32 %v9233_v30, %v9233_v30 }
 0x2f9   : > { %v9617_v25 = vadd.f32 %v9616_v14, %v9490_v38  ;;  %v9357_v53 = vadd.f32 %v9356_v24, %v9230_v45  ;;  %v9097_v4 = vadd.f32 %v8900_v50, %v8295_v23  ;;  %v12651_v36 = vpop.f32.mrf.mxu1  ;;  %v8300_v17 = vadd.f32 %v12506_v21, %v16229_v41  ;;  %v16234_v38 = vld [vmem:[#allocation59_spill] sm:$0xff] }
 0x2fa   : > { %v9234_v49 = vadd.f32 %v15142_v32, %v9099_v27  ;;  %v8111_v6 = vpop.f32.mrf.mxu0  ;;  %v9492_v1 = vmul.f32 %v9231_v62, %v9231_v62  ;;  %v16236_v41 = vld [vmem:[#allocation67_spill] sm:$0xff] }
 0x2fb   : > { %v9358_v13 = vadd.f32 %v9357_v53, %v9231_v62  ;;  %v9618_v57 = vadd.f32 %v9617_v25, %v9491_v35  ;;  %v9232_v10 = vadd.f32 %v15142_v32, %v9097_v4  ;;  %v8916_v52 = vpop.f32.mrf.mxu1  ;;  %v8298_v2 = vadd.f32 %v8111_v6, %v16230_v37  ;;  %v16235_v25 = vld [vmem:[#allocation62_spill] sm:$0xff] }
 0x2fc   : > { %v11626_v8 = vpack.c.bf16 %v9234_v49, %v9233_v30  ;;  %v12507_v7 = vpop.f32.mrf.mxu0  ;;  %v9102_v20 = vadd.f32 %v12650_v0, %v8300_v17  ;;  %v9495_v55 = vmul.f32 %v9234_v49, %v9234_v49 }
 0x2fd   : > { %v9619_v56 = vadd.f32 %v9618_v57, %v9492_v1  ;;  %v9359_v43 = vadd.f32 %v9358_v13, %v9232_v10  ;;  %v9493_v42 = vmul.f32 %v9232_v10, %v9232_v10  ;;  %v11621_v39 = vpack.c.bf16 %v9232_v10, %v9231_v62  ;;  %v12654_v11 = vpop.f32.mrf.mxu1 }
 0x2fe   : > { %11793 = vst [vmem:[%s14958_s9 + $0x1a8] sm:$0xff] %v11626_v8   ;;  %v9100_v47 = vadd.f32 %v8913_v15, %v8298_v2  ;;  %v8301_v59 = vadd.f32 %v12507_v7, %v16231_v46  ;;  %v8114_v48 = vpop.f32.mrf.mxu0  ;;  %v9237_v22 = vadd.f32 %v15142_v32, %v9102_v20  ;;  %v15288_v7 = vld [vmem:[%s15337_s4] ss:$0 sm:$0xff] }
 0x2ff   : > { %v9360_v58 = vadd.f32 %v9359_v43, %v9233_v30  ;;  %v9620_v45 = vadd.f32 %v9619_v56, %v9493_v42  ;;  %11792 = vst [vmem:[%s14958_s9 + $0x1a0] sm:$0xff] %v11621_v39   ;;  %v8299_v44 = vadd.f32 %v8114_v48, %v16232_v26  ;;  %v8929_v12 = vpop.f32.mrf.mxu1  ;;  %v16237_v42 = vld [vmem:[#allocation63_spill] sm:$0xff] }
 0x300   : > { %v9235_v51 = vadd.f32 %v15142_v32, %v9100_v47  ;;  %v9103_v40 = vadd.f32 %v12651_v36, %v8301_v59  ;;  %v12510_v16 = vpop.f32.mrf.mxu0  ;;  %v9498_v36 = vmul.f32 %v9237_v22, %v9237_v22 }
 0x301   : > { %v9621_v50 = vadd.f32 %v9620_v45, %v9494_v31  ;;  %v9361_v9 = vadd.f32 %v9360_v58, %v9234_v49  ;;  %v9101_v61 = vadd.f32 %v8916_v52, %v8299_v44  ;;  %v12655_v18 = vpop.f32.mrf.mxu1  ;;  %v8304_v29 = vadd.f32 %v12510_v16, %v16233_v3  ;;  %v16238_v31 = vld [vmem:[#allocation69_spill] sm:$0xff] }
 0x302   : > { %v9238_v60 = vadd.f32 %v15142_v32, %v9103_v40  ;;  %v8127_v63 = vpop.f32.mrf.mxu0  ;;  %v9496_v5 = vmul.f32 %v9235_v51, %v9235_v51  ;;  %v16240_v3 = vld [vmem:[#allocation65_spill] sm:$0xff] }
 0x303   : > { %v9362_v0 = vadd.f32 %v9361_v9, %v9235_v51  ;;  %v9622_v19 = vadd.f32 %v9621_v50, %v9495_v55  ;;  %v9236_v33 = vadd.f32 %v15142_v32, %v9101_v61  ;;  %v8932_v28 = vpop.f32.mrf.mxu1  ;;  %v8302_v24 = vadd.f32 %v8127_v63, %v16234_v38  ;;  %v16239_v50 = vld [vmem:[#allocation66_spill] sm:$0xff] }
 0x304   : > { %v11636_v34 = vpack.c.bf16 %v9238_v60, %v9237_v22  ;;  %v12511_v14 = vpop.f32.mrf.mxu0  ;;  %v9106_v21 = vadd.f32 %v12654_v11, %v8304_v29  ;;  %v9499_v10 = vmul.f32 %v9238_v60, %v9238_v60 }
 0x305   : > { %v9623_v54 = vadd.f32 %v9622_v19, %v9496_v5  ;;  %v9363_v23 = vadd.f32 %v9362_v0, %v9236_v33  ;;  %v9497_v15 = vmul.f32 %v9236_v33, %v9236_v33  ;;  %v11631_v62 = vpack.c.bf16 %v9236_v33, %v9235_v51  ;;  %v12658_v27 = vpop.f32.mrf.mxu1 }
 0x306   : > { %11795 = vst [vmem:[%s14958_s9 + $0x1b8] sm:$0xff] %v11636_v34   ;;  %v9104_v35 = vadd.f32 %v8929_v12, %v8302_v24  ;;  %v8305_v53 = vadd.f32 %v12511_v14, %v16235_v25  ;;  %v8130_v4 = vpop.f32.mrf.mxu0  ;;  %v9241_v56 = vadd.f32 %v15288_v7, %v9106_v21 }
 0x307   : > { %v9364_v30 = vadd.f32 %v9363_v23, %v9237_v22  ;;  %v9624_v49 = vadd.f32 %v9623_v54, %v9497_v15  ;;  %11794 = vst [vmem:[%s14958_s9 + $0x1b0] sm:$0xff] %v11631_v62   ;;  %v8303_v17 = vadd.f32 %v8130_v4, %v16236_v41  ;;  %v8945_v6 = vpop.f32.mrf.mxu1  ;;  %v16241_v23 = vld [vmem:[#allocation68_spill] sm:$0xff] }
 0x308   : > { %v9239_v13 = vadd.f32 %v15142_v32, %v9104_v35  ;;  %v9107_v1 = vadd.f32 %v12655_v18, %v8305_v53  ;;  %v12514_v57 = vpop.f32.mrf.mxu0  ;;  %v9502_v18 = vmul.f32 %v9241_v56, %v9241_v56 }
 0x309   : > { %v9625_v52 = vadd.f32 %v9624_v49, %v9498_v36  ;;  %v9365_v8 = vadd.f32 %v9364_v30, %v9238_v60  ;;  %v9105_v37 = vadd.f32 %v8932_v28, %v8303_v17  ;;  %v12659_v2 = vpop.f32.mrf.mxu1  ;;  %v8308_v39 = vadd.f32 %v12514_v57, %v16237_v42  ;;  %v16242_v36 = vld [vmem:[#allocation73_spill] sm:$0xff]  ;;  %v16244_v42 = vld [vmem:[#allocation71_spill] sm:$0xff] }
 0x30a   : > { %v9242_v43 = vadd.f32 %v15288_v7, %v9107_v1  ;;  %v8143_v32 = vpop.f32.mrf.mxu0  ;;  %v9500_v20 = vmul.f32 %v9239_v13, %v9239_v13 }
 0x30b   : > { %v9366_v11 = vadd.f32 %v9365_v8, %v9239_v13  ;;  %v9626_v47 = vadd.f32 %v9625_v52, %v9499_v10  ;;  %v9240_v46 = vadd.f32 %v15288_v7, %v9105_v37  ;;  %v8948_v59 = vpop.f32.mrf.mxu1  ;;  %v8306_v58 = vadd.f32 %v8143_v32, %v16238_v31  ;;  %v16243_v52 = vld [vmem:[#allocation70_spill] sm:$0xff] }
 0x30c   : > { %v11646_v48 = vpack.c.bf16 %v9242_v43, %v9241_v56  ;;  %v12515_v45 = vpop.f32.mrf.mxu0  ;;  %v9110_v16 = vadd.f32 %v12658_v27, %v8308_v39  ;;  %v9503_v33 = vmul.f32 %v9242_v43, %v9242_v43 }
 0x30d   : > { %v9627_v26 = vadd.f32 %v9626_v47, %v9500_v20  ;;  %v9367_v44 = vadd.f32 %v9366_v11, %v9240_v46  ;;  %v9501_v12 = vmul.f32 %v9240_v46, %v9240_v46  ;;  %v11641_v51 = vpack.c.bf16 %v9240_v46, %v9239_v13  ;;  %v12662_v40 = vpop.f32.mrf.mxu1 }
 0x30e   : > { %11797 = vst [vmem:[%s14958_s9 + $0x1c8] sm:$0xff] %v11646_v48   ;;  %v9108_v55 = vadd.f32 %v8945_v6, %v8306_v58  ;;  %v8309_v9 = vadd.f32 %v12515_v45, %v16239_v50  ;;  %v8146_v61 = vpop.f32.mrf.mxu0  ;;  %v9245_v14 = vadd.f32 %v15288_v7, %v9110_v16 }
 0x30f   : > { %v9368_v22 = vadd.f32 %v9367_v44, %v9241_v56  ;;  %v9628_v60 = vadd.f32 %v9627_v26, %v9501_v12  ;;  %11796 = vst [vmem:[%s14958_s9 + $0x1c0] sm:$0xff] %v11641_v51   ;;  %v8307_v29 = vadd.f32 %v8146_v61, %v16240_v3  ;;  %v8961_v63 = vpop.f32.mrf.mxu1  ;;  %v16245_v26 = vld [vmem:[#allocation76_spill] sm:$0xff] }
 0x310   : > { %v9243_v0 = vadd.f32 %v15288_v7, %v9108_v55  ;;  %v9111_v5 = vadd.f32 %v12659_v2, %v8309_v9  ;;  %v12518_v19 = vpop.f32.mrf.mxu0  ;;  %v9506_v2 = vmul.f32 %v9245_v14, %v9245_v14  ;;  %v16246_v9 = vld [vmem:[#allocation72_spill] sm:$0xff] }
 0x311   : > { %v9629_v28 = vadd.f32 %v9628_v60, %v9502_v18  ;;  %v9369_v34 = vadd.f32 %v9368_v22, %v9242_v43  ;;  %v9109_v38 = vadd.f32 %v8948_v59, %v8307_v29  ;;  %v12663_v24 = vpop.f32.mrf.mxu1  ;;  %v8312_v15 = vadd.f32 %v12518_v19, %v16241_v23  ;;  %v16247_v19 = vld [vmem:[#allocation79_spill] sm:$0xff] }
 0x312   : > { %v9246_v54 = vadd.f32 %v15288_v7, %v9111_v5  ;;  %v8159_v62 = vpop.f32.mrf.mxu0  ;;  %v9504_v21 = vmul.f32 %v9243_v0, %v9243_v0 }
 0x313   : > { %v9370_v27 = vadd.f32 %v9369_v34, %v9243_v0  ;;  %v9630_v35 = vadd.f32 %v9629_v28, %v9503_v33  ;;  %v9244_v25 = vadd.f32 %v15288_v7, %v9109_v38  ;;  %v8964_v53 = vpop.f32.mrf.mxu1  ;;  %v8310_v30 = vadd.f32 %v8159_v62, %v16242_v36 }
 0x314   : > { %v11656_v4 = vpack.c.bf16 %v9246_v54, %v9245_v14  ;;  %v12519_v49 = vpop.f32.mrf.mxu0  ;;  %v9114_v57 = vadd.f32 %v12662_v40, %v8312_v15  ;;  %v9507_v46 = vmul.f32 %v9246_v54, %v9246_v54 }
 0x315   : > { %v9631_v41 = vadd.f32 %v9630_v35, %v9504_v21  ;;  %v9371_v17 = vadd.f32 %v9370_v27, %v9244_v25  ;;  %v9505_v6 = vmul.f32 %v9244_v25, %v9244_v25  ;;  %v11651_v13 = vpack.c.bf16 %v9244_v25, %v9243_v0  ;;  %v12666_v1 = vpop.f32.mrf.mxu1 }
 0x316   : > { %11799 = vst [vmem:[%s14958_s9 + $0x1d8] sm:$0xff] %v11656_v4   ;;  %v9112_v10 = vadd.f32 %v8961_v63, %v8310_v30  ;;  %v8313_v8 = vadd.f32 %v12519_v49, %v16243_v52  ;;  %v8162_v37 = vpop.f32.mrf.mxu0  ;;  %v9249_v58 = vadd.f32 %v15288_v7, %v9114_v57 }
 0x317   : > { %v9372_v56 = vadd.f32 %v9371_v17, %v9245_v14  ;;  %v9632_v43 = vadd.f32 %v9631_v41, %v9505_v6  ;;  %11798 = vst [vmem:[%s14958_s9 + $0x1d0] sm:$0xff] %v11651_v13   ;;  %v8311_v39 = vadd.f32 %v8162_v37, %v16244_v42  ;;  %v8977_v47 = vpop.f32.mrf.mxu1  ;;  %v16248_v14 = vld [vmem:[#allocation75_spill] sm:$0xff] }
 0x318   : > { %v9247_v32 = vadd.f32 %v15288_v7, %v9112_v10  ;;  %v9115_v11 = vadd.f32 %v12663_v24, %v8313_v8  ;;  %v12522_v20 = vpop.f32.mrf.mxu0  ;;  %v9510_v34 = vmul.f32 %v9249_v58, %v9249_v58 }
 0x319   : > { %v9633_v59 = vadd.f32 %v9632_v43, %v9506_v2  ;;  %v9373_v48 = vadd.f32 %v9372_v56, %v9246_v54  ;;  %v9113_v31 = vadd.f32 %v8964_v53, %v8311_v39  ;;  %v8316_v44 = vadd.f32 %v12522_v20, %v16245_v26  ;;  %v12667_v22 = vpop.f32.mrf.mxu1 }
 0x31a   : > { %v9250_v45 = vadd.f32 %v15288_v7, %v9115_v11  ;;  %v8175_v12 = vpop.f32.mrf.mxu0  ;;  %v9508_v40 = vmul.f32 %v9247_v32, %v9247_v32 }
 0x31b   : > { %v9374_v51 = vadd.f32 %v9373_v48, %v9247_v32  ;;  %v9634_v16 = vadd.f32 %v9633_v59, %v9507_v46  ;;  %v9248_v55 = vadd.f32 %v15288_v7, %v9113_v31  ;;  %v8314_v61 = vadd.f32 %v8175_v12, %v16246_v9  ;;  %v8980_v62 = vpop.f32.mrf.mxu1 }
 0x31c   : > { %v11666_v50 = vpack.c.bf16 %v9250_v45, %v9249_v58  ;;  %v12523_v18 = vpop.f32.mrf.mxu0  ;;  %v9118_v0 = vadd.f32 %v12666_v1, %v8316_v44  ;;  %v9511_v27 = vmul.f32 %v9250_v45, %v9250_v45 }
 0x31d   : > { %v9635_v60 = vadd.f32 %v9634_v16, %v9508_v40  ;;  %v9375_v3 = vadd.f32 %v9374_v51, %v9248_v55  ;;  %v9509_v29 = vmul.f32 %v9248_v55, %v9248_v55  ;;  %v11661_v63 = vpack.c.bf16 %v9248_v55, %v9247_v32 }
 0x31e   : > { %11801 = vst [vmem:[%s14958_s9 + $0x1e8] sm:$0xff] %v11666_v50   ;;  %v9116_v5 = vadd.f32 %v8977_v47, %v8314_v61  ;;  %v8317_v33 = vadd.f32 %v12523_v18, %v16247_v19  ;;  %v8178_v28 = vpop.f32.mrf.mxu0  ;;  %v9253_v53 = vadd.f32 %v15288_v7, %v9118_v0 }
 0x31f   : > { %v9376_v38 = vadd.f32 %v9375_v3, %v9249_v58  ;;  %v9636_v24 = vadd.f32 %v9635_v60, %v9509_v29  ;;  %11800 = vst [vmem:[%s14958_s9 + $0x1e0] sm:$0xff] %v11661_v63   ;;  %v8315_v54 = vadd.f32 %v8178_v28, %v16248_v14 }
 0x320   : > { %v9251_v23 = vadd.f32 %v15288_v7, %v9116_v5  ;;  %v9119_v15 = vadd.f32 %v12667_v22, %v8317_v33  ;;  %v9514_v10 = vmul.f32 %v9253_v53, %v9253_v53 }
 0x321   : > { %v9637_v21 = vadd.f32 %v9636_v24, %v9510_v34  ;;  %v9377_v35 = vadd.f32 %v9376_v38, %v9250_v45  ;;  %v9117_v25 = vadd.f32 %v8980_v62, %v8315_v54 }
 0x322   : > { %v9254_v4 = vadd.f32 %v15288_v7, %v9119_v15  ;;  %v9512_v30 = vmul.f32 %v9251_v23, %v9251_v23 }
 0x323   : > { %v9378_v36 = vadd.f32 %v9377_v35, %v9251_v23  ;;  %v9638_v49 = vadd.f32 %v9637_v21, %v9511_v27  ;;  %v9252_v41 = vadd.f32 %v15288_v7, %v9117_v25 }
 0x324   : > { %v11676_v17 = vpack.c.bf16 %v9254_v4, %v9253_v53  ;;  %v9515_v37 = vmul.f32 %v9254_v4, %v9254_v4 }
 0x325   : > { %v9639_v6 = vadd.f32 %v9638_v49, %v9512_v30  ;;  %v9379_v13 = vadd.f32 %v9378_v36, %v9252_v41  ;;  %v9513_v1 = vmul.f32 %v9252_v41, %v9252_v41  ;;  %v11671_v57 = vpack.c.bf16 %v9252_v41, %v9251_v23 }
 0x326   : > { %11803 = vst [vmem:[%s14958_s9 + $0x1f8] sm:$0xff] %v11676_v17  }
 0x327   : > { %v9380_v52 = vadd.f32 %v9379_v13, %v9253_v53  ;;  %v9640_v8 = vadd.f32 %v9639_v6, %v9513_v1  ;;  %11802 = vst [vmem:[%s14958_s9 + $0x1f0] sm:$0xff] %v11671_v57  }
 0x329   : > { %v9381_v2 = vadd.f32 %v9380_v52, %v9254_v4  ;;  %v9641_v56 = vadd.f32 %v9640_v8, %v9514_v10 }
 0x32b   : > { %v9382_v43 = vrot.slane %v9381_v2, 4  ;;  %v9642_v42 = vadd.f32 %v9641_v56, %v9515_v37 }
 0x32d   : > { %v9383_v39 = vadd.f32 %v9382_v43, %v9381_v2  ;;  %v9643_v7 = vrot.slane %v9642_v42, 4 }
 0x32f   : > { %v9384_v32 = vrot.slane %v9383_v39, 2  ;;  %v9644_v11 = vadd.f32 %v9643_v7, %v9642_v42 }
 0x331   : > { %v9385_v20 = vadd.f32 %v9384_v32, %v9383_v39  ;;  %v9645_v47 = vrot.slane %v9644_v11, 2 }
 0x333   : > { %v9386_v46 = vrot.slane %v9385_v20, 1  ;;  %v9646_v59 = vadd.f32 %v9645_v47, %v9644_v11 }
 0x335   : > { %v9647_v48 = vrot.slane %v9646_v59, 1  ;;  %v9387_v31 = vadd.f32 %v9386_v46, %v9385_v20 }
 0x337   : > { %v9648_v58 = vadd.f32 %v9647_v48, %v9646_v59 }
 0x339   : > { %v9650_v45 = vsel %vm9649_vm4, %v9387_v31, %v9648_v58 }
 0x33a   : > { %9651 = vst [vmem:[%s265_s15] sm:$0x3] %v9650_v45 }
 0x33b PF: > { %s17_s21 = sadd.s32 1, %s12725_s21  }
 0x33c   : > { %p14_p5 = scmp.ge.s32.totalorder %s17_s21, 4  }
 0x33e   :  { %16 = sbr.rel (!%p14_p5) target bundleno = 1 (0x1), region = 85 }

</bundles_post_ra>
